<compile_context>
chip_gen: v6e
topology: v6e:2x2x1
jax: 0.10.0
libtpu: 0.0.40
codegen_flags: <defaults>
</compile_context>

<pallas_src>
import jax
import jax.numpy as jnp
from jax import lax
from jax.experimental import pallas as pl
from jax.experimental.pallas import tpu as pltpu

SQUARE_K = 3        # see NOTE above (module default 2 breaks the elementwise product)
BAND_K = 11         # band_kernel_size
BN_EPS = 1e-5


def _zpad_hw(a, ph, pw):
    """Zero-pad a (H, W, C) tile along H and W (channels stay on lanes)."""
    h, w, c = a.shape
    if pw:
        zw = jnp.zeros((h, pw, c), a.dtype)
        a = jnp.concatenate([zw, a, zw], axis=1)
    if ph:
        zh = jnp.zeros((ph, a.shape[1], c), a.dtype)
        a = jnp.concatenate([zh, a, zh], axis=0)
    return a


def _zpad_rows(a, p):
    """Zero-pad a (R, C) array along the row axis."""
    z = jnp.zeros((p, a.shape[1]), a.dtype)
    return jnp.concatenate([z, a, z], axis=0)


def rca_kernel(x_ref, w_dw_ref, b_dw_ref, w_e1_ref, bn_s_ref, bn_b_ref,
               w_e2_ref, b_e2_ref, o_ref):
    x = x_ref[...].astype(jnp.float32)          # (H, W, Cb), channels on lanes
    H, W, C = x.shape

    # ---- loc = depthwise SQUARE_K x SQUARE_K conv, zero padding SQUARE_K//2 ----
    pad = SQUARE_K // 2
    xp = _zpad_hw(x, pad, pad)                  # (H+2, W+2, Cb)
    loc = None
    for t in range(SQUARE_K * SQUARE_K):
        di, dj = t // SQUARE_K, t % SQUARE_K
        term = w_dw_ref[t][None, None, :] * xp[di:di + H, dj:dj + W, :]
        loc = term if loc is None else loc + term
    loc = loc + b_dw_ref[0][None, None, :]

    # ---- sge: strip pooling gather ----
    x_h = jnp.mean(x, axis=1)                   # (H, Cb)  == AdaptiveAvgPool2d((None, 1))
    x_w = jnp.mean(x, axis=0)                   # (W, Cb)  == AdaptiveAvgPool2d((1, None))

    # ---- excite[0]: depthwise (1, BAND_K) conv on g = x_h + x_w (separable) ----
    bp = BAND_K // 2
    x_w_pad = _zpad_rows(x_w, bp)               # (W + 2*bp, Cb)
    col = lax.broadcasted_iota(jnp.int32, (W, 1), 0)
    S = None                                    # boundary-aware partial tap sums, (W, Cb)
    cw = None                                   # conv_(1,11)(x_w), (W, Cb)
    for k in range(BAND_K):
        wk = w_e1_ref[k][None, :]               # (1, Cb)
        off = k - bp
        valid = jnp.logical_and(col + off >= 0, col + off <= W - 1)   # (W, 1)
        s_k = jnp.where(valid, wk, 0.0)
        c_k = wk * x_w_pad[k:k + W, :]
        S = s_k if S is None else S + s_k
        cw = c_k if cw is None else cw + c_k
    # conv_(1,11)(g)[i,j,c] = x_h[i,c]*S[j,c] + cw[j,c]; bias b_e1 folded into BN shift.
    h_pre = x_h[:, None, :] * S[None, :, :] + cw[None, :, :]          # (H, W, Cb)

    # ---- excite[1], excite[2]: folded BatchNorm2d (eval) + ReLU ----
    h = jnp.maximum(h_pre * bn_s_ref[0][None, None, :] + bn_b_ref[0][None, None, :], 0.0)

    # ---- excite[3]: depthwise (BAND_K, 1) conv along H, zero padding bp ----
    hp = _zpad_hw(h, bp, 0)                     # (H + 2*bp, W, Cb)
    a = None
    for k in range(BAND_K):
        term = w_e2_ref[k][None, None, :] * hp[k:k + H, :, :]
        a = term if a is None else a + term
    a = a + b_e2_ref[0][None, None, :]

    # ---- excite[4]: Sigmoid; out = att * loc ----
    att = jax.nn.sigmoid(a)
    o_ref[...] = (att * loc).astype(o_ref.dtype)


def rca_forward(x, params):
    N, C, H, W = x.shape

    # Fold eval-mode BatchNorm and the e1 bias into one per-channel scale/shift (glue).
    bn_scale = params["bn_gamma"] / jnp.sqrt(params["bn_var"] + BN_EPS)
    bn_shift = (params["bn_beta"] - params["bn_mean"] * bn_scale
                + bn_scale * params["b_e1"])

    # Channel-last layout: C on the lane axis.
    x_nhwc = jnp.transpose(x, (0, 2, 3, 1))

    # Channel block: lane-dense (multiple of 128) when possible, else full C.
    # Budget sized conservatively for v7x's 64 MiB VMEM (I/O double-buffered + temps).
    budget = 40 * 1024 * 1024

    def _footprint(cb):
        return 16 * H * W * cb * 4

    if C % 128 == 0:
        cb = 128
        while C % (cb * 2) == 0 and _footprint(cb * 2) <= budget:
            cb *= 2
    else:
        cb = C
    vmem_limit = int(min(100 * 1024 * 1024,
                         max(32 * 1024 * 1024, _footprint(cb) + (2 << 20))))

    # Weight tables as (taps, C): one lane vector per tap.
    w_dw = jnp.transpose(params["w_dw"].reshape(C, SQUARE_K * SQUARE_K))   # (9, C)
    w_e1 = jnp.transpose(params["w_e1"])                                   # (11, C)
    w_e2 = jnp.transpose(params["w_e2"])                                   # (11, C)
    vec = lambda v: v.reshape(1, C)

    img_in = pl.BlockSpec((None, H, W, cb), lambda n, cc: (n, 0, 0, cc))
    img_out = pl.BlockSpec((None, H, W, cb), lambda n, cc: (n, 0, 0, cc))

    def tap_spec(t):
        return pl.BlockSpec((t, cb), lambda n, cc: (0, cc))

    out_nhwc = pl.pallas_call(
        rca_kernel,
        out_shape=jax.ShapeDtypeStruct((N, H, W, C), x.dtype),
        grid=(N, C // cb),
        in_specs=[img_in,
                  tap_spec(SQUARE_K * SQUARE_K), tap_spec(1),
                  tap_spec(BAND_K), tap_spec(1), tap_spec(1),
                  tap_spec(BAND_K), tap_spec(1)],
        out_specs=img_out,
        compiler_params=pltpu.CompilerParams(
            dimension_semantics=("parallel", "parallel"),
            vmem_limit_bytes=vmem_limit),
    )(x_nhwc, w_dw, vec(params["b_dw"]), w_e1, vec(bn_scale), vec(bn_shift),
      w_e2, vec(params["b_e2"]))

    return jnp.transpose(out_nhwc, (0, 3, 1, 2))


def rca_reference(x, params):
    """Pure-JAX reference (XLA convs) mirroring the PyTorch forward."""
    N, C, H, W = x.shape
    dn = ("NCHW", "OIHW", "NCHW")
    pad = SQUARE_K // 2
    loc = lax.conv_general_dilated(
        x, params["w_dw"].reshape(C, 1, SQUARE_K, SQUARE_K), (1, 1),
        ((pad, pad), (pad, pad)), dimension_numbers=dn, feature_group_count=C)
    loc = loc + params["b_dw"][None, :, None, None]

    x_h = jnp.mean(x, axis=3, keepdims=True)
    x_w = jnp.mean(x, axis=2, keepdims=True)
    g = x_h + x_w

    bp = BAND_K // 2
    h = lax.conv_general_dilated(
        g, params["w_e1"].reshape(C, 1, 1, BAND_K), (1, 1),
        ((0, 0), (bp, bp)), dimension_numbers=dn, feature_group_count=C)
    h = h + params["b_e1"][None, :, None, None]
    scale = params["bn_gamma"] / jnp.sqrt(params["bn_var"] + BN_EPS)
    shift = params["bn_beta"] - params["bn_mean"] * scale
    h = jnp.maximum(h * scale[None, :, None, None] + shift[None, :, None, None], 0.0)
    h = lax.conv_general_dilated(
        h, params["w_e2"].reshape(C, 1, BAND_K, 1), (1, 1),
        ((bp, bp), (0, 0)), dimension_numbers=dn, feature_group_count=C)
    h = h + params["b_e2"][None, :, None, None]
    att = jax.nn.sigmoid(h)
    return att * loc


if __name__ == "__main__":
    N, C, H, W = 2, 4, 16, 16
    key = jax.random.PRNGKey(0)
    ks = jax.random.split(key, 11)

    x = jax.random.normal(ks[0], (N, C, H, W), jnp.float32)
    params = {
        # dwconv_hw: Conv2d(C, C, 3, padding=1, groups=C)
        "w_dw": 0.3 * jax.random.normal(ks[1], (C, SQUARE_K, SQUARE_K), jnp.float32),
        "b_dw": 0.1 * jax.random.normal(ks[2], (C,), jnp.float32),
        # excite[0]: Conv2d(C, C, (1, 11), padding=(0, 5), groups=C)  (ratio=1 -> gc=C)
        "w_e1": 0.3 * jax.random.normal(ks[3], (C, BAND_K), jnp.float32),
        "b_e1": 0.1 * jax.random.normal(ks[4], (C,), jnp.float32),
        # excite[1]: BatchNorm2d(C) in eval mode
        "bn_gamma": 1.0 + 0.1 * jax.random.normal(ks[5], (C,), jnp.float32),
        "bn_beta": 0.1 * jax.random.normal(ks[6], (C,), jnp.float32),
        "bn_mean": 0.1 * jax.random.normal(ks[7], (C,), jnp.float32),
        "bn_var": 1.0 + 0.1 * jnp.abs(jax.random.normal(ks[8], (C,), jnp.float32)),
        # excite[3]: Conv2d(C, C, (11, 1), padding=(5, 0), groups=C)
        "w_e2": 0.3 * jax.random.normal(ks[9], (C, BAND_K), jnp.float32),
        "b_e2": 0.1 * jax.random.normal(ks[10], (C,), jnp.float32),
    }

    out = jax.block_until_ready(rca_forward(x, params))
    ref = jax.block_until_ready(rca_reference(x, params))
    assert out.shape == (N, C, H, W)
    max_err = float(jnp.max(jnp.abs(out - ref)))
    assert max_err < 1e-4, f"max abs error too large: {max_err}"
    print("KERNEL_OK")
</pallas_src>

<mosaic_0001>
module attributes {stable_mosaic.version = 11 : i64} {
  func.func @rca_kernel(%arg0: i32, %arg1: i32, %arg2: memref<1x16x16x4xf32, #tpu.memory_space<vmem>>, %arg3: memref<9x4xf32, #tpu.memory_space<vmem>>, %arg4: memref<1x4xf32, #tpu.memory_space<vmem>>, %arg5: memref<11x4xf32, #tpu.memory_space<vmem>>, %arg6: memref<1x4xf32, #tpu.memory_space<vmem>>, %arg7: memref<1x4xf32, #tpu.memory_space<vmem>>, %arg8: memref<11x4xf32, #tpu.memory_space<vmem>>, %arg9: memref<1x4xf32, #tpu.memory_space<vmem>>, %arg10: memref<1x16x16x4xf32, #tpu.memory_space<vmem>>) attributes {dimension_semantics = [#tpu.dimension_semantics<parallel>, #tpu.dimension_semantics<parallel>], iteration_bounds = array<i64: 2, 1>, scalar_prefetch = 0 : i64, scratch_operands = 0 : i64, tpu.core_type = #tpu.core_type<tc>, window_params = [{transform_indices = @transform_0, window_bounds = array<i64: 1, 16, 16, 4>}, {transform_indices = @transform_1, window_bounds = array<i64: 9, 4>}, {transform_indices = @transform_2, window_bounds = array<i64: 1, 4>}, {transform_indices = @transform_3, window_bounds = array<i64: 11, 4>}, {transform_indices = @transform_4, window_bounds = array<i64: 1, 4>}, {transform_indices = @transform_5, window_bounds = array<i64: 1, 4>}, {transform_indices = @transform_6, window_bounds = array<i64: 11, 4>}, {transform_indices = @transform_7, window_bounds = array<i64: 1, 4>}, {transform_indices = @transform_8, window_bounds = array<i64: 1, 16, 16, 4>}]} {
    %c0 = arith.constant 0 : index
    %c0_0 = arith.constant 0 : index
    %c0_1 = arith.constant 0 : index
    %c0_2 = arith.constant 0 : index
    %0 = vector.load %arg2[%c0, %c0_0, %c0_1, %c0_2] : memref<1x16x16x4xf32, #tpu.memory_space<vmem>>, vector<1x16x16x4xf32>
    %1 = vector.shape_cast %0 : vector<1x16x16x4xf32> to vector<16x16x4xf32>
    %cst = arith.constant 0.000000e+00 : f32
    %2 = vector.broadcast %cst : f32 to vector<16x1x4xf32>
    %3 = tpu.concatenate %2, %1, %2 in 1 : vector<16x1x4xf32>, vector<16x16x4xf32>, vector<16x1x4xf32> -> vector<16x18x4xf32>
    %cst_3 = arith.constant 0.000000e+00 : f32
    %4 = vector.broadcast %cst_3 : f32 to vector<1x18x4xf32>
    %5 = tpu.concatenate %4, %3, %4 in 0 : vector<1x18x4xf32>, vector<16x18x4xf32>, vector<1x18x4xf32> -> vector<18x18x4xf32>
    %c0_4 = arith.constant 0 : index
    %c0_5 = arith.constant 0 : index
    %6 = vector.load %arg3[%c0_4, %c0_5] : memref<9x4xf32, #tpu.memory_space<vmem>>, vector<1x4xf32>
    %7 = vector.shape_cast %6 : vector<1x4xf32> to vector<4xf32>
    %8 = vector.shape_cast %7 : vector<4xf32> to vector<1x1x4xf32>
    %9 = vector.extract_strided_slice %5 {offsets = [0, 0, 0], sizes = [16, 16, 4], strides = [1, 1, 1]} : vector<18x18x4xf32> to vector<16x16x4xf32>
    %10 = vector.broadcast %8 : vector<1x1x4xf32> to vector<16x16x4xf32>
    %11 = arith.mulf %10, %9 : vector<16x16x4xf32>
    %c1 = arith.constant 1 : index
    %c0_6 = arith.constant 0 : index
    %12 = vector.load %arg3[%c1, %c0_6] : memref<9x4xf32, #tpu.memory_space<vmem>>, vector<1x4xf32>
    %13 = vector.shape_cast %12 : vector<1x4xf32> to vector<4xf32>
    %14 = vector.shape_cast %13 : vector<4xf32> to vector<1x1x4xf32>
    %15 = vector.extract_strided_slice %5 {offsets = [0, 1, 0], sizes = [16, 16, 4], strides = [1, 1, 1]} : vector<18x18x4xf32> to vector<16x16x4xf32>
    %16 = vector.broadcast %14 : vector<1x1x4xf32> to vector<16x16x4xf32>
    %17 = arith.mulf %16, %15 : vector<16x16x4xf32>
    %18 = arith.addf %11, %17 : vector<16x16x4xf32>
    %c2 = arith.constant 2 : index
    %c0_7 = arith.constant 0 : index
    %19 = vector.load %arg3[%c2, %c0_7] : memref<9x4xf32, #tpu.memory_space<vmem>>, vector<1x4xf32>
    %20 = vector.shape_cast %19 : vector<1x4xf32> to vector<4xf32>
    %21 = vector.shape_cast %20 : vector<4xf32> to vector<1x1x4xf32>
    %22 = vector.extract_strided_slice %5 {offsets = [0, 2, 0], sizes = [16, 16, 4], strides = [1, 1, 1]} : vector<18x18x4xf32> to vector<16x16x4xf32>
    %23 = vector.broadcast %21 : vector<1x1x4xf32> to vector<16x16x4xf32>
    %24 = arith.mulf %23, %22 : vector<16x16x4xf32>
    %25 = arith.addf %18, %24 : vector<16x16x4xf32>
    %c3 = arith.constant 3 : index
    %c0_8 = arith.constant 0 : index
    %26 = vector.load %arg3[%c3, %c0_8] : memref<9x4xf32, #tpu.memory_space<vmem>>, vector<1x4xf32>
    %27 = vector.shape_cast %26 : vector<1x4xf32> to vector<4xf32>
    %28 = vector.shape_cast %27 : vector<4xf32> to vector<1x1x4xf32>
    %29 = vector.extract_strided_slice %5 {offsets = [1, 0, 0], sizes = [16, 16, 4], strides = [1, 1, 1]} : vector<18x18x4xf32> to vector<16x16x4xf32>
    %30 = vector.broadcast %28 : vector<1x1x4xf32> to vector<16x16x4xf32>
    %31 = arith.mulf %30, %29 : vector<16x16x4xf32>
    %32 = arith.addf %25, %31 : vector<16x16x4xf32>
    %c4 = arith.constant 4 : index
    %c0_9 = arith.constant 0 : index
    %33 = vector.load %arg3[%c4, %c0_9] : memref<9x4xf32, #tpu.memory_space<vmem>>, vector<1x4xf32>
    %34 = vector.shape_cast %33 : vector<1x4xf32> to vector<4xf32>
    %35 = vector.shape_cast %34 : vector<4xf32> to vector<1x1x4xf32>
    %36 = vector.extract_strided_slice %5 {offsets = [1, 1, 0], sizes = [16, 16, 4], strides = [1, 1, 1]} : vector<18x18x4xf32> to vector<16x16x4xf32>
    %37 = vector.broadcast %35 : vector<1x1x4xf32> to vector<16x16x4xf32>
    %38 = arith.mulf %37, %36 : vector<16x16x4xf32>
    %39 = arith.addf %32, %38 : vector<16x16x4xf32>
    %c5 = arith.constant 5 : index
    %c0_10 = arith.constant 0 : index
    %40 = vector.load %arg3[%c5, %c0_10] : memref<9x4xf32, #tpu.memory_space<vmem>>, vector<1x4xf32>
    %41 = vector.shape_cast %40 : vector<1x4xf32> to vector<4xf32>
    %42 = vector.shape_cast %41 : vector<4xf32> to vector<1x1x4xf32>
    %43 = vector.extract_strided_slice %5 {offsets = [1, 2, 0], sizes = [16, 16, 4], strides = [1, 1, 1]} : vector<18x18x4xf32> to vector<16x16x4xf32>
    %44 = vector.broadcast %42 : vector<1x1x4xf32> to vector<16x16x4xf32>
    %45 = arith.mulf %44, %43 : vector<16x16x4xf32>
    %46 = arith.addf %39, %45 : vector<16x16x4xf32>
    %c6 = arith.constant 6 : index
    %c0_11 = arith.constant 0 : index
    %47 = vector.load %arg3[%c6, %c0_11] : memref<9x4xf32, #tpu.memory_space<vmem>>, vector<1x4xf32>
    %48 = vector.shape_cast %47 : vector<1x4xf32> to vector<4xf32>
    %49 = vector.shape_cast %48 : vector<4xf32> to vector<1x1x4xf32>
    %50 = vector.extract_strided_slice %5 {offsets = [2, 0, 0], sizes = [16, 16, 4], strides = [1, 1, 1]} : vector<18x18x4xf32> to vector<16x16x4xf32>
    %51 = vector.broadcast %49 : vector<1x1x4xf32> to vector<16x16x4xf32>
    %52 = arith.mulf %51, %50 : vector<16x16x4xf32>
    %53 = arith.addf %46, %52 : vector<16x16x4xf32>
    %c7 = arith.constant 7 : index
    %c0_12 = arith.constant 0 : index
    %54 = vector.load %arg3[%c7, %c0_12] : memref<9x4xf32, #tpu.memory_space<vmem>>, vector<1x4xf32>
    %55 = vector.shape_cast %54 : vector<1x4xf32> to vector<4xf32>
    %56 = vector.shape_cast %55 : vector<4xf32> to vector<1x1x4xf32>
    %57 = vector.extract_strided_slice %5 {offsets = [2, 1, 0], sizes = [16, 16, 4], strides = [1, 1, 1]} : vector<18x18x4xf32> to vector<16x16x4xf32>
    %58 = vector.broadcast %56 : vector<1x1x4xf32> to vector<16x16x4xf32>
    %59 = arith.mulf %58, %57 : vector<16x16x4xf32>
    %60 = arith.addf %53, %59 : vector<16x16x4xf32>
    %c8 = arith.constant 8 : index
    %c0_13 = arith.constant 0 : index
    %61 = vector.load %arg3[%c8, %c0_13] : memref<9x4xf32, #tpu.memory_space<vmem>>, vector<1x4xf32>
    %62 = vector.shape_cast %61 : vector<1x4xf32> to vector<4xf32>
    %63 = vector.shape_cast %62 : vector<4xf32> to vector<1x1x4xf32>
    %64 = vector.extract_strided_slice %5 {offsets = [2, 2, 0], sizes = [16, 16, 4], strides = [1, 1, 1]} : vector<18x18x4xf32> to vector<16x16x4xf32>
    %65 = vector.broadcast %63 : vector<1x1x4xf32> to vector<16x16x4xf32>
    %66 = arith.mulf %65, %64 : vector<16x16x4xf32>
    %67 = arith.addf %60, %66 : vector<16x16x4xf32>
    %c0_14 = arith.constant 0 : index
    %c0_15 = arith.constant 0 : index
    %68 = vector.load %arg4[%c0_14, %c0_15] : memref<1x4xf32, #tpu.memory_space<vmem>>, vector<1x4xf32>
    %69 = vector.shape_cast %68 : vector<1x4xf32> to vector<4xf32>
    %70 = vector.shape_cast %69 : vector<4xf32> to vector<1x1x4xf32>
    %71 = vector.broadcast %70 : vector<1x1x4xf32> to vector<16x16x4xf32>
    %72 = arith.addf %67, %71 : vector<16x16x4xf32>
    %cst_16 = arith.constant dense<0.000000e+00> : vector<16x4xf32>
    %73 = vector.multi_reduction <add>, %1, %cst_16 [1] : vector<16x16x4xf32> to vector<16x4xf32>
    %cst_17 = arith.constant 1.600000e+01 : f32
    %74 = vector.broadcast %cst_17 : f32 to vector<16x4xf32>
    %75 = arith.divf %73, %74 : vector<16x4xf32>
    %cst_18 = arith.constant dense<0.000000e+00> : vector<16x4xf32>
    %76 = vector.multi_reduction <add>, %1, %cst_18 [0] : vector<16x16x4xf32> to vector<16x4xf32>
    %cst_19 = arith.constant 1.600000e+01 : f32
    %77 = vector.broadcast %cst_19 : f32 to vector<16x4xf32>
    %78 = arith.divf %76, %77 : vector<16x4xf32>
    %cst_20 = arith.constant 0.000000e+00 : f32
    %79 = vector.broadcast %cst_20 : f32 to vector<5x4xf32>
    %80 = tpu.concatenate %79, %78, %79 in 0 : vector<5x4xf32>, vector<16x4xf32>, vector<5x4xf32> -> vector<26x4xf32>
    %81 = tpu.iota {dimensions = array<i32: 0>} : vector<16x1xi32>
    %c0_21 = arith.constant 0 : index
    %c0_22 = arith.constant 0 : index
    %82 = vector.load %arg5[%c0_21, %c0_22] : memref<11x4xf32, #tpu.memory_space<vmem>>, vector<1x4xf32>
    %83 = vector.shape_cast %82 : vector<1x4xf32> to vector<4xf32>
    %84 = vector.shape_cast %83 : vector<4xf32> to vector<1x4xf32>
    %c-5_i32 = arith.constant -5 : i32
    %85 = vector.broadcast %c-5_i32 : i32 to vector<16x1xi32>
    %86 = arith.addi %81, %85 : vector<16x1xi32>
    %c0_i32 = arith.constant 0 : i32
    %87 = vector.broadcast %c0_i32 : i32 to vector<16x1xi32>
    %88 = arith.cmpi sge, %86, %87 : vector<16x1xi32>
    %c-5_i32_23 = arith.constant -5 : i32
    %89 = vector.broadcast %c-5_i32_23 : i32 to vector<16x1xi32>
    %90 = arith.addi %81, %89 : vector<16x1xi32>
    %c15_i32 = arith.constant 15 : i32
    %91 = vector.broadcast %c15_i32 : i32 to vector<16x1xi32>
    %92 = arith.cmpi sle, %90, %91 : vector<16x1xi32>
    %93 = arith.andi %88, %92 : vector<16x1xi1>
    %cst_24 = arith.constant 0.000000e+00 : f32
    %94 = vector.shape_cast %93 : vector<16x1xi1> to vector<16x1xi1>
    %95 = vector.broadcast %94 : vector<16x1xi1> to vector<16x4xi1>
    %96 = vector.shape_cast %84 : vector<1x4xf32> to vector<1x4xf32>
    %97 = vector.broadcast %96 : vector<1x4xf32> to vector<16x4xf32>
    %98 = vector.broadcast %cst_24 : f32 to vector<16x4xf32>
    %99 = arith.select %95, %97, %98 : vector<16x4xi1>, vector<16x4xf32>
    %100 = vector.extract_strided_slice %80 {offsets = [0, 0], sizes = [16, 4], strides = [1, 1]} : vector<26x4xf32> to vector<16x4xf32>
    %101 = vector.broadcast %84 : vector<1x4xf32> to vector<16x4xf32>
    %102 = arith.mulf %101, %100 : vector<16x4xf32>
    %c1_25 = arith.constant 1 : index
    %c0_26 = arith.constant 0 : index
    %103 = vector.load %arg5[%c1_25, %c0_26] : memref<11x4xf32, #tpu.memory_space<vmem>>, vector<1x4xf32>
    %104 = vector.shape_cast %103 : vector<1x4xf32> to vector<4xf32>
    %105 = vector.shape_cast %104 : vector<4xf32> to vector<1x4xf32>
    %c-4_i32 = arith.constant -4 : i32
    %106 = vector.broadcast %c-4_i32 : i32 to vector<16x1xi32>
    %107 = arith.addi %81, %106 : vector<16x1xi32>
    %c0_i32_27 = arith.constant 0 : i32
    %108 = vector.broadcast %c0_i32_27 : i32 to vector<16x1xi32>
    %109 = arith.cmpi sge, %107, %108 : vector<16x1xi32>
    %c-4_i32_28 = arith.constant -4 : i32
    %110 = vector.broadcast %c-4_i32_28 : i32 to vector<16x1xi32>
    %111 = arith.addi %81, %110 : vector<16x1xi32>
    %c15_i32_29 = arith.constant 15 : i32
    %112 = vector.broadcast %c15_i32_29 : i32 to vector<16x1xi32>
    %113 = arith.cmpi sle, %111, %112 : vector<16x1xi32>
    %114 = arith.andi %109, %113 : vector<16x1xi1>
    %cst_30 = arith.constant 0.000000e+00 : f32
    %115 = vector.shape_cast %114 : vector<16x1xi1> to vector<16x1xi1>
    %116 = vector.broadcast %115 : vector<16x1xi1> to vector<16x4xi1>
    %117 = vector.shape_cast %105 : vector<1x4xf32> to vector<1x4xf32>
    %118 = vector.broadcast %117 : vector<1x4xf32> to vector<16x4xf32>
    %119 = vector.broadcast %cst_30 : f32 to vector<16x4xf32>
    %120 = arith.select %116, %118, %119 : vector<16x4xi1>, vector<16x4xf32>
    %121 = vector.extract_strided_slice %80 {offsets = [1, 0], sizes = [16, 4], strides = [1, 1]} : vector<26x4xf32> to vector<16x4xf32>
    %122 = vector.broadcast %105 : vector<1x4xf32> to vector<16x4xf32>
    %123 = arith.mulf %122, %121 : vector<16x4xf32>
    %124 = arith.addf %99, %120 : vector<16x4xf32>
    %125 = arith.addf %102, %123 : vector<16x4xf32>
    %c2_31 = arith.constant 2 : index
    %c0_32 = arith.constant 0 : index
    %126 = vector.load %arg5[%c2_31, %c0_32] : memref<11x4xf32, #tpu.memory_space<vmem>>, vector<1x4xf32>
    %127 = vector.shape_cast %126 : vector<1x4xf32> to vector<4xf32>
    %128 = vector.shape_cast %127 : vector<4xf32> to vector<1x4xf32>
    %c-3_i32 = arith.constant -3 : i32
    %129 = vector.broadcast %c-3_i32 : i32 to vector<16x1xi32>
    %130 = arith.addi %81, %129 : vector<16x1xi32>
    %c0_i32_33 = arith.constant 0 : i32
    %131 = vector.broadcast %c0_i32_33 : i32 to vector<16x1xi32>
    %132 = arith.cmpi sge, %130, %131 : vector<16x1xi32>
    %c-3_i32_34 = arith.constant -3 : i32
    %133 = vector.broadcast %c-3_i32_34 : i32 to vector<16x1xi32>
    %134 = arith.addi %81, %133 : vector<16x1xi32>
    %c15_i32_35 = arith.constant 15 : i32
    %135 = vector.broadcast %c15_i32_35 : i32 to vector<16x1xi32>
    %136 = arith.cmpi sle, %134, %135 : vector<16x1xi32>
    %137 = arith.andi %132, %136 : vector<16x1xi1>
    %cst_36 = arith.constant 0.000000e+00 : f32
    %138 = vector.shape_cast %137 : vector<16x1xi1> to vector<16x1xi1>
    %139 = vector.broadcast %138 : vector<16x1xi1> to vector<16x4xi1>
    %140 = vector.shape_cast %128 : vector<1x4xf32> to vector<1x4xf32>
    %141 = vector.broadcast %140 : vector<1x4xf32> to vector<16x4xf32>
    %142 = vector.broadcast %cst_36 : f32 to vector<16x4xf32>
    %143 = arith.select %139, %141, %142 : vector<16x4xi1>, vector<16x4xf32>
    %144 = vector.extract_strided_slice %80 {offsets = [2, 0], sizes = [16, 4], strides = [1, 1]} : vector<26x4xf32> to vector<16x4xf32>
    %145 = vector.broadcast %128 : vector<1x4xf32> to vector<16x4xf32>
    %146 = arith.mulf %145, %144 : vector<16x4xf32>
    %147 = arith.addf %124, %143 : vector<16x4xf32>
    %148 = arith.addf %125, %146 : vector<16x4xf32>
    %c3_37 = arith.constant 3 : index
    %c0_38 = arith.constant 0 : index
    %149 = vector.load %arg5[%c3_37, %c0_38] : memref<11x4xf32, #tpu.memory_space<vmem>>, vector<1x4xf32>
    %150 = vector.shape_cast %149 : vector<1x4xf32> to vector<4xf32>
    %151 = vector.shape_cast %150 : vector<4xf32> to vector<1x4xf32>
    %c-2_i32 = arith.constant -2 : i32
    %152 = vector.broadcast %c-2_i32 : i32 to vector<16x1xi32>
    %153 = arith.addi %81, %152 : vector<16x1xi32>
    %c0_i32_39 = arith.constant 0 : i32
    %154 = vector.broadcast %c0_i32_39 : i32 to vector<16x1xi32>
    %155 = arith.cmpi sge, %153, %154 : vector<16x1xi32>
    %c-2_i32_40 = arith.constant -2 : i32
    %156 = vector.broadcast %c-2_i32_40 : i32 to vector<16x1xi32>
    %157 = arith.addi %81, %156 : vector<16x1xi32>
    %c15_i32_41 = arith.constant 15 : i32
    %158 = vector.broadcast %c15_i32_41 : i32 to vector<16x1xi32>
    %159 = arith.cmpi sle, %157, %158 : vector<16x1xi32>
    %160 = arith.andi %155, %159 : vector<16x1xi1>
    %cst_42 = arith.constant 0.000000e+00 : f32
    %161 = vector.shape_cast %160 : vector<16x1xi1> to vector<16x1xi1>
    %162 = vector.broadcast %161 : vector<16x1xi1> to vector<16x4xi1>
    %163 = vector.shape_cast %151 : vector<1x4xf32> to vector<1x4xf32>
    %164 = vector.broadcast %163 : vector<1x4xf32> to vector<16x4xf32>
    %165 = vector.broadcast %cst_42 : f32 to vector<16x4xf32>
    %166 = arith.select %162, %164, %165 : vector<16x4xi1>, vector<16x4xf32>
    %167 = vector.extract_strided_slice %80 {offsets = [3, 0], sizes = [16, 4], strides = [1, 1]} : vector<26x4xf32> to vector<16x4xf32>
    %168 = vector.broadcast %151 : vector<1x4xf32> to vector<16x4xf32>
    %169 = arith.mulf %168, %167 : vector<16x4xf32>
    %170 = arith.addf %147, %166 : vector<16x4xf32>
    %171 = arith.addf %148, %169 : vector<16x4xf32>
    %c4_43 = arith.constant 4 : index
    %c0_44 = arith.constant 0 : index
    %172 = vector.load %arg5[%c4_43, %c0_44] : memref<11x4xf32, #tpu.memory_space<vmem>>, vector<1x4xf32>
    %173 = vector.shape_cast %172 : vector<1x4xf32> to vector<4xf32>
    %174 = vector.shape_cast %173 : vector<4xf32> to vector<1x4xf32>
    %c-1_i32 = arith.constant -1 : i32
    %175 = vector.broadcast %c-1_i32 : i32 to vector<16x1xi32>
    %176 = arith.addi %81, %175 : vector<16x1xi32>
    %c0_i32_45 = arith.constant 0 : i32
    %177 = vector.broadcast %c0_i32_45 : i32 to vector<16x1xi32>
    %178 = arith.cmpi sge, %176, %177 : vector<16x1xi32>
    %c-1_i32_46 = arith.constant -1 : i32
    %179 = vector.broadcast %c-1_i32_46 : i32 to vector<16x1xi32>
    %180 = arith.addi %81, %179 : vector<16x1xi32>
    %c15_i32_47 = arith.constant 15 : i32
    %181 = vector.broadcast %c15_i32_47 : i32 to vector<16x1xi32>
    %182 = arith.cmpi sle, %180, %181 : vector<16x1xi32>
    %183 = arith.andi %178, %182 : vector<16x1xi1>
    %cst_48 = arith.constant 0.000000e+00 : f32
    %184 = vector.shape_cast %183 : vector<16x1xi1> to vector<16x1xi1>
    %185 = vector.broadcast %184 : vector<16x1xi1> to vector<16x4xi1>
    %186 = vector.shape_cast %174 : vector<1x4xf32> to vector<1x4xf32>
    %187 = vector.broadcast %186 : vector<1x4xf32> to vector<16x4xf32>
    %188 = vector.broadcast %cst_48 : f32 to vector<16x4xf32>
    %189 = arith.select %185, %187, %188 : vector<16x4xi1>, vector<16x4xf32>
    %190 = vector.extract_strided_slice %80 {offsets = [4, 0], sizes = [16, 4], strides = [1, 1]} : vector<26x4xf32> to vector<16x4xf32>
    %191 = vector.broadcast %174 : vector<1x4xf32> to vector<16x4xf32>
    %192 = arith.mulf %191, %190 : vector<16x4xf32>
    %193 = arith.addf %170, %189 : vector<16x4xf32>
    %194 = arith.addf %171, %192 : vector<16x4xf32>
    %c5_49 = arith.constant 5 : index
    %c0_50 = arith.constant 0 : index
    %195 = vector.load %arg5[%c5_49, %c0_50] : memref<11x4xf32, #tpu.memory_space<vmem>>, vector<1x4xf32>
    %196 = vector.shape_cast %195 : vector<1x4xf32> to vector<4xf32>
    %197 = vector.shape_cast %196 : vector<4xf32> to vector<1x4xf32>
    %c0_i32_51 = arith.constant 0 : i32
    %198 = vector.broadcast %c0_i32_51 : i32 to vector<16x1xi32>
    %199 = arith.addi %81, %198 : vector<16x1xi32>
    %c0_i32_52 = arith.constant 0 : i32
    %200 = vector.broadcast %c0_i32_52 : i32 to vector<16x1xi32>
    %201 = arith.cmpi sge, %199, %200 : vector<16x1xi32>
    %c0_i32_53 = arith.constant 0 : i32
    %202 = vector.broadcast %c0_i32_53 : i32 to vector<16x1xi32>
    %203 = arith.addi %81, %202 : vector<16x1xi32>
    %c15_i32_54 = arith.constant 15 : i32
    %204 = vector.broadcast %c15_i32_54 : i32 to vector<16x1xi32>
    %205 = arith.cmpi sle, %203, %204 : vector<16x1xi32>
    %206 = arith.andi %201, %205 : vector<16x1xi1>
    %cst_55 = arith.constant 0.000000e+00 : f32
    %207 = vector.shape_cast %206 : vector<16x1xi1> to vector<16x1xi1>
    %208 = vector.broadcast %207 : vector<16x1xi1> to vector<16x4xi1>
    %209 = vector.shape_cast %197 : vector<1x4xf32> to vector<1x4xf32>
    %210 = vector.broadcast %209 : vector<1x4xf32> to vector<16x4xf32>
    %211 = vector.broadcast %cst_55 : f32 to vector<16x4xf32>
    %212 = arith.select %208, %210, %211 : vector<16x4xi1>, vector<16x4xf32>
    %213 = vector.extract_strided_slice %80 {offsets = [5, 0], sizes = [16, 4], strides = [1, 1]} : vector<26x4xf32> to vector<16x4xf32>
    %214 = vector.broadcast %197 : vector<1x4xf32> to vector<16x4xf32>
    %215 = arith.mulf %214, %213 : vector<16x4xf32>
    %216 = arith.addf %193, %212 : vector<16x4xf32>
    %217 = arith.addf %194, %215 : vector<16x4xf32>
    %c6_56 = arith.constant 6 : index
    %c0_57 = arith.constant 0 : index
    %218 = vector.load %arg5[%c6_56, %c0_57] : memref<11x4xf32, #tpu.memory_space<vmem>>, vector<1x4xf32>
    %219 = vector.shape_cast %218 : vector<1x4xf32> to vector<4xf32>
    %220 = vector.shape_cast %219 : vector<4xf32> to vector<1x4xf32>
    %c1_i32 = arith.constant 1 : i32
    %221 = vector.broadcast %c1_i32 : i32 to vector<16x1xi32>
    %222 = arith.addi %81, %221 : vector<16x1xi32>
    %c0_i32_58 = arith.constant 0 : i32
    %223 = vector.broadcast %c0_i32_58 : i32 to vector<16x1xi32>
    %224 = arith.cmpi sge, %222, %223 : vector<16x1xi32>
    %c1_i32_59 = arith.constant 1 : i32
    %225 = vector.broadcast %c1_i32_59 : i32 to vector<16x1xi32>
    %226 = arith.addi %81, %225 : vector<16x1xi32>
    %c15_i32_60 = arith.constant 15 : i32
    %227 = vector.broadcast %c15_i32_60 : i32 to vector<16x1xi32>
    %228 = arith.cmpi sle, %226, %227 : vector<16x1xi32>
    %229 = arith.andi %224, %228 : vector<16x1xi1>
    %cst_61 = arith.constant 0.000000e+00 : f32
    %230 = vector.shape_cast %229 : vector<16x1xi1> to vector<16x1xi1>
    %231 = vector.broadcast %230 : vector<16x1xi1> to vector<16x4xi1>
    %232 = vector.shape_cast %220 : vector<1x4xf32> to vector<1x4xf32>
    %233 = vector.broadcast %232 : vector<1x4xf32> to vector<16x4xf32>
    %234 = vector.broadcast %cst_61 : f32 to vector<16x4xf32>
    %235 = arith.select %231, %233, %234 : vector<16x4xi1>, vector<16x4xf32>
    %236 = vector.extract_strided_slice %80 {offsets = [6, 0], sizes = [16, 4], strides = [1, 1]} : vector<26x4xf32> to vector<16x4xf32>
    %237 = vector.broadcast %220 : vector<1x4xf32> to vector<16x4xf32>
    %238 = arith.mulf %237, %236 : vector<16x4xf32>
    %239 = arith.addf %216, %235 : vector<16x4xf32>
    %240 = arith.addf %217, %238 : vector<16x4xf32>
    %c7_62 = arith.constant 7 : index
    %c0_63 = arith.constant 0 : index
    %241 = vector.load %arg5[%c7_62, %c0_63] : memref<11x4xf32, #tpu.memory_space<vmem>>, vector<1x4xf32>
    %242 = vector.shape_cast %241 : vector<1x4xf32> to vector<4xf32>
    %243 = vector.shape_cast %242 : vector<4xf32> to vector<1x4xf32>
    %c2_i32 = arith.constant 2 : i32
    %244 = vector.broadcast %c2_i32 : i32 to vector<16x1xi32>
    %245 = arith.addi %81, %244 : vector<16x1xi32>
    %c0_i32_64 = arith.constant 0 : i32
    %246 = vector.broadcast %c0_i32_64 : i32 to vector<16x1xi32>
    %247 = arith.cmpi sge, %245, %246 : vector<16x1xi32>
    %c2_i32_65 = arith.constant 2 : i32
    %248 = vector.broadcast %c2_i32_65 : i32 to vector<16x1xi32>
    %249 = arith.addi %81, %248 : vector<16x1xi32>
    %c15_i32_66 = arith.constant 15 : i32
    %250 = vector.broadcast %c15_i32_66 : i32 to vector<16x1xi32>
    %251 = arith.cmpi sle, %249, %250 : vector<16x1xi32>
    %252 = arith.andi %247, %251 : vector<16x1xi1>
    %cst_67 = arith.constant 0.000000e+00 : f32
    %253 = vector.shape_cast %252 : vector<16x1xi1> to vector<16x1xi1>
    %254 = vector.broadcast %253 : vector<16x1xi1> to vector<16x4xi1>
    %255 = vector.shape_cast %243 : vector<1x4xf32> to vector<1x4xf32>
    %256 = vector.broadcast %255 : vector<1x4xf32> to vector<16x4xf32>
    %257 = vector.broadcast %cst_67 : f32 to vector<16x4xf32>
    %258 = arith.select %254, %256, %257 : vector<16x4xi1>, vector<16x4xf32>
    %259 = vector.extract_strided_slice %80 {offsets = [7, 0], sizes = [16, 4], strides = [1, 1]} : vector<26x4xf32> to vector<16x4xf32>
    %260 = vector.broadcast %243 : vector<1x4xf32> to vector<16x4xf32>
    %261 = arith.mulf %260, %259 : vector<16x4xf32>
    %262 = arith.addf %239, %258 : vector<16x4xf32>
    %263 = arith.addf %240, %261 : vector<16x4xf32>
    %c8_68 = arith.constant 8 : index
    %c0_69 = arith.constant 0 : index
    %264 = vector.load %arg5[%c8_68, %c0_69] : memref<11x4xf32, #tpu.memory_space<vmem>>, vector<1x4xf32>
    %265 = vector.shape_cast %264 : vector<1x4xf32> to vector<4xf32>
    %266 = vector.shape_cast %265 : vector<4xf32> to vector<1x4xf32>
    %c3_i32 = arith.constant 3 : i32
    %267 = vector.broadcast %c3_i32 : i32 to vector<16x1xi32>
    %268 = arith.addi %81, %267 : vector<16x1xi32>
    %c0_i32_70 = arith.constant 0 : i32
    %269 = vector.broadcast %c0_i32_70 : i32 to vector<16x1xi32>
    %270 = arith.cmpi sge, %268, %269 : vector<16x1xi32>
    %c3_i32_71 = arith.constant 3 : i32
    %271 = vector.broadcast %c3_i32_71 : i32 to vector<16x1xi32>
    %272 = arith.addi %81, %271 : vector<16x1xi32>
    %c15_i32_72 = arith.constant 15 : i32
    %273 = vector.broadcast %c15_i32_72 : i32 to vector<16x1xi32>
    %274 = arith.cmpi sle, %272, %273 : vector<16x1xi32>
    %275 = arith.andi %270, %274 : vector<16x1xi1>
    %cst_73 = arith.constant 0.000000e+00 : f32
    %276 = vector.shape_cast %275 : vector<16x1xi1> to vector<16x1xi1>
    %277 = vector.broadcast %276 : vector<16x1xi1> to vector<16x4xi1>
    %278 = vector.shape_cast %266 : vector<1x4xf32> to vector<1x4xf32>
    %279 = vector.broadcast %278 : vector<1x4xf32> to vector<16x4xf32>
    %280 = vector.broadcast %cst_73 : f32 to vector<16x4xf32>
    %281 = arith.select %277, %279, %280 : vector<16x4xi1>, vector<16x4xf32>
    %282 = vector.extract_strided_slice %80 {offsets = [8, 0], sizes = [16, 4], strides = [1, 1]} : vector<26x4xf32> to vector<16x4xf32>
    %283 = vector.broadcast %266 : vector<1x4xf32> to vector<16x4xf32>
    %284 = arith.mulf %283, %282 : vector<16x4xf32>
    %285 = arith.addf %262, %281 : vector<16x4xf32>
    %286 = arith.addf %263, %284 : vector<16x4xf32>
    %c9 = arith.constant 9 : index
    %c0_74 = arith.constant 0 : index
    %287 = vector.load %arg5[%c9, %c0_74] : memref<11x4xf32, #tpu.memory_space<vmem>>, vector<1x4xf32>
    %288 = vector.shape_cast %287 : vector<1x4xf32> to vector<4xf32>
    %289 = vector.shape_cast %288 : vector<4xf32> to vector<1x4xf32>
    %c4_i32 = arith.constant 4 : i32
    %290 = vector.broadcast %c4_i32 : i32 to vector<16x1xi32>
    %291 = arith.addi %81, %290 : vector<16x1xi32>
    %c0_i32_75 = arith.constant 0 : i32
    %292 = vector.broadcast %c0_i32_75 : i32 to vector<16x1xi32>
    %293 = arith.cmpi sge, %291, %292 : vector<16x1xi32>
    %c4_i32_76 = arith.constant 4 : i32
    %294 = vector.broadcast %c4_i32_76 : i32 to vector<16x1xi32>
    %295 = arith.addi %81, %294 : vector<16x1xi32>
    %c15_i32_77 = arith.constant 15 : i32
    %296 = vector.broadcast %c15_i32_77 : i32 to vector<16x1xi32>
    %297 = arith.cmpi sle, %295, %296 : vector<16x1xi32>
    %298 = arith.andi %293, %297 : vector<16x1xi1>
    %cst_78 = arith.constant 0.000000e+00 : f32
    %299 = vector.shape_cast %298 : vector<16x1xi1> to vector<16x1xi1>
    %300 = vector.broadcast %299 : vector<16x1xi1> to vector<16x4xi1>
    %301 = vector.shape_cast %289 : vector<1x4xf32> to vector<1x4xf32>
    %302 = vector.broadcast %301 : vector<1x4xf32> to vector<16x4xf32>
    %303 = vector.broadcast %cst_78 : f32 to vector<16x4xf32>
    %304 = arith.select %300, %302, %303 : vector<16x4xi1>, vector<16x4xf32>
    %305 = vector.extract_strided_slice %80 {offsets = [9, 0], sizes = [16, 4], strides = [1, 1]} : vector<26x4xf32> to vector<16x4xf32>
    %306 = vector.broadcast %289 : vector<1x4xf32> to vector<16x4xf32>
    %307 = arith.mulf %306, %305 : vector<16x4xf32>
    %308 = arith.addf %285, %304 : vector<16x4xf32>
    %309 = arith.addf %286, %307 : vector<16x4xf32>
    %c10 = arith.constant 10 : index
    %c0_79 = arith.constant 0 : index
    %310 = vector.load %arg5[%c10, %c0_79] : memref<11x4xf32, #tpu.memory_space<vmem>>, vector<1x4xf32>
    %311 = vector.shape_cast %310 : vector<1x4xf32> to vector<4xf32>
    %312 = vector.shape_cast %311 : vector<4xf32> to vector<1x4xf32>
    %c5_i32 = arith.constant 5 : i32
    %313 = vector.broadcast %c5_i32 : i32 to vector<16x1xi32>
    %314 = arith.addi %81, %313 : vector<16x1xi32>
    %c0_i32_80 = arith.constant 0 : i32
    %315 = vector.broadcast %c0_i32_80 : i32 to vector<16x1xi32>
    %316 = arith.cmpi sge, %314, %315 : vector<16x1xi32>
    %c5_i32_81 = arith.constant 5 : i32
    %317 = vector.broadcast %c5_i32_81 : i32 to vector<16x1xi32>
    %318 = arith.addi %81, %317 : vector<16x1xi32>
    %c15_i32_82 = arith.constant 15 : i32
    %319 = vector.broadcast %c15_i32_82 : i32 to vector<16x1xi32>
    %320 = arith.cmpi sle, %318, %319 : vector<16x1xi32>
    %321 = arith.andi %316, %320 : vector<16x1xi1>
    %cst_83 = arith.constant 0.000000e+00 : f32
    %322 = vector.shape_cast %321 : vector<16x1xi1> to vector<16x1xi1>
    %323 = vector.broadcast %322 : vector<16x1xi1> to vector<16x4xi1>
    %324 = vector.shape_cast %312 : vector<1x4xf32> to vector<1x4xf32>
    %325 = vector.broadcast %324 : vector<1x4xf32> to vector<16x4xf32>
    %326 = vector.broadcast %cst_83 : f32 to vector<16x4xf32>
    %327 = arith.select %323, %325, %326 : vector<16x4xi1>, vector<16x4xf32>
    %328 = vector.extract_strided_slice %80 {offsets = [10, 0], sizes = [16, 4], strides = [1, 1]} : vector<26x4xf32> to vector<16x4xf32>
    %329 = vector.broadcast %312 : vector<1x4xf32> to vector<16x4xf32>
    %330 = arith.mulf %329, %328 : vector<16x4xf32>
    %331 = arith.addf %308, %327 : vector<16x4xf32>
    %332 = arith.addf %309, %330 : vector<16x4xf32>
    %333 = vector.shape_cast %75 : vector<16x4xf32> to vector<16x1x4xf32>
    %334 = vector.shape_cast %331 : vector<16x4xf32> to vector<1x16x4xf32>
    %335 = vector.broadcast %333 : vector<16x1x4xf32> to vector<16x16x4xf32>
    %336 = vector.broadcast %334 : vector<1x16x4xf32> to vector<16x16x4xf32>
    %337 = arith.mulf %335, %336 : vector<16x16x4xf32>
    %338 = vector.shape_cast %332 : vector<16x4xf32> to vector<1x16x4xf32>
    %339 = vector.broadcast %338 : vector<1x16x4xf32> to vector<16x16x4xf32>
    %340 = arith.addf %337, %339 : vector<16x16x4xf32>
    %c0_84 = arith.constant 0 : index
    %c0_85 = arith.constant 0 : index
    %341 = vector.load %arg6[%c0_84, %c0_85] : memref<1x4xf32, #tpu.memory_space<vmem>>, vector<1x4xf32>
    %342 = vector.shape_cast %341 : vector<1x4xf32> to vector<4xf32>
    %343 = vector.shape_cast %342 : vector<4xf32> to vector<1x1x4xf32>
    %344 = vector.broadcast %343 : vector<1x1x4xf32> to vector<16x16x4xf32>
    %345 = arith.mulf %340, %344 : vector<16x16x4xf32>
    %c0_86 = arith.constant 0 : index
    %c0_87 = arith.constant 0 : index
    %346 = vector.load %arg7[%c0_86, %c0_87] : memref<1x4xf32, #tpu.memory_space<vmem>>, vector<1x4xf32>
    %347 = vector.shape_cast %346 : vector<1x4xf32> to vector<4xf32>
    %348 = vector.shape_cast %347 : vector<4xf32> to vector<1x1x4xf32>
    %349 = vector.broadcast %348 : vector<1x1x4xf32> to vector<16x16x4xf32>
    %350 = arith.addf %345, %349 : vector<16x16x4xf32>
    %cst_88 = arith.constant 0.000000e+00 : f32
    %351 = vector.broadcast %cst_88 : f32 to vector<16x16x4xf32>
    %352 = arith.maximumf %350, %351 : vector<16x16x4xf32>
    %cst_89 = arith.constant 0.000000e+00 : f32
    %353 = vector.broadcast %cst_89 : f32 to vector<5x16x4xf32>
    %354 = tpu.concatenate %353, %352, %353 in 0 : vector<5x16x4xf32>, vector<16x16x4xf32>, vector<5x16x4xf32> -> vector<26x16x4xf32>
    %c0_90 = arith.constant 0 : index
    %c0_91 = arith.constant 0 : index
    %355 = vector.load %arg8[%c0_90, %c0_91] : memref<11x4xf32, #tpu.memory_space<vmem>>, vector<1x4xf32>
    %356 = vector.shape_cast %355 : vector<1x4xf32> to vector<4xf32>
    %357 = vector.shape_cast %356 : vector<4xf32> to vector<1x1x4xf32>
    %358 = vector.extract_strided_slice %354 {offsets = [0, 0, 0], sizes = [16, 16, 4], strides = [1, 1, 1]} : vector<26x16x4xf32> to vector<16x16x4xf32>
    %359 = vector.broadcast %357 : vector<1x1x4xf32> to vector<16x16x4xf32>
    %360 = arith.mulf %359, %358 : vector<16x16x4xf32>
    %c1_92 = arith.constant 1 : index
    %c0_93 = arith.constant 0 : index
    %361 = vector.load %arg8[%c1_92, %c0_93] : memref<11x4xf32, #tpu.memory_space<vmem>>, vector<1x4xf32>
    %362 = vector.shape_cast %361 : vector<1x4xf32> to vector<4xf32>
    %363 = vector.shape_cast %362 : vector<4xf32> to vector<1x1x4xf32>
    %364 = vector.extract_strided_slice %354 {offsets = [1, 0, 0], sizes = [16, 16, 4], strides = [1, 1, 1]} : vector<26x16x4xf32> to vector<16x16x4xf32>
    %365 = vector.broadcast %363 : vector<1x1x4xf32> to vector<16x16x4xf32>
    %366 = arith.mulf %365, %364 : vector<16x16x4xf32>
    %367 = arith.addf %360, %366 : vector<16x16x4xf32>
    %c2_94 = arith.constant 2 : index
    %c0_95 = arith.constant 0 : index
    %368 = vector.load %arg8[%c2_94, %c0_95] : memref<11x4xf32, #tpu.memory_space<vmem>>, vector<1x4xf32>
    %369 = vector.shape_cast %368 : vector<1x4xf32> to vector<4xf32>
    %370 = vector.shape_cast %369 : vector<4xf32> to vector<1x1x4xf32>
    %371 = vector.extract_strided_slice %354 {offsets = [2, 0, 0], sizes = [16, 16, 4], strides = [1, 1, 1]} : vector<26x16x4xf32> to vector<16x16x4xf32>
    %372 = vector.broadcast %370 : vector<1x1x4xf32> to vector<16x16x4xf32>
    %373 = arith.mulf %372, %371 : vector<16x16x4xf32>
    %374 = arith.addf %367, %373 : vector<16x16x4xf32>
    %c3_96 = arith.constant 3 : index
    %c0_97 = arith.constant 0 : index
    %375 = vector.load %arg8[%c3_96, %c0_97] : memref<11x4xf32, #tpu.memory_space<vmem>>, vector<1x4xf32>
    %376 = vector.shape_cast %375 : vector<1x4xf32> to vector<4xf32>
    %377 = vector.shape_cast %376 : vector<4xf32> to vector<1x1x4xf32>
    %378 = vector.extract_strided_slice %354 {offsets = [3, 0, 0], sizes = [16, 16, 4], strides = [1, 1, 1]} : vector<26x16x4xf32> to vector<16x16x4xf32>
    %379 = vector.broadcast %377 : vector<1x1x4xf32> to vector<16x16x4xf32>
    %380 = arith.mulf %379, %378 : vector<16x16x4xf32>
    %381 = arith.addf %374, %380 : vector<16x16x4xf32>
    %c4_98 = arith.constant 4 : index
    %c0_99 = arith.constant 0 : index
    %382 = vector.load %arg8[%c4_98, %c0_99] : memref<11x4xf32, #tpu.memory_space<vmem>>, vector<1x4xf32>
    %383 = vector.shape_cast %382 : vector<1x4xf32> to vector<4xf32>
    %384 = vector.shape_cast %383 : vector<4xf32> to vector<1x1x4xf32>
    %385 = vector.extract_strided_slice %354 {offsets = [4, 0, 0], sizes = [16, 16, 4], strides = [1, 1, 1]} : vector<26x16x4xf32> to vector<16x16x4xf32>
    %386 = vector.broadcast %384 : vector<1x1x4xf32> to vector<16x16x4xf32>
    %387 = arith.mulf %386, %385 : vector<16x16x4xf32>
    %388 = arith.addf %381, %387 : vector<16x16x4xf32>
    %c5_100 = arith.constant 5 : index
    %c0_101 = arith.constant 0 : index
    %389 = vector.load %arg8[%c5_100, %c0_101] : memref<11x4xf32, #tpu.memory_space<vmem>>, vector<1x4xf32>
    %390 = vector.shape_cast %389 : vector<1x4xf32> to vector<4xf32>
    %391 = vector.shape_cast %390 : vector<4xf32> to vector<1x1x4xf32>
    %392 = vector.extract_strided_slice %354 {offsets = [5, 0, 0], sizes = [16, 16, 4], strides = [1, 1, 1]} : vector<26x16x4xf32> to vector<16x16x4xf32>
    %393 = vector.broadcast %391 : vector<1x1x4xf32> to vector<16x16x4xf32>
    %394 = arith.mulf %393, %392 : vector<16x16x4xf32>
    %395 = arith.addf %388, %394 : vector<16x16x4xf32>
    %c6_102 = arith.constant 6 : index
    %c0_103 = arith.constant 0 : index
    %396 = vector.load %arg8[%c6_102, %c0_103] : memref<11x4xf32, #tpu.memory_space<vmem>>, vector<1x4xf32>
    %397 = vector.shape_cast %396 : vector<1x4xf32> to vector<4xf32>
    %398 = vector.shape_cast %397 : vector<4xf32> to vector<1x1x4xf32>
    %399 = vector.extract_strided_slice %354 {offsets = [6, 0, 0], sizes = [16, 16, 4], strides = [1, 1, 1]} : vector<26x16x4xf32> to vector<16x16x4xf32>
    %400 = vector.broadcast %398 : vector<1x1x4xf32> to vector<16x16x4xf32>
    %401 = arith.mulf %400, %399 : vector<16x16x4xf32>
    %402 = arith.addf %395, %401 : vector<16x16x4xf32>
    %c7_104 = arith.constant 7 : index
    %c0_105 = arith.constant 0 : index
    %403 = vector.load %arg8[%c7_104, %c0_105] : memref<11x4xf32, #tpu.memory_space<vmem>>, vector<1x4xf32>
    %404 = vector.shape_cast %403 : vector<1x4xf32> to vector<4xf32>
    %405 = vector.shape_cast %404 : vector<4xf32> to vector<1x1x4xf32>
    %406 = vector.extract_strided_slice %354 {offsets = [7, 0, 0], sizes = [16, 16, 4], strides = [1, 1, 1]} : vector<26x16x4xf32> to vector<16x16x4xf32>
    %407 = vector.broadcast %405 : vector<1x1x4xf32> to vector<16x16x4xf32>
    %408 = arith.mulf %407, %406 : vector<16x16x4xf32>
    %409 = arith.addf %402, %408 : vector<16x16x4xf32>
    %c8_106 = arith.constant 8 : index
    %c0_107 = arith.constant 0 : index
    %410 = vector.load %arg8[%c8_106, %c0_107] : memref<11x4xf32, #tpu.memory_space<vmem>>, vector<1x4xf32>
    %411 = vector.shape_cast %410 : vector<1x4xf32> to vector<4xf32>
    %412 = vector.shape_cast %411 : vector<4xf32> to vector<1x1x4xf32>
    %413 = vector.extract_strided_slice %354 {offsets = [8, 0, 0], sizes = [16, 16, 4], strides = [1, 1, 1]} : vector<26x16x4xf32> to vector<16x16x4xf32>
    %414 = vector.broadcast %412 : vector<1x1x4xf32> to vector<16x16x4xf32>
    %415 = arith.mulf %414, %413 : vector<16x16x4xf32>
    %416 = arith.addf %409, %415 : vector<16x16x4xf32>
    %c9_108 = arith.constant 9 : index
    %c0_109 = arith.constant 0 : index
    %417 = vector.load %arg8[%c9_108, %c0_109] : memref<11x4xf32, #tpu.memory_space<vmem>>, vector<1x4xf32>
    %418 = vector.shape_cast %417 : vector<1x4xf32> to vector<4xf32>
    %419 = vector.shape_cast %418 : vector<4xf32> to vector<1x1x4xf32>
    %420 = vector.extract_strided_slice %354 {offsets = [9, 0, 0], sizes = [16, 16, 4], strides = [1, 1, 1]} : vector<26x16x4xf32> to vector<16x16x4xf32>
    %421 = vector.broadcast %419 : vector<1x1x4xf32> to vector<16x16x4xf32>
    %422 = arith.mulf %421, %420 : vector<16x16x4xf32>
    %423 = arith.addf %416, %422 : vector<16x16x4xf32>
    %c10_110 = arith.constant 10 : index
    %c0_111 = arith.constant 0 : index
    %424 = vector.load %arg8[%c10_110, %c0_111] : memref<11x4xf32, #tpu.memory_space<vmem>>, vector<1x4xf32>
    %425 = vector.shape_cast %424 : vector<1x4xf32> to vector<4xf32>
    %426 = vector.shape_cast %425 : vector<4xf32> to vector<1x1x4xf32>
    %427 = vector.extract_strided_slice %354 {offsets = [10, 0, 0], sizes = [16, 16, 4], strides = [1, 1, 1]} : vector<26x16x4xf32> to vector<16x16x4xf32>
    %428 = vector.broadcast %426 : vector<1x1x4xf32> to vector<16x16x4xf32>
    %429 = arith.mulf %428, %427 : vector<16x16x4xf32>
    %430 = arith.addf %423, %429 : vector<16x16x4xf32>
    %c0_112 = arith.constant 0 : index
    %c0_113 = arith.constant 0 : index
    %431 = vector.load %arg9[%c0_112, %c0_113] : memref<1x4xf32, #tpu.memory_space<vmem>>, vector<1x4xf32>
    %432 = vector.shape_cast %431 : vector<1x4xf32> to vector<4xf32>
    %433 = vector.shape_cast %432 : vector<4xf32> to vector<1x1x4xf32>
    %434 = vector.broadcast %433 : vector<1x1x4xf32> to vector<16x16x4xf32>
    %435 = arith.addf %430, %434 : vector<16x16x4xf32>
    %436 = arith.negf %435 : vector<16x16x4xf32>
    %437 = math.exp %436 : vector<16x16x4xf32>
    %cst_114 = arith.constant 1.000000e+00 : f32
    %438 = vector.broadcast %cst_114 : f32 to vector<16x16x4xf32>
    %439 = arith.addf %438, %437 : vector<16x16x4xf32>
    %440 = arith.divf %438, %439 : vector<16x16x4xf32>
    %441 = arith.mulf %440, %72 : vector<16x16x4xf32>
    %c0_115 = arith.constant 0 : index
    %c0_116 = arith.constant 0 : index
    %c0_117 = arith.constant 0 : index
    %c0_118 = arith.constant 0 : index
    %442 = vector.load %arg10[%c0_115, %c0_116, %c0_117, %c0_118] : memref<1x16x16x4xf32, #tpu.memory_space<vmem>>, vector<1x16x16x4xf32>
    %443 = vector.shape_cast %442 : vector<1x16x16x4xf32> to vector<16x16x4xf32>
    %444 = vector.shape_cast %441 : vector<16x16x4xf32> to vector<1x16x16x4xf32>
    tpu.vector_store %arg10[%c0_115, %c0_116, %c0_117, %c0_118], %444 {strides = array<i32>} : memref<1x16x16x4xf32, #tpu.memory_space<vmem>>, vector<1x16x16x4xf32>,
    return
  }
  func.func @transform_0(%arg0: i32, %arg1: i32) -> (i32, i32, i32, i32) {
    %c0_i32 = arith.constant 0 : i32
    %c0_i32_0 = arith.constant 0 : i32
    %c0_i32_1 = arith.constant 0 : i32
    return %arg0, %c0_i32, %c0_i32_0, %arg1 : i32, i32, i32, i32
  }
  func.func @transform_1(%arg0: i32, %arg1: i32) -> (i32, i32) {
    %c0_i32 = arith.constant 0 : i32
    %c0_i32_0 = arith.constant 0 : i32
    return %c0_i32, %arg1 : i32, i32
  }
  func.func @transform_2(%arg0: i32, %arg1: i32) -> (i32, i32) {
    %c0_i32 = arith.constant 0 : i32
    %c0_i32_0 = arith.constant 0 : i32
    return %c0_i32, %arg1 : i32, i32
  }
  func.func @transform_3(%arg0: i32, %arg1: i32) -> (i32, i32) {
    %c0_i32 = arith.constant 0 : i32
    %c0_i32_0 = arith.constant 0 : i32
    return %c0_i32, %arg1 : i32, i32
  }
  func.func @transform_4(%arg0: i32, %arg1: i32) -> (i32, i32) {
    %c0_i32 = arith.constant 0 : i32
    %c0_i32_0 = arith.constant 0 : i32
    return %c0_i32, %arg1 : i32, i32
  }
  func.func @transform_5(%arg0: i32, %arg1: i32) -> (i32, i32) {
    %c0_i32 = arith.constant 0 : i32
    %c0_i32_0 = arith.constant 0 : i32
    return %c0_i32, %arg1 : i32, i32
  }
  func.func @transform_6(%arg0: i32, %arg1: i32) -> (i32, i32) {
    %c0_i32 = arith.constant 0 : i32
    %c0_i32_0 = arith.constant 0 : i32
    return %c0_i32, %arg1 : i32, i32
  }
  func.func @transform_7(%arg0: i32, %arg1: i32) -> (i32, i32) {
    %c0_i32 = arith.constant 0 : i32
    %c0_i32_0 = arith.constant 0 : i32
    return %c0_i32, %arg1 : i32, i32
  }
  func.func @transform_8(%arg0: i32, %arg1: i32) -> (i32, i32, i32, i32) {
    %c0_i32 = arith.constant 0 : i32
    %c0_i32_0 = arith.constant 0 : i32
    %c0_i32_1 = arith.constant 0 : i32
    return %arg0, %c0_i32, %c0_i32_0, %arg1 : i32, i32, i32, i32
  }
}

</mosaic_0001>

<bundles_post_ra>
// kernel: tpu_custom_call.1
= control target key start
LH: loop header
LB: loop body
LE: loop exit
PB: predicated region body
PF: predicated region fallthrough
CT: control target
= control target key end

     0   :  { %s4513_s27 = smov 0   ;;  %s4515_s28 = smov 0   ;;  %s8757_s0 = inlined_call_operand.vmem [shape: f32[2,16,16,4], index: 0, kind: input, shape index: {}]   ;;  %s8758_s1 = inlined_call_operand.vmem [shape: f32[9,4], index: 1, kind: input, shape index: {}]   ;;  %s8759_s2 = inlined_call_operand.vmem [shape: f32[1,4], index: 2, kind: input, shape index: {}]   ;;  %s8760_s3 = inlined_call_operand.vmem [shape: f32[11,4], index: 3, kind: input, shape index: {}]   ;;  %s8761_s4 = inlined_call_operand.vmem [shape: f32[1,4], index: 4, kind: input, shape index: {}]   ;;  %s8762_s5 = inlined_call_operand.vmem [shape: f32[1,4], index: 5, kind: input, shape index: {}]   ;;  %s8763_s6 = inlined_call_operand.vmem [shape: f32[11,4], index: 6, kind: input, shape index: {}]   ;;  %s8764_s7 = inlined_call_operand.vmem [shape: f32[1,4], index: 7, kind: input, shape index: {}]   ;;  %s8765_s8 = inlined_call_operand.vmem [shape: f32[2,16,16,4], index: 8, kind: output, shape index: {}]  }
   0x1   :  { %s4517_s29 = smov 0  }
   0x2 LB: > { %s30_s30 = sadd.s32 1, %s4462_s28  ;;  %p4184_p0 = scmp.ge.s32.totalorder %s4466_s29, 1  ;;  %s4466_s29 = sphi %s4517_s29, %s18_s29   ;;  %s4462_s28 = sphi %s4515_s28, %s10069_s28   ;;  %s4458_s27 = sphi %s4513_s27, %s10068_s27  }
   0x3   : > { %p32_p1 = scmp.ge.s32.totalorder %s30_s30, 2  ;;  %p340_p2 = scmp.lt.s32.totalorder %s4466_s29, 3 }
   0x5   : > { %s10071_s30 = smov (%p32_p1, %s30_s30), 0  ;;  %p341_p3 = pnand %p4184_p0, %p340_p2 }
   0x7   : > { %344 = sbr.rel (%p341_p3) target bundleno = 696 (0x2b8), region = 52 }
   0xc   : > { %p404_p4 = scmp.lt.s32.totalorder %s4458_s27, 1  ;;  %v4536_v0 = vld [vmem:[%s8758_s1 + $0x1] ss:$0 sm:$0xff]  ;;  %v4543_v2 = vld [vmem:[%s8758_s1] ss:$0 sm:$0xff]  ;;  %vm508_vm0 = vcmask 1040384  }
   0xd   : > { %v678_v1 = vmul.f32 0.0, %v4536_v0  ;;  %v4548_v3 = vld [vmem:[%s8758_s1 + $0x2] ss:$0 sm:$0xff]  ;;  %v642_v4 = vmul.f32 0.0, %v4543_v2  ;;  %vm770_vm1 = vcmask 1046528   ;;  %vm1007_vm2 = vcmask 1045504  }
   0xe   : > { %s10073_s27 = smov (!%p404_p4, %s4458_s27), 1  ;;  %8960 = vst [vmem:[#allocation2_spill] sm:$0xff] %v4548_v3  ;;  %v915_v6 = vmul.f32 0.0, %v4548_v3  ;;  %vm2287_vm3 = vcmask 31744   ;;  %vm2483_vm12 = vcmask 1044480   ;;  %vm2651_vm13 = vcmask 1043456  }
   0xf   : > { %s4258_s11 = sshll.u32 %s10073_s27, 8  ;;  %v771_v5 = vrot.slane %v678_v1, 1  ;;  %vm2686_vm14 = vcmask 1042432   ;;  %vm2723_vm15 = vcmask 1041408  }
  0x10   : > { %s4555_s18 = scalar_lea.vmem %s8757_s0, %s4258_s11  ;;  %v1008_v12 = vrot.slane %v915_v6, 2  ;;  %s8591_s17 = scalar_lea.vmem %s8765_s8, %s4258_s11 }
  0x11   : > { %v4560_v7 = vld [vmem:[%s4555_s18] sm:$0xff]  ;;  %v4563_v8 = vld [vmem:[%s4555_s18 + $0x8] sm:$0xff]  ;;  %v4566_v9 = vld [vmem:[%s4555_s18 + $0x10] sm:$0xff]  ;;  %v879_v11 = vadd.f32 %v771_v5, %v642_v4 }
  0x12   : > { %v4569_v10 = vld [vmem:[%s4555_s18 + $0x18] sm:$0xff]  ;;  %v4572_v13 = vld [vmem:[%s4555_s18 + $0x20] sm:$0xff]  ;;  %v4575_v14 = vld [vmem:[%s4555_s18 + $0x28] sm:$0xff]  ;;  %v509_v16 = vrot.slane %v4560_v7, 7  ;;  %v510_v17 = vrot.slane %v4563_v8, 7  ;;  %v512_v21 = vrot.slane %v4566_v9, 7 }
  0x13   : > { %v4578_v15 = vld [vmem:[%s4555_s18 + $0x30] sm:$0xff]  ;;  %v4583_v18 = vld [vmem:[%s4555_s18 + $0x38] sm:$0xff]  ;;  %v4586_v19 = vld [vmem:[%s4555_s18 + $0x40] sm:$0xff]  ;;  %v513_v22 = vrot.slane %v4569_v10, 7  ;;  %v515_v26 = vrot.slane %v4572_v13, 7  ;;  %v516_v27 = vrot.slane %v4575_v14, 7  ;;  %v4617_v35 = vadd.f32 %v1008_v12, %v879_v11 }
  0x14   : > { %v4589_v20 = vld [vmem:[%s4555_s18 + $0x48] sm:$0xff]  ;;  %v4594_v23 = vld [vmem:[%s4555_s18 + $0x50] sm:$0xff]  ;;  %v4597_v24 = vld [vmem:[%s4555_s18 + $0x58] sm:$0xff]  ;;  %v518_v28 = vrot.slane %v4578_v15, 7  ;;  %v519_v32 = vrot.slane %v4583_v18, 7  ;;  %v521_v33 = vrot.slane %v4586_v19, 7  ;;  %v4631_v39 = vsel %vm508_vm0, %v509_v16, %v510_v17 }
  0x15   : > { %v4600_v25 = vld [vmem:[%s4555_s18 + $0x60] sm:$0xff]  ;;  %v4606_v29 = vld [vmem:[%s4555_s18 + $0x68] sm:$0xff]  ;;  %v4609_v30 = vld [vmem:[%s4555_s18 + $0x70] sm:$0xff]  ;;  %v522_v34 = vrot.slane %v4589_v20, 7  ;;  %8961 = vst [vmem:[#allocation3_spill] sm:$0xff] %v4617_v35  ;;  %v524_v40 = vrot.slane %v4594_v23, 7  ;;  %v4648_v46 = vsel %vm508_vm0, %v512_v21, %v513_v22  ;;  %v4663_v53 = vsel %vm508_vm0, %v515_v26, %v516_v27 }
  0x16   : > { %v4612_v31 = vld [vmem:[%s4555_s18 + $0x78] sm:$0xff]  ;;  %v4620_v36 = vld [vmem:[%s4555_s18 + $0x80] sm:$0xff]  ;;  %v4623_v37 = vld [vmem:[%s4555_s18 + $0x88] sm:$0xff]  ;;  %8962 = vst [vmem:[#allocation4_spill] sm:$0xff] %v4631_v39  ;;  %v8768_v41 = vrot.slane %v4597_v24, 7  ;;  %v527_v42 = vrot.slane %v4600_v25, 7  ;;  %v4675_v60 = vsel %vm508_vm0, %v518_v28, %v519_v32 }
  0x17   : > { %v462_v38 = vld [vmem:[%s4555_s18 + $0x90] sm:$0xff]  ;;  %v4637_v43 = vld [vmem:[%s4555_s18 + $0x98] sm:$0xff]  ;;  %v464_v44 = vld [vmem:[%s4555_s18 + $0xa0] sm:$0xff]  ;;  %8963 = vst [vmem:[#allocation5_spill] sm:$0xff] %v4648_v46  ;;  %v8767_v47 = vrot.slane %v4606_v29, 7  ;;  %v530_v48 = vrot.slane %v4609_v30, 7 }
  0x18   : > { %v4641_v45 = vld [vmem:[%s4555_s18 + $0xa8] sm:$0xff]  ;;  %v8766_v49 = vrot.slane %v4612_v31, 7  ;;  %v466_v50 = vld [vmem:[%s4555_s18 + $0xb0] sm:$0xff]  ;;  %v4655_v51 = vld [vmem:[%s4555_s18 + $0xb8] sm:$0xff]  ;;  %8964 = vst [vmem:[#allocation6_spill] sm:$0xff] %v4663_v53  ;;  %v533_v54 = vrot.slane %v4620_v36, 7 }
  0x19   : > { %v468_v52 = vld [vmem:[%s4555_s18 + $0xc0] sm:$0xff]  ;;  %v534_v55 = vrot.slane %v4623_v37, 7  ;;  %v536_v56 = vrot.slane %v462_v38, 7  ;;  %v469_v57 = vld [vmem:[%s4555_s18 + $0xc8] sm:$0xff]  ;;  %v470_v58 = vld [vmem:[%s4555_s18 + $0xd0] sm:$0xff]  ;;  %8965 = vst [vmem:[#allocation7_spill] sm:$0xff] %v4675_v60  ;;  %v4687_v38 = vsel %vm508_vm0, %v521_v33, %v522_v34 }
  0x1a   : > { %v471_v59 = vld [vmem:[%s4555_s18 + $0xd8] sm:$0xff]  ;;  %v537_v61 = vrot.slane %v4637_v43, 7  ;;  %v539_v62 = vrot.slane %v464_v44, 7  ;;  %v540_v63 = vrot.slane %v4641_v45, 7  ;;  %v472_v1 = vld [vmem:[%s4555_s18 + $0xe0] sm:$0xff]  ;;  %v473_v4 = vld [vmem:[%s4555_s18 + $0xe8] sm:$0xff]  ;;  %v4692_v43 = vsel %vm508_vm0, %v524_v40, %v8768_v41 }
  0x1b   : > { %v542_v5 = vrot.slane %v466_v50, 7  ;;  %v543_v6 = vrot.slane %v4655_v51, 7  ;;  %v545_v11 = vrot.slane %v468_v52, 7  ;;  %v546_v12 = vrot.slane %v469_v57, 7  ;;  %v474_v19 = vld [vmem:[%s4555_s18 + $0xf0] sm:$0xff]  ;;  %v475_v23 = vld [vmem:[%s4555_s18 + $0xf8] sm:$0xff] }
  0x1c   : > { %v548_v25 = vrot.slane %v470_v58, 7  ;;  %v549_v30 = vrot.slane %v471_v59, 7  ;;  %v551_v36 = vrot.slane %v472_v1, 7  ;;  %v552_v37 = vrot.slane %v473_v4, 7  ;;  %8966 = vst [vmem:[#allocation8_spill] sm:$0xff] %v4687_v38  ;;  %8967 = vst [vmem:[#allocation9_spill] sm:$0xff] %v4692_v43 }
  0x1d   : > { %v554_v44 = vrot.slane %v474_v19, 7  ;;  %v555_v45 = vrot.slane %v475_v23, 7  ;;  %v4697_v50 = vsel %vm508_vm0, %v527_v42, %v8767_v47  ;;  %v4702_v51 = vsel %vm508_vm0, %v530_v48, %v8766_v49 }
  0x1e   : > { %8968 = vst [vmem:[#allocation10_spill] sm:$0xff] %v4697_v50  ;;  %8969 = vst [vmem:[#allocation11_spill] sm:$0xff] %v4702_v51  ;;  %v4705_v52 = vsel %vm508_vm0, %v533_v54, %v534_v55  ;;  %v4708_v57 = vsel %vm508_vm0, %v536_v56, %v537_v61  ;;  %v4711_v58 = vsel %vm508_vm0, %v539_v62, %v540_v63  ;;  %v4722_v4 = vsel %vm508_vm0, 0.0, %v509_v16 }
  0x1f   : > { %8970 = vst [vmem:[#allocation12_spill] sm:$0xff] %v4705_v52  ;;  %8971 = vst [vmem:[#allocation13_spill] sm:$0xff] %v4708_v57  ;;  %v4714_v59 = vsel %vm508_vm0, %v542_v5, %v543_v6  ;;  %v4717_v1 = vsel %vm508_vm0, %v545_v11, %v546_v12  ;;  %v4725_v19 = vsel %vm508_vm0, %v548_v25, %v549_v30  ;;  %v4733_v49 = vsel %vm508_vm0, 0.0, %v512_v21 }
  0x20   : > { %8972 = vst [vmem:[#allocation14_spill] sm:$0xff] %v4711_v58  ;;  %8973 = vst [vmem:[#allocation15_spill] sm:$0xff] %v4714_v59  ;;  %v4728_v23 = vsel %vm508_vm0, %v551_v36, %v552_v37  ;;  %v4738_v47 = vsel %vm508_vm0, 0.0, %v515_v26  ;;  %v4741_v7 = vsel %vm508_vm0, %v554_v44, %v555_v45  ;;  %v4746_v16 = vsel %vm508_vm0, 0.0, %v518_v28 }
  0x21   : > { %8974 = vst [vmem:[#allocation16_spill] sm:$0xff] %v4717_v1  ;;  %8975 = vst [vmem:[#allocation17_spill] sm:$0xff] %v4722_v4  ;;  %v4749_v41 = vsel %vm508_vm0, 0.0, %v521_v33  ;;  %v4752_v9 = vsel %vm508_vm0, 0.0, %v524_v40  ;;  %v4755_v21 = vsel %vm508_vm0, 0.0, %v527_v42  ;;  %v4758_v13 = vsel %vm508_vm0, 0.0, %v530_v48 }
  0x22   : > { %8976 = vst [vmem:[#allocation18_spill] sm:$0xff] %v4725_v19  ;;  %8977 = vst [vmem:[#allocation19_spill] sm:$0xff] %v4728_v23  ;;  %v4761_v26 = vsel %vm508_vm0, 0.0, %v533_v54  ;;  %v4764_v15 = vsel %vm508_vm0, 0.0, %v536_v56  ;;  %v4767_v28 = vsel %vm508_vm0, 0.0, %v539_v62  ;;  %v4770_v33 = vsel %vm508_vm0, 0.0, %v542_v5 }
  0x23   : > { %8978 = vst [vmem:[#allocation20_spill] sm:$0xff] %v4733_v49  ;;  %8979 = vst [vmem:[#allocation21_spill] sm:$0xff] %v4738_v47  ;;  %v4773_v40 = vsel %vm508_vm0, 0.0, %v545_v11  ;;  %v4776_v42 = vsel %vm508_vm0, 0.0, %v548_v25  ;;  %v4779_v48 = vsel %vm508_vm0, 0.0, %v551_v36  ;;  %v4782_v54 = vsel %vm508_vm0, 0.0, %v554_v44 }
  0x24   : > { %8980 = vst [vmem:[#allocation22_spill] sm:$0xff] %v4741_v7  ;;  %8981 = vst [vmem:[#allocation23_spill] sm:$0xff] %v4746_v16  ;;  %v4787_v56 = vsel %vm508_vm0, %v510_v17, 0.0  ;;  %v4792_v62 = vsel %vm508_vm0, %v513_v22, 0.0  ;;  %v4797_v5 = vsel %vm508_vm0, %v516_v27, 0.0  ;;  %v4802_v11 = vsel %vm508_vm0, %v519_v32, 0.0 }
  0x25   : > { %8982 = vst [vmem:[#allocation24_spill] sm:$0xff] %v4749_v41  ;;  %8983 = vst [vmem:[#allocation25_spill] sm:$0xff] %v4752_v9  ;;  %v4807_v8 = vsel %vm508_vm0, %v522_v34, 0.0  ;;  %v8999_v10 = vrot.slane %v4597_v24, 7  ;;  %v9001_v14 = vrot.slane %v4606_v29, 7  ;;  %v9003_v18 = vrot.slane %v4612_v31, 7 }
  0x26   : > { %8984 = vst [vmem:[#allocation26_spill] sm:$0xff] %v4755_v21  ;;  %8985 = vst [vmem:[#allocation27_spill] sm:$0xff] %v4758_v13  ;;  %v4825_v20 = vsel %vm508_vm0, %v534_v55, 0.0  ;;  %v4828_v32 = vsel %vm508_vm0, %v537_v61, 0.0  ;;  %v4831_v24 = vsel %vm508_vm0, %v540_v63, 0.0  ;;  %v4834_v34 = vsel %vm508_vm0, %v543_v6, 0.0 }
  0x27   : > { %8986 = vst [vmem:[#allocation28_spill] sm:$0xff] %v4761_v26  ;;  %8987 = vst [vmem:[#allocation29_spill] sm:$0xff] %v4764_v15  ;;  %v4812_v17 = vsel %vm508_vm0, %v8999_v10, 0.0  ;;  %v4817_v22 = vsel %vm508_vm0, %v9001_v14, 0.0  ;;  %v4822_v27 = vsel %vm508_vm0, %v9003_v18, 0.0  ;;  %v4837_v29 = vsel %vm508_vm0, %v546_v12, 0.0 }
  0x28   : > { %8988 = vst [vmem:[#allocation30_spill] sm:$0xff] %v4767_v28  ;;  %8989 = vst [vmem:[#allocation31_spill] sm:$0xff] %v4770_v33  ;;  %v4840_v31 = vsel %vm508_vm0, %v549_v30, 0.0  ;;  %v4843_v25 = vsel %vm508_vm0, %v552_v37, 0.0  ;;  %v4846_v55 = vsel %vm508_vm0, %v555_v45, 0.0  ;;  %v4850_v61 = vmul.f32 %v4543_v2, %v4722_v4 }
  0x29   : > { %8990 = vst [vmem:[#allocation32_spill] sm:$0xff] %v4773_v40  ;;  %8991 = vst [vmem:[#allocation33_spill] sm:$0xff] %v4776_v42  ;;  %v4854_v63 = vmul.f32 %v4543_v2, %v4631_v39  ;;  %v4858_v6 = vmul.f32 %v4543_v2, %v4733_v49  ;;  %v4862_v12 = vmul.f32 %v4543_v2, %v4648_v46 }
  0x2a   : > { %8992 = vst [vmem:[#allocation34_spill] sm:$0xff] %v4779_v48  ;;  %8993 = vst [vmem:[#allocation35_spill] sm:$0xff] %v4782_v54  ;;  %v4866_v30 = vmul.f32 %v4543_v2, %v4738_v47  ;;  %v4870_v36 = vmul.f32 %v4543_v2, %v4663_v53  ;;  %v4874_v37 = vmul.f32 %v4543_v2, %v4746_v16 }
  0x2b   : > { %8994 = vst [vmem:[#allocation36_spill] sm:$0xff] %v4787_v56  ;;  %8995 = vst [vmem:[#allocation37_spill] sm:$0xff] %v4792_v62  ;;  %v4878_v44 = vmul.f32 %v4543_v2, %v4675_v60  ;;  %v4882_v45 = vmul.f32 %v4543_v2, %v4749_v41  ;;  %v4886_v10 = vmul.f32 %v4543_v2, %v4687_v38 }
  0x2c   : > { %8996 = vst [vmem:[#allocation38_spill] sm:$0xff] %v4797_v5  ;;  %8997 = vst [vmem:[#allocation39_spill] sm:$0xff] %v4802_v11  ;;  %v4890_v14 = vmul.f32 %v4543_v2, %v4752_v9  ;;  %v4894_v18 = vmul.f32 %v4543_v2, %v4692_v43  ;;  %v4902_v35 = vmul.f32 %v4543_v2, %v4697_v50 }
  0x2d   : > { %8998 = vst [vmem:[#allocation40_spill] sm:$0xff] %v4807_v8  ;;  %9000 = vst [vmem:[#allocation41_spill] sm:$0xff] %v4812_v17  ;;  %v4906_v7 = vmul.f32 %v4543_v2, %v4758_v13  ;;  %v4910_v54 = vmul.f32 %v4543_v2, %v4702_v51  ;;  %v4914_v3 = vmul.f32 %v4543_v2, %v4761_v26 }
  0x2e   : > { %9002 = vst [vmem:[#allocation42_spill] sm:$0xff] %v4817_v22  ;;  %9004 = vst [vmem:[#allocation43_spill] sm:$0xff] %v4822_v27 }
  0x2f   : > { %9005 = vst [vmem:[#allocation44_spill] sm:$0xff] %v4825_v20  ;;  %9006 = vst [vmem:[#allocation45_spill] sm:$0xff] %v4828_v32 }
  0x30   : > { %9007 = vst [vmem:[#allocation46_spill] sm:$0xff] %v4831_v24  ;;  %9008 = vst [vmem:[#allocation47_spill] sm:$0xff] %v4834_v34 }
  0x31   : > { %9009 = vst [vmem:[#allocation48_spill] sm:$0xff] %v4837_v29  ;;  %9010 = vst [vmem:[#allocation49_spill] sm:$0xff] %v4840_v31 }
  0x32   : > { %9011 = vst [vmem:[#allocation50_spill] sm:$0xff] %v4843_v25  ;;  %9012 = vst [vmem:[#allocation51_spill] sm:$0xff] %v4846_v55  ;;  %v4898_v55 = vmul.f32 %v4543_v2, %v4755_v21 }
  0x33   : > { %9013 = vst [vmem:[#allocation52_spill] sm:$0xff] %v4886_v10  ;;  %9014 = vst [vmem:[#allocation53_spill] sm:$0xff] %v4890_v14  ;;  %v5112_v14 = vmul.f32 %v4536_v0, %v4717_v1 }
  0x34   : > { %9015 = vst [vmem:[#allocation54_spill] sm:$0xff] %v4894_v18  ;;  %9016 = vst [vmem:[#allocation55_spill] sm:$0xff] %v4898_v55  ;;  %v4918_v18 = vmul.f32 %v4543_v2, %v4705_v52  ;;  %v4922_v55 = vmul.f32 %v4543_v2, %v4764_v15 }
  0x35   : > { %9017 = vst [vmem:[#allocation56_spill] sm:$0xff] %v4902_v35  ;;  %9018 = vst [vmem:[#allocation57_spill] sm:$0xff] %v4906_v7  ;;  %v4926_v35 = vmul.f32 %v4543_v2, %v4708_v57  ;;  %v4930_v7 = vmul.f32 %v4543_v2, %v4767_v28 }
  0x36   : > { %9019 = vst [vmem:[#allocation58_spill] sm:$0xff] %v4910_v54  ;;  %9020 = vst [vmem:[#allocation59_spill] sm:$0xff] %v4914_v3  ;;  %v4934_v54 = vmul.f32 %v4543_v2, %v4711_v58  ;;  %v4938_v3 = vmul.f32 %v4543_v2, %v4770_v33 }
  0x37   : > { %9021 = vst [vmem:[#allocation60_spill] sm:$0xff] %v4918_v18  ;;  %9022 = vst [vmem:[#allocation61_spill] sm:$0xff] %v4922_v55  ;;  %v4942_v18 = vmul.f32 %v4543_v2, %v4714_v59  ;;  %v4946_v55 = vmul.f32 %v4543_v2, %v4773_v40 }
  0x38   : > { %9023 = vst [vmem:[#allocation62_spill] sm:$0xff] %v4926_v35  ;;  %9024 = vst [vmem:[#allocation63_spill] sm:$0xff] %v4930_v7  ;;  %v4950_v35 = vmul.f32 %v4543_v2, %v4717_v1  ;;  %v4954_v7 = vmul.f32 %v4543_v2, %v4776_v42 }
  0x39   : > { %9025 = vst [vmem:[#allocation64_spill] sm:$0xff] %v4934_v54  ;;  %9026 = vst [vmem:[#allocation65_spill] sm:$0xff] %v4938_v3  ;;  %v4958_v54 = vmul.f32 %v4543_v2, %v4725_v19  ;;  %v4962_v3 = vmul.f32 %v4543_v2, %v4779_v48 }
  0x3a   : > { %9027 = vst [vmem:[#allocation66_spill] sm:$0xff] %v4942_v18  ;;  %9028 = vst [vmem:[#allocation67_spill] sm:$0xff] %v4946_v55  ;;  %v4966_v18 = vmul.f32 %v4543_v2, %v4728_v23  ;;  %v679_v55 = vmul.f32 %v4536_v0, %v4722_v4  ;;  %v4984_v2 = vmul.f32 %v4536_v0, %v4792_v62 }
  0x3b   : > { %9029 = vst [vmem:[#allocation68_spill] sm:$0xff] %v4950_v35  ;;  %9030 = vst [vmem:[#allocation69_spill] sm:$0xff] %v4954_v7  ;;  %v680_v35 = vmul.f32 %v4536_v0, %v4631_v39  ;;  %v681_v7 = vmul.f32 %v4536_v0, %v4787_v56  ;;  %v4988_v4 = vmul.f32 %v4536_v0, %v4738_v47 }
  0x3c   : > { %9031 = vst [vmem:[#allocation70_spill] sm:$0xff] %v4958_v54  ;;  %9032 = vst [vmem:[#allocation71_spill] sm:$0xff] %v4962_v3  ;;  %v4976_v54 = vmul.f32 %v4536_v0, %v4733_v49  ;;  %v4980_v3 = vmul.f32 %v4536_v0, %v4648_v46  ;;  %v4992_v39 = vmul.f32 %v4536_v0, %v4663_v53  ;;  %v773_v56 = vrot.slane %v679_v55, 1 }
  0x3d   : > { %9033 = vst [vmem:[#allocation72_spill] sm:$0xff] %v4966_v18  ;;  %v4996_v49 = vmul.f32 %v4536_v0, %v4797_v5  ;;  %v5000_v46 = vmul.f32 %v4536_v0, %v4746_v16  ;;  %v5004_v62 = vmul.f32 %v4536_v0, %v4675_v60  ;;  %v5008_v47 = vmul.f32 %v4536_v0, %v4802_v11 }
  0x3e   : > { %v5012_v53 = vmul.f32 %v4536_v0, %v4749_v41  ;;  %v5016_v5 = vmul.f32 %v4536_v0, %v4687_v38  ;;  %v5020_v16 = vmul.f32 %v4536_v0, %v4807_v8  ;;  %v5024_v60 = vmul.f32 %v4536_v0, %v4752_v9 }
  0x3f   : > { %v5028_v11 = vmul.f32 %v4536_v0, %v4692_v43  ;;  %v5032_v41 = vmul.f32 %v4536_v0, %v4812_v17  ;;  %v5036_v38 = vmul.f32 %v4536_v0, %v4755_v21  ;;  %v5040_v8 = vmul.f32 %v4536_v0, %v4697_v50 }
  0x40   : > { %v5044_v9 = vmul.f32 %v4536_v0, %v4817_v22  ;;  %v5048_v43 = vmul.f32 %v4536_v0, %v4758_v13  ;;  %v5052_v17 = vmul.f32 %v4536_v0, %v4702_v51  ;;  %v5056_v21 = vmul.f32 %v4536_v0, %v4822_v27 }
  0x41   : > { %v5060_v50 = vmul.f32 %v4536_v0, %v4761_v26  ;;  %v5064_v22 = vmul.f32 %v4536_v0, %v4705_v52  ;;  %v5068_v13 = vmul.f32 %v4536_v0, %v4825_v20  ;;  %v5072_v51 = vmul.f32 %v4536_v0, %v4764_v15 }
  0x42   : > { %v5076_v27 = vmul.f32 %v4536_v0, %v4708_v57  ;;  %v5080_v26 = vmul.f32 %v4536_v0, %v4828_v32  ;;  %v5084_v52 = vmul.f32 %v4536_v0, %v4767_v28  ;;  %v5088_v20 = vmul.f32 %v4536_v0, %v4711_v58 }
  0x43   : > { %v5092_v15 = vmul.f32 %v4536_v0, %v4831_v24  ;;  %v5096_v57 = vmul.f32 %v4536_v0, %v4770_v33  ;;  %v5100_v32 = vmul.f32 %v4536_v0, %v4714_v59  ;;  %v5104_v28 = vmul.f32 %v4536_v0, %v4834_v34 }
  0x44   : > { %v5108_v58 = vmul.f32 %v4536_v0, %v4773_v40  ;;  %v774_v18 = vrot.slane %v680_v35, 1  ;;  %v776_v24 = vrot.slane %v681_v7, 1  ;;  %v5116_v33 = vmul.f32 %v4536_v0, %v4837_v29 }
  0x45   : > { %v5120_v59 = vmul.f32 %v4536_v0, %v4776_v42  ;;  %v5124_v34 = vmul.f32 %v4536_v0, %v4725_v19  ;;  %v5128_v35 = vmul.f32 %v4536_v0, %v4840_v31  ;;  %v5132_v7 = vmul.f32 %v4536_v0, %v4779_v48 }
  0x46   : > { %v5136_v55 = vmul.f32 %v4536_v0, %v4728_v23  ;;  %v5140_v42 = vmul.f32 %v4536_v0, %v4843_v25  ;;  %v778_v29 = vrot.slane %v4976_v54, 1  ;;  %v779_v19 = vrot.slane %v4980_v3, 1 }
  0x47   : > { %v781_v1 = vrot.slane %v4984_v2, 1  ;;  %v783_v31 = vrot.slane %v4988_v4, 1  ;;  %v5147_v40 = vsel %vm770_vm1, %v773_v56, %v774_v18  ;;  %v5150_v48 = vsel %vm770_vm1, %v774_v18, %v776_v24 }
  0x48   : > { %v784_v23 = vrot.slane %v4992_v39, 1  ;;  %v786_v10 = vrot.slane %v4996_v49, 1  ;;  %v788_v0 = vrot.slane %v5000_v46, 1  ;;  %v789_v54 = vrot.slane %v5004_v62, 1 }
  0x49   : > { %v791_v3 = vrot.slane %v5008_v47, 1  ;;  %v793_v2 = vrot.slane %v5012_v53, 1  ;;  %v794_v4 = vrot.slane %v5016_v5, 1  ;;  %v796_v56 = vrot.slane %v5020_v16, 1 }
  0x4a   : > { %v798_v25 = vrot.slane %v5024_v60, 1  ;;  %v799_v24 = vrot.slane %v5028_v11, 1  ;;  %v801_v39 = vrot.slane %v5032_v41, 1  ;;  %v803_v49 = vrot.slane %v5036_v38, 1 }
  0x4b   : > { %v804_v46 = vrot.slane %v5040_v8, 1  ;;  %v806_v62 = vrot.slane %v5044_v9, 1  ;;  %v780_v47 = vsel %vm770_vm1, %v778_v29, %v779_v19  ;;  %v782_v53 = vsel %vm770_vm1, %v779_v19, %v781_v1 }
  0x4c   : > { %v808_v5 = vrot.slane %v5048_v43, 1  ;;  %v809_v16 = vrot.slane %v5052_v17, 1  ;;  %v785_v60 = vsel %vm770_vm1, %v783_v31, %v784_v23  ;;  %v787_v11 = vsel %vm770_vm1, %v784_v23, %v786_v10 }
  0x4d   : > { %v790_v41 = vsel %vm770_vm1, %v788_v0, %v789_v54  ;;  %v811_v38 = vrot.slane %v5056_v21, 1  ;;  %v792_v8 = vsel %vm770_vm1, %v789_v54, %v791_v3  ;;  %v795_v9 = vsel %vm770_vm1, %v793_v2, %v794_v4 }
  0x4e   : > { %v797_v29 = vsel %vm770_vm1, %v794_v4, %v796_v56  ;;  %v800_v1 = vsel %vm770_vm1, %v798_v25, %v799_v24  ;;  %v802_v43 = vsel %vm770_vm1, %v799_v24, %v801_v39  ;;  %v805_v19 = vsel %vm770_vm1, %v803_v49, %v804_v46 }
  0x4f   : > { %v807_v17 = vsel %vm770_vm1, %v804_v46, %v806_v62  ;;  %v813_v23 = vrot.slane %v5060_v50, 1  ;;  %v810_v31 = vsel %vm770_vm1, %v808_v5, %v809_v16  ;;  %v814_v21 = vrot.slane %v5064_v22, 1 }
  0x50   : > { %v816_v10 = vrot.slane %v5068_v13, 1  ;;  %v818_v18 = vrot.slane %v5072_v51, 1  ;;  %v812_v0 = vsel %vm770_vm1, %v809_v16, %v811_v38  ;;  %v819_v25 = vrot.slane %v5076_v27, 1 }
  0x51   : > { %v821_v54 = vrot.slane %v5080_v26, 1  ;;  %v823_v3 = vrot.slane %v5084_v52, 1  ;;  %v824_v2 = vrot.slane %v5088_v20, 1  ;;  %v826_v50 = vrot.slane %v5092_v15, 1 }
  0x52   : > { %v828_v4 = vrot.slane %v5096_v57, 1  ;;  %v829_v22 = vrot.slane %v5100_v32, 1  ;;  %v831_v13 = vrot.slane %v5104_v28, 1  ;;  %v833_v51 = vrot.slane %v5108_v58, 1 }
  0x53   : > { %v834_v56 = vrot.slane %v5112_v14, 1  ;;  %v836_v27 = vrot.slane %v5116_v33, 1  ;;  %v815_v26 = vsel %vm770_vm1, %v813_v23, %v814_v21  ;;  %v838_v52 = vrot.slane %v5120_v59, 1 }
  0x54   : > { %v839_v20 = vrot.slane %v5124_v34, 1  ;;  %v841_v15 = vrot.slane %v5128_v35, 1  ;;  %v817_v57 = vsel %vm770_vm1, %v814_v21, %v816_v10  ;;  %v843_v32 = vrot.slane %v5132_v7, 1 }
  0x55   : > { %v844_v28 = vrot.slane %v5136_v55, 1  ;;  %v846_v58 = vrot.slane %v5140_v42, 1  ;;  %v820_v14 = vsel %vm770_vm1, %v818_v18, %v819_v25  ;;  %v822_v33 = vsel %vm770_vm1, %v819_v25, %v821_v54 }
  0x56   : > { %v825_v24 = vsel %vm770_vm1, %v823_v3, %v824_v2  ;;  %v827_v59 = vsel %vm770_vm1, %v824_v2, %v826_v50  ;;  %v830_v34 = vsel %vm770_vm1, %v828_v4, %v829_v22  ;;  %v832_v35 = vsel %vm770_vm1, %v829_v22, %v831_v13  ;;  %v9061_v50 = vld [vmem:[#allocation66_spill] sm:$0xff]  ;;  %v9063_v22 = vld [vmem:[#allocation67_spill] sm:$0xff] }
  0x57   : > { %v835_v39 = vsel %vm770_vm1, %v833_v51, %v834_v56  ;;  %v837_v7 = vsel %vm770_vm1, %v834_v56, %v836_v27  ;;  %v840_v55 = vsel %vm770_vm1, %v838_v52, %v839_v20  ;;  %v842_v42 = vsel %vm770_vm1, %v839_v20, %v841_v15  ;;  %v9065_v51 = vld [vmem:[#allocation68_spill] sm:$0xff]  ;;  %v9067_v27 = vld [vmem:[#allocation69_spill] sm:$0xff]  ;;  %v9069_v52 = vld [vmem:[#allocation70_spill] sm:$0xff] }
  0x58   : > { %v5218_v49 = vadd.f32 %v5147_v40, %v4850_v61  ;;  %v5222_v46 = vadd.f32 %v5150_v48, %v4854_v63  ;;  %v845_v62 = vsel %vm770_vm1, %v843_v32, %v844_v28  ;;  %v847_v5 = vsel %vm770_vm1, %v844_v28, %v846_v58  ;;  %v9071_v15 = vld [vmem:[#allocation71_spill] sm:$0xff]  ;;  %v9073_v32 = vld [vmem:[#allocation72_spill] sm:$0xff]  ;;  %v9075_v58 = vld [vmem:[#allocation17_spill] sm:$0xff] }
  0x59   : > { %v5227_v16 = vadd.f32 %v780_v47, %v4858_v6  ;;  %v5230_v38 = vadd.f32 %v782_v53, %v4862_v12  ;;  %v5233_v23 = vadd.f32 %v785_v60, %v4866_v30  ;;  %v5236_v40 = vadd.f32 %v787_v11, %v4870_v36  ;;  %v9034_v6 = vld [vmem:[#allocation52_spill] sm:$0xff]  ;;  %v9035_v12 = vld [vmem:[#allocation53_spill] sm:$0xff]  ;;  %v9037_v30 = vld [vmem:[#allocation54_spill] sm:$0xff] }
  0x5a   : > { %v5239_v61 = vadd.f32 %v790_v41, %v4874_v37  ;;  %v5242_v48 = vadd.f32 %v792_v8, %v4878_v44  ;;  %v5245_v63 = vadd.f32 %v795_v9, %v4882_v45  ;;  %v5248_v47 = vadd.f32 %v797_v29, %v9034_v6  ;;  %v9039_v36 = vld [vmem:[#allocation55_spill] sm:$0xff]  ;;  %v9041_v37 = vld [vmem:[#allocation56_spill] sm:$0xff]  ;;  %v9043_v44 = vld [vmem:[#allocation57_spill] sm:$0xff] }
  0x5b   : > { %v5251_v53 = vadd.f32 %v800_v1, %v9035_v12  ;;  %v5254_v60 = vadd.f32 %v802_v43, %v9037_v30  ;;  %v5257_v11 = vadd.f32 %v805_v19, %v9039_v36  ;;  %v5260_v41 = vadd.f32 %v807_v17, %v9041_v37  ;;  %v9045_v45 = vld [vmem:[#allocation58_spill] sm:$0xff]  ;;  %v9047_v29 = vld [vmem:[#allocation59_spill] sm:$0xff]  ;;  %v9049_v1 = vld [vmem:[#allocation60_spill] sm:$0xff] }
  0x5c   : > { %v5263_v8 = vadd.f32 %v810_v31, %v9043_v44  ;;  %v5266_v9 = vadd.f32 %v812_v0, %v9045_v45  ;;  %v5269_v21 = vadd.f32 %v815_v26, %v9047_v29  ;;  %v5272_v10 = vadd.f32 %v817_v57, %v9049_v1  ;;  %v9051_v43 = vld [vmem:[#allocation61_spill] sm:$0xff]  ;;  %v9053_v19 = vld [vmem:[#allocation62_spill] sm:$0xff]  ;;  %v9055_v17 = vld [vmem:[#allocation63_spill] sm:$0xff] }
  0x5d   : > { %9036 = vst [vmem:[#allocation52_spill] sm:$0xff] %v5251_v53  ;;  %9038 = vst [vmem:[#allocation53_spill] sm:$0xff] %v5254_v60  ;;  %v5275_v18 = vadd.f32 %v820_v14, %v9051_v43  ;;  %v5278_v25 = vadd.f32 %v822_v33, %v9053_v19  ;;  %v5281_v54 = vadd.f32 %v825_v24, %v9055_v17  ;;  %v9057_v31 = vld [vmem:[#allocation64_spill] sm:$0xff]  ;;  %v9059_v0 = vld [vmem:[#allocation65_spill] sm:$0xff] }
  0x5e   : > { %9040 = vst [vmem:[#allocation54_spill] sm:$0xff] %v5257_v11  ;;  %9042 = vst [vmem:[#allocation55_spill] sm:$0xff] %v5260_v41  ;;  %v5284_v3 = vadd.f32 %v827_v59, %v9057_v31  ;;  %v5287_v2 = vadd.f32 %v830_v34, %v9059_v0  ;;  %v5290_v4 = vadd.f32 %v832_v35, %v9061_v50  ;;  %v9076_v14 = vld [vmem:[#allocation2_spill] sm:$0xff]  ;;  %v9077_v24 = vld [vmem:[#allocation4_spill] sm:$0xff] }
  0x5f   : > { %9044 = vst [vmem:[#allocation56_spill] sm:$0xff] %v5263_v8  ;;  %9046 = vst [vmem:[#allocation57_spill] sm:$0xff] %v5266_v9  ;;  %v5293_v13 = vadd.f32 %v835_v39, %v9063_v22  ;;  %v5296_v56 = vadd.f32 %v837_v7, %v9065_v51  ;;  %v5299_v26 = vadd.f32 %v840_v55, %v9067_v27  ;;  %v9078_v34 = vld [vmem:[#allocation36_spill] sm:$0xff]  ;;  %v9080_v55 = vld [vmem:[#allocation5_spill] sm:$0xff] }
  0x60   : > { %9048 = vst [vmem:[#allocation58_spill] sm:$0xff] %v5269_v21  ;;  %9050 = vst [vmem:[#allocation59_spill] sm:$0xff] %v5272_v10  ;;  %v5302_v20 = vadd.f32 %v842_v42, %v9069_v52  ;;  %v5305_v57 = vadd.f32 %v845_v62, %v9071_v15  ;;  %v5308_v28 = vadd.f32 %v847_v5, %v9073_v32  ;;  %v9079_v39 = vld [vmem:[#allocation20_spill] sm:$0xff]  ;;  %v9081_v62 = vld [vmem:[#allocation37_spill] sm:$0xff] }
  0x61   : > { %9052 = vst [vmem:[#allocation60_spill] sm:$0xff] %v5275_v18  ;;  %9054 = vst [vmem:[#allocation61_spill] sm:$0xff] %v5278_v25  ;;  %v916_v33 = vmul.f32 %v9076_v14, %v9075_v58  ;;  %v917_v59 = vmul.f32 %v9076_v14, %v9077_v24  ;;  %v918_v35 = vmul.f32 %v9076_v14, %v9078_v34  ;;  %v9082_v6 = vld [vmem:[#allocation21_spill] sm:$0xff]  ;;  %v9083_v30 = vld [vmem:[#allocation6_spill] sm:$0xff] }
  0x62   : > { %9056 = vst [vmem:[#allocation62_spill] sm:$0xff] %v5281_v54  ;;  %9058 = vst [vmem:[#allocation63_spill] sm:$0xff] %v5284_v3  ;;  %v919_v7 = vmul.f32 %v9076_v14, %v9079_v39  ;;  %v5320_v42 = vmul.f32 %v9076_v14, %v9080_v55  ;;  %v5324_v5 = vmul.f32 %v9076_v14, %v9081_v62  ;;  %v9084_v37 = vld [vmem:[#allocation38_spill] sm:$0xff]  ;;  %v9085_v45 = vld [vmem:[#allocation23_spill] sm:$0xff] }
  0x63   : > { %9060 = vst [vmem:[#allocation64_spill] sm:$0xff] %v5287_v2  ;;  %9062 = vst [vmem:[#allocation65_spill] sm:$0xff] %v5290_v4  ;;  %v5328_v12 = vmul.f32 %v9076_v14, %v9082_v6  ;;  %v5332_v36 = vmul.f32 %v9076_v14, %v9083_v30  ;;  %v5336_v44 = vmul.f32 %v9076_v14, %v9084_v37  ;;  %v9086_v1 = vld [vmem:[#allocation7_spill] sm:$0xff]  ;;  %v9088_v31 = vld [vmem:[#allocation24_spill] sm:$0xff]  ;;  %v1010_v54 = vrot.slane %v916_v33, 2 }
  0x64   : > { %9064 = vst [vmem:[#allocation66_spill] sm:$0xff] %v5293_v13  ;;  %9066 = vst [vmem:[#allocation67_spill] sm:$0xff] %v5296_v56  ;;  %v5340_v29 = vmul.f32 %v9076_v14, %v9085_v45  ;;  %v5344_v43 = vmul.f32 %v9076_v14, %v9086_v1  ;;  %v9087_v19 = vld [vmem:[#allocation39_spill] sm:$0xff]  ;;  %v5352_v0 = vmul.f32 %v9076_v14, %v9088_v31  ;;  %v9089_v50 = vld [vmem:[#allocation8_spill] sm:$0xff]  ;;  %v1011_v25 = vrot.slane %v917_v59, 2 }
  0x65   : > { %9068 = vst [vmem:[#allocation68_spill] sm:$0xff] %v5299_v26  ;;  %9070 = vst [vmem:[#allocation69_spill] sm:$0xff] %v5302_v20  ;;  %v5348_v17 = vmul.f32 %v9076_v14, %v9087_v19  ;;  %v5356_v22 = vmul.f32 %v9076_v14, %v9089_v50  ;;  %v9090_v51 = vld [vmem:[#allocation40_spill] sm:$0xff]  ;;  %v9091_v52 = vld [vmem:[#allocation25_spill] sm:$0xff]  ;;  %v1015_v18 = vrot.slane %v919_v7, 2  ;;  %v1016_v10 = vrot.slane %v5320_v42, 2 }
  0x66   : > { %9072 = vst [vmem:[#allocation70_spill] sm:$0xff] %v5305_v57  ;;  %9074 = vst [vmem:[#allocation71_spill] sm:$0xff] %v5308_v28  ;;  %v5360_v27 = vmul.f32 %v9076_v14, %v9090_v51  ;;  %v5364_v15 = vmul.f32 %v9076_v14, %v9091_v52  ;;  %v9092_v32 = vld [vmem:[#allocation9_spill] sm:$0xff]  ;;  %v9094_v34 = vld [vmem:[#allocation26_spill] sm:$0xff]  ;;  %v1018_v11 = vrot.slane %v5324_v5, 2  ;;  %v1021_v60 = vrot.slane %v5332_v36, 2 }
  0x67   : > { %v5368_v19 = vmul.f32 %v9076_v14, %v9092_v32  ;;  %v9093_v37 = vld [vmem:[#allocation41_spill] sm:$0xff]  ;;  %v5376_v50 = vmul.f32 %v9076_v14, %v9094_v34  ;;  %v9095_v31 = vld [vmem:[#allocation10_spill] sm:$0xff]  ;;  %v9097_v45 = vld [vmem:[#allocation27_spill] sm:$0xff]  ;;  %v5488_v53 = vsel %vm1007_vm2, %v1010_v54, %v1011_v25  ;;  %v1028_v5 = vrot.slane %v5348_v17, 2 }
  0x68   : > { %v5372_v62 = vmul.f32 %v9076_v14, %v9093_v37  ;;  %v5380_v51 = vmul.f32 %v9076_v14, %v9095_v31  ;;  %v9096_v1 = vld [vmem:[#allocation42_spill] sm:$0xff]  ;;  %v5388_v32 = vmul.f32 %v9076_v14, %v9097_v45  ;;  %v9098_v30 = vld [vmem:[#allocation11_spill] sm:$0xff]  ;;  %v9100_v55 = vld [vmem:[#allocation28_spill] sm:$0xff]  ;;  %v1031_v36 = vrot.slane %v5356_v22, 2 }
  0x69   : > { %v5384_v52 = vmul.f32 %v9076_v14, %v9096_v1  ;;  %v5392_v37 = vmul.f32 %v9076_v14, %v9098_v30  ;;  %v9099_v6 = vld [vmem:[#allocation43_spill] sm:$0xff]  ;;  %v5400_v31 = vmul.f32 %v9076_v14, %v9100_v55  ;;  %v9101_v39 = vld [vmem:[#allocation12_spill] sm:$0xff]  ;;  %v9103_v58 = vld [vmem:[#allocation29_spill] sm:$0xff]  ;;  %v1035_v54 = vrot.slane %v5364_v15, 2 }
  0x6a   : > { %v5396_v34 = vmul.f32 %v9076_v14, %v9099_v6  ;;  %v5404_v1 = vmul.f32 %v9076_v14, %v9101_v39  ;;  %v9102_v24 = vld [vmem:[#allocation44_spill] sm:$0xff]  ;;  %v5412_v30 = vmul.f32 %v9076_v14, %v9103_v58  ;;  %v9104_v28 = vld [vmem:[#allocation13_spill] sm:$0xff]  ;;  %v9106_v20 = vld [vmem:[#allocation30_spill] sm:$0xff]  ;;  %v1045_v22 = vrot.slane %v5388_v32, 2 }
  0x6b   : > { %v5408_v45 = vmul.f32 %v9076_v14, %v9102_v24  ;;  %v5416_v6 = vmul.f32 %v9076_v14, %v9104_v28  ;;  %v9105_v57 = vld [vmem:[#allocation45_spill] sm:$0xff]  ;;  %v5424_v39 = vmul.f32 %v9076_v14, %v9106_v20  ;;  %v9107_v26 = vld [vmem:[#allocation14_spill] sm:$0xff]  ;;  %v9109_v13 = vld [vmem:[#allocation31_spill] sm:$0xff]  ;;  %v1043_v17 = vrot.slane %v5384_v52, 2 }
  0x6c   : > { %v5420_v55 = vmul.f32 %v9076_v14, %v9105_v57  ;;  %v5428_v24 = vmul.f32 %v9076_v14, %v9107_v26  ;;  %v9108_v56 = vld [vmem:[#allocation46_spill] sm:$0xff]  ;;  %v5436_v28 = vmul.f32 %v9076_v14, %v9109_v13  ;;  %v9110_v4 = vld [vmem:[#allocation15_spill] sm:$0xff]  ;;  %v9112_v3 = vld [vmem:[#allocation32_spill] sm:$0xff]  ;;  %v1048_v15 = vrot.slane %v5396_v34, 2 }
  0x6d   : > { %v5432_v58 = vmul.f32 %v9076_v14, %v9108_v56  ;;  %v5440_v57 = vmul.f32 %v9076_v14, %v9110_v4  ;;  %v9111_v2 = vld [vmem:[#allocation47_spill] sm:$0xff]  ;;  %v5448_v26 = vmul.f32 %v9076_v14, %v9112_v3  ;;  %v1013_v56 = vrot.slane %v918_v35, 2  ;;  %v9113_v13 = vld [vmem:[#allocation16_spill] sm:$0xff]  ;;  %v9116_v3 = vld [vmem:[#allocation18_spill] sm:$0xff] }
  0x6e   : > { %v5444_v20 = vmul.f32 %v9076_v14, %v9111_v2  ;;  %v5453_v21 = vmul.f32 %v9076_v14, %v9113_v13  ;;  %v9114_v4 = vld [vmem:[#allocation48_spill] sm:$0xff]  ;;  %v9115_v2 = vld [vmem:[#allocation33_spill] sm:$0xff]  ;;  %v5465_v33 = vmul.f32 %v9076_v14, %v9116_v3  ;;  %v9118_v7 = vld [vmem:[#allocation34_spill] sm:$0xff]  ;;  %v1020_v3 = vrot.slane %v5328_v12, 2 }
  0x6f   : > { %v5457_v9 = vmul.f32 %v9076_v14, %v9114_v4  ;;  %v5461_v8 = vmul.f32 %v9076_v14, %v9115_v2  ;;  %v9117_v59 = vld [vmem:[#allocation49_spill] sm:$0xff]  ;;  %v5473_v42 = vmul.f32 %v9076_v14, %v9118_v7  ;;  %v9119_v13 = vld [vmem:[#allocation19_spill] sm:$0xff]  ;;  %v9120_v41 = vld [vmem:[#allocation50_spill] sm:$0xff]  ;;  %v5491_v7 = vsel %vm1007_vm2, %v1011_v25, %v1013_v56 }
  0x70   : > { %v5469_v35 = vmul.f32 %v9076_v14, %v9117_v59  ;;  %v5477_v4 = vmul.f32 %v9076_v14, %v9119_v13  ;;  %v5481_v2 = vmul.f32 %v9076_v14, %v9120_v41  ;;  %v1023_v59 = vrot.slane %v5336_v44, 2 }
  0x71   : > { %v5494_v13 = vsel %vm1007_vm2, %v1015_v18, %v1016_v10  ;;  %v1025_v14 = vrot.slane %v5340_v29, 2  ;;  %v1026_v41 = vrot.slane %v5344_v43, 2  ;;  %v1030_v12 = vrot.slane %v5352_v0, 2 }
  0x72   : > { %v1033_v44 = vrot.slane %v5360_v27, 2  ;;  %v1036_v25 = vrot.slane %v5368_v19, 2  ;;  %v1038_v56 = vrot.slane %v5372_v62, 2  ;;  %v1019_v18 = vsel %vm1007_vm2, %v1016_v10, %v1018_v11 }
  0x73   : > { %v1040_v29 = vrot.slane %v5376_v50, 2  ;;  %v1041_v43 = vrot.slane %v5380_v51, 2  ;;  %v1022_v0 = vsel %vm1007_vm2, %v1020_v3, %v1021_v60  ;;  %v1046_v27 = vrot.slane %v5392_v37, 2 }
  0x74   : > { %v1024_v19 = vsel %vm1007_vm2, %v1021_v60, %v1023_v59  ;;  %v1027_v62 = vsel %vm1007_vm2, %v1025_v14, %v1026_v41  ;;  %v1029_v11 = vsel %vm1007_vm2, %v1026_v41, %v1028_v5  ;;  %v1032_v10 = vsel %vm1007_vm2, %v1030_v12, %v1031_v36 }
  0x75   : > { %v1034_v50 = vsel %vm1007_vm2, %v1031_v36, %v1033_v44  ;;  %v1037_v51 = vsel %vm1007_vm2, %v1035_v54, %v1036_v25  ;;  %v1039_v3 = vsel %vm1007_vm2, %v1036_v25, %v1038_v56  ;;  %v1050_v52 = vrot.slane %v5400_v31, 2 }
  0x76   : > { %v1042_v37 = vsel %vm1007_vm2, %v1040_v29, %v1041_v43  ;;  %v1044_v34 = vsel %vm1007_vm2, %v1041_v43, %v1043_v17  ;;  %v1051_v60 = vrot.slane %v5404_v1, 2  ;;  %v1053_v32 = vrot.slane %v5408_v45, 2 }
  0x77   : > { %v1047_v41 = vsel %vm1007_vm2, %v1045_v22, %v1046_v27  ;;  %v1049_v59 = vsel %vm1007_vm2, %v1046_v27, %v1048_v15  ;;  %v1055_v14 = vrot.slane %v5412_v30, 2  ;;  %v1056_v5 = vrot.slane %v5416_v6, 2 }
  0x78   : > { %v1058_v12 = vrot.slane %v5420_v55, 2  ;;  %v1060_v31 = vrot.slane %v5424_v39, 2  ;;  %v1061_v36 = vrot.slane %v5428_v24, 2  ;;  %v1063_v44 = vrot.slane %v5432_v58, 2 }
  0x79   : > { %v1065_v1 = vrot.slane %v5436_v28, 2  ;;  %v1066_v45 = vrot.slane %v5440_v57, 2  ;;  %v1068_v54 = vrot.slane %v5444_v20, 2  ;;  %v1070_v25 = vrot.slane %v5448_v26, 2 }
  0x7a   : > { %v1071_v30 = vrot.slane %v5453_v21, 2  ;;  %v1073_v6 = vrot.slane %v5457_v9, 2  ;;  %v1075_v55 = vrot.slane %v5461_v8, 2  ;;  %v1076_v39 = vrot.slane %v5465_v33, 2 }
  0x7b   : > { %v1052_v24 = vsel %vm1007_vm2, %v1050_v52, %v1051_v60  ;;  %v1054_v58 = vsel %vm1007_vm2, %v1051_v60, %v1053_v32  ;;  %v1057_v28 = vsel %vm1007_vm2, %v1055_v14, %v1056_v5  ;;  %v1078_v57 = vrot.slane %v5469_v35, 2 }
  0x7c   : > { %v1059_v20 = vsel %vm1007_vm2, %v1056_v5, %v1058_v12  ;;  %v1080_v26 = vrot.slane %v5473_v42, 2  ;;  %v1081_v21 = vrot.slane %v5477_v4, 2  ;;  %v1083_v9 = vrot.slane %v5481_v2, 2 }
  0x7d   : > { %v1062_v8 = vsel %vm1007_vm2, %v1060_v31, %v1061_v36  ;;  %v1064_v33 = vsel %vm1007_vm2, %v1061_v36, %v1063_v44  ;;  %v1067_v56 = vsel %vm1007_vm2, %v1065_v1, %v1066_v45  ;;  %v1069_v29 = vsel %vm1007_vm2, %v1066_v45, %v1068_v54  ;;  %v9135_v31 = vld [vmem:[#allocation64_spill] sm:$0xff]  ;;  %v9137_v44 = vld [vmem:[#allocation65_spill] sm:$0xff]  ;;  %v9139_v45 = vld [vmem:[#allocation66_spill] sm:$0xff] }
  0x7e   : > { %v1072_v43 = vsel %vm1007_vm2, %v1070_v25, %v1071_v30  ;;  %v1074_v35 = vsel %vm1007_vm2, %v1071_v30, %v1073_v6  ;;  %v1077_v17 = vsel %vm1007_vm2, %v1075_v55, %v1076_v39  ;;  %v5558_v42 = vadd.f32 %v5488_v53, %v5218_v49  ;;  %v9141_v25 = vld [vmem:[#allocation67_spill] sm:$0xff]  ;;  %v9143_v6 = vld [vmem:[#allocation68_spill] sm:$0xff] }
  0x7f   : > { %v1079_v2 = vsel %vm1007_vm2, %v1076_v39, %v1078_v57  ;;  %v5563_v4 = vadd.f32 %v5491_v7, %v5222_v46  ;;  %v5567_v22 = vadd.f32 %v5494_v13, %v5227_v16  ;;  %v5570_v27 = vadd.f32 %v1019_v18, %v5230_v38  ;;  %v9121_v13 = vld [vmem:[#allocation52_spill] sm:$0xff]  ;;  %v9145_v39 = vld [vmem:[#allocation69_spill] sm:$0xff]  ;;  %v9149_v57 = vld [vmem:[#allocation71_spill] sm:$0xff] }
  0x80   : > { %v1082_v15 = vsel %vm1007_vm2, %v1080_v26, %v1081_v21  ;;  %v1084_v52 = vsel %vm1007_vm2, %v1081_v21, %v1083_v9  ;;  %v5575_v49 = vadd.f32 %v1022_v0, %v5233_v23  ;;  %v5578_v53 = vadd.f32 %v1024_v19, %v5236_v40  ;;  %v9122_v23 = vld [vmem:[#allocation53_spill] sm:$0xff]  ;;  %v9123_v40 = vld [vmem:[#allocation54_spill] sm:$0xff]  ;;  %v9152_v9 = vld [vmem:[#allocation4_spill] sm:$0xff] }
  0x81   : > { %v5581_v46 = vadd.f32 %v1027_v62, %v5239_v61  ;;  %v5584_v7 = vadd.f32 %v1029_v11, %v5242_v48  ;;  %v5587_v16 = vadd.f32 %v1032_v10, %v5245_v63  ;;  %v5590_v38 = vadd.f32 %v1034_v50, %v5248_v47  ;;  %v9124_v61 = vld [vmem:[#allocation55_spill] sm:$0xff]  ;;  %v9125_v48 = vld [vmem:[#allocation56_spill] sm:$0xff]  ;;  %v9126_v63 = vld [vmem:[#allocation57_spill] sm:$0xff] }
  0x82   : > { %v5593_v18 = vadd.f32 %v1037_v51, %v9121_v13  ;;  %v5596_v0 = vadd.f32 %v1039_v3, %v9122_v23  ;;  %v5599_v19 = vadd.f32 %v1042_v37, %v9123_v40  ;;  %v5602_v62 = vadd.f32 %v1044_v34, %v9124_v61  ;;  %v9127_v47 = vld [vmem:[#allocation58_spill] sm:$0xff]  ;;  %v9128_v51 = vld [vmem:[#allocation59_spill] sm:$0xff]  ;;  %v9129_v3 = vld [vmem:[#allocation60_spill] sm:$0xff] }
  0x83   : > { %v5605_v11 = vadd.f32 %v1047_v41, %v9125_v48  ;;  %v5608_v10 = vadd.f32 %v1049_v59, %v9126_v63  ;;  %v5611_v50 = vadd.f32 %v1052_v24, %v9127_v47  ;;  %v5614_v60 = vadd.f32 %v1054_v58, %v9128_v51  ;;  %v9130_v37 = vld [vmem:[#allocation61_spill] sm:$0xff]  ;;  %v9131_v34 = vld [vmem:[#allocation62_spill] sm:$0xff]  ;;  %v9133_v41 = vld [vmem:[#allocation63_spill] sm:$0xff] }
  0x84   : > { %v5617_v32 = vadd.f32 %v1057_v28, %v9129_v3  ;;  %v5620_v14 = vadd.f32 %v1059_v20, %v9130_v37  ;;  %v5623_v5 = vadd.f32 %v1062_v8, %v9131_v34  ;;  %v5626_v12 = vadd.f32 %v1064_v33, %v9133_v41  ;;  %v4192_v59 = vld [vmem:[%s8758_s1 + $0x3] ss:$0 sm:$0xff]  ;;  %v9151_v26 = vld [vmem:[#allocation17_spill] sm:$0xff]  ;;  %v9153_v33 = vld [vmem:[#allocation20_spill] sm:$0xff] }
  0x85   : > { %v5632_v36 = vadd.f32 %v1067_v56, %v9135_v31  ;;  %v5635_v1 = vadd.f32 %v1069_v29, %v9137_v44  ;;  %v5638_v54 = vadd.f32 %v1072_v43, %v9139_v45  ;;  %v5641_v30 = vadd.f32 %v1074_v35, %v9141_v25  ;;  %v9147_v58 = vld [vmem:[#allocation70_spill] sm:$0xff]  ;;  %v9154_v29 = vld [vmem:[#allocation5_spill] sm:$0xff]  ;;  %v9158_v61 = vld [vmem:[#allocation7_spill] sm:$0xff] }
  0x86   : > { %9132 = vst [vmem:[#allocation72_spill] sm:$0xff] %v5623_v5  ;;  %9134 = vst [vmem:[#allocation2_spill] sm:$0xff] %v5626_v12  ;;  %v5644_v55 = vadd.f32 %v1077_v17, %v9143_v6  ;;  %v5647_v24 = vadd.f32 %v1079_v2, %v9145_v39  ;;  %v5650_v28 = vadd.f32 %v1082_v15, %v9147_v58  ;;  %v9155_v35 = vld [vmem:[#allocation21_spill] sm:$0xff]  ;;  %v9156_v13 = vld [vmem:[#allocation6_spill] sm:$0xff] }
  0x87   : > { %9136 = vst [vmem:[#allocation52_spill] sm:$0xff] %v5632_v36  ;;  %9138 = vst [vmem:[#allocation53_spill] sm:$0xff] %v5635_v1  ;;  %v5653_v20 = vadd.f32 %v1084_v52, %v9149_v57  ;;  %v1152_v21 = vmul.f32 %v4192_v59, %v9151_v26  ;;  %v1153_v8 = vmul.f32 %v4192_v59, %v9152_v9  ;;  %v9157_v2 = vld [vmem:[#allocation23_spill] sm:$0xff]  ;;  %v9159_v48 = vld [vmem:[#allocation24_spill] sm:$0xff] }
  0x88   : > { %9140 = vst [vmem:[#allocation54_spill] sm:$0xff] %v5638_v54  ;;  %9142 = vst [vmem:[#allocation55_spill] sm:$0xff] %v5641_v30  ;;  %v1154_v56 = vmul.f32 %v4192_v59, %v9153_v33  ;;  %v1155_v43 = vmul.f32 %v4192_v59, %v9154_v29  ;;  %v1156_v17 = vmul.f32 %v4192_v59, %v9155_v35  ;;  %v9160_v52 = vld [vmem:[#allocation8_spill] sm:$0xff]  ;;  %v9161_v51 = vld [vmem:[#allocation25_spill] sm:$0xff] }
  0x89   : > { %9144 = vst [vmem:[#allocation56_spill] sm:$0xff] %v5644_v55  ;;  %9146 = vst [vmem:[#allocation57_spill] sm:$0xff] %v5647_v24  ;;  %v1157_v23 = vmul.f32 %v4192_v59, %v9156_v13  ;;  %v1158_v40 = vmul.f32 %v4192_v59, %v9157_v2  ;;  %v1159_v15 = vmul.f32 %v4192_v59, %v9158_v61  ;;  %v9162_v37 = vld [vmem:[#allocation9_spill] sm:$0xff]  ;;  %v9163_v41 = vld [vmem:[#allocation26_spill] sm:$0xff] }
  0x8a   : > { %9148 = vst [vmem:[#allocation58_spill] sm:$0xff] %v5650_v28  ;;  %9150 = vst [vmem:[#allocation59_spill] sm:$0xff] %v5653_v20  ;;  %v1160_v63 = vmul.f32 %v4192_v59, %v9159_v48  ;;  %v1161_v47 = vmul.f32 %v4192_v59, %v9160_v52  ;;  %v1162_v3 = vmul.f32 %v4192_v59, %v9161_v51  ;;  %v9164_v44 = vld [vmem:[#allocation10_spill] sm:$0xff]  ;;  %v9165_v25 = vld [vmem:[#allocation27_spill] sm:$0xff] }
  0x8b   : > { %v1163_v34 = vmul.f32 %v4192_v59, %v9162_v37  ;;  %v1164_v31 = vmul.f32 %v4192_v59, %v9163_v41  ;;  %v1165_v45 = vmul.f32 %v4192_v59, %v9164_v44  ;;  %v1166_v6 = vmul.f32 %v4192_v59, %v9165_v25  ;;  %v9166_v39 = vld [vmem:[#allocation11_spill] sm:$0xff]  ;;  %v9167_v57 = vld [vmem:[#allocation28_spill] sm:$0xff]  ;;  %v9169_v35 = vld [vmem:[#allocation29_spill] sm:$0xff] }
  0x8c   : > { %v1167_v58 = vmul.f32 %v4192_v59, %v9166_v39  ;;  %v1168_v2 = vmul.f32 %v4192_v59, %v9167_v57  ;;  %v9168_v13 = vld [vmem:[#allocation12_spill] sm:$0xff]  ;;  %v1170_v48 = vmul.f32 %v4192_v59, %v9169_v35  ;;  %v9170_v29 = vld [vmem:[#allocation13_spill] sm:$0xff]  ;;  %v9171_v33 = vld [vmem:[#allocation30_spill] sm:$0xff] }
  0x8d   : > { %v1169_v61 = vmul.f32 %v4192_v59, %v9168_v13  ;;  %v1171_v52 = vmul.f32 %v4192_v59, %v9170_v29  ;;  %v1172_v51 = vmul.f32 %v4192_v59, %v9171_v33  ;;  %v9172_v9 = vld [vmem:[#allocation14_spill] sm:$0xff]  ;;  %v9173_v26 = vld [vmem:[#allocation31_spill] sm:$0xff]  ;;  %v9175_v28 = vld [vmem:[#allocation32_spill] sm:$0xff] }
  0x8e   : > { %v1173_v37 = vmul.f32 %v4192_v59, %v9172_v9  ;;  %v1174_v41 = vmul.f32 %v4192_v59, %v9173_v26  ;;  %v9174_v20 = vld [vmem:[#allocation15_spill] sm:$0xff]  ;;  %v1176_v25 = vmul.f32 %v4192_v59, %v9175_v28  ;;  %v9176_v24 = vld [vmem:[#allocation16_spill] sm:$0xff]  ;;  %v9177_v55 = vld [vmem:[#allocation33_spill] sm:$0xff] }
  0x8f   : > { %v1175_v44 = vmul.f32 %v4192_v59, %v9174_v20  ;;  %v1177_v39 = vmul.f32 %v4192_v59, %v9176_v24  ;;  %v1178_v57 = vmul.f32 %v4192_v59, %v9177_v55  ;;  %v9178_v30 = vld [vmem:[#allocation18_spill] sm:$0xff]  ;;  %v9180_v1 = vld [vmem:[#allocation19_spill] sm:$0xff]  ;;  %v5694_v24 = vadd.f32 %v1154_v56, %v5558_v42 }
  0x90   : > { %v1179_v13 = vmul.f32 %v4192_v59, %v9178_v30  ;;  %v9179_v54 = vld [vmem:[#allocation34_spill] sm:$0xff]  ;;  %v1181_v29 = vmul.f32 %v4192_v59, %v9180_v1  ;;  %v9181_v36 = vld [vmem:[#allocation35_spill] sm:$0xff]  ;;  %v5697_v55 = vadd.f32 %v1155_v43, %v5563_v4  ;;  %v5703_v1 = vadd.f32 %v1157_v23, %v5570_v27 }
  0x91   : > { %v1180_v35 = vmul.f32 %v4192_v59, %v9179_v54  ;;  %v1182_v33 = vmul.f32 %v4192_v59, %v9181_v36  ;;  %v9182_v12 = vld [vmem:[#allocation22_spill] sm:$0xff]  ;;  %v9183_v5 = vld [vmem:[#allocation3_spill] sm:$0xff]  ;;  %v5700_v54 = vadd.f32 %v1156_v17, %v5567_v22  ;;  %v5715_v42 = vadd.f32 %v1161_v47, %v5584_v7 }
  0x92   : > { %v1183_v9 = vmul.f32 %v4192_v59, %v9182_v12  ;;  %v5688_v26 = vadd.f32 %v1152_v21, %v9183_v5  ;;  %v5691_v20 = vadd.f32 %v1153_v8, %v9183_v5  ;;  %9184 = vst [vmem:[#allocation60_spill] sm:$0xff] %v5703_v1  ;;  %v5706_v59 = vadd.f32 %v1158_v40, %v5575_v49  ;;  %v9213_v40 = vld [vmem:[#allocation56_spill] sm:$0xff]  ;;  %v9219_v47 = vld [vmem:[#allocation59_spill] sm:$0xff] }
  0x93   : > { %v5709_v21 = vadd.f32 %v1159_v15, %v5578_v53  ;;  %v5712_v5 = vadd.f32 %v1160_v63, %v5581_v46  ;;  %9188 = vst [vmem:[#allocation64_spill] sm:$0xff] %v5715_v42  ;;  %v5718_v4 = vadd.f32 %v1162_v3, %v5587_v16  ;;  %v5721_v22 = vadd.f32 %v1163_v34, %v5590_v38  ;;  %v9215_v15 = vld [vmem:[#allocation57_spill] sm:$0xff]  ;;  %v9217_v63 = vld [vmem:[#allocation58_spill] sm:$0xff]  ;;  %v9222_v34 = vld [vmem:[#allocation4_spill] sm:$0xff] }
  0x94   : > { %9185 = vst [vmem:[#allocation61_spill] sm:$0xff] %v5706_v59  ;;  %v5724_v27 = vadd.f32 %v1164_v31, %v5593_v18  ;;  %v5727_v49 = vadd.f32 %v1165_v45, %v5596_v0  ;;  %v5730_v53 = vadd.f32 %v1166_v6, %v5599_v19  ;;  %v5733_v46 = vadd.f32 %v1167_v58, %v5602_v62  ;;  %v9201_v62 = vld [vmem:[#allocation72_spill] sm:$0xff]  ;;  %v9221_v3 = vld [vmem:[#allocation17_spill] sm:$0xff] }
  0x95   : > { %9186 = vst [vmem:[#allocation62_spill] sm:$0xff] %v5709_v21  ;;  %9187 = vst [vmem:[#allocation63_spill] sm:$0xff] %v5712_v5  ;;  %v5736_v7 = vadd.f32 %v1168_v2, %v5605_v11  ;;  %v5739_v16 = vadd.f32 %v1169_v61, %v5608_v10  ;;  %v5742_v38 = vadd.f32 %v1170_v48, %v5611_v50  ;;  %v9203_v11 = vld [vmem:[#allocation2_spill] sm:$0xff]  ;;  %v9205_v50 = vld [vmem:[#allocation52_spill] sm:$0xff] }
  0x96   : > { %9189 = vst [vmem:[#allocation65_spill] sm:$0xff] %v5718_v4  ;;  %9190 = vst [vmem:[#allocation66_spill] sm:$0xff] %v5721_v22  ;;  %v5745_v18 = vadd.f32 %v1171_v52, %v5614_v60  ;;  %v5748_v0 = vadd.f32 %v1172_v51, %v5617_v32  ;;  %v5751_v19 = vadd.f32 %v1173_v37, %v5620_v14  ;;  %v4193_v10 = vld [vmem:[%s8758_s1 + $0x4] ss:$0 sm:$0xff]  ;;  %v9207_v60 = vld [vmem:[#allocation53_spill] sm:$0xff] }
  0x97   : > { %9191 = vst [vmem:[#allocation67_spill] sm:$0xff] %v5724_v27  ;;  %9192 = vst [vmem:[#allocation68_spill] sm:$0xff] %v5727_v49  ;;  %v5754_v8 = vadd.f32 %v1174_v41, %v9201_v62  ;;  %v5757_v56 = vadd.f32 %v1175_v44, %v9203_v11  ;;  %v5763_v43 = vadd.f32 %v1176_v25, %v9205_v50  ;;  %v9209_v32 = vld [vmem:[#allocation54_spill] sm:$0xff]  ;;  %v9211_v14 = vld [vmem:[#allocation55_spill] sm:$0xff] }
  0x98   : > { %9193 = vst [vmem:[#allocation69_spill] sm:$0xff] %v5730_v53  ;;  %9194 = vst [vmem:[#allocation70_spill] sm:$0xff] %v5733_v46  ;;  %v5766_v17 = vadd.f32 %v1177_v39, %v9207_v60  ;;  %v5769_v23 = vadd.f32 %v1178_v57, %v9209_v32  ;;  %v5772_v2 = vadd.f32 %v1179_v13, %v9211_v14  ;;  %v9223_v31 = vld [vmem:[#allocation36_spill] sm:$0xff]  ;;  %v9225_v25 = vld [vmem:[#allocation5_spill] sm:$0xff] }
  0x99   : > { %9195 = vst [vmem:[#allocation71_spill] sm:$0xff] %v5736_v7  ;;  %9196 = vst [vmem:[#allocation3_spill] sm:$0xff] %v5739_v16  ;;  %v5775_v61 = vadd.f32 %v1180_v35, %v9213_v40  ;;  %v5778_v48 = vadd.f32 %v1181_v29, %v9215_v15  ;;  %v5781_v52 = vadd.f32 %v1182_v33, %v9217_v63  ;;  %v9224_v13 = vld [vmem:[#allocation20_spill] sm:$0xff]  ;;  %v9226_v6 = vld [vmem:[#allocation37_spill] sm:$0xff] }
  0x9a   : > { %9197 = vst [vmem:[#allocation73_spill] sm:$0xff] %v5742_v38  ;;  %9198 = vst [vmem:[#allocation74_spill] sm:$0xff] %v5745_v18  ;;  %v5784_v51 = vadd.f32 %v1183_v9, %v9219_v47  ;;  %v1221_v37 = vmul.f32 %v4193_v10, %v9221_v3  ;;  %v1222_v41 = vmul.f32 %v4193_v10, %v9222_v34  ;;  %v9227_v29 = vld [vmem:[#allocation21_spill] sm:$0xff]  ;;  %v9228_v33 = vld [vmem:[#allocation6_spill] sm:$0xff] }
  0x9b   : > { %9199 = vst [vmem:[#allocation75_spill] sm:$0xff] %v5748_v0  ;;  %9200 = vst [vmem:[#allocation76_spill] sm:$0xff] %v5751_v19  ;;  %v1223_v44 = vmul.f32 %v4193_v10, %v9223_v31  ;;  %v1224_v45 = vmul.f32 %v4193_v10, %v9224_v13  ;;  %v1225_v35 = vmul.f32 %v4193_v10, %v9225_v25  ;;  %v9229_v9 = vld [vmem:[#allocation38_spill] sm:$0xff]  ;;  %v9230_v11 = vld [vmem:[#allocation23_spill] sm:$0xff] }
  0x9c   : > { %9202 = vst [vmem:[#allocation72_spill] sm:$0xff] %v5754_v8  ;;  %9204 = vst [vmem:[#allocation2_spill] sm:$0xff] %v5757_v56  ;;  %v1226_v39 = vmul.f32 %v4193_v10, %v9226_v6  ;;  %v5793_v58 = vmul.f32 %v4193_v10, %v9227_v29  ;;  %v5796_v57 = vmul.f32 %v4193_v10, %v9228_v33  ;;  %v9231_v60 = vld [vmem:[#allocation7_spill] sm:$0xff]  ;;  %v9233_v15 = vld [vmem:[#allocation24_spill] sm:$0xff]  ;;  %v1318_v27 = vrot.slane %v1222_v41, 1 }
  0x9d   : > { %9206 = vst [vmem:[#allocation52_spill] sm:$0xff] %v5763_v43  ;;  %9208 = vst [vmem:[#allocation53_spill] sm:$0xff] %v5766_v17  ;;  %v5799_v62 = vmul.f32 %v4193_v10, %v9229_v9  ;;  %v5802_v50 = vmul.f32 %v4193_v10, %v9230_v11  ;;  %v5805_v32 = vmul.f32 %v4193_v10, %v9231_v60  ;;  %v9232_v14 = vld [vmem:[#allocation39_spill] sm:$0xff]  ;;  %v9234_v47 = vld [vmem:[#allocation8_spill] sm:$0xff]  ;;  %v1320_v22 = vrot.slane %v1223_v44, 1 }
  0x9e   : > { %9210 = vst [vmem:[#allocation54_spill] sm:$0xff] %v5769_v23  ;;  %9212 = vst [vmem:[#allocation55_spill] sm:$0xff] %v5772_v2  ;;  %v5808_v40 = vmul.f32 %v4193_v10, %v9232_v14  ;;  %v5811_v63 = vmul.f32 %v4193_v10, %v9233_v15  ;;  %v5814_v29 = vmul.f32 %v4193_v10, %v9234_v47  ;;  %v9235_v33 = vld [vmem:[#allocation40_spill] sm:$0xff]  ;;  %v9236_v9 = vld [vmem:[#allocation25_spill] sm:$0xff]  ;;  %v1323_v42 = vrot.slane %v1225_v35, 1 }
  0x9f   : > { %9214 = vst [vmem:[#allocation56_spill] sm:$0xff] %v5775_v61  ;;  %9216 = vst [vmem:[#allocation57_spill] sm:$0xff] %v5778_v48  ;;  %v5817_v6 = vmul.f32 %v4193_v10, %v9235_v33  ;;  %v5820_v25 = vmul.f32 %v4193_v10, %v9236_v9  ;;  %v9237_v11 = vld [vmem:[#allocation9_spill] sm:$0xff]  ;;  %v9239_v14 = vld [vmem:[#allocation26_spill] sm:$0xff]  ;;  %v1325_v5 = vrot.slane %v1226_v39, 1  ;;  %v1328_v35 = vrot.slane %v5796_v57, 1 }
  0xa0   : > { %9218 = vst [vmem:[#allocation58_spill] sm:$0xff] %v5781_v52  ;;  %9220 = vst [vmem:[#allocation59_spill] sm:$0xff] %v5784_v51  ;;  %v5823_v13 = vmul.f32 %v4193_v10, %v9237_v11  ;;  %v9238_v60 = vld [vmem:[#allocation41_spill] sm:$0xff]  ;;  %v5829_v34 = vmul.f32 %v4193_v10, %v9239_v14  ;;  %v9240_v15 = vld [vmem:[#allocation10_spill] sm:$0xff]  ;;  %v1335_v57 = vrot.slane %v5808_v40, 1 }
  0xa1   : > { %v5826_v31 = vmul.f32 %v4193_v10, %v9238_v60  ;;  %v5832_v3 = vmul.f32 %v4193_v10, %v9240_v15  ;;  %v9241_v47 = vld [vmem:[#allocation42_spill] sm:$0xff]  ;;  %v9242_v33 = vld [vmem:[#allocation27_spill] sm:$0xff]  ;;  %v9245_v60 = vld [vmem:[#allocation28_spill] sm:$0xff] }
  0xa2   : > { %v5835_v51 = vmul.f32 %v4193_v10, %v9241_v47  ;;  %v5838_v52 = vmul.f32 %v4193_v10, %v9242_v33  ;;  %v9243_v9 = vld [vmem:[#allocation11_spill] sm:$0xff]  ;;  %v5847_v2 = vmul.f32 %v4193_v10, %v9245_v60  ;;  %v9246_v14 = vld [vmem:[#allocation12_spill] sm:$0xff]  ;;  %v9248_v47 = vld [vmem:[#allocation29_spill] sm:$0xff] }
  0xa3   : > { %v5841_v48 = vmul.f32 %v4193_v10, %v9243_v9  ;;  %v9244_v11 = vld [vmem:[#allocation43_spill] sm:$0xff]  ;;  %v5850_v23 = vmul.f32 %v4193_v10, %v9246_v14  ;;  %v9247_v15 = vld [vmem:[#allocation44_spill] sm:$0xff]  ;;  %v5856_v43 = vmul.f32 %v4193_v10, %v9248_v47  ;;  %v9249_v33 = vld [vmem:[#allocation13_spill] sm:$0xff] }
  0xa4   : > { %v5844_v61 = vmul.f32 %v4193_v10, %v9244_v11  ;;  %v5853_v17 = vmul.f32 %v4193_v10, %v9247_v15  ;;  %v5859_v56 = vmul.f32 %v4193_v10, %v9249_v33  ;;  %v9250_v9 = vld [vmem:[#allocation45_spill] sm:$0xff]  ;;  %v9251_v11 = vld [vmem:[#allocation30_spill] sm:$0xff]  ;;  %v9254_v15 = vld [vmem:[#allocation31_spill] sm:$0xff] }
  0xa5   : > { %v5862_v8 = vmul.f32 %v4193_v10, %v9250_v9  ;;  %v5865_v19 = vmul.f32 %v4193_v10, %v9251_v11  ;;  %v9252_v60 = vld [vmem:[#allocation14_spill] sm:$0xff]  ;;  %v5874_v38 = vmul.f32 %v4193_v10, %v9254_v15  ;;  %v9255_v47 = vld [vmem:[#allocation15_spill] sm:$0xff]  ;;  %v5883_v9 = vmul.f32 %v4193_v10, %v9175_v28  ;;  %v9257_v11 = vld [vmem:[#allocation16_spill] sm:$0xff] }
  0xa6   : > { %v5868_v0 = vmul.f32 %v4193_v10, %v9252_v60  ;;  %v9253_v14 = vld [vmem:[#allocation46_spill] sm:$0xff]  ;;  %v5877_v16 = vmul.f32 %v4193_v10, %v9255_v47  ;;  %v9256_v33 = vld [vmem:[#allocation47_spill] sm:$0xff]  ;;  %v5886_v46 = vmul.f32 %v4193_v10, %v9257_v11  ;;  %v9258_v60 = vld [vmem:[#allocation48_spill] sm:$0xff]  ;;  %v5895_v15 = vmul.f32 %v4193_v10, %v9178_v30 }
  0xa7   : > { %v5871_v18 = vmul.f32 %v4193_v10, %v9253_v14  ;;  %v5880_v7 = vmul.f32 %v4193_v10, %v9256_v33  ;;  %v5889_v53 = vmul.f32 %v4193_v10, %v9258_v60  ;;  %v9259_v14 = vld [vmem:[#allocation33_spill] sm:$0xff]  ;;  %v1317_v47 = vrot.slane %v1221_v37, 1  ;;  %v9261_v11 = vld [vmem:[#allocation34_spill] sm:$0xff]  ;;  %v9262_v60 = vld [vmem:[#allocation19_spill] sm:$0xff] }
  0xa8   : > { %v5892_v49 = vmul.f32 %v4193_v10, %v9259_v14  ;;  %v9260_v33 = vld [vmem:[#allocation49_spill] sm:$0xff]  ;;  %v1322_v28 = vrot.slane %v1224_v45, 1  ;;  %v5901_v21 = vmul.f32 %v4193_v10, %v9261_v11  ;;  %v5904_v59 = vmul.f32 %v4193_v10, %v9262_v60  ;;  %v9263_v14 = vld [vmem:[#allocation50_spill] sm:$0xff]  ;;  %v9264_v41 = vld [vmem:[#allocation51_spill] sm:$0xff] }
  0xa9   : > { %v5898_v4 = vmul.f32 %v4193_v10, %v9260_v33  ;;  %v5907_v1 = vmul.f32 %v4193_v10, %v9263_v14  ;;  %v5910_v30 = vmul.f32 %v4193_v10, %v9181_v36  ;;  %v5913_v37 = vmul.f32 %v4193_v10, %v9182_v12 }
  0xaa   : > { %v5916_v44 = vmul.f32 %v4193_v10, %v9264_v41  ;;  %v1327_v45 = vrot.slane %v5793_v58, 1  ;;  %v5921_v39 = vsel %vm770_vm1, %v1317_v47, %v1318_v27  ;;  %v5924_v60 = vsel %vm770_vm1, %v1318_v27, %v1320_v22 }
  0xab   : > { %v1330_v14 = vrot.slane %v5799_v62, 1  ;;  %v1332_v36 = vrot.slane %v5802_v50, 1  ;;  %v5929_v12 = vsel %vm770_vm1, %v1322_v28, %v1323_v42  ;;  %v5932_v10 = vsel %vm770_vm1, %v1323_v42, %v1325_v5 }
  0xac   : > { %v1333_v58 = vrot.slane %v5805_v32, 1  ;;  %v1337_v47 = vrot.slane %v5811_v63, 1  ;;  %v1338_v41 = vrot.slane %v5814_v29, 1  ;;  %v1340_v22 = vrot.slane %v5817_v6, 1 }
  0xad   : > { %v1342_v27 = vrot.slane %v5820_v25, 1  ;;  %v1343_v62 = vrot.slane %v5823_v13, 1  ;;  %v1345_v28 = vrot.slane %v5826_v31, 1  ;;  %v1347_v50 = vrot.slane %v5829_v34, 1 }
  0xae   : > { %v1348_v5 = vrot.slane %v5832_v3, 1  ;;  %v1350_v42 = vrot.slane %v5835_v51, 1  ;;  %v1352_v32 = vrot.slane %v5838_v52, 1  ;;  %v1353_v40 = vrot.slane %v5841_v48, 1 }
  0xaf   : > { %v1355_v29 = vrot.slane %v5844_v61, 1  ;;  %v1329_v6 = vsel %vm770_vm1, %v1327_v45, %v1328_v35  ;;  %v1331_v25 = vsel %vm770_vm1, %v1328_v35, %v1330_v14  ;;  %v1357_v13 = vrot.slane %v5847_v2, 1 }
  0xb0   : > { %v1358_v31 = vrot.slane %v5850_v23, 1  ;;  %v1334_v34 = vsel %vm770_vm1, %v1332_v36, %v1333_v58  ;;  %v1336_v3 = vsel %vm770_vm1, %v1333_v58, %v1335_v57  ;;  %v1339_v51 = vsel %vm770_vm1, %v1337_v47, %v1338_v41 }
  0xb1   : > { %v1360_v52 = vrot.slane %v5853_v17, 1  ;;  %v1341_v48 = vsel %vm770_vm1, %v1338_v41, %v1340_v22  ;;  %v1344_v61 = vsel %vm770_vm1, %v1342_v27, %v1343_v62  ;;  %v1346_v63 = vsel %vm770_vm1, %v1343_v62, %v1345_v28 }
  0xb2   : > { %v1349_v14 = vsel %vm770_vm1, %v1347_v50, %v1348_v5  ;;  %v1351_v2 = vsel %vm770_vm1, %v1348_v5, %v1350_v42  ;;  %v1354_v23 = vsel %vm770_vm1, %v1352_v32, %v1353_v40  ;;  %v1356_v36 = vsel %vm770_vm1, %v1353_v40, %v1355_v29 }
  0xb3   : > { %v1362_v45 = vrot.slane %v5856_v43, 1  ;;  %v1359_v35 = vsel %vm770_vm1, %v1357_v13, %v1358_v31  ;;  %v1363_v17 = vrot.slane %v5859_v56, 1  ;;  %v1365_v41 = vrot.slane %v5862_v8, 1 }
  0xb4   : > { %v1367_v58 = vrot.slane %v5865_v19, 1  ;;  %v1361_v57 = vsel %vm770_vm1, %v1358_v31, %v1360_v52  ;;  %v1368_v47 = vrot.slane %v5868_v0, 1  ;;  %v1370_v22 = vrot.slane %v5871_v18, 1 }
  0xb5   : > { %v1372_v27 = vrot.slane %v5874_v38, 1  ;;  %v1373_v62 = vrot.slane %v5877_v16, 1  ;;  %v1375_v43 = vrot.slane %v5880_v7, 1  ;;  %v1377_v28 = vrot.slane %v5883_v9, 1 }
  0xb6   : > { %v1378_v56 = vrot.slane %v5886_v46, 1  ;;  %v1380_v8 = vrot.slane %v5889_v53, 1  ;;  %v1382_v19 = vrot.slane %v5892_v49, 1  ;;  %v1383_v50 = vrot.slane %v5895_v15, 1 }
  0xb7   : > { %v1385_v0 = vrot.slane %v5898_v4, 1  ;;  %v1364_v18 = vsel %vm770_vm1, %v1362_v45, %v1363_v17  ;;  %v1387_v38 = vrot.slane %v5901_v21, 1  ;;  %v1388_v16 = vrot.slane %v5904_v59, 1 }
  0xb8   : > { %v1390_v7 = vrot.slane %v5907_v1, 1  ;;  %v1366_v9 = vsel %vm770_vm1, %v1363_v17, %v1365_v41  ;;  %v1392_v46 = vrot.slane %v5910_v30, 1  ;;  %v1393_v53 = vrot.slane %v5913_v37, 1  ;;  %v9268_v17 = vld [vmem:[#allocation62_spill] sm:$0xff] }
  0xb9   : > { %v1395_v49 = vrot.slane %v5916_v44, 1  ;;  %v1369_v15 = vsel %vm770_vm1, %v1367_v58, %v1368_v47  ;;  %v1371_v4 = vsel %vm770_vm1, %v1368_v47, %v1370_v22  ;;  %v1374_v5 = vsel %vm770_vm1, %v1372_v27, %v1373_v62  ;;  %v9270_v58 = vld [vmem:[#allocation63_spill] sm:$0xff] }
  0xba   : > { %v1376_v21 = vsel %vm770_vm1, %v1373_v62, %v1375_v43  ;;  %v1379_v59 = vsel %vm770_vm1, %v1377_v28, %v1378_v56  ;;  %v1381_v1 = vsel %vm770_vm1, %v1378_v56, %v1380_v8  ;;  %v1384_v42 = vsel %vm770_vm1, %v1382_v19, %v1383_v50 }
  0xbb   : > { %v1386_v30 = vsel %vm770_vm1, %v1383_v50, %v1385_v0  ;;  %v1389_v37 = vsel %vm770_vm1, %v1387_v38, %v1388_v16  ;;  %v1391_v44 = vsel %vm770_vm1, %v1388_v16, %v1390_v7  ;;  %v6000_v32 = vadd.f32 %v5921_v39, %v5688_v26  ;;  %v9265_v26 = vld [vmem:[#allocation60_spill] sm:$0xff] }
  0xbc   : > { %v6004_v40 = vadd.f32 %v5924_v60, %v5691_v20  ;;  %v1394_v29 = vsel %vm770_vm1, %v1392_v46, %v1393_v53  ;;  %v1396_v13 = vsel %vm770_vm1, %v1393_v53, %v1395_v49  ;;  %v6010_v31 = vadd.f32 %v5929_v12, %v5694_v24  ;;  %v9266_v20 = vld [vmem:[#allocation61_spill] sm:$0xff]  ;;  %v9272_v12 = vld [vmem:[#allocation64_spill] sm:$0xff]  ;;  %v9306_v53 = vld [vmem:[#allocation54_spill] sm:$0xff] }
  0xbd   : > { %v6014_v52 = vadd.f32 %v5932_v10, %v5697_v55  ;;  %v6017_v45 = vadd.f32 %v1329_v6, %v5700_v54  ;;  %v6020_v39 = vadd.f32 %v1331_v25, %v9265_v26  ;;  %v6023_v60 = vadd.f32 %v1334_v34, %v9266_v20  ;;  %v9274_v55 = vld [vmem:[#allocation65_spill] sm:$0xff]  ;;  %v9276_v54 = vld [vmem:[#allocation66_spill] sm:$0xff]  ;;  %v9278_v25 = vld [vmem:[#allocation67_spill] sm:$0xff] }
  0xbe   : > { %v6026_v41 = vadd.f32 %v1336_v3, %v9268_v17  ;;  %v6029_v47 = vadd.f32 %v1339_v51, %v9270_v58  ;;  %v6032_v24 = vadd.f32 %v1341_v48, %v9272_v12  ;;  %v6035_v10 = vadd.f32 %v1344_v61, %v9274_v55  ;;  %v9280_v34 = vld [vmem:[#allocation68_spill] sm:$0xff]  ;;  %v9282_v3 = vld [vmem:[#allocation69_spill] sm:$0xff]  ;;  %v9284_v51 = vld [vmem:[#allocation70_spill] sm:$0xff] }
  0xbf   : > { %9267 = vst [vmem:[#allocation60_spill] sm:$0xff] %v6023_v60  ;;  %v6038_v6 = vadd.f32 %v1346_v63, %v9276_v54  ;;  %v6041_v22 = vadd.f32 %v1349_v14, %v9278_v25  ;;  %v6044_v27 = vadd.f32 %v1351_v2, %v9280_v34  ;;  %v6047_v62 = vadd.f32 %v1354_v23, %v9282_v3  ;;  %v9286_v48 = vld [vmem:[#allocation71_spill] sm:$0xff]  ;;  %v9290_v63 = vld [vmem:[#allocation73_spill] sm:$0xff]  ;;  %v9292_v14 = vld [vmem:[#allocation74_spill] sm:$0xff] }
  0xc0   : > { %9269 = vst [vmem:[#allocation61_spill] sm:$0xff] %v6026_v41  ;;  %9271 = vst [vmem:[#allocation62_spill] sm:$0xff] %v6029_v47  ;;  %v6050_v43 = vadd.f32 %v1356_v36, %v9284_v51  ;;  %v6053_v28 = vadd.f32 %v1359_v35, %v9286_v48  ;;  %v9288_v61 = vld [vmem:[#allocation3_spill] sm:$0xff]  ;;  %v6059_v8 = vadd.f32 %v1364_v18, %v9290_v63  ;;  %v9296_v23 = vld [vmem:[#allocation76_spill] sm:$0xff] }
  0xc1   : > { %9273 = vst [vmem:[#allocation63_spill] sm:$0xff] %v6032_v24  ;;  %9275 = vst [vmem:[#allocation64_spill] sm:$0xff] %v6035_v10  ;;  %v6056_v56 = vadd.f32 %v1361_v57, %v9288_v61  ;;  %v6062_v19 = vadd.f32 %v1366_v9, %v9292_v14  ;;  %v9294_v2 = vld [vmem:[#allocation75_spill] sm:$0xff]  ;;  %v6068_v0 = vadd.f32 %v1371_v4, %v9296_v23  ;;  %v9298_v36 = vld [vmem:[#allocation72_spill] sm:$0xff] }
  0xc2   : > { %9277 = vst [vmem:[#allocation65_spill] sm:$0xff] %v6038_v6  ;;  %9279 = vst [vmem:[#allocation66_spill] sm:$0xff] %v6041_v22  ;;  %v6065_v50 = vadd.f32 %v1369_v15, %v9294_v2  ;;  %v6071_v38 = vadd.f32 %v1374_v5, %v9298_v36  ;;  %v9300_v35 = vld [vmem:[#allocation2_spill] sm:$0xff]  ;;  %v9302_v18 = vld [vmem:[#allocation52_spill] sm:$0xff]  ;;  %v6086_v49 = vadd.f32 %v1384_v42, %v9306_v53 }
  0xc3   : > { %9281 = vst [vmem:[#allocation67_spill] sm:$0xff] %v6044_v27  ;;  %9283 = vst [vmem:[#allocation68_spill] sm:$0xff] %v6047_v62  ;;  %v6074_v16 = vadd.f32 %v1376_v21, %v9300_v35  ;;  %v4194_v57 = vld [vmem:[%s8758_s1 + $0x5] ss:$0 sm:$0xff]  ;;  %v6080_v7 = vadd.f32 %v1379_v59, %v9302_v18  ;;  %v9304_v9 = vld [vmem:[#allocation53_spill] sm:$0xff] }
  0xc4   : > { %9285 = vst [vmem:[#allocation69_spill] sm:$0xff] %v6050_v43  ;;  %9287 = vst [vmem:[#allocation70_spill] sm:$0xff] %v6053_v28  ;;  %v6083_v46 = vadd.f32 %v1381_v1, %v9304_v9  ;;  %v9308_v15 = vld [vmem:[#allocation55_spill] sm:$0xff]  ;;  %v9310_v5 = vld [vmem:[#allocation56_spill] sm:$0xff] }
  0xc5   : > { %9289 = vst [vmem:[#allocation71_spill] sm:$0xff] %v6056_v56  ;;  %9291 = vst [vmem:[#allocation3_spill] sm:$0xff] %v6059_v8  ;;  %v6089_v4 = vadd.f32 %v1386_v30, %v9308_v15  ;;  %v6092_v26 = vadd.f32 %v1389_v37, %v9310_v5  ;;  %v9312_v21 = vld [vmem:[#allocation57_spill] sm:$0xff]  ;;  %v9314_v17 = vld [vmem:[#allocation58_spill] sm:$0xff] }
  0xc6   : > { %9293 = vst [vmem:[#allocation73_spill] sm:$0xff] %v6062_v19  ;;  %9295 = vst [vmem:[#allocation74_spill] sm:$0xff] %v6065_v50  ;;  %v6095_v20 = vadd.f32 %v1391_v44, %v9312_v21  ;;  %v6098_v58 = vadd.f32 %v1394_v29, %v9314_v17  ;;  %v9316_v59 = vld [vmem:[#allocation59_spill] sm:$0xff]  ;;  %v9318_v1 = vld [vmem:[#allocation17_spill] sm:$0xff] }
  0xc7   : > { %9297 = vst [vmem:[#allocation75_spill] sm:$0xff] %v6068_v0  ;;  %9299 = vst [vmem:[#allocation76_spill] sm:$0xff] %v6071_v38  ;;  %v6101_v12 = vadd.f32 %v1396_v13, %v9316_v59  ;;  %v1466_v55 = vmul.f32 %v4194_v57, %v9318_v1  ;;  %v9319_v54 = vld [vmem:[#allocation4_spill] sm:$0xff]  ;;  %v9322_v51 = vld [vmem:[#allocation5_spill] sm:$0xff] }
  0xc8   : > { %9301 = vst [vmem:[#allocation72_spill] sm:$0xff] %v6074_v16  ;;  %9303 = vst [vmem:[#allocation2_spill] sm:$0xff] %v6080_v7  ;;  %v1467_v42 = vmul.f32 %v4194_v57, %v9319_v54  ;;  %v9320_v25 = vld [vmem:[#allocation36_spill] sm:$0xff]  ;;  %v1470_v37 = vmul.f32 %v4194_v57, %v9322_v51  ;;  %v9323_v48 = vld [vmem:[#allocation37_spill] sm:$0xff] }
  0xc9   : > { %9305 = vst [vmem:[#allocation52_spill] sm:$0xff] %v6083_v46  ;;  %9307 = vst [vmem:[#allocation53_spill] sm:$0xff] %v6086_v49  ;;  %v1468_v34 = vmul.f32 %v4194_v57, %v9320_v25  ;;  %v9321_v30 = vld [vmem:[#allocation20_spill] sm:$0xff]  ;;  %v1471_v61 = vmul.f32 %v4194_v57, %v9323_v48  ;;  %v9324_v44 = vld [vmem:[#allocation21_spill] sm:$0xff] }
  0xca   : > { %9309 = vst [vmem:[#allocation54_spill] sm:$0xff] %v6089_v4  ;;  %9311 = vst [vmem:[#allocation55_spill] sm:$0xff] %v6092_v26  ;;  %v1469_v3 = vmul.f32 %v4194_v57, %v9321_v30  ;;  %v6110_v63 = vmul.f32 %v4194_v57, %v9324_v44  ;;  %v9325_v29 = vld [vmem:[#allocation6_spill] sm:$0xff]  ;;  %v9327_v23 = vld [vmem:[#allocation23_spill] sm:$0xff]  ;;  %v1563_v22 = vrot.slane %v1467_v42, 2  ;;  %v1568_v10 = vrot.slane %v1470_v37, 2 }
  0xcb   : > { %9313 = vst [vmem:[#allocation56_spill] sm:$0xff] %v6095_v20  ;;  %9315 = vst [vmem:[#allocation57_spill] sm:$0xff] %v6098_v58  ;;  %v6113_v14 = vmul.f32 %v4194_v57, %v9325_v29  ;;  %v9326_v13 = vld [vmem:[#allocation38_spill] sm:$0xff]  ;;  %v6119_v36 = vmul.f32 %v4194_v57, %v9327_v23  ;;  %v9328_v35 = vld [vmem:[#allocation7_spill] sm:$0xff]  ;;  %v1565_v6 = vrot.slane %v1468_v34, 2  ;;  %v1570_v24 = vrot.slane %v1471_v61, 2 }
  0xcc   : > { %9317 = vst [vmem:[#allocation58_spill] sm:$0xff] %v6101_v12  ;;  %v6116_v2 = vmul.f32 %v4194_v57, %v9326_v13  ;;  %v6122_v18 = vmul.f32 %v4194_v57, %v9328_v35  ;;  %v9329_v9 = vld [vmem:[#allocation39_spill] sm:$0xff]  ;;  %v9330_v15 = vld [vmem:[#allocation24_spill] sm:$0xff]  ;;  %v9333_v54 = vld [vmem:[#allocation25_spill] sm:$0xff] }
  0xcd   : > { %v6125_v53 = vmul.f32 %v4194_v57, %v9329_v9  ;;  %v6128_v5 = vmul.f32 %v4194_v57, %v9330_v15  ;;  %v9331_v21 = vld [vmem:[#allocation8_spill] sm:$0xff]  ;;  %v6137_v25 = vmul.f32 %v4194_v57, %v9333_v54  ;;  %v9334_v13 = vld [vmem:[#allocation9_spill] sm:$0xff]  ;;  %v9336_v9 = vld [vmem:[#allocation26_spill] sm:$0xff]  ;;  %v1573_v37 = vrot.slane %v6113_v14, 2 }
  0xce   : > { %v6131_v17 = vmul.f32 %v4194_v57, %v9331_v21  ;;  %v9332_v59 = vld [vmem:[#allocation40_spill] sm:$0xff]  ;;  %v6140_v48 = vmul.f32 %v4194_v57, %v9334_v13  ;;  %v9335_v35 = vld [vmem:[#allocation41_spill] sm:$0xff]  ;;  %v6146_v29 = vmul.f32 %v4194_v57, %v9336_v9  ;;  %v9337_v15 = vld [vmem:[#allocation10_spill] sm:$0xff] }
  0xcf   : > { %v6134_v1 = vmul.f32 %v4194_v57, %v9332_v59  ;;  %v6143_v23 = vmul.f32 %v4194_v57, %v9335_v35  ;;  %v6149_v44 = vmul.f32 %v4194_v57, %v9337_v15  ;;  %v9338_v21 = vld [vmem:[#allocation42_spill] sm:$0xff]  ;;  %v9339_v59 = vld [vmem:[#allocation27_spill] sm:$0xff]  ;;  %v9342_v35 = vld [vmem:[#allocation28_spill] sm:$0xff]  ;;  %v1580_v14 = vrot.slane %v6125_v53, 2 }
  0xd0   : > { %v6152_v51 = vmul.f32 %v4194_v57, %v9338_v21  ;;  %v6155_v30 = vmul.f32 %v4194_v57, %v9339_v59  ;;  %v9340_v54 = vld [vmem:[#allocation11_spill] sm:$0xff]  ;;  %v6164_v20 = vmul.f32 %v4194_v57, %v9342_v35  ;;  %v9343_v9 = vld [vmem:[#allocation12_spill] sm:$0xff]  ;;  %v9345_v21 = vld [vmem:[#allocation29_spill] sm:$0xff] }
  0xd1   : > { %v6158_v12 = vmul.f32 %v4194_v57, %v9340_v54  ;;  %v9341_v13 = vld [vmem:[#allocation43_spill] sm:$0xff]  ;;  %v6167_v26 = vmul.f32 %v4194_v57, %v9343_v9  ;;  %v9344_v15 = vld [vmem:[#allocation44_spill] sm:$0xff]  ;;  %v6173_v49 = vmul.f32 %v4194_v57, %v9345_v21  ;;  %v9346_v59 = vld [vmem:[#allocation13_spill] sm:$0xff] }
  0xd2   : > { %v6161_v58 = vmul.f32 %v4194_v57, %v9341_v13  ;;  %v6170_v4 = vmul.f32 %v4194_v57, %v9344_v15  ;;  %v6176_v46 = vmul.f32 %v4194_v57, %v9346_v59  ;;  %v9347_v54 = vld [vmem:[#allocation45_spill] sm:$0xff]  ;;  %v9348_v13 = vld [vmem:[#allocation30_spill] sm:$0xff]  ;;  %v9351_v15 = vld [vmem:[#allocation31_spill] sm:$0xff] }
  0xd3   : > { %v6179_v7 = vmul.f32 %v4194_v57, %v9347_v54  ;;  %v6182_v16 = vmul.f32 %v4194_v57, %v9348_v13  ;;  %v9349_v35 = vld [vmem:[#allocation14_spill] sm:$0xff]  ;;  %v6191_v50 = vmul.f32 %v4194_v57, %v9351_v15  ;;  %v9352_v21 = vld [vmem:[#allocation15_spill] sm:$0xff]  ;;  %v9354_v54 = vld [vmem:[#allocation32_spill] sm:$0xff]  ;;  %v1598_v53 = vrot.slane %v6158_v12, 2 }
  0xd4   : > { %v6185_v38 = vmul.f32 %v4194_v57, %v9349_v35  ;;  %v9350_v9 = vld [vmem:[#allocation46_spill] sm:$0xff]  ;;  %v6194_v19 = vmul.f32 %v4194_v57, %v9352_v21  ;;  %v9353_v59 = vld [vmem:[#allocation47_spill] sm:$0xff]  ;;  %v6200_v56 = vmul.f32 %v4194_v57, %v9354_v54  ;;  %v9355_v13 = vld [vmem:[#allocation16_spill] sm:$0xff]  ;;  %v1562_v21 = vrot.slane %v1466_v55, 2 }
  0xd5   : > { %v6188_v0 = vmul.f32 %v4194_v57, %v9350_v9  ;;  %v6197_v8 = vmul.f32 %v4194_v57, %v9353_v59  ;;  %v6203_v28 = vmul.f32 %v4194_v57, %v9355_v13  ;;  %v9356_v35 = vld [vmem:[#allocation48_spill] sm:$0xff]  ;;  %v9357_v9 = vld [vmem:[#allocation33_spill] sm:$0xff]  ;;  %v9358_v15 = vld [vmem:[#allocation18_spill] sm:$0xff]  ;;  %v6215_v59 = vmul.f32 %v4194_v57, %v9260_v33 }
  0xd6   : > { %v6206_v43 = vmul.f32 %v4194_v57, %v9356_v35  ;;  %v6209_v62 = vmul.f32 %v4194_v57, %v9357_v9  ;;  %v6212_v27 = vmul.f32 %v4194_v57, %v9358_v15  ;;  %v1567_v54 = vrot.slane %v1469_v3, 2  ;;  %v9359_v35 = vld [vmem:[#allocation19_spill] sm:$0xff]  ;;  %v9360_v9 = vld [vmem:[#allocation50_spill] sm:$0xff] }
  0xd7   : > { %v6218_v13 = vmul.f32 %v4194_v57, %v9261_v11  ;;  %v6221_v47 = vmul.f32 %v4194_v57, %v9359_v35  ;;  %v6224_v41 = vmul.f32 %v4194_v57, %v9360_v9  ;;  %v9361_v15 = vld [vmem:[#allocation35_spill] sm:$0xff]  ;;  %v9362_v55 = vld [vmem:[#allocation22_spill] sm:$0xff]  ;;  %v1572_v3 = vrot.slane %v6110_v63, 2 }
  0xd8   : > { %v6227_v60 = vmul.f32 %v4194_v57, %v9361_v15  ;;  %v6230_v42 = vmul.f32 %v4194_v57, %v9362_v55  ;;  %v9363_v34 = vld [vmem:[#allocation51_spill] sm:$0xff]  ;;  %v6238_v61 = vsel %vm1007_vm2, %v1562_v21, %v1563_v22  ;;  %v6241_v35 = vsel %vm1007_vm2, %v1563_v22, %v1565_v6 }
  0xd9   : > { %v6233_v33 = vmul.f32 %v4194_v57, %v9363_v34  ;;  %v1575_v9 = vrot.slane %v6116_v2, 2  ;;  %v1577_v15 = vrot.slane %v6119_v36, 2  ;;  %v6246_v55 = vsel %vm1007_vm2, %v1567_v54, %v1568_v10 }
  0xda   : > { %v6249_v57 = vsel %vm1007_vm2, %v1568_v10, %v1570_v24  ;;  %v1578_v63 = vrot.slane %v6122_v18, 2  ;;  %v1582_v21 = vrot.slane %v6128_v5, 2  ;;  %v1583_v34 = vrot.slane %v6131_v17, 2 }
  0xdb   : > { %v1585_v6 = vrot.slane %v6134_v1, 2  ;;  %v1587_v22 = vrot.slane %v6137_v25, 2  ;;  %v1588_v2 = vrot.slane %v6140_v48, 2  ;;  %v1590_v36 = vrot.slane %v6143_v23, 2 }
  0xdc   : > { %v1592_v54 = vrot.slane %v6146_v29, 2  ;;  %v1593_v24 = vrot.slane %v6149_v44, 2  ;;  %v1595_v10 = vrot.slane %v6152_v51, 2  ;;  %v1597_v18 = vrot.slane %v6155_v30, 2 }
  0xdd   : > { %v1600_v5 = vrot.slane %v6161_v58, 2  ;;  %v1574_v17 = vsel %vm1007_vm2, %v1572_v3, %v1573_v37  ;;  %v1576_v1 = vsel %vm1007_vm2, %v1573_v37, %v1575_v9  ;;  %v1602_v48 = vrot.slane %v6164_v20, 2 }
  0xde   : > { %v1603_v23 = vrot.slane %v6167_v26, 2  ;;  %v1579_v29 = vsel %vm1007_vm2, %v1577_v15, %v1578_v63  ;;  %v1581_v44 = vsel %vm1007_vm2, %v1578_v63, %v1580_v14  ;;  %v1584_v51 = vsel %vm1007_vm2, %v1582_v21, %v1583_v34 }
  0xdf   : > { %v1605_v30 = vrot.slane %v6170_v4, 2  ;;  %v1586_v12 = vsel %vm1007_vm2, %v1583_v34, %v1585_v6  ;;  %v1589_v58 = vsel %vm1007_vm2, %v1587_v22, %v1588_v2  ;;  %v1591_v25 = vsel %vm1007_vm2, %v1588_v2, %v1590_v36 }
  0xe0   : > { %v1594_v9 = vsel %vm1007_vm2, %v1592_v54, %v1593_v24  ;;  %v1596_v20 = vsel %vm1007_vm2, %v1593_v24, %v1595_v10  ;;  %v1599_v26 = vsel %vm1007_vm2, %v1597_v18, %v1598_v53  ;;  %v1601_v15 = vsel %vm1007_vm2, %v1598_v53, %v1600_v5 }
  0xe1   : > { %v1607_v3 = vrot.slane %v6173_v49, 2  ;;  %v1604_v37 = vsel %vm1007_vm2, %v1602_v48, %v1603_v23  ;;  %v1608_v4 = vrot.slane %v6176_v46, 2  ;;  %v1610_v34 = vrot.slane %v6179_v7, 2 }
  0xe2   : > { %v1612_v63 = vrot.slane %v6182_v16, 2  ;;  %v1606_v14 = vsel %vm1007_vm2, %v1603_v23, %v1605_v30  ;;  %v1613_v21 = vrot.slane %v6185_v38, 2  ;;  %v1615_v6 = vrot.slane %v6188_v0, 2 }
  0xe3   : > { %v1617_v22 = vrot.slane %v6191_v50, 2  ;;  %v1618_v2 = vrot.slane %v6194_v19, 2  ;;  %v1620_v49 = vrot.slane %v6197_v8, 2  ;;  %v1622_v36 = vrot.slane %v6200_v56, 2 }
  0xe4   : > { %v1623_v46 = vrot.slane %v6203_v28, 2  ;;  %v1625_v7 = vrot.slane %v6206_v43, 2  ;;  %v1627_v16 = vrot.slane %v6209_v62, 2  ;;  %v1628_v54 = vrot.slane %v6212_v27, 2 }
  0xe5   : > { %v1630_v38 = vrot.slane %v6215_v59, 2  ;;  %v1609_v0 = vsel %vm1007_vm2, %v1607_v3, %v1608_v4  ;;  %v1632_v50 = vrot.slane %v6218_v13, 2  ;;  %v1633_v19 = vrot.slane %v6221_v47, 2 }
  0xe6   : > { %v1635_v8 = vrot.slane %v6224_v41, 2  ;;  %v1611_v56 = vsel %vm1007_vm2, %v1608_v4, %v1610_v34  ;;  %v1637_v28 = vrot.slane %v6227_v60, 2  ;;  %v1638_v43 = vrot.slane %v6230_v42, 2  ;;  %v9366_v34 = vld [vmem:[#allocation62_spill] sm:$0xff] }
  0xe7   : > { %v1640_v62 = vrot.slane %v6233_v33, 2  ;;  %v1614_v27 = vsel %vm1007_vm2, %v1612_v63, %v1613_v21  ;;  %v1616_v59 = vsel %vm1007_vm2, %v1613_v21, %v1615_v6  ;;  %v1619_v24 = vsel %vm1007_vm2, %v1617_v22, %v1618_v2 }
  0xe8   : > { %v1621_v13 = vsel %vm1007_vm2, %v1618_v2, %v1620_v49  ;;  %v1624_v47 = vsel %vm1007_vm2, %v1622_v36, %v1623_v46  ;;  %v1626_v41 = vsel %vm1007_vm2, %v1623_v46, %v1625_v7  ;;  %v1629_v10 = vsel %vm1007_vm2, %v1627_v16, %v1628_v54 }
  0xe9   : > { %v1631_v60 = vsel %vm1007_vm2, %v1628_v54, %v1630_v38  ;;  %v1634_v42 = vsel %vm1007_vm2, %v1632_v50, %v1633_v19  ;;  %v1636_v33 = vsel %vm1007_vm2, %v1633_v19, %v1635_v8  ;;  %v6317_v18 = vadd.f32 %v6238_v61, %v6000_v32  ;;  %v9365_v61 = vld [vmem:[#allocation61_spill] sm:$0xff]  ;;  %v9386_v19 = vld [vmem:[#allocation52_spill] sm:$0xff] }
  0xea   : > { %v6321_v53 = vadd.f32 %v6241_v35, %v6004_v40  ;;  %v1639_v5 = vsel %vm1007_vm2, %v1637_v28, %v1638_v43  ;;  %v1641_v48 = vsel %vm1007_vm2, %v1638_v43, %v1640_v62  ;;  %v6327_v23 = vadd.f32 %v6246_v55, %v6010_v31  ;;  %v9364_v40 = vld [vmem:[#allocation60_spill] sm:$0xff]  ;;  %v9367_v31 = vld [vmem:[#allocation63_spill] sm:$0xff]  ;;  %v9390_v43 = vld [vmem:[#allocation54_spill] sm:$0xff] }
  0xeb   : > { %v6331_v30 = vadd.f32 %v6249_v57, %v6014_v52  ;;  %v6334_v3 = vadd.f32 %v1574_v17, %v6017_v45  ;;  %v6337_v32 = vadd.f32 %v1576_v1, %v6020_v39  ;;  %v6340_v35 = vadd.f32 %v1579_v29, %v9364_v40  ;;  %v9368_v52 = vld [vmem:[#allocation64_spill] sm:$0xff]  ;;  %v9369_v45 = vld [vmem:[#allocation65_spill] sm:$0xff]  ;;  %v9370_v39 = vld [vmem:[#allocation66_spill] sm:$0xff] }
  0xec   : > { %v6343_v4 = vadd.f32 %v1581_v44, %v9365_v61  ;;  %v6346_v63 = vadd.f32 %v1584_v51, %v9366_v34  ;;  %v6349_v55 = vadd.f32 %v1586_v12, %v9367_v31  ;;  %v6352_v57 = vadd.f32 %v1589_v58, %v9368_v52  ;;  %v9371_v29 = vld [vmem:[#allocation67_spill] sm:$0xff]  ;;  %v9372_v44 = vld [vmem:[#allocation68_spill] sm:$0xff]  ;;  %v9373_v51 = vld [vmem:[#allocation69_spill] sm:$0xff] }
  0xed   : > { %v6355_v17 = vadd.f32 %v1591_v25, %v9369_v45  ;;  %v6358_v1 = vadd.f32 %v1594_v9, %v9370_v39  ;;  %v6361_v21 = vadd.f32 %v1596_v20, %v9371_v29  ;;  %v6364_v6 = vadd.f32 %v1599_v26, %v9372_v44  ;;  %v9374_v12 = vld [vmem:[#allocation70_spill] sm:$0xff]  ;;  %v9375_v58 = vld [vmem:[#allocation71_spill] sm:$0xff]  ;;  %v9377_v9 = vld [vmem:[#allocation73_spill] sm:$0xff] }
  0xee   : > { %v6367_v22 = vadd.f32 %v1601_v15, %v9373_v51  ;;  %v6370_v2 = vadd.f32 %v1604_v37, %v9374_v12  ;;  %v6373_v49 = vadd.f32 %v1606_v14, %v9375_v58  ;;  %v9376_v25 = vld [vmem:[#allocation3_spill] sm:$0xff]  ;;  %v6379_v46 = vadd.f32 %v1611_v56, %v9377_v9  ;;  %v9378_v20 = vld [vmem:[#allocation74_spill] sm:$0xff]  ;;  %v9380_v15 = vld [vmem:[#allocation76_spill] sm:$0xff] }
  0xef   : > { %v6376_v36 = vadd.f32 %v1609_v0, %v9376_v25  ;;  %v6382_v7 = vadd.f32 %v1614_v27, %v9378_v20  ;;  %v9379_v26 = vld [vmem:[#allocation75_spill] sm:$0xff]  ;;  %v6388_v54 = vadd.f32 %v1619_v24, %v9380_v15  ;;  %v9382_v37 = vld [vmem:[#allocation72_spill] sm:$0xff]  ;;  %v4195_v14 = vld [vmem:[%s8758_s1 + $0x6] ss:$0 sm:$0xff]  ;;  %v6400_v8 = vadd.f32 %v1626_v41, %v9386_v19 }
  0xf0   : > { %v6385_v16 = vadd.f32 %v1616_v59, %v9379_v26  ;;  %v6391_v38 = vadd.f32 %v1621_v13, %v9382_v37  ;;  %v9384_v0 = vld [vmem:[#allocation2_spill] sm:$0xff]  ;;  %v9388_v56 = vld [vmem:[#allocation53_spill] sm:$0xff]  ;;  %v6406_v62 = vadd.f32 %v1631_v60, %v9390_v43  ;;  %v9392_v27 = vld [vmem:[#allocation55_spill] sm:$0xff] }
  0xf1   : > { %9381 = vst [vmem:[#allocation59_spill] sm:$0xff] %v6388_v54  ;;  %v6397_v50 = vadd.f32 %v1624_v47, %v9384_v0  ;;  %9387 = vst [vmem:[#allocation36_spill] sm:$0xff] %v6400_v8  ;;  %v6403_v28 = vadd.f32 %v1629_v10, %v9388_v56  ;;  %v6409_v59 = vadd.f32 %v1634_v42, %v9392_v27  ;;  %v9394_v24 = vld [vmem:[#allocation56_spill] sm:$0xff]  ;;  %v9396_v40 = vld [vmem:[#allocation57_spill] sm:$0xff]  ;;  %v1741_v54 = vmul.f32 0.0, %v4195_v14 }
  0xf2   : > { %9383 = vst [vmem:[#allocation17_spill] sm:$0xff] %v6391_v38  ;;  %9391 = vst [vmem:[#allocation61_spill] sm:$0xff] %v6406_v62  ;;  %v6412_v13 = vadd.f32 %v1636_v33, %v9394_v24  ;;  %v6415_v61 = vadd.f32 %v1639_v5, %v9396_v40  ;;  %v9398_v47 = vld [vmem:[#allocation58_spill] sm:$0xff]  ;;  %v9400_v41 = vld [vmem:[#allocation20_spill] sm:$0xff] }
  0xf3   : > { %9385 = vst [vmem:[#allocation4_spill] sm:$0xff] %v6397_v50  ;;  %9389 = vst [vmem:[#allocation60_spill] sm:$0xff] %v6403_v28  ;;  %v6418_v34 = vadd.f32 %v1641_v48, %v9398_v47  ;;  %v1711_v31 = vmul.f32 %v4195_v14, %v9400_v41  ;;  %v9401_v52 = vld [vmem:[#allocation5_spill] sm:$0xff]  ;;  %v9403_v60 = vld [vmem:[#allocation6_spill] sm:$0xff] }
  0xf4   : > { %9393 = vst [vmem:[#allocation62_spill] sm:$0xff] %v6409_v59  ;;  %9395 = vst [vmem:[#allocation63_spill] sm:$0xff] %v6412_v13  ;;  %v1712_v10 = vmul.f32 %v4195_v14, %v9401_v52  ;;  %v9402_v45 = vld [vmem:[#allocation21_spill] sm:$0xff]  ;;  %v1714_v29 = vmul.f32 %v4195_v14, %v9403_v60  ;;  %v9404_v44 = vld [vmem:[#allocation23_spill] sm:$0xff] }
  0xf5   : > { %9397 = vst [vmem:[#allocation64_spill] sm:$0xff] %v6415_v61  ;;  %9399 = vst [vmem:[#allocation65_spill] sm:$0xff] %v6418_v34  ;;  %v1713_v39 = vmul.f32 %v4195_v14, %v9402_v45  ;;  %v1715_v42 = vmul.f32 %v4195_v14, %v9404_v44  ;;  %v9405_v51 = vld [vmem:[#allocation7_spill] sm:$0xff]  ;;  %v9406_v33 = vld [vmem:[#allocation24_spill] sm:$0xff] }
  0xf6   : > { %v1716_v12 = vmul.f32 %v4195_v14, %v9405_v51  ;;  %v1717_v58 = vmul.f32 %v4195_v14, %v9406_v33  ;;  %v9407_v25 = vld [vmem:[#allocation8_spill] sm:$0xff]  ;;  %v9408_v9 = vld [vmem:[#allocation25_spill] sm:$0xff]  ;;  %v9410_v15 = vld [vmem:[#allocation26_spill] sm:$0xff] }
  0xf7   : > { %v1718_v5 = vmul.f32 %v4195_v14, %v9407_v25  ;;  %v1719_v20 = vmul.f32 %v4195_v14, %v9408_v9  ;;  %v9409_v48 = vld [vmem:[#allocation9_spill] sm:$0xff]  ;;  %v1721_v37 = vmul.f32 %v4195_v14, %v9410_v15  ;;  %v9411_v0 = vld [vmem:[#allocation10_spill] sm:$0xff]  ;;  %v9412_v56 = vld [vmem:[#allocation27_spill] sm:$0xff] }
  0xf8   : > { %v1720_v26 = vmul.f32 %v4195_v14, %v9409_v48  ;;  %v1722_v19 = vmul.f32 %v4195_v14, %v9411_v0  ;;  %v1723_v43 = vmul.f32 %v4195_v14, %v9412_v56  ;;  %v9413_v27 = vld [vmem:[#allocation11_spill] sm:$0xff]  ;;  %v9414_v40 = vld [vmem:[#allocation28_spill] sm:$0xff]  ;;  %v9416_v60 = vld [vmem:[#allocation29_spill] sm:$0xff] }
  0xf9   : > { %v1724_v24 = vmul.f32 %v4195_v14, %v9413_v27  ;;  %v1725_v47 = vmul.f32 %v4195_v14, %v9414_v40  ;;  %v9415_v44 = vld [vmem:[#allocation12_spill] sm:$0xff]  ;;  %v1727_v33 = vmul.f32 %v4195_v14, %v9416_v60  ;;  %v9417_v45 = vld [vmem:[#allocation13_spill] sm:$0xff]  ;;  %v9418_v52 = vld [vmem:[#allocation30_spill] sm:$0xff]  ;;  %v1737_v60 = vmul.f32 %v4195_v14, %v9261_v11 }
  0xfa   : > { %v1726_v51 = vmul.f32 %v4195_v14, %v9415_v44  ;;  %v1728_v25 = vmul.f32 %v4195_v14, %v9417_v45  ;;  %v1729_v9 = vmul.f32 %v4195_v14, %v9418_v52  ;;  %v9419_v41 = vld [vmem:[#allocation14_spill] sm:$0xff]  ;;  %v9420_v34 = vld [vmem:[#allocation31_spill] sm:$0xff]  ;;  %v9422_v13 = vld [vmem:[#allocation32_spill] sm:$0xff]  ;;  %v6463_v11 = vadd.f32 %v1715_v42, %v6334_v3 }
  0xfb   : > { %v1730_v48 = vmul.f32 %v4195_v14, %v9419_v41  ;;  %v1731_v15 = vmul.f32 %v4195_v14, %v9420_v34  ;;  %v9421_v61 = vld [vmem:[#allocation15_spill] sm:$0xff]  ;;  %v1733_v56 = vmul.f32 %v4195_v14, %v9422_v13  ;;  %v9423_v59 = vld [vmem:[#allocation16_spill] sm:$0xff]  ;;  %v9424_v62 = vld [vmem:[#allocation33_spill] sm:$0xff]  ;;  %v6451_v34 = vadd.f32 %v1711_v31, %v6317_v18 }
  0xfc   : > { %v1732_v0 = vmul.f32 %v4195_v14, %v9421_v61  ;;  %v1734_v27 = vmul.f32 %v4195_v14, %v9423_v59  ;;  %v1735_v40 = vmul.f32 %v4195_v14, %v9424_v62  ;;  %v9425_v28 = vld [vmem:[#allocation18_spill] sm:$0xff]  ;;  %v9426_v8 = vld [vmem:[#allocation19_spill] sm:$0xff]  ;;  %v6454_v13 = vadd.f32 %v1712_v10, %v6321_v53 }
  0xfd   : > { %v1736_v44 = vmul.f32 %v4195_v14, %v9425_v28  ;;  %v1738_v45 = vmul.f32 %v4195_v14, %v9426_v8  ;;  %v9427_v50 = vld [vmem:[#allocation35_spill] sm:$0xff]  ;;  %v9428_v38 = vld [vmem:[#allocation22_spill] sm:$0xff]  ;;  %v6457_v59 = vadd.f32 %v1713_v39, %v6327_v23  ;;  %v6460_v28 = vadd.f32 %v1714_v29, %v6331_v30 }
  0xfe   : > { %v1739_v52 = vmul.f32 %v4195_v14, %v9427_v50  ;;  %v1740_v41 = vmul.f32 %v4195_v14, %v9428_v38  ;;  %v6466_v50 = vadd.f32 %v1716_v12, %v6337_v32  ;;  %v6469_v14 = vadd.f32 %v1717_v58, %v6340_v35  ;;  %v9457_v58 = vld [vmem:[#allocation63_spill] sm:$0xff] }
  0xff   : > { %v6472_v18 = vadd.f32 %v1718_v5, %v6343_v4  ;;  %v6475_v53 = vadd.f32 %v1719_v20, %v6346_v63  ;;  %v6478_v23 = vadd.f32 %v1720_v26, %v6349_v55  ;;  %v6481_v30 = vadd.f32 %v1721_v37, %v6352_v57  ;;  %v9459_v5 = vld [vmem:[#allocation64_spill] sm:$0xff]  ;;  %v9461_v20 = vld [vmem:[#allocation65_spill] sm:$0xff] }
 0x100   : > { %v6484_v3 = vadd.f32 %v1722_v19, %v6355_v17  ;;  %v6487_v32 = vadd.f32 %v1723_v43, %v6358_v1  ;;  %v6490_v35 = vadd.f32 %v1724_v24, %v6361_v21  ;;  %v6493_v4 = vadd.f32 %v1725_v47, %v6364_v6  ;;  %v4196_v6 = vld [vmem:[%s8758_s1 + $0x7] ss:$0 sm:$0xff]  ;;  %v9465_v37 = vld [vmem:[#allocation37_spill] sm:$0xff]  ;;  %v9471_v47 = vld [vmem:[#allocation39_spill] sm:$0xff] }
 0x101   : > { %9429 = vst [vmem:[#allocation66_spill] sm:$0xff] %v6475_v53  ;;  %9430 = vst [vmem:[#allocation67_spill] sm:$0xff] %v6478_v23  ;;  %v6496_v63 = vadd.f32 %v1726_v51, %v6367_v22  ;;  %v6499_v55 = vadd.f32 %v1727_v33, %v6370_v2  ;;  %v6502_v57 = vadd.f32 %v1728_v25, %v6373_v49  ;;  %v9443_v2 = vld [vmem:[#allocation59_spill] sm:$0xff]  ;;  %v9445_v49 = vld [vmem:[#allocation17_spill] sm:$0xff] }
 0x102   : > { %9431 = vst [vmem:[#allocation68_spill] sm:$0xff] %v6481_v30  ;;  %9432 = vst [vmem:[#allocation69_spill] sm:$0xff] %v6484_v3  ;;  %v6505_v17 = vadd.f32 %v1729_v9, %v6376_v36  ;;  %v6508_v1 = vadd.f32 %v1730_v48, %v6379_v46  ;;  %v6511_v21 = vadd.f32 %v1731_v15, %v6382_v7  ;;  %v9447_v36 = vld [vmem:[#allocation4_spill] sm:$0xff]  ;;  %v9453_v51 = vld [vmem:[#allocation61_spill] sm:$0xff] }
 0x103   : > { %9433 = vst [vmem:[#allocation70_spill] sm:$0xff] %v6487_v32  ;;  %9434 = vst [vmem:[#allocation71_spill] sm:$0xff] %v6490_v35  ;;  %v6517_v22 = vadd.f32 %v1732_v0, %v6385_v16  ;;  %v6520_v31 = vadd.f32 %v1733_v56, %v9443_v2  ;;  %v6523_v10 = vadd.f32 %v1734_v27, %v9445_v49  ;;  %v9449_v46 = vld [vmem:[#allocation36_spill] sm:$0xff]  ;;  %v9455_v16 = vld [vmem:[#allocation62_spill] sm:$0xff] }
 0x104   : > { %9435 = vst [vmem:[#allocation3_spill] sm:$0xff] %v6493_v4  ;;  %9436 = vst [vmem:[#allocation73_spill] sm:$0xff] %v6496_v63  ;;  %v6526_v39 = vadd.f32 %v1735_v40, %v9447_v36  ;;  %v6529_v29 = vadd.f32 %v1736_v44, %v9449_v46  ;;  %v9451_v7 = vld [vmem:[#allocation60_spill] sm:$0xff]  ;;  %v6535_v12 = vadd.f32 %v1738_v45, %v9453_v51  ;;  %v9464_v15 = vld [vmem:[#allocation5_spill] sm:$0xff] }
 0x105   : > { %9437 = vst [vmem:[#allocation74_spill] sm:$0xff] %v6499_v55  ;;  %9438 = vst [vmem:[#allocation75_spill] sm:$0xff] %v6502_v57  ;;  %v6532_v42 = vadd.f32 %v1737_v60, %v9451_v7  ;;  %v6538_v33 = vadd.f32 %v1739_v52, %v9455_v16  ;;  %v6541_v25 = vadd.f32 %v1740_v41, %v9457_v58  ;;  %v9463_v44 = vld [vmem:[#allocation20_spill] sm:$0xff]  ;;  %v9466_v45 = vld [vmem:[#allocation21_spill] sm:$0xff] }
 0x106   : > { %9439 = vst [vmem:[#allocation76_spill] sm:$0xff] %v6505_v17  ;;  %9440 = vst [vmem:[#allocation72_spill] sm:$0xff] %v6508_v1  ;;  %v6544_v9 = vadd.f32 %v1741_v54, %v9459_v5  ;;  %v6547_v48 = vadd.f32 %v1741_v54, %v9461_v20  ;;  %v1779_v26 = vmul.f32 %v4196_v6, %v9463_v44  ;;  %v9467_v52 = vld [vmem:[#allocation6_spill] sm:$0xff]  ;;  %v9469_v27 = vld [vmem:[#allocation23_spill] sm:$0xff] }
 0x107   : > { %9441 = vst [vmem:[#allocation2_spill] sm:$0xff] %v6511_v21  ;;  %9442 = vst [vmem:[#allocation52_spill] sm:$0xff] %v6517_v22  ;;  %v1780_v60 = vmul.f32 %v4196_v6, %v9464_v15  ;;  %v1781_v0 = vmul.f32 %v4196_v6, %v9465_v37  ;;  %v6553_v19 = vmul.f32 %v4196_v6, %v9466_v45  ;;  %v9468_v41 = vld [vmem:[#allocation38_spill] sm:$0xff]  ;;  %v9470_v54 = vld [vmem:[#allocation7_spill] sm:$0xff] }
 0x108   : > { %9444 = vst [vmem:[#allocation53_spill] sm:$0xff] %v6520_v31  ;;  %9446 = vst [vmem:[#allocation54_spill] sm:$0xff] %v6523_v10  ;;  %v6556_v56 = vmul.f32 %v4196_v6, %v9467_v52  ;;  %v6559_v43 = vmul.f32 %v4196_v6, %v9468_v41  ;;  %v6562_v24 = vmul.f32 %v4196_v6, %v9469_v27  ;;  %v9472_v49 = vld [vmem:[#allocation24_spill] sm:$0xff]  ;;  %v9475_v58 = vld [vmem:[#allocation25_spill] sm:$0xff] }
 0x109   : > { %9448 = vst [vmem:[#allocation55_spill] sm:$0xff] %v6526_v39  ;;  %9450 = vst [vmem:[#allocation56_spill] sm:$0xff] %v6529_v29  ;;  %v6565_v40 = vmul.f32 %v4196_v6, %v9470_v54  ;;  %v6568_v2 = vmul.f32 %v4196_v6, %v9471_v47  ;;  %v6571_v36 = vmul.f32 %v4196_v6, %v9472_v49  ;;  %v9473_v46 = vld [vmem:[#allocation8_spill] sm:$0xff]  ;;  %v9476_v20 = vld [vmem:[#allocation9_spill] sm:$0xff]  ;;  %v1872_v63 = vrot.slane %v1780_v60, 1 }
 0x10a   : > { %9452 = vst [vmem:[#allocation57_spill] sm:$0xff] %v6532_v42  ;;  %9454 = vst [vmem:[#allocation58_spill] sm:$0xff] %v6535_v12  ;;  %v6574_v7 = vmul.f32 %v4196_v6, %v9473_v46  ;;  %v9474_v51 = vld [vmem:[#allocation40_spill] sm:$0xff]  ;;  %v6580_v5 = vmul.f32 %v4196_v6, %v9475_v58  ;;  %v9477_v54 = vld [vmem:[#allocation41_spill] sm:$0xff]  ;;  %v1874_v4 = vrot.slane %v1781_v0, 1  ;;  %v6678_v0 = vmul.f32 0.0, %v4196_v6 }
 0x10b   : > { %9456 = vst [vmem:[#allocation59_spill] sm:$0xff] %v6538_v33  ;;  %9458 = vst [vmem:[#allocation17_spill] sm:$0xff] %v6541_v25  ;;  %v6577_v16 = vmul.f32 %v4196_v6, %v9474_v51  ;;  %v6586_v27 = vmul.f32 %v4196_v6, %v9477_v54  ;;  %v9478_v47 = vld [vmem:[#allocation26_spill] sm:$0xff]  ;;  %v9481_v51 = vld [vmem:[#allocation27_spill] sm:$0xff] }
 0x10c   : > { %9460 = vst [vmem:[#allocation4_spill] sm:$0xff] %v6544_v9  ;;  %9462 = vst [vmem:[#allocation36_spill] sm:$0xff] %v6547_v48  ;;  %v6583_v48 = vmul.f32 %v4196_v6, %v9476_v20  ;;  %v6589_v41 = vmul.f32 %v4196_v6, %v9478_v47  ;;  %v9479_v49 = vld [vmem:[#allocation10_spill] sm:$0xff]  ;;  %v6598_v37 = vmul.f32 %v4196_v6, %v9481_v51  ;;  %v9482_v58 = vld [vmem:[#allocation11_spill] sm:$0xff] }
 0x10d   : > { %v6592_v52 = vmul.f32 %v4196_v6, %v9479_v49  ;;  %v9480_v46 = vld [vmem:[#allocation42_spill] sm:$0xff]  ;;  %v6601_v15 = vmul.f32 %v4196_v6, %v9482_v58  ;;  %v9483_v20 = vld [vmem:[#allocation43_spill] sm:$0xff]  ;;  %v9484_v54 = vld [vmem:[#allocation28_spill] sm:$0xff]  ;;  %9504 = vst [vmem:[#allocation60_spill] sm:$0xff] %v6678_v0 }
 0x10e   : > { %v6595_v45 = vmul.f32 %v4196_v6, %v9480_v46  ;;  %v6604_v44 = vmul.f32 %v4196_v6, %v9483_v20  ;;  %v6607_v9 = vmul.f32 %v4196_v6, %v9484_v54  ;;  %v9485_v47 = vld [vmem:[#allocation12_spill] sm:$0xff]  ;;  %v9487_v46 = vld [vmem:[#allocation29_spill] sm:$0xff]  ;;  %v9490_v20 = vld [vmem:[#allocation30_spill] sm:$0xff]  ;;  %v1896_v53 = vrot.slane %v6589_v41, 1 }
 0x10f   : > { %v6610_v25 = vmul.f32 %v4196_v6, %v9485_v47  ;;  %v9486_v49 = vld [vmem:[#allocation44_spill] sm:$0xff]  ;;  %v6616_v12 = vmul.f32 %v4196_v6, %v9487_v46  ;;  %v9488_v51 = vld [vmem:[#allocation13_spill] sm:$0xff]  ;;  %v6625_v39 = vmul.f32 %v4196_v6, %v9490_v20  ;;  %v9491_v54 = vld [vmem:[#allocation14_spill] sm:$0xff]  ;;  %v6637_v46 = vmul.f32 %v4196_v6, %v9421_v61 }
 0x110   : > { %v6613_v33 = vmul.f32 %v4196_v6, %v9486_v49  ;;  %v6619_v42 = vmul.f32 %v4196_v6, %v9488_v51  ;;  %v9489_v58 = vld [vmem:[#allocation45_spill] sm:$0xff]  ;;  %v6628_v10 = vmul.f32 %v4196_v6, %v9491_v54  ;;  %v9492_v47 = vld [vmem:[#allocation46_spill] sm:$0xff]  ;;  %v9493_v49 = vld [vmem:[#allocation31_spill] sm:$0xff]  ;;  %v1871_v61 = vrot.slane %v1779_v26, 1 }
 0x111   : > { %v6622_v29 = vmul.f32 %v4196_v6, %v9489_v58  ;;  %v6631_v31 = vmul.f32 %v4196_v6, %v9492_v47  ;;  %v6634_v22 = vmul.f32 %v4196_v6, %v9493_v49  ;;  %v9494_v51 = vld [vmem:[#allocation47_spill] sm:$0xff]  ;;  %v9495_v58 = vld [vmem:[#allocation32_spill] sm:$0xff]  ;;  %v6652_v47 = vmul.f32 %v4196_v6, %v9424_v62  ;;  %v9498_v49 = vld [vmem:[#allocation18_spill] sm:$0xff] }
 0x112   : > { %v6640_v21 = vmul.f32 %v4196_v6, %v9494_v51  ;;  %v6643_v1 = vmul.f32 %v4196_v6, %v9495_v58  ;;  %v9496_v20 = vld [vmem:[#allocation16_spill] sm:$0xff]  ;;  %v6655_v55 = vmul.f32 %v4196_v6, %v9498_v49  ;;  %v9499_v51 = vld [vmem:[#allocation49_spill] sm:$0xff]  ;;  %v9500_v58 = vld [vmem:[#allocation34_spill] sm:$0xff]  ;;  %v6673_v49 = vmul.f32 %v4196_v6, %v9428_v38 }
 0x113   : > { %v6646_v17 = vmul.f32 %v4196_v6, %v9496_v20  ;;  %v9497_v54 = vld [vmem:[#allocation48_spill] sm:$0xff]  ;;  %v6658_v35 = vmul.f32 %v4196_v6, %v9499_v51  ;;  %v6661_v32 = vmul.f32 %v4196_v6, %v9500_v58  ;;  %v6664_v20 = vmul.f32 %v4196_v6, %v9426_v8  ;;  %v9502_v62 = vld [vmem:[#allocation35_spill] sm:$0xff] }
 0x114   : > { %v6649_v57 = vmul.f32 %v4196_v6, %v9497_v54  ;;  %v9501_v54 = vld [vmem:[#allocation50_spill] sm:$0xff]  ;;  %v6670_v30 = vmul.f32 %v4196_v6, %v9502_v62  ;;  %v9503_v26 = vld [vmem:[#allocation51_spill] sm:$0xff]  ;;  %v1876_v58 = vrot.slane %v6553_v19, 1  ;;  %v1877_v51 = vrot.slane %v6556_v56, 1 }
 0x115   : > { %v6667_v3 = vmul.f32 %v4196_v6, %v9501_v54  ;;  %v6676_v60 = vmul.f32 %v4196_v6, %v9503_v26  ;;  %v1879_v8 = vrot.slane %v6559_v43, 1  ;;  %v1881_v54 = vrot.slane %v6562_v24, 1 }
 0x116   : > { %v6685_v23 = vsel %vm770_vm1, %v1871_v61, %v1872_v63  ;;  %v6688_v62 = vsel %vm770_vm1, %v1872_v63, %v1874_v4  ;;  %v1882_v38 = vrot.slane %v6565_v40, 1  ;;  %v1884_v26 = vrot.slane %v6568_v2, 1 }
 0x117   : > { %v1886_v6 = vrot.slane %v6571_v36, 1  ;;  %v1887_v19 = vrot.slane %v6574_v7, 1  ;;  %v1889_v56 = vrot.slane %v6577_v16, 1  ;;  %v1891_v43 = vrot.slane %v6580_v5, 1 }
 0x118   : > { %v1892_v24 = vrot.slane %v6583_v48, 1  ;;  %v1894_v61 = vrot.slane %v6586_v27, 1  ;;  %v1897_v4 = vrot.slane %v6592_v52, 1  ;;  %v1899_v63 = vrot.slane %v6595_v45, 1 }
 0x119   : > { %v1901_v40 = vrot.slane %v6598_v37, 1  ;;  %v1902_v2 = vrot.slane %v6601_v15, 1  ;;  %v1904_v36 = vrot.slane %v6604_v44, 1  ;;  %v1878_v7 = vsel %vm770_vm1, %v1876_v58, %v1877_v51 }
 0x11a   : > { %v1880_v16 = vsel %vm770_vm1, %v1877_v51, %v1879_v8  ;;  %v1906_v48 = vrot.slane %v6607_v9, 1  ;;  %v1907_v27 = vrot.slane %v6610_v25, 1  ;;  %v1883_v41 = vsel %vm770_vm1, %v1881_v54, %v1882_v38 }
 0x11b   : > { %v1885_v52 = vsel %vm770_vm1, %v1882_v38, %v1884_v26  ;;  %v1888_v45 = vsel %vm770_vm1, %v1886_v6, %v1887_v19  ;;  %v1909_v37 = vrot.slane %v6613_v33, 1  ;;  %v1890_v15 = vsel %vm770_vm1, %v1887_v19, %v1889_v56 }
 0x11c   : > { %v1893_v44 = vsel %vm770_vm1, %v1891_v43, %v1892_v24  ;;  %v1895_v58 = vsel %vm770_vm1, %v1892_v24, %v1894_v61  ;;  %v1898_v8 = vsel %vm770_vm1, %v1896_v53, %v1897_v4  ;;  %v1900_v9 = vsel %vm770_vm1, %v1897_v4, %v1899_v63 }
 0x11d   : > { %v1903_v25 = vsel %vm770_vm1, %v1901_v40, %v1902_v2  ;;  %v1905_v54 = vsel %vm770_vm1, %v1902_v2, %v1904_v36  ;;  %v1911_v38 = vrot.slane %v6616_v12, 1  ;;  %v1908_v51 = vsel %vm770_vm1, %v1906_v48, %v1907_v27 }
 0x11e   : > { %v1912_v33 = vrot.slane %v6619_v42, 1  ;;  %v1914_v5 = vrot.slane %v6622_v29, 1  ;;  %v1916_v26 = vrot.slane %v6625_v39, 1  ;;  %v1910_v6 = vsel %vm770_vm1, %v1907_v27, %v1909_v37 }
 0x11f   : > { %v1917_v53 = vrot.slane %v6628_v10, 1  ;;  %v1919_v19 = vrot.slane %v6631_v31, 1  ;;  %v1921_v56 = vrot.slane %v6634_v22, 1  ;;  %v1922_v43 = vrot.slane %v6637_v46, 1 }
 0x120   : > { %v1924_v12 = vrot.slane %v6640_v21, 1  ;;  %v1926_v24 = vrot.slane %v6643_v1, 1  ;;  %v1927_v42 = vrot.slane %v6646_v17, 1  ;;  %v1929_v29 = vrot.slane %v6649_v57, 1 }
 0x121   : > { %v1931_v39 = vrot.slane %v6652_v47, 1  ;;  %v1932_v61 = vrot.slane %v6655_v55, 1  ;;  %v1934_v10 = vrot.slane %v6658_v35, 1  ;;  %v1913_v31 = vsel %vm770_vm1, %v1911_v38, %v1912_v33 }
 0x122   : > { %v1936_v22 = vrot.slane %v6661_v32, 1  ;;  %v1937_v46 = vrot.slane %v6664_v20, 1  ;;  %v1939_v21 = vrot.slane %v6667_v3, 1  ;;  %v1915_v1 = vsel %vm770_vm1, %v1912_v33, %v1914_v5 }
 0x123   : > { %v1941_v17 = vrot.slane %v6670_v30, 1  ;;  %v1942_v57 = vrot.slane %v6673_v49, 1  ;;  %v1944_v47 = vrot.slane %v6676_v60, 1  ;;  %v1918_v55 = vsel %vm770_vm1, %v1916_v26, %v1917_v53 }
 0x124   : > { %v1920_v35 = vsel %vm770_vm1, %v1917_v53, %v1919_v19  ;;  %v1923_v4 = vsel %vm770_vm1, %v1921_v56, %v1922_v43  ;;  %v1925_v32 = vsel %vm770_vm1, %v1922_v43, %v1924_v12  ;;  %v1928_v20 = vsel %vm770_vm1, %v1926_v24, %v1927_v42 }
 0x125   : > { %v1930_v3 = vsel %vm770_vm1, %v1927_v42, %v1929_v29  ;;  %v1933_v63 = vsel %vm770_vm1, %v1931_v39, %v1932_v61  ;;  %v1935_v30 = vsel %vm770_vm1, %v1932_v61, %v1934_v10  ;;  %v1938_v49 = vsel %vm770_vm1, %v1936_v22, %v1937_v46  ;;  %v4197_v29 = vld [vmem:[%s8758_s1 + $0x8] ss:$0 sm:$0xff]  ;;  %v9543_v39 = vld [vmem:[#allocation54_spill] sm:$0xff]  ;;  %v9547_v22 = vld [vmem:[#allocation56_spill] sm:$0xff] }
 0x126   : > { %v1940_v60 = vsel %vm770_vm1, %v1937_v46, %v1939_v21  ;;  %v8875_v40 = vrot.slane %v6678_v0, 1  ;;  %v6757_v2 = vadd.f32 %v6685_v23, %v6451_v34  ;;  %v1943_v36 = vsel %vm770_vm1, %v1941_v17, %v1942_v57  ;;  %v9545_v10 = vld [vmem:[#allocation55_spill] sm:$0xff]  ;;  %v9549_v21 = vld [vmem:[#allocation57_spill] sm:$0xff]  ;;  %v9551_v17 = vld [vmem:[#allocation58_spill] sm:$0xff] }
 0x127   : > { %v1945_v48 = vsel %vm770_vm1, %v1942_v57, %v1944_v47  ;;  %v6763_v27 = vadd.f32 %v6688_v62, %v6454_v13  ;;  %v6766_v37 = vadd.f32 %v1878_v7, %v6457_v59  ;;  %v6769_v38 = vadd.f32 %v1880_v16, %v6460_v28  ;;  %v9513_v62 = vld [vmem:[#allocation66_spill] sm:$0xff]  ;;  %v9515_v59 = vld [vmem:[#allocation67_spill] sm:$0xff]  ;;  %v9517_v28 = vld [vmem:[#allocation68_spill] sm:$0xff] }
 0x128   : > { %9505 = vst [vmem:[#allocation61_spill] sm:$0xff] %v6757_v2  ;;  %v6772_v33 = vadd.f32 %v1883_v41, %v6463_v11  ;;  %v6775_v34 = vadd.f32 %v1885_v52, %v6466_v50  ;;  %v6778_v23 = vadd.f32 %v1888_v45, %v6469_v14  ;;  %v6781_v5 = vadd.f32 %v1890_v15, %v6472_v18  ;;  %v9519_v11 = vld [vmem:[#allocation69_spill] sm:$0xff]  ;;  %v9521_v50 = vld [vmem:[#allocation70_spill] sm:$0xff]  ;;  %v9523_v14 = vld [vmem:[#allocation71_spill] sm:$0xff] }
 0x129   : > { %9506 = vst [vmem:[#allocation62_spill] sm:$0xff] %v6763_v27  ;;  %9507 = vst [vmem:[#allocation63_spill] sm:$0xff] %v6766_v37  ;;  %v6784_v13 = vadd.f32 %v1893_v44, %v9513_v62  ;;  %v6787_v7 = vadd.f32 %v1895_v58, %v9515_v59  ;;  %v6790_v16 = vadd.f32 %v1898_v8, %v9517_v28  ;;  %v9525_v18 = vld [vmem:[#allocation3_spill] sm:$0xff]  ;;  %v9527_v44 = vld [vmem:[#allocation73_spill] sm:$0xff] }
 0x12a   : > { %9508 = vst [vmem:[#allocation64_spill] sm:$0xff] %v6769_v38  ;;  %9509 = vst [vmem:[#allocation65_spill] sm:$0xff] %v6772_v33  ;;  %v6793_v41 = vadd.f32 %v1900_v9, %v9519_v11  ;;  %v6796_v52 = vadd.f32 %v1903_v25, %v9521_v50  ;;  %v6799_v45 = vadd.f32 %v1905_v54, %v9523_v14  ;;  %v9529_v58 = vld [vmem:[#allocation74_spill] sm:$0xff]  ;;  %v9531_v8 = vld [vmem:[#allocation75_spill] sm:$0xff] }
 0x12b   : > { %9510 = vst [vmem:[#allocation77_spill] sm:$0xff] %v6775_v34  ;;  %9511 = vst [vmem:[#allocation78_spill] sm:$0xff] %v6778_v23  ;;  %v6802_v15 = vadd.f32 %v1908_v51, %v9525_v18  ;;  %v6805_v26 = vadd.f32 %v1910_v6, %v9527_v44  ;;  %v6808_v53 = vadd.f32 %v1913_v31, %v9529_v58  ;;  %v9533_v9 = vld [vmem:[#allocation76_spill] sm:$0xff]  ;;  %v9537_v54 = vld [vmem:[#allocation2_spill] sm:$0xff] }
 0x12c   : > { %9512 = vst [vmem:[#allocation79_spill] sm:$0xff] %v6781_v5  ;;  %9514 = vst [vmem:[#allocation66_spill] sm:$0xff] %v6784_v13  ;;  %v6811_v19 = vadd.f32 %v1915_v1, %v9531_v8  ;;  %v6814_v56 = vadd.f32 %v1918_v55, %v9533_v9  ;;  %v9535_v25 = vld [vmem:[#allocation72_spill] sm:$0xff]  ;;  %v6820_v12 = vadd.f32 %v1923_v4, %v9537_v54  ;;  %v9541_v6 = vld [vmem:[#allocation53_spill] sm:$0xff] }
 0x12d   : > { %9516 = vst [vmem:[#allocation67_spill] sm:$0xff] %v6787_v7  ;;  %9518 = vst [vmem:[#allocation68_spill] sm:$0xff] %v6790_v16  ;;  %v6817_v43 = vadd.f32 %v1920_v35, %v9535_v25  ;;  %v9539_v51 = vld [vmem:[#allocation52_spill] sm:$0xff]  ;;  %v6826_v42 = vadd.f32 %v1928_v20, %v9541_v6  ;;  %v6832_v61 = vadd.f32 %v1930_v3, %v9543_v39  ;;  %v9553_v47 = vld [vmem:[#allocation59_spill] sm:$0xff] }
 0x12e   : > { %9520 = vst [vmem:[#allocation69_spill] sm:$0xff] %v6793_v41  ;;  %9522 = vst [vmem:[#allocation70_spill] sm:$0xff] %v6796_v52  ;;  %v6823_v24 = vadd.f32 %v1925_v32, %v9539_v51  ;;  %v6835_v31 = vadd.f32 %v1933_v63, %v9545_v10  ;;  %v6838_v46 = vadd.f32 %v1935_v30, %v9547_v22  ;;  %v9555_v35 = vld [vmem:[#allocation17_spill] sm:$0xff]  ;;  %v9557_v32 = vld [vmem:[#allocation4_spill] sm:$0xff] }
 0x12f   : > { %9524 = vst [vmem:[#allocation71_spill] sm:$0xff] %v6799_v45  ;;  %9526 = vst [vmem:[#allocation3_spill] sm:$0xff] %v6802_v15  ;;  %v6841_v1 = vadd.f32 %v1938_v49, %v9549_v21  ;;  %v6844_v57 = vadd.f32 %v1940_v60, %v9551_v17  ;;  %v6847_v55 = vadd.f32 %v1943_v36, %v9553_v47  ;;  %v9559_v3 = vld [vmem:[#allocation20_spill] sm:$0xff]  ;;  %v9560_v30 = vld [vmem:[#allocation5_spill] sm:$0xff] }
 0x130   : > { %9528 = vst [vmem:[#allocation73_spill] sm:$0xff] %v6805_v26  ;;  %9530 = vst [vmem:[#allocation74_spill] sm:$0xff] %v6808_v53  ;;  %v6850_v4 = vadd.f32 %v1945_v48, %v9555_v35  ;;  %v6855_v20 = vadd.f32 %v8875_v40, %v9557_v32  ;;  %v2016_v63 = vmul.f32 %v4197_v29, %v9559_v3  ;;  %v9561_v49 = vld [vmem:[#allocation37_spill] sm:$0xff]  ;;  %v9563_v11 = vld [vmem:[#allocation6_spill] sm:$0xff] }
 0x131   : > { %9532 = vst [vmem:[#allocation75_spill] sm:$0xff] %v6811_v19  ;;  %9534 = vst [vmem:[#allocation76_spill] sm:$0xff] %v6814_v56  ;;  %v2017_v62 = vmul.f32 %v4197_v29, %v9560_v30  ;;  %v2018_v59 = vmul.f32 %v4197_v29, %v9561_v49  ;;  %v9562_v28 = vld [vmem:[#allocation21_spill] sm:$0xff]  ;;  %v2020_v50 = vmul.f32 %v4197_v29, %v9563_v11  ;;  %v9564_v36 = vld [vmem:[#allocation38_spill] sm:$0xff] }
 0x132   : > { %9536 = vst [vmem:[#allocation72_spill] sm:$0xff] %v6817_v43  ;;  %9538 = vst [vmem:[#allocation2_spill] sm:$0xff] %v6820_v12  ;;  %v2019_v60 = vmul.f32 %v4197_v29, %v9562_v28  ;;  %v2021_v14 = vmul.f32 %v4197_v29, %v9564_v36  ;;  %v9565_v18 = vld [vmem:[#allocation23_spill] sm:$0xff]  ;;  %v9568_v25 = vld [vmem:[#allocation24_spill] sm:$0xff] }
 0x133   : > { %9540 = vst [vmem:[#allocation52_spill] sm:$0xff] %v6823_v24  ;;  %9542 = vst [vmem:[#allocation53_spill] sm:$0xff] %v6826_v42  ;;  %v2022_v48 = vmul.f32 %v4197_v29, %v9565_v18  ;;  %v9566_v44 = vld [vmem:[#allocation7_spill] sm:$0xff]  ;;  %v6871_v54 = vmul.f32 %v4197_v29, %v9568_v25  ;;  %v9569_v51 = vld [vmem:[#allocation8_spill] sm:$0xff]  ;;  %v2109_v15 = vrot.slane %v2017_v62, 2  ;;  %v2111_v45 = vrot.slane %v2018_v59, 2 }
 0x134   : > { %9544 = vst [vmem:[#allocation54_spill] sm:$0xff] %v6832_v61  ;;  %9546 = vst [vmem:[#allocation55_spill] sm:$0xff] %v6835_v31  ;;  %v6865_v58 = vmul.f32 %v4197_v29, %v9566_v44  ;;  %v9567_v8 = vld [vmem:[#allocation39_spill] sm:$0xff]  ;;  %v6874_v6 = vmul.f32 %v4197_v29, %v9569_v51  ;;  %v9570_v39 = vld [vmem:[#allocation40_spill] sm:$0xff]  ;;  %v2114_v16 = vrot.slane %v2020_v50, 2  ;;  %v2116_v13 = vrot.slane %v2021_v14, 2 }
 0x135   : > { %9548 = vst [vmem:[#allocation56_spill] sm:$0xff] %v6838_v46  ;;  %9550 = vst [vmem:[#allocation57_spill] sm:$0xff] %v6841_v1  ;;  %v6868_v9 = vmul.f32 %v4197_v29, %v9567_v8  ;;  %v6877_v10 = vmul.f32 %v4197_v29, %v9570_v39  ;;  %v9571_v22 = vld [vmem:[#allocation25_spill] sm:$0xff]  ;;  %v9574_v3 = vld [vmem:[#allocation26_spill] sm:$0xff]  ;;  %v6979_v62 = vmul.f32 0.0, %v4197_v29  ;;  %v2123_v50 = vrot.slane %v6871_v54, 2 }
 0x136   : > { %9552 = vst [vmem:[#allocation58_spill] sm:$0xff] %v6844_v57  ;;  %9554 = vst [vmem:[#allocation59_spill] sm:$0xff] %v6847_v55  ;;  %v6880_v21 = vmul.f32 %v4197_v29, %v9571_v22  ;;  %v9572_v17 = vld [vmem:[#allocation9_spill] sm:$0xff]  ;;  %v6889_v30 = vmul.f32 %v4197_v29, %v9574_v3  ;;  %v9575_v49 = vld [vmem:[#allocation10_spill] sm:$0xff]  ;;  %v2124_v14 = vrot.slane %v6874_v6, 2 }
 0x137   : > { %9556 = vst [vmem:[#allocation17_spill] sm:$0xff] %v6850_v4  ;;  %9558 = vst [vmem:[#allocation4_spill] sm:$0xff] %v6855_v20  ;;  %v6883_v47 = vmul.f32 %v4197_v29, %v9572_v17  ;;  %v9573_v35 = vld [vmem:[#allocation41_spill] sm:$0xff]  ;;  %v6892_v28 = vmul.f32 %v4197_v29, %v9575_v49  ;;  %v9576_v11 = vld [vmem:[#allocation42_spill] sm:$0xff]  ;;  %v2121_v59 = vrot.slane %v6868_v9, 2  ;;  %v6997_v9 = vsel %vm1007_vm2, %v2114_v16, %v2116_v13 }
 0x138   : > { %v6886_v32 = vmul.f32 %v4197_v29, %v9573_v35  ;;  %v6895_v36 = vmul.f32 %v4197_v29, %v9576_v11  ;;  %v9577_v18 = vld [vmem:[#allocation27_spill] sm:$0xff]  ;;  %v9580_v22 = vld [vmem:[#allocation28_spill] sm:$0xff]  ;;  %v9583_v11 = vld [vmem:[#allocation29_spill] sm:$0xff]  ;;  %9621 = vst [vmem:[#allocation42_spill] sm:$0xff] %v6979_v62 }
 0x139   : > { %v6898_v44 = vmul.f32 %v4197_v29, %v9577_v18  ;;  %v9578_v8 = vld [vmem:[#allocation11_spill] sm:$0xff]  ;;  %v6907_v17 = vmul.f32 %v4197_v29, %v9580_v22  ;;  %v9581_v35 = vld [vmem:[#allocation12_spill] sm:$0xff]  ;;  %v6916_v20 = vmul.f32 %v4197_v29, %v9583_v11  ;;  %v9584_v18 = vld [vmem:[#allocation13_spill] sm:$0xff]  ;;  %9625 = vst [vmem:[#allocation28_spill] sm:$0xff] %v6997_v9 }
 0x13a   : > { %v6901_v25 = vmul.f32 %v4197_v29, %v9578_v8  ;;  %v9579_v51 = vld [vmem:[#allocation43_spill] sm:$0xff]  ;;  %v6910_v3 = vmul.f32 %v4197_v29, %v9581_v35  ;;  %v9582_v49 = vld [vmem:[#allocation44_spill] sm:$0xff]  ;;  %v6919_v4 = vmul.f32 %v4197_v29, %v9584_v18  ;;  %v9585_v8 = vld [vmem:[#allocation45_spill] sm:$0xff] }
 0x13b   : > { %v6904_v39 = vmul.f32 %v4197_v29, %v9579_v51  ;;  %v6913_v40 = vmul.f32 %v4197_v29, %v9582_v49  ;;  %v6922_v55 = vmul.f32 %v4197_v29, %v9585_v8  ;;  %v9586_v51 = vld [vmem:[#allocation30_spill] sm:$0xff]  ;;  %v9591_v49 = vld [vmem:[#allocation31_spill] sm:$0xff]  ;;  %v9597_v8 = vld [vmem:[#allocation32_spill] sm:$0xff] }
 0x13c   : > { %v6925_v57 = vmul.f32 %v4197_v29, %v9586_v51  ;;  %v9587_v22 = vld [vmem:[#allocation14_spill] sm:$0xff]  ;;  %v6934_v46 = vmul.f32 %v4197_v29, %v9591_v49  ;;  %v9593_v11 = vld [vmem:[#allocation15_spill] sm:$0xff]  ;;  %v6943_v42 = vmul.f32 %v4197_v29, %v9597_v8  ;;  %v9599_v51 = vld [vmem:[#allocation16_spill] sm:$0xff]  ;;  %v2139_v37 = vrot.slane %v6901_v25, 2 }
 0x13d   : > { %v6928_v0 = vmul.f32 %v4197_v29, %v9587_v22  ;;  %v9589_v35 = vld [vmem:[#allocation46_spill] sm:$0xff]  ;;  %v6937_v31 = vmul.f32 %v4197_v29, %v9593_v11  ;;  %v9595_v18 = vld [vmem:[#allocation47_spill] sm:$0xff]  ;;  %v6946_v24 = vmul.f32 %v4197_v29, %v9599_v51  ;;  %v9601_v22 = vld [vmem:[#allocation48_spill] sm:$0xff]  ;;  %v2108_v51 = vrot.slane %v2016_v63, 2 }
 0x13e   : > { %v6931_v1 = vmul.f32 %v4197_v29, %v9589_v35  ;;  %9592 = vst [vmem:[#allocation37_spill] sm:$0xff] %v6934_v46  ;;  %v6940_v61 = vmul.f32 %v4197_v29, %v9595_v18  ;;  %9598 = vst [vmem:[#allocation38_spill] sm:$0xff] %v6943_v42  ;;  %v6949_v12 = vmul.f32 %v4197_v29, %v9601_v22  ;;  %v9603_v35 = vld [vmem:[#allocation33_spill] sm:$0xff]  ;;  %v9605_v49 = vld [vmem:[#allocation18_spill] sm:$0xff] }
 0x13f   : > { %9588 = vst [vmem:[#allocation20_spill] sm:$0xff] %v6928_v0  ;;  %9594 = vst [vmem:[#allocation21_spill] sm:$0xff] %v6937_v31  ;;  %v6952_v43 = vmul.f32 %v4197_v29, %v9603_v35  ;;  %v6955_v56 = vmul.f32 %v4197_v29, %v9605_v49  ;;  %v9607_v11 = vld [vmem:[#allocation49_spill] sm:$0xff]  ;;  %v9609_v18 = vld [vmem:[#allocation34_spill] sm:$0xff]  ;;  %v2113_v49 = vrot.slane %v2019_v60, 2  ;;  %v6983_v60 = vsel %vm1007_vm2, %v2108_v51, %v2109_v15 }
 0x140   : > { %9590 = vst [vmem:[#allocation5_spill] sm:$0xff] %v6931_v1  ;;  %9596 = vst [vmem:[#allocation6_spill] sm:$0xff] %v6940_v61  ;;  %v6958_v19 = vmul.f32 %v4197_v29, %v9607_v11  ;;  %v6961_v53 = vmul.f32 %v4197_v29, %v9609_v18  ;;  %v9611_v8 = vld [vmem:[#allocation19_spill] sm:$0xff]  ;;  %v9613_v22 = vld [vmem:[#allocation50_spill] sm:$0xff]  ;;  %v2118_v18 = vrot.slane %v2022_v48, 2  ;;  %v2128_v48 = vrot.slane %v6880_v21, 2 }
 0x141   : > { %9600 = vst [vmem:[#allocation23_spill] sm:$0xff] %v6946_v24  ;;  %9602 = vst [vmem:[#allocation7_spill] sm:$0xff] %v6949_v12  ;;  %v6964_v26 = vmul.f32 %v4197_v29, %v9611_v8  ;;  %v6967_v52 = vmul.f32 %v4197_v29, %v9613_v22  ;;  %v9615_v35 = vld [vmem:[#allocation35_spill] sm:$0xff]  ;;  %v9617_v7 = vld [vmem:[#allocation22_spill] sm:$0xff]  ;;  %v2119_v8 = vrot.slane %v6865_v58, 2  ;;  %v2129_v58 = vrot.slane %v6883_v47, 2 }
 0x142   : > { %9604 = vst [vmem:[#allocation39_spill] sm:$0xff] %v6952_v43  ;;  %9606 = vst [vmem:[#allocation24_spill] sm:$0xff] %v6955_v56  ;;  %v6970_v41 = vmul.f32 %v4197_v29, %v9615_v35  ;;  %v6973_v11 = vmul.f32 %v4197_v29, %v9617_v7  ;;  %v9619_v5 = vld [vmem:[#allocation51_spill] sm:$0xff]  ;;  %v6986_v7 = vsel %vm1007_vm2, %v2109_v15, %v2111_v45  ;;  %v4412_v15 = vld [vmem:[%s4555_s18] sm:$0xff] }
 0x143   : > { %9608 = vst [vmem:[#allocation8_spill] sm:$0xff] %v6958_v19  ;;  %9610 = vst [vmem:[#allocation40_spill] sm:$0xff] %v6961_v53  ;;  %v6977_v63 = vmul.f32 %v4197_v29, %v9619_v5  ;;  %v6991_v5 = vsel %vm1007_vm2, %v2113_v49, %v2114_v16  ;;  %v2126_v29 = vrot.slane %v6877_v10, 2  ;;  %v7000_v45 = vsel %vm1007_vm2, %v2118_v18, %v2119_v8  ;;  %v4413_v6 = vld [vmem:[%s4555_s18 + $0x8] sm:$0xff]  ;;  %v4414_v16 = vld [vmem:[%s4555_s18 + $0x10] sm:$0xff] }
 0x144   : > { %9612 = vst [vmem:[#allocation25_spill] sm:$0xff] %v6964_v26  ;;  %9614 = vst [vmem:[#allocation9_spill] sm:$0xff] %v6967_v52  ;;  %v7004_v54 = vsel %vm2287_vm3, %v4412_v15, 0.0  ;;  %v7008_v51 = vsel %vm2287_vm3, %v4413_v6, 0.0  ;;  %v7011_v10 = vsel %vm1007_vm2, %v2119_v8, %v2121_v59  ;;  %v7017_v21 = vsel %vm2287_vm3, %v4414_v16, 0.0  ;;  %v4415_v47 = vld [vmem:[%s4555_s18 + $0x18] sm:$0xff] }
 0x145   : > { %9616 = vst [vmem:[#allocation41_spill] sm:$0xff] %v6970_v41  ;;  %9618 = vst [vmem:[#allocation26_spill] sm:$0xff] %v6973_v11  ;;  %v2290_v13 = vadd.f32 %v7008_v51, %v7004_v54  ;;  %v7021_v22 = vsel %vm2287_vm3, %v4415_v47, 0.0  ;;  %v7024_v35 = vsel %vm1007_vm2, %v2123_v50, %v2124_v14  ;;  %v2131_v49 = vrot.slane %v6886_v32, 2  ;;  %v4416_v16 = vld [vmem:[%s4555_s18 + $0x20] sm:$0xff]  ;;  %v4423_v34 = vld [vmem:[%s4555_s18 + $0x58] sm:$0xff] }
 0x146   : > { %9620 = vst [vmem:[#allocation10_spill] sm:$0xff] %v6977_v63  ;;  %9622 = vst [vmem:[#allocation27_spill] sm:$0xff] %v6983_v60  ;;  %v2133_v18 = vrot.slane %v6889_v30, 2  ;;  %v2299_v8 = vadd.f32 %v7021_v22, %v7017_v21  ;;  %v7031_v59 = vsel %vm1007_vm2, %v2124_v14, %v2126_v29  ;;  %v7034_v15 = vsel %vm1007_vm2, %v2128_v48, %v2129_v58  ;;  %v4417_v30 = vld [vmem:[%s4555_s18 + $0x28] sm:$0xff]  ;;  %v4418_v14 = vld [vmem:[%s4555_s18 + $0x30] sm:$0xff] }
 0x147   : > { %9623 = vst [vmem:[#allocation11_spill] sm:$0xff] %v6986_v7  ;;  %9624 = vst [vmem:[#allocation43_spill] sm:$0xff] %v6991_v5  ;;  %v2134_v6 = vrot.slane %v6892_v28, 2  ;;  %v2136_v50 = vrot.slane %v6895_v36, 2  ;;  %v7040_v32 = vsel %vm2287_vm3, %v4416_v16, 0.0  ;;  %v7044_v47 = vsel %vm2287_vm3, %v4417_v30, 0.0 }
 0x148   : > { %9626 = vst [vmem:[#allocation12_spill] sm:$0xff] %v7000_v45  ;;  %9627 = vst [vmem:[#allocation44_spill] sm:$0xff] %v7011_v10  ;;  %v7048_v29 = vsel %vm2287_vm3, %v4418_v14, 0.0  ;;  %v4419_v48 = vld [vmem:[%s4555_s18 + $0x38] sm:$0xff]  ;;  %v2291_v36 = vrot.slane %v2290_v13, 4  ;;  %v2308_v16 = vadd.f32 %v7044_v47, %v7040_v32  ;;  %v4421_v14 = vld [vmem:[%s4555_s18 + $0x48] sm:$0xff] }
 0x149   : > { %9628 = vst [vmem:[#allocation29_spill] sm:$0xff] %v7024_v35  ;;  %9629 = vst [vmem:[#allocation13_spill] sm:$0xff] %v7031_v59  ;;  %v7052_v28 = vsel %vm2287_vm3, %v4419_v48, 0.0  ;;  %v4420_v59 = vld [vmem:[%s4555_s18 + $0x40] sm:$0xff]  ;;  %v2300_v35 = vrot.slane %v2299_v8, 4  ;;  %v7064_v23 = vsel %vm2287_vm3, %v4421_v14, 0.0 }
 0x14a   : > { %9630 = vst [vmem:[#allocation45_spill] sm:$0xff] %v7034_v15  ;;  %v2317_v15 = vadd.f32 %v7052_v28, %v7048_v29  ;;  %v7060_v30 = vsel %vm2287_vm3, %v4420_v59, 0.0  ;;  %v4422_v10 = vld [vmem:[%s4555_s18 + $0x50] sm:$0xff]  ;;  %v7072_v45 = vsel %vm2287_vm3, %v4423_v34, 0.0  ;;  %v4424_v9 = vld [vmem:[%s4555_s18 + $0x60] sm:$0xff]  ;;  %v4425_v38 = vld [vmem:[%s4555_s18 + $0x68] sm:$0xff] }
 0x14b   : > { %v7068_v48 = vsel %vm2287_vm3, %v4422_v10, 0.0  ;;  %v2326_v33 = vadd.f32 %v7064_v23, %v7060_v30  ;;  %v7080_v14 = vsel %vm2287_vm3, %v4424_v9, 0.0  ;;  %v7084_v5 = vsel %vm2287_vm3, %v4425_v38, 0.0  ;;  %v4426_v2 = vld [vmem:[%s4555_s18 + $0x70] sm:$0xff]  ;;  %v4427_v62 = vld [vmem:[%s4555_s18 + $0x78] sm:$0xff]  ;;  %v4428_v26 = vld [vmem:[%s4555_s18 + $0x80] sm:$0xff] }
 0x14c   : > { %v2335_v59 = vadd.f32 %v7072_v45, %v7068_v48  ;;  %v7087_v10 = vsel %vm1007_vm2, %v2129_v58, %v2131_v49  ;;  %v2138_v34 = vrot.slane %v6898_v44, 2  ;;  %v2344_v7 = vadd.f32 %v7084_v5, %v7080_v14 }
 0x14d   : > { %9631 = vst [vmem:[#allocation30_spill] sm:$0xff] %v7087_v10  ;;  %v2309_v27 = vrot.slane %v2308_v16, 4  ;;  %v2318_v60 = vrot.slane %v2317_v15, 4  ;;  %v7095_v9 = vsel %vm2287_vm3, %v4426_v2, 0.0  ;;  %v7099_v38 = vsel %vm2287_vm3, %v4427_v62, 0.0 }
 0x14e   : > { %v7102_v58 = vsel %vm1007_vm2, %v2133_v18, %v2134_v6  ;;  %v2292_v49 = vadd.f32 %v2291_v36, %v2290_v13  ;;  %v2301_v44 = vadd.f32 %v2300_v35, %v2299_v8  ;;  %v2353_v25 = vadd.f32 %v7099_v38, %v7095_v9 }
 0x14f   : > { %9632 = vst [vmem:[#allocation14_spill] sm:$0xff] %v7102_v58  ;;  %v7107_v10 = vsel %vm1007_vm2, %v2134_v6, %v2136_v50  ;;  %v2141_v63 = vrot.slane %v6904_v39, 2  ;;  %v2327_v11 = vrot.slane %v2326_v33, 4  ;;  %v2336_v2 = vrot.slane %v2335_v59, 4 }
 0x150   : > { %9633 = vst [vmem:[#allocation46_spill] sm:$0xff] %v7107_v10  ;;  %v2143_v41 = vrot.slane %v6907_v17, 2  ;;  %v2144_v62 = vrot.slane %v6910_v3, 2  ;;  %v2146_v18 = vrot.slane %v6913_v40, 2  ;;  %v2345_v13 = vrot.slane %v2344_v7, 4  ;;  %v4429_v40 = vld [vmem:[%s4555_s18 + $0x88] sm:$0xff] }
 0x151   : > { %v7114_v35 = vsel %vm1007_vm2, %v2138_v34, %v2139_v37  ;;  %v2148_v8 = vrot.slane %v6916_v20, 2  ;;  %v2310_v6 = vadd.f32 %v2309_v27, %v2308_v16  ;;  %v2319_v50 = vadd.f32 %v2318_v60, %v2317_v15 }
 0x152   : > { %9634 = vst [vmem:[#allocation31_spill] sm:$0xff] %v7114_v35  ;;  %v2149_v39 = vrot.slane %v6919_v4, 2  ;;  %v2293_v36 = vrot.slane %v2292_v49, 2  ;;  %v2302_v10 = vrot.slane %v2301_v44, 2  ;;  %v2354_v58 = vrot.slane %v2353_v25, 4 }
 0x153   : > { %v2328_v52 = vadd.f32 %v2327_v11, %v2326_v33  ;;  %v2337_v17 = vadd.f32 %v2336_v2, %v2335_v59  ;;  %v7120_v3 = vsel %vm2287_vm3, %v4428_v26, 0.0  ;;  %v7124_v53 = vsel %vm2287_vm3, %v4429_v40, 0.0  ;;  %v4430_v40 = vld [vmem:[%s4555_s18 + $0x90] sm:$0xff] }
 0x154   : > { %v7127_v34 = vsel %vm1007_vm2, %v2139_v37, %v2141_v63  ;;  %v2151_v27 = vrot.slane %v6922_v55, 2  ;;  %v2346_v20 = vadd.f32 %v2345_v13, %v2344_v7  ;;  %v2362_v4 = vadd.f32 %v7124_v53, %v7120_v3 }
 0x155   : > { %9635 = vst [vmem:[#allocation15_spill] sm:$0xff] %v7127_v34  ;;  %v7133_v33 = vsel %vm1007_vm2, %v2143_v41, %v2144_v62  ;;  %v7136_v26 = vsel %vm1007_vm2, %v2144_v62, %v2146_v18  ;;  %v2311_v11 = vrot.slane %v2310_v6, 2  ;;  %v2320_v60 = vrot.slane %v2319_v50, 2  ;;  %v4431_v18 = vld [vmem:[%s4555_s18 + $0x98] sm:$0xff]  ;;  %v4437_v34 = vld [vmem:[%s4555_s18 + $0xc8] sm:$0xff] }
 0x156   : > { %9636 = vst [vmem:[#allocation47_spill] sm:$0xff] %v7133_v33  ;;  %9637 = vst [vmem:[#allocation32_spill] sm:$0xff] %v7136_v26  ;;  %v7139_v15 = vsel %vm1007_vm2, %v2148_v8, %v2149_v39  ;;  %v2153_v37 = vrot.slane %v6925_v57, 2  ;;  %v2355_v63 = vadd.f32 %v2354_v58, %v2353_v25  ;;  %v2294_v7 = vadd.f32 %v2293_v36, %v2292_v49 }
 0x157   : > { %9638 = vst [vmem:[#allocation16_spill] sm:$0xff] %v7139_v15  ;;  %v2303_v16 = vadd.f32 %v2302_v10, %v2301_v44  ;;  %v2329_v59 = vrot.slane %v2328_v52, 2  ;;  %v2338_v2 = vrot.slane %v2337_v17, 2  ;;  %v2347_v41 = vrot.slane %v2346_v20, 2  ;;  %v4432_v44 = vld [vmem:[%s4555_s18 + $0xa0] sm:$0xff]  ;;  %v4433_v15 = vld [vmem:[%s4555_s18 + $0xa8] sm:$0xff] }
 0x158   : > { %v2363_v13 = vrot.slane %v2362_v4, 4  ;;  %v7145_v62 = vsel %vm2287_vm3, %v4430_v40, 0.0  ;;  %v7149_v26 = vsel %vm2287_vm3, %v4431_v18, 0.0  ;;  %v7152_v8 = vsel %vm1007_vm2, %v2149_v39, %v2151_v27 }
 0x159   : > { %9639 = vst [vmem:[#allocation48_spill] sm:$0xff] %v7152_v8  ;;  %v2312_v57 = vadd.f32 %v2311_v11, %v2310_v6  ;;  %v2321_v55 = vadd.f32 %v2320_v60, %v2319_v50  ;;  %v2371_v10 = vadd.f32 %v7149_v26, %v7145_v62  ;;  %v9640_v58 = vrot.slane %v6928_v0, 2 }
 0x15a   : > { %v2356_v36 = vrot.slane %v2355_v63, 2  ;;  %v2330_v50 = vadd.f32 %v2329_v59, %v2328_v52  ;;  %v2339_v27 = vadd.f32 %v2338_v2, %v2337_v17  ;;  %v2295_v11 = vrot.slane %v2294_v7, 1  ;;  %v4434_v52 = vld [vmem:[%s4555_s18 + $0xb0] sm:$0xff] }
 0x15b   : > { %v7159_v49 = vsel %vm1007_vm2, %v2153_v37, %v9640_v58  ;;  %v2304_v60 = vrot.slane %v2303_v16, 1  ;;  %v2348_v40 = vadd.f32 %v2347_v41, %v2346_v20  ;;  %v2364_v18 = vadd.f32 %v2363_v13, %v2362_v4  ;;  %v4435_v20 = vld [vmem:[%s4555_s18 + $0xb8] sm:$0xff] }
 0x15c   : > { %9641 = vst [vmem:[#allocation33_spill] sm:$0xff] %v7159_v49  ;;  %v2313_v37 = vrot.slane %v2312_v57, 1  ;;  %v2322_v58 = vrot.slane %v2321_v55, 1  ;;  %v2372_v49 = vrot.slane %v2371_v10, 4  ;;  %v7167_v25 = vsel %vm2287_vm3, %v4432_v44, 0.0 }
 0x15d   : > { %v2357_v8 = vadd.f32 %v2356_v36, %v2355_v63  ;;  %v7171_v39 = vsel %vm2287_vm3, %v4433_v15, 0.0  ;;  %v7175_v17 = vsel %vm2287_vm3, %v4434_v52, 0.0  ;;  %v7179_v4 = vsel %vm2287_vm3, %v4435_v20, 0.0  ;;  %v4436_v20 = vld [vmem:[%s4555_s18 + $0xc0] sm:$0xff] }
 0x15e   : > { %v2331_v59 = vrot.slane %v2330_v50, 1  ;;  %v2340_v2 = vrot.slane %v2339_v27, 1  ;;  %v2380_v41 = vadd.f32 %v7171_v39, %v7167_v25  ;;  %v2389_v63 = vadd.f32 %v7179_v4, %v7175_v17 }
 0x15f   : > { %v7186_v13 = vadd.f32 %v2295_v11, %v2294_v7  ;;  %v2349_v44 = vrot.slane %v2348_v40, 1  ;;  %v2365_v36 = vrot.slane %v2364_v18, 2  ;;  %v7188_v52 = vadd.f32 %v2304_v60, %v2303_v16 }
 0x160   : > { %v2373_v6 = vadd.f32 %v2372_v49, %v2371_v10  ;;  %v7192_v33 = vsel %vm2287_vm3, %v4436_v20, 0.0  ;;  %v7196_v35 = vsel %vm2287_vm3, %v4437_v34, 0.0  ;;  %v7198_v19 = vadd.f32 %v2313_v37, %v2312_v57  ;;  %v4438_v34 = vld [vmem:[%s4555_s18 + $0xd0] sm:$0xff] }
 0x161   : > { %v7200_v15 = vadd.f32 %v2322_v58, %v2321_v55  ;;  %v2358_v7 = vrot.slane %v2357_v8, 1  ;;  %v2398_v16 = vadd.f32 %v7196_v35, %v7192_v33  ;;  %v7204_v11 = vadd.f32 %v2331_v59, %v2330_v50  ;;  %v4439_v58 = vld [vmem:[%s4555_s18 + $0xd8] sm:$0xff] }
 0x162   : > { %v7206_v10 = vadd.f32 %v2340_v2, %v2339_v27  ;;  %v2381_v49 = vrot.slane %v2380_v41, 4  ;;  %v2390_v60 = vrot.slane %v2389_v63, 4  ;;  %v7208_v20 = vadd.f32 %v2349_v44, %v2348_v40  ;;  %v4440_v2 = vld [vmem:[%s4555_s18 + $0xe0] sm:$0xff] }
 0x163   : > { %v2366_v42 = vadd.f32 %v2365_v36, %v2364_v18  ;;  %v7212_v57 = vsel %vm2287_vm3, %v4438_v34, 0.0  ;;  %v2449_v55 = vadd.f32 %v7017_v21, %v7004_v54  ;;  %v2374_v37 = vrot.slane %v2373_v6, 2 }
 0x164   : > { %v7218_v50 = vsel %vm2287_vm3, %v4439_v58, 0.0  ;;  %v2464_v27 = vadd.f32 %v7021_v22, %v7008_v51  ;;  %v2492_v59 = vlaneseq  ;;  %v7222_v40 = vadd.f32 %v2358_v7, %v2357_v8  ;;  %v4441_v51 = vld [vmem:[%s4555_s18 + $0xe8] sm:$0xff] }
 0x165   : > { %v2399_v18 = vrot.slane %v2398_v16, 4  ;;  %v7226_v44 = vsel %vm2287_vm3, %v4440_v2, 0.0  ;;  %v2450_v36 = vadd.f32 %v2449_v55, %v7040_v32  ;;  %v2382_v54 = vadd.f32 %v2381_v49, %v2380_v41  ;;  %v7241_v32 = vld [vmem:[%s8760_s3] ss:$0 sm:$0xff] }
 0x166   : > { %v2391_v21 = vadd.f32 %v2390_v60, %v2389_v63  ;;  %v2465_v34 = vadd.f32 %v2464_v27, %v7044_v47  ;;  %v2493_v61 = vshrl.u32 %v2492_v59, 7  ;;  %v2367_v58 = vrot.slane %v2366_v42, 1 }
 0x167   : > { %v2407_v56 = vadd.f32 %v7218_v50, %v7212_v57  ;;  %v7234_v22 = vsel %vm2287_vm3, %v4441_v51, 0.0  ;;  %v2451_v8 = vadd.f32 %v2450_v36, %v7048_v29  ;;  %v2375_v7 = vadd.f32 %v2374_v37, %v2373_v6  ;;  %v4442_v36 = vld [vmem:[%s4555_s18 + $0xf0] sm:$0xff] }
 0x168   : > { %v2466_v2 = vadd.f32 %v2465_v34, %v7052_v28  ;;  %v2496_v47 = vadd.s32 4294967291, %v2493_v61  ;;  %v2517_v41 = vadd.s32 4294967292, %v2493_v61  ;;  %v2400_v63 = vadd.f32 %v2399_v18, %v2398_v16  ;;  %v7250_v28 = vld [vmem:[%s8760_s3 + $0x1] ss:$0 sm:$0xff] }
 0x169   : > { %v2416_v49 = vadd.f32 %v7234_v22, %v7226_v44  ;;  %v2452_v60 = vadd.f32 %v2451_v8, %v7060_v30  ;;  %v2553_v55 = vadd.s32 4294967293, %v2493_v61  ;;  %v2589_v6 = vadd.s32 4294967294, %v2493_v61 }
 0x16a   : > { %v2467_v29 = vadd.f32 %v2466_v2, %v7064_v23  ;;  %vm2498_vm4 = vcmp.ge.s32.totalorder %v2496_v47, 0  ;;  %vm2519_vm5 = vcmp.ge.s32.totalorder %v2517_v41, 0  ;;  %v2383_v59 = vrot.slane %v2382_v54, 2  ;;  %v7266_v2 = vld [vmem:[%s8760_s3 + $0x2] ss:$0 sm:$0xff] }
 0x16b   : > { %v2453_v37 = vadd.f32 %v2452_v60, %v7068_v48  ;;  %v2512_v16 = vsel %vm2498_vm4, %v7241_v32, 0.0  ;;  %v2533_v27 = vsel %vm2519_vm5, %v7250_v28, 0.0  ;;  %vm2555_vm6 = vcmp.ge.s32.totalorder %v2553_v55, 0 }
 0x16c   : > { %v2392_v30 = vrot.slane %v2391_v21, 2  ;;  %v2408_v18 = vrot.slane %v2407_v56, 4  ;;  %v2468_v23 = vadd.f32 %v2467_v29, %v7072_v45  ;;  %v7258_v34 = vsel %vm2287_vm3, %v4442_v36, 0.0 }
 0x16d   : > { %v2454_v51 = vadd.f32 %v2453_v37, %v7080_v14  ;;  %v2538_v8 = vadd.f32 %v2533_v27, %v2512_v16  ;;  %v2539_v48 = vadd.f32 %v7250_v28, %v7241_v32  ;;  %v7268_v47 = vadd.f32 %v2367_v58, %v2366_v42 }
 0x16e   : > { %v2401_v41 = vrot.slane %v2400_v63, 2  ;;  %v2469_v45 = vadd.f32 %v2468_v23, %v7084_v5  ;;  %v2569_v60 = vsel %vm2555_vm6, %v7266_v2, 0.0  ;;  %v2417_v55 = vrot.slane %v2416_v49, 4  ;;  %v7279_v5 = vld [vmem:[%s8760_s3 + $0x3] ss:$0 sm:$0xff] }
 0x16f   : > { %v2455_v14 = vadd.f32 %v2454_v51, %v7095_v9  ;;  %vm2591_vm7 = vcmp.ge.s32.totalorder %v2589_v6, 0  ;;  %v2625_v29 = vadd.s32 4294967295, %v2493_v61  ;;  %v2376_v37 = vrot.slane %v2375_v7, 1  ;;  %v4443_v9 = vld [vmem:[%s4555_s18 + $0xf8] sm:$0xff] }
 0x170   : > { %v2384_v16 = vadd.f32 %v2383_v59, %v2382_v54  ;;  %v2409_v27 = vadd.f32 %v2408_v18, %v2407_v56  ;;  %v2470_v36 = vadd.f32 %v2469_v45, %v7099_v38  ;;  %v2393_v46 = vadd.f32 %v2392_v30, %v2391_v21 }
 0x171   : > { %v2456_v42 = vadd.f32 %v2455_v14, %v7120_v3  ;;  %v2574_v58 = vadd.f32 %v2569_v60, %v2538_v8  ;;  %v2575_v31 = vadd.f32 %v7266_v2, %v2539_v48  ;;  %v2402_v23 = vadd.f32 %v2401_v41, %v2400_v63 }
 0x172   : > { %v2424_v6 = vsel %vm2287_vm3, %v4443_v9, 0.0  ;;  %v2471_v54 = vadd.f32 %v2470_v36, %v7124_v53  ;;  %v2605_v56 = vsel %vm2591_vm7, %v7279_v5, 0.0  ;;  %v2418_v38 = vadd.f32 %v2417_v55, %v2416_v49 }
 0x173   : > { %v2457_v21 = vadd.f32 %v2456_v42, %v7145_v62  ;;  %v7286_v3 = vadd.s32 8, %v2493_v61  ;;  %vm2627_vm8 = vcmp.ge.s32.totalorder %v2625_v29, 0  ;;  %v7288_v59 = vadd.f32 %v2376_v37, %v2375_v7  ;;  %v7297_v62 = vld [vmem:[%s8760_s3 + $0x4] ss:$0 sm:$0xff] }
 0x174   : > { %v2410_v30 = vrot.slane %v2409_v27, 2  ;;  %v2425_v18 = vadd.f32 %v2424_v6, %v7258_v34  ;;  %v2472_v63 = vadd.f32 %v2471_v54, %v7149_v26  ;;  %v2385_v51 = vrot.slane %v2384_v16, 1 }
 0x175   : > { %v2458_v8 = vadd.f32 %v2457_v21, %v7167_v25  ;;  %v2610_v48 = vadd.f32 %v2605_v56, %v2574_v58  ;;  %v2611_v53 = vadd.f32 %v7279_v5, %v2575_v31  ;;  %v2394_v61 = vrot.slane %v2393_v46, 1  ;;  %v7337_v56 = vld [vmem:[%s8760_s3 + $0x6] ss:$0 sm:$0xff] }
 0x176   : > { %v2403_v49 = vrot.slane %v2402_v23, 1  ;;  %v2473_v7 = vadd.f32 %v2472_v63, %v7171_v39  ;;  %v2641_v41 = vsel %vm2627_vm8, %v7297_v62, 0.0  ;;  %v2419_v45 = vrot.slane %v2418_v38, 2 }
 0x177   : > { %v7302_v26 = vmul.f32 0.0625, %v7186_v13  ;;  %v2459_v25 = vadd.f32 %v2458_v8, %v7175_v17  ;;  %v2698_v60 = vadd.s32 1, %v7286_v3  ;;  %v2411_v31 = vadd.f32 %v2410_v30, %v2409_v27 }
 0x178   : > { %v2426_v55 = vrot.slane %v2425_v18, 4  ;;  %v7307_v14 = vmul.f32 0.0625, %v7188_v52  ;;  %v2474_v29 = vadd.f32 %v2473_v7, %v7179_v4  ;;  %v2386_v37 = vadd.f32 %v2385_v51, %v2384_v16 }
 0x179   : > { %v2460_v39 = vadd.f32 %v2459_v25, %v7192_v33  ;;  %v2646_v36 = vadd.f32 %v2641_v41, %v2610_v48  ;;  %v2647_v42 = vadd.f32 %v7297_v62, %v2611_v53  ;;  %v2395_v58 = vadd.f32 %v2394_v61, %v2393_v46 }
 0x17a   : > { %v7312_v13 = vadd.f32 %v2403_v49, %v2402_v23  ;;  %v7315_v17 = vmul.f32 0.0625, %v7198_v19  ;;  %v2475_v27 = vadd.f32 %v2474_v29, %v7196_v35  ;;  %v7318_v9 = vadd.f32 %v2419_v45, %v2418_v38  ;;  %v7329_v19 = vld [vmem:[%s8760_s3 + $0x5] ss:$0 sm:$0xff] }
 0x17b   : > { %v2461_v52 = vadd.f32 %v2460_v39, %v7212_v57  ;;  %vm2702_vm9 = vcmp.le.s32.totalorder %v2698_v60, 15  ;;  %v2735_v4 = vadd.s32 2, %v7286_v3  ;;  %v2412_v16 = vrot.slane %v2411_v31, 1 }
 0x17c   : > { %v2427_v33 = vadd.f32 %v2426_v55, %v2425_v18  ;;  %v7323_v54 = vmul.f32 0.0625, %v7200_v15  ;;  %v2476_v46 = vadd.f32 %v2475_v27, %v7218_v50  ;;  %v2681_v23 = vadd.f32 %v7329_v19, %v2646_v36 }
 0x17d   : > { %v2462_v35 = vadd.f32 %v2461_v52, %v7226_v44  ;;  %v2682_v57 = vadd.f32 %v7329_v19, %v2647_v42  ;;  %v2771_v15 = vadd.s32 3, %v7286_v3  ;;  %v7341_v50 = vmul.f32 0.0625, %v7204_v11 }
 0x17e   : > { %v7344_v38 = vmul.f32 0.0625, %v7206_v10  ;;  %v2477_v21 = vadd.f32 %v2476_v46, %v7234_v22  ;;  %v2714_v44 = vsel %vm2702_vm9, %v7337_v56, 0.0  ;;  %v2421_v30 = vrot.slane %v7318_v9, 1 }
 0x17f   : > { %v7350_v18 = vmul.f32 0.0625, %v7208_v20  ;;  %v2463_v63 = vadd.f32 %v2462_v35, %v7258_v34  ;;  %vm2739_vm10 = vcmp.le.s32.totalorder %v2735_v4, 15  ;;  %v2428_v51 = vrot.slane %v2427_v33, 2  ;;  %v7363_v20 = vld [vmem:[%s8760_s3 + $0x7] ss:$0 sm:$0xff] }
 0x180   : > { %v7354_v8 = vmul.f32 0.0625, %v7222_v40  ;;  %v7357_v11 = vmul.f32 0.0625, %v7268_v47  ;;  %v2478_v10 = vadd.f32 %v2477_v21, %v2424_v6  ;;  %v2718_v22 = vadd.f32 %v7337_v56, %v2681_v23  ;;  %v7368_v34 = vld [vmem:[%s8760_s3 + $0x8] ss:$0 sm:$0xff] }
 0x181   : > { %v2479_v48 = vmul.f32 0.0625, %v2463_v63  ;;  %v2719_v53 = vadd.f32 %v2714_v44, %v2682_v57  ;;  %vm2775_vm11 = vcmp.le.s32.totalorder %v2771_v15, 15  ;;  %v7370_v40 = vadd.f32 %v2412_v16, %v2411_v31 }
 0x182   : > { %v2480_v47 = vmul.f32 0.0625, %v2478_v10  ;;  %v2751_v6 = vsel %vm2739_vm10, %v7363_v20, 0.0  ;;  %v7374_v61 = vmul.f32 0.0625, %v7288_v59  ;;  %v7376_v49 = vmul.f32 0.0625, %v2386_v37 }
 0x183   : > { %v7378_v7 = vmul.f32 0.0625, %v2395_v58  ;;  %v2484_v41 = vrot.slane %v2479_v48, 3  ;;  %v7380_v45 = vadd.f32 %v2428_v51, %v2427_v33  ;;  %v7383_v60 = vsel %vm2775_vm11, %v7368_v34, 0.0 }
 0x184   : > { %v2485_v25 = vrot.slane %v2480_v47, 3  ;;  %v7386_v31 = vadd.s32 4, %v7286_v3  ;;  %v7392_v59 = vadd.f32 %v7363_v20, %v2718_v22  ;;  %v7394_v29 = vadd.f32 %v2751_v6, %v2719_v53 }
 0x185   : > { %v7389_v55 = vsel %vm2483_vm12, 0.0, %v2484_v41  ;;  %v7397_v37 = vadd.s32 5, %v7286_v3 }
 0x186   : > { %v7400_v39 = vsel %vm2483_vm12, %v2484_v41, %v2485_v25  ;;  %v7403_v36 = vsel %vm2483_vm12, %v2485_v25, 0.0  ;;  %v2514_v42 = vmul.f32 %v7241_v32, %v7389_v55  ;;  %v2535_v58 = vmul.f32 %v7250_v28, %v7389_v55 }
 0x187   : > { %v2515_v27 = vmul.f32 %v7241_v32, %v7400_v39  ;;  %v2536_v3 = vmul.f32 %v7250_v28, %v7400_v39  ;;  %v2537_v52 = vmul.f32 %v7250_v28, %v7403_v36  ;;  %v2571_v4 = vmul.f32 %v7266_v2, %v7389_v55 }
 0x188   : > { %v2543_v16 = vrot.slane %v2535_v58, 1  ;;  %v2572_v33 = vmul.f32 %v7266_v2, %v7400_v39  ;;  %v2573_v46 = vmul.f32 %v7266_v2, %v7403_v36  ;;  %v2607_v35 = vmul.f32 %v7279_v5, %v7389_v55 }
 0x189   : > { %v2544_v32 = vrot.slane %v2536_v3, 1  ;;  %v2546_v23 = vrot.slane %v2537_v52, 1  ;;  %v2579_v57 = vrot.slane %v2571_v4, 2  ;;  %v2608_v28 = vmul.f32 %v7279_v5, %v7400_v39 }
 0x18a   : > { %v2580_v15 = vrot.slane %v2572_v33, 2  ;;  %v2582_v21 = vrot.slane %v2573_v46, 2  ;;  %v2609_v44 = vmul.f32 %v7279_v5, %v7403_v36  ;;  %v2615_v63 = vrot.slane %v2607_v35, 3 }
 0x18b   : > { %v2545_v51 = vsel %vm770_vm1, %v2543_v16, %v2544_v32  ;;  %v2547_v2 = vsel %vm770_vm1, %v2544_v32, %v2546_v23  ;;  %v2616_v10 = vrot.slane %v2608_v28, 3  ;;  %v2643_v48 = vmul.f32 %v7297_v62, %v7389_v55 }
 0x18c   : > { %v2550_v22 = vadd.f32 %v2545_v51, %v2514_v42  ;;  %v2551_v53 = vadd.f32 %v2547_v2, %v2515_v27  ;;  %v2581_v47 = vsel %vm1007_vm2, %v2579_v57, %v2580_v15  ;;  %v2583_v6 = vsel %vm1007_vm2, %v2580_v15, %v2582_v21 }
 0x18d   : > { %vm2800_vm4 = vcmp.le.s32.totalorder %v7386_v31, 15  ;;  %v2617_v5 = vsel %vm2483_vm12, %v2615_v63, %v2616_v10  ;;  %v2618_v41 = vrot.slane %v2609_v44, 3  ;;  %v2644_v25 = vmul.f32 %v7297_v62, %v7400_v39 }
 0x18e   : > { %v2645_v58 = vmul.f32 %v7297_v62, %v7403_v36  ;;  %v2586_v3 = vadd.f32 %v2581_v47, %v2550_v22  ;;  %v2587_v52 = vadd.f32 %v2583_v6, %v2551_v53  ;;  %v2652_v4 = vrot.slane %v2643_v48, 4 }
 0x18f   : > { %v2678_v42 = vmul.f32 %v7329_v19, %v7389_v55  ;;  %v2619_v27 = vsel %vm2483_vm12, %v2616_v10, %v2618_v41  ;;  %v2653_v16 = vrot.slane %v2644_v25, 4  ;;  %v2679_v46 = vmul.f32 %v7329_v19, %v7400_v39 }
 0x190   : > { %v2655_v33 = vrot.slane %v2645_v58, 4  ;;  %v2622_v35 = vadd.f32 %v2617_v5, %v2586_v3  ;;  %v2623_v32 = vadd.f32 %v2619_v27, %v2587_v52  ;;  %v2680_v23 = vmul.f32 %v7329_v19, %v7403_v36 }
 0x191   : > { %v2687_v57 = vrot.slane %v2678_v42, 5  ;;  %v2654_v62 = vsel %vm2651_vm13, %v2652_v4, %v2653_v16  ;;  %v2688_v15 = vrot.slane %v2679_v46, 5  ;;  %v2715_v21 = vmul.f32 %v7337_v56, %v7389_v55  ;;  %v4208_v42 = vld [vmem:[%s8760_s3 + $0x9] ss:$0 sm:$0xff] }
 0x192   : > { %v2656_v28 = vsel %vm2651_vm13, %v2653_v16, %v2655_v33  ;;  %v2659_v44 = vadd.f32 %v2654_v62, %v2622_v35  ;;  %v2690_v51 = vrot.slane %v2680_v23, 5  ;;  %v2716_v2 = vmul.f32 %v7337_v56, %v7400_v39 }
 0x193   : > { %v2660_v63 = vadd.f32 %v2656_v28, %v2623_v32  ;;  %v2689_v10 = vsel %vm2686_vm14, %v2687_v57, %v2688_v15  ;;  %v2717_v19 = vmul.f32 %v7337_v56, %v7403_v36  ;;  %v2724_v48 = vrot.slane %v2715_v21, 6 }
 0x194   : > { %v2752_v22 = vmul.f32 %v7363_v20, %v7389_v55  ;;  %v2691_v53 = vsel %vm2686_vm14, %v2688_v15, %v2690_v51  ;;  %v2694_v47 = vadd.f32 %v2689_v10, %v2659_v44  ;;  %v2725_v6 = vrot.slane %v2716_v2, 6  ;;  %v7500_v44 = vld [vmem:[%s8763_s6 + $0x1] ss:$0 sm:$0xff]  ;;  %v7510_v2 = vld [vmem:[%s8763_s6 + $0x2] ss:$0 sm:$0xff] }
 0x195   : > { %v2753_v5 = vmul.f32 %v7363_v20, %v7400_v39  ;;  %v2695_v41 = vadd.f32 %v2691_v53, %v2660_v63  ;;  %v2727_v25 = vrot.slane %v2717_v19, 6  ;;  %v2754_v58 = vmul.f32 %v7363_v20, %v7403_v36  ;;  %9642 = vst [vmem:[#allocation18_spill] sm:$0xff] %v7510_v2  ;;  %v7516_v53 = vld [vmem:[%s8763_s6 + $0x3] ss:$0 sm:$0xff] }
 0x196   : > { %v2760_v3 = vrot.slane %v2752_v22, 7  ;;  %v2430_v52 = vrot.slane %v7380_v45, 1  ;;  %v2726_v56 = vsel %vm2723_vm15, %v2724_v48, %v2725_v6  ;;  %v2791_v55 = vadd.f32 %v7383_v60, %v7394_v29  ;;  %v4209_v29 = vld [vmem:[%s8760_s3 + $0xa] ss:$0 sm:$0xff]  ;;  %9643 = vst [vmem:[#allocation49_spill] sm:$0xff] %v7516_v53 }
 0x197   : > { %v2761_v4 = vrot.slane %v2753_v5, 7  ;;  %v2728_v27 = vsel %vm2723_vm15, %v2725_v6, %v2727_v25  ;;  %v2763_v16 = vrot.slane %v2754_v58, 7  ;;  %v2790_v33 = vadd.f32 %v7368_v34, %v7392_v59 }
 0x198   : > { %v2812_v20 = vsel %vm2800_vm4, %v4208_v42, 0.0  ;;  %v2422_v46 = vadd.f32 %v2421_v30, %v7318_v9  ;;  %v7478_v35 = vmul.f32 0.0625, %v7312_v13  ;;  %v2731_v60 = vadd.f32 %v2726_v56, %v2694_v47 }
 0x199   : > { %vm2836_vm5 = vcmp.le.s32.totalorder %v7397_v37, 15  ;;  %v2732_v32 = vadd.f32 %v2728_v27, %v2695_v41  ;;  %v2762_v59 = vsel %vm508_vm0, %v2760_v3, %v2761_v4  ;;  %v2813_v31 = vmul.f32 %v4208_v42, %v7400_v39  ;;  %v7495_v37 = vld [vmem:[%s8763_s6] ss:$0 sm:$0xff] }
 0x19a   : > { %v2814_v23 = vmul.f32 %v4208_v42, %v7403_v36  ;;  %v7488_v57 = vmul.f32 0.0625, %v7370_v40  ;;  %v2764_v13 = vsel %vm508_vm0, %v2761_v4, %v2763_v16  ;;  %v2815_v9 = vmul.f32 0.0, %v4208_v42 }
 0x19b   : > { %v2817_v30 = vadd.f32 %v2812_v20, %v2791_v55  ;;  %v2431_v62 = vadd.f32 %v2430_v52, %v7380_v45  ;;  %v2816_v28 = vadd.f32 %v4208_v42, %v2790_v33  ;;  %v2848_v15 = vsel %vm2836_vm5, %v4209_v29, 0.0 }
 0x19c   : > { %v2851_v21 = vmul.f32 0.0, %v4209_v29  ;;  %v2767_v40 = vadd.f32 %v2762_v59, %v2731_v60  ;;  %v2788_v63 = vmul.f32 %v7368_v34, %v7400_v39  ;;  %v2789_v45 = vmul.f32 %v7368_v34, %v7403_v36  ;;  %v7521_v34 = vld [vmem:[%s8763_s6 + $0x4] ss:$0 sm:$0xff] }
 0x19d   : > { %v2849_v51 = vmul.f32 %v4209_v29, %v7400_v39  ;;  %v2768_v10 = vadd.f32 %v2764_v13, %v2732_v32  ;;  %v2821_v19 = vrot.slane %v2813_v31, 1  ;;  %v2822_v48 = vrot.slane %v2814_v23, 1  ;;  %9644 = vst [vmem:[#allocation34_spill] sm:$0xff] %v7521_v34 }
 0x19e   : > { %v2850_v22 = vmul.f32 %v4209_v29, %v7403_v36  ;;  %v2824_v39 = vrot.slane %v2815_v9, 1  ;;  %v2853_v47 = vadd.f32 %v2848_v15, %v2817_v30  ;;  %v7524_v6 = vmul.f32 0.0, %v7495_v37 }
 0x19f   : > { %v3073_v5 = vmul.f32 0.0, %v7500_v44  ;;  %v2447_v41 = vmul.f32 0.0625, %v2422_v46  ;;  %v2448_v25 = vmul.f32 0.0625, %v2431_v62  ;;  %v2860_v36 = vrot.slane %v2851_v21, 2 }
 0x1a0   : > { %v3128_v58 = vmul.f32 0.0, %v7510_v2  ;;  %v2792_v3 = vadd.f32 %v2788_v63, %v2767_v40  ;;  %v2852_v52 = vadd.f32 %v4209_v29, %v2816_v28  ;;  %v3187_v56 = vmul.f32 0.0, %v7516_v53 }
 0x1a1   : > { %v7530_v4 = vmul.f32 0.0, %v7521_v34  ;;  %v2793_v55 = vadd.f32 %v2789_v45, %v2768_v10  ;;  %v2823_v42 = vsel %vm770_vm1, %v2821_v19, %v2822_v48  ;;  %v2857_v27 = vrot.slane %v2849_v51, 2 }
 0x1a2   : > { %v2858_v16 = vrot.slane %v2850_v22, 2  ;;  %v2825_v33 = vsel %vm770_vm1, %v2822_v48, %v2824_v39  ;;  %v2867_v20 = vmul.f32 %v2853_v47, %v7302_v26  ;;  %v2869_v46 = vmul.f32 %v2853_v47, %v7307_v14 }
 0x1a3   : > { %9645 = vst [vmem:[#allocation19_spill] sm:$0xff] %v7530_v4  ;;  %v7537_v60 = vadd.f32 %v3073_v5, %v7524_v6  ;;  %v2871_v29 = vmul.f32 %v2853_v47, %v7315_v17  ;;  %v2873_v32 = vmul.f32 %v2853_v47, %v7323_v54  ;;  %v2875_v59 = vmul.f32 %v2853_v47, %v7341_v50 }
 0x1a4   : > { %v2877_v31 = vmul.f32 %v2853_v47, %v7344_v38  ;;  %v2828_v23 = vadd.f32 %v2823_v42, %v2792_v3  ;;  %v2879_v13 = vmul.f32 %v2853_v47, %v7350_v18  ;;  %v2881_v9 = vmul.f32 %v2853_v47, %v7354_v8 }
 0x1a5   : > { %9646 = vst [vmem:[#allocation50_spill] sm:$0xff] %v7537_v60  ;;  %v2883_v30 = vmul.f32 %v2853_v47, %v7357_v11  ;;  %v2829_v62 = vadd.f32 %v2825_v33, %v2793_v55  ;;  %v2859_v28 = vsel %vm1007_vm2, %v2857_v27, %v2858_v16  ;;  %v2866_v15 = vmul.f32 %v2852_v52, %v7302_v26 }
 0x1a6   : > { %v2885_v21 = vmul.f32 %v2853_v47, %v7374_v61  ;;  %v2861_v40 = vsel %vm1007_vm2, %v2858_v16, %v2860_v36  ;;  %v2868_v63 = vmul.f32 %v2852_v52, %v7307_v14  ;;  %v2870_v45 = vmul.f32 %v2852_v52, %v7315_v17 }
 0x1a7   : > { %v2872_v51 = vmul.f32 %v2852_v52, %v7323_v54  ;;  %v2874_v10 = vmul.f32 %v2852_v52, %v7341_v50  ;;  %v2876_v19 = vmul.f32 %v2852_v52, %v7344_v38  ;;  %v2878_v48 = vmul.f32 %v2852_v52, %v7350_v18  ;;  %v7568_v38 = vld [vmem:[%s8763_s6 + $0x6] ss:$0 sm:$0xff] }
 0x1a8   : > { %v2880_v22 = vmul.f32 %v2852_v52, %v7354_v8  ;;  %v2864_v39 = vadd.f32 %v2859_v28, %v2828_v23  ;;  %v2882_v26 = vmul.f32 %v2852_v52, %v7357_v11  ;;  %v2884_v5 = vmul.f32 %v2852_v52, %v7374_v61  ;;  %9648 = vst [vmem:[#allocation22_spill] sm:$0xff] %v7568_v38 }
 0x1a9   : > { %v7560_v36 = vadd.f32 %v3128_v58, %v7537_v60  ;;  %v2865_v14 = vadd.f32 %v2861_v40, %v2829_v62  ;;  %v2886_v17 = vmul.f32 %v2852_v52, %v7376_v49  ;;  %v2887_v54 = vmul.f32 %v2853_v47, %v7376_v49 }
 0x1aa   : > { %v2888_v50 = vmul.f32 %v2852_v52, %v7378_v7  ;;  %v2889_v18 = vmul.f32 %v2853_v47, %v7378_v7  ;;  %v2890_v8 = vmul.f32 %v2852_v52, %v7478_v35  ;;  %v2891_v11 = vmul.f32 %v2853_v47, %v7478_v35 }
 0x1ab   : > { %9647 = vst [vmem:[#allocation35_spill] sm:$0xff] %v7560_v36  ;;  %v2892_v61 = vmul.f32 %v2852_v52, %v7488_v57  ;;  %v2893_v58 = vmul.f32 %v2853_v47, %v7488_v57  ;;  %v2894_v3 = vmul.f32 %v2852_v52, %v2447_v41  ;;  %v2895_v55 = vmul.f32 %v2853_v47, %v2447_v41 }
 0x1ac   : > { %v2896_v49 = vmul.f32 %v2852_v52, %v2448_v25  ;;  %v2897_v42 = vmul.f32 %v2853_v47, %v2448_v25  ;;  %v2898_v27 = vadd.f32 %v2866_v15, %v2864_v39  ;;  %v7576_v16 = vadd.f32 %v3187_v56, %v7560_v36 }
 0x1ad   : > { %v7579_v33 = vmul.f32 0.0, %v7568_v38  ;;  %v2899_v7 = vadd.f32 %v2867_v20, %v2865_v14  ;;  %v2900_v23 = vadd.f32 %v2868_v63, %v2864_v39  ;;  %v2902_v62 = vadd.f32 %v2870_v45, %v2864_v39  ;;  %v4210_v20 = vld [vmem:[%s8761_s4] ss:$0 sm:$0xff] }
 0x1ae   : > { %9649 = vst [vmem:[#allocation51_spill] sm:$0xff] %v7576_v16  ;;  %v2904_v28 = vadd.f32 %v2872_v51, %v2864_v39  ;;  %v2901_v35 = vadd.f32 %v2869_v46, %v2865_v14  ;;  %v2903_v40 = vadd.f32 %v2871_v29, %v2865_v14  ;;  %v2905_v43 = vadd.f32 %v2873_v32, %v2865_v14 }
 0x1af   : > { %9650 = vst [vmem:[#allocation80_spill] sm:$0xff] %v7579_v33  ;;  %v2906_v12 = vadd.f32 %v2874_v10, %v2864_v39  ;;  %v2907_v57 = vadd.f32 %v2875_v59, %v2865_v14  ;;  %v2908_v24 = vadd.f32 %v2876_v19, %v2864_v39  ;;  %v2909_v41 = vadd.f32 %v2877_v31, %v2865_v14 }
 0x1b0   : > { %v2910_v52 = vadd.f32 %v2878_v48, %v2864_v39  ;;  %v2911_v47 = vadd.f32 %v2879_v13, %v2865_v14  ;;  %v2912_v25 = vadd.f32 %v2880_v22, %v2864_v39  ;;  %v2913_v15 = vadd.f32 %v2881_v9, %v2865_v14 }
 0x1b1   : > { %v2914_v56 = vadd.f32 %v2882_v26, %v2864_v39  ;;  %v2915_v0 = vadd.f32 %v2883_v30, %v2865_v14  ;;  %v2916_v1 = vadd.f32 %v2884_v5, %v2864_v39  ;;  %v2917_v38 = vadd.f32 %v2885_v21, %v2865_v14 }
 0x1b2   : > { %v2918_v33 = vadd.f32 %v2886_v17, %v2864_v39  ;;  %v2919_v46 = vadd.f32 %v2887_v54, %v2865_v14  ;;  %v2920_v29 = vadd.f32 %v2888_v50, %v2864_v39  ;;  %v2921_v32 = vadd.f32 %v2889_v18, %v2865_v14 }
 0x1b3   : > { %v2922_v63 = vadd.f32 %v2890_v8, %v2864_v39  ;;  %v2923_v59 = vadd.f32 %v2891_v11, %v2865_v14  ;;  %v2924_v45 = vadd.f32 %v2892_v61, %v2864_v39  ;;  %v2925_v31 = vadd.f32 %v2893_v58, %v2865_v14 }
 0x1b4   : > { %v2926_v51 = vadd.f32 %v2894_v3, %v2864_v39  ;;  %v2927_v13 = vadd.f32 %v2895_v55, %v2865_v14  ;;  %v2928_v10 = vadd.f32 %v2896_v49, %v2864_v39  ;;  %v2929_v9 = vadd.f32 %v2897_v42, %v2865_v14  ;;  %v4211_v42 = vld [vmem:[%s8762_s5] ss:$0 sm:$0xff] }
 0x1b5   : > { %v2937_v19 = vmul.f32 %v4210_v20, %v2898_v27  ;;  %v2938_v30 = vmul.f32 %v4210_v20, %v2899_v7  ;;  %v2939_v48 = vmul.f32 %v4210_v20, %v2900_v23  ;;  %v2940_v21 = vmul.f32 %v4210_v20, %v2901_v35 }
 0x1b6   : > { %v2941_v22 = vmul.f32 %v4210_v20, %v2902_v62  ;;  %v2942_v26 = vmul.f32 %v4210_v20, %v2903_v40  ;;  %v2943_v5 = vmul.f32 %v4210_v20, %v2904_v28  ;;  %v2944_v17 = vmul.f32 %v4210_v20, %v2905_v43 }
 0x1b7   : > { %v2945_v4 = vmul.f32 %v4210_v20, %v2906_v12  ;;  %v2946_v54 = vmul.f32 %v4210_v20, %v2907_v57  ;;  %v2947_v50 = vmul.f32 %v4210_v20, %v2908_v24  ;;  %v2948_v18 = vmul.f32 %v4210_v20, %v2909_v41 }
 0x1b8   : > { %v2949_v8 = vmul.f32 %v4210_v20, %v2910_v52  ;;  %v2950_v11 = vmul.f32 %v4210_v20, %v2911_v47  ;;  %v2951_v61 = vmul.f32 %v4210_v20, %v2912_v25  ;;  %v2952_v58 = vmul.f32 %v4210_v20, %v2913_v15 }
 0x1b9   : > { %v2953_v3 = vmul.f32 %v4210_v20, %v2914_v56  ;;  %v2954_v55 = vmul.f32 %v4210_v20, %v2915_v0  ;;  %v2955_v39 = vmul.f32 %v4210_v20, %v2916_v1  ;;  %v2956_v14 = vmul.f32 %v4210_v20, %v2917_v38 }
 0x1ba   : > { %v2957_v49 = vmul.f32 %v4210_v20, %v2918_v33  ;;  %v2958_v27 = vmul.f32 %v4210_v20, %v2919_v46  ;;  %v2959_v7 = vmul.f32 %v4210_v20, %v2920_v29  ;;  %v2960_v43 = vmul.f32 %v4210_v20, %v2921_v32 }
 0x1bb   : > { %v2961_v12 = vmul.f32 %v4210_v20, %v2922_v63  ;;  %v2962_v23 = vmul.f32 %v4210_v20, %v2923_v59  ;;  %v2963_v24 = vmul.f32 %v4210_v20, %v2924_v45  ;;  %v2964_v62 = vmul.f32 %v4210_v20, %v2925_v31 }
 0x1bc   : > { %v2965_v28 = vmul.f32 %v4210_v20, %v2926_v51  ;;  %v2966_v35 = vmul.f32 %v4210_v20, %v2927_v13  ;;  %v2967_v40 = vmul.f32 %v4210_v20, %v2928_v10  ;;  %v2968_v57 = vmul.f32 %v4210_v20, %v2929_v9 }
 0x1bd   : > { %v2976_v41 = vadd.f32 %v4211_v42, %v2937_v19  ;;  %v2977_v0 = vadd.f32 %v4211_v42, %v2938_v30  ;;  %v2978_v1 = vadd.f32 %v4211_v42, %v2939_v48  ;;  %v2979_v38 = vadd.f32 %v4211_v42, %v2940_v21 }
 0x1be   : > { %v2980_v33 = vadd.f32 %v4211_v42, %v2941_v22  ;;  %v2981_v52 = vadd.f32 %v4211_v42, %v2942_v26  ;;  %v2982_v47 = vadd.f32 %v4211_v42, %v2943_v5  ;;  %v2983_v25 = vadd.f32 %v4211_v42, %v2944_v17 }
 0x1bf   : > { %v2984_v15 = vadd.f32 %v4211_v42, %v2945_v4  ;;  %v2985_v56 = vadd.f32 %v4211_v42, %v2946_v54  ;;  %v2986_v46 = vadd.f32 %v4211_v42, %v2947_v50  ;;  %v2987_v29 = vadd.f32 %v4211_v42, %v2948_v18 }
 0x1c0   : > { %v2988_v32 = vadd.f32 %v4211_v42, %v2949_v8  ;;  %v2989_v63 = vadd.f32 %v4211_v42, %v2950_v11  ;;  %v2990_v59 = vadd.f32 %v4211_v42, %v2951_v61  ;;  %v2991_v45 = vadd.f32 %v4211_v42, %v2952_v58 }
 0x1c1   : > { %v2992_v31 = vadd.f32 %v4211_v42, %v2953_v3  ;;  %v2993_v51 = vadd.f32 %v4211_v42, %v2954_v55  ;;  %v2994_v13 = vadd.f32 %v4211_v42, %v2955_v39  ;;  %v2995_v20 = vadd.f32 %v4211_v42, %v2956_v14 }
 0x1c2   : > { %v2996_v10 = vadd.f32 %v4211_v42, %v2957_v49  ;;  %v2997_v9 = vadd.f32 %v4211_v42, %v2958_v27  ;;  %v2998_v19 = vadd.f32 %v4211_v42, %v2959_v7  ;;  %v2999_v30 = vadd.f32 %v4211_v42, %v2960_v43 }
 0x1c3   : > { %v3000_v48 = vadd.f32 %v4211_v42, %v2961_v12  ;;  %v3001_v21 = vadd.f32 %v4211_v42, %v2962_v23  ;;  %v3002_v22 = vadd.f32 %v4211_v42, %v2963_v24  ;;  %v3003_v26 = vadd.f32 %v4211_v42, %v2964_v62 }
 0x1c4   : > { %v3004_v4 = vadd.f32 %v4211_v42, %v2965_v28  ;;  %v3005_v5 = vadd.f32 %v4211_v42, %v2966_v35  ;;  %v3006_v17 = vadd.f32 %v4211_v42, %v2967_v40  ;;  %v3007_v54 = vadd.f32 %v4211_v42, %v2968_v57 }
 0x1c5   : > { %v7587_v50 = vmax.f32 %v2976_v41, 0.0  ;;  %v7589_v18 = vmax.f32 %v2977_v0, 0.0  ;;  %v7591_v8 = vmax.f32 %v2978_v1, 0.0  ;;  %v7593_v11 = vmax.f32 %v2979_v38, 0.0 }
 0x1c6   : > { %v7595_v61 = vmax.f32 %v2980_v33, 0.0  ;;  %v7597_v58 = vmax.f32 %v2981_v52, 0.0  ;;  %v7599_v3 = vmax.f32 %v2982_v47, 0.0  ;;  %v7601_v55 = vmax.f32 %v2983_v25, 0.0 }
 0x1c7   : > { %9651 = vst [vmem:[#allocation81_spill] sm:$0xff] %v7587_v50  ;;  %9652 = vst [vmem:[#allocation82_spill] sm:$0xff] %v7589_v18  ;;  %v7603_v39 = vmax.f32 %v2984_v15, 0.0  ;;  %v7605_v14 = vmax.f32 %v2985_v56, 0.0  ;;  %v7607_v49 = vmax.f32 %v2986_v46, 0.0  ;;  %v7609_v42 = vmax.f32 %v2987_v29, 0.0 }
 0x1c8   : > { %9653 = vst [vmem:[#allocation83_spill] sm:$0xff] %v7591_v8  ;;  %9654 = vst [vmem:[#allocation84_spill] sm:$0xff] %v7593_v11  ;;  %v7611_v27 = vmax.f32 %v2988_v32, 0.0  ;;  %v7613_v7 = vmax.f32 %v2989_v63, 0.0  ;;  %v7615_v43 = vmax.f32 %v2990_v59, 0.0  ;;  %v7617_v12 = vmax.f32 %v2991_v45, 0.0 }
 0x1c9   : > { %9655 = vst [vmem:[#allocation85_spill] sm:$0xff] %v7595_v61  ;;  %9656 = vst [vmem:[#allocation86_spill] sm:$0xff] %v7597_v58  ;;  %v7619_v23 = vmax.f32 %v2992_v31, 0.0  ;;  %v7621_v24 = vmax.f32 %v2993_v51, 0.0  ;;  %v7623_v62 = vmax.f32 %v2994_v13, 0.0  ;;  %v7625_v28 = vmax.f32 %v2995_v20, 0.0 }
 0x1ca   : > { %9657 = vst [vmem:[#allocation87_spill] sm:$0xff] %v7599_v3  ;;  %9658 = vst [vmem:[#allocation88_spill] sm:$0xff] %v7601_v55  ;;  %v7627_v35 = vmax.f32 %v2996_v10, 0.0  ;;  %v7629_v40 = vmax.f32 %v2997_v9, 0.0  ;;  %v7631_v57 = vmax.f32 %v2998_v19, 0.0  ;;  %v7633_v41 = vmax.f32 %v2999_v30, 0.0 }
 0x1cb   : > { %9659 = vst [vmem:[#allocation89_spill] sm:$0xff] %v7603_v39  ;;  %9660 = vst [vmem:[#allocation90_spill] sm:$0xff] %v7605_v14  ;;  %v7635_v0 = vmax.f32 %v3000_v48, 0.0  ;;  %v7637_v1 = vmax.f32 %v3001_v21, 0.0  ;;  %v7639_v38 = vmax.f32 %v3002_v22, 0.0  ;;  %v7641_v33 = vmax.f32 %v3003_v26, 0.0 }
 0x1cc   : > { %9661 = vst [vmem:[#allocation91_spill] sm:$0xff] %v7607_v49  ;;  %9662 = vst [vmem:[#allocation92_spill] sm:$0xff] %v7609_v42  ;;  %v7643_v52 = vmax.f32 %v3004_v4, 0.0  ;;  %v7645_v47 = vmax.f32 %v3005_v5, 0.0  ;;  %v7647_v25 = vmax.f32 %v3006_v17, 0.0  ;;  %v7649_v15 = vmax.f32 %v3007_v54, 0.0 }
 0x1cd   : > { %9663 = vst [vmem:[#allocation93_spill] sm:$0xff] %v7611_v27  ;;  %9664 = vst [vmem:[#allocation94_spill] sm:$0xff] %v7613_v7  ;;  %v3046_v56 = vmul.f32 %v7495_v37, %v7587_v50  ;;  %v3047_v46 = vmul.f32 %v7495_v37, %v7589_v18  ;;  %v3048_v29 = vmul.f32 %v7495_v37, %v7591_v8 }
 0x1ce   : > { %9665 = vst [vmem:[#allocation95_spill] sm:$0xff] %v7615_v43  ;;  %9666 = vst [vmem:[#allocation96_spill] sm:$0xff] %v7617_v12  ;;  %v3049_v32 = vmul.f32 %v7495_v37, %v7593_v11  ;;  %v3050_v63 = vmul.f32 %v7495_v37, %v7595_v61  ;;  %v3051_v59 = vmul.f32 %v7495_v37, %v7597_v58 }
 0x1cf   : > { %9667 = vst [vmem:[#allocation97_spill] sm:$0xff] %v7619_v23  ;;  %9668 = vst [vmem:[#allocation98_spill] sm:$0xff] %v7621_v24  ;;  %v3052_v45 = vmul.f32 %v7495_v37, %v7599_v3  ;;  %v3053_v31 = vmul.f32 %v7495_v37, %v7601_v55  ;;  %v3054_v51 = vmul.f32 %v7495_v37, %v7603_v39 }
 0x1d0   : > { %9669 = vst [vmem:[#allocation99_spill] sm:$0xff] %v7623_v62  ;;  %9670 = vst [vmem:[#allocation100_spill] sm:$0xff] %v7625_v28  ;;  %v3055_v13 = vmul.f32 %v7495_v37, %v7605_v14  ;;  %v3056_v20 = vmul.f32 %v7495_v37, %v7607_v49  ;;  %v3057_v10 = vmul.f32 %v7495_v37, %v7609_v42 }
 0x1d1   : > { %9671 = vst [vmem:[#allocation101_spill] sm:$0xff] %v7627_v35  ;;  %9672 = vst [vmem:[#allocation102_spill] sm:$0xff] %v7629_v40  ;;  %v3058_v9 = vmul.f32 %v7495_v37, %v7611_v27  ;;  %v3059_v19 = vmul.f32 %v7495_v37, %v7613_v7  ;;  %v3060_v30 = vmul.f32 %v7495_v37, %v7615_v43 }
 0x1d2   : > { %9673 = vst [vmem:[#allocation103_spill] sm:$0xff] %v7631_v57  ;;  %9674 = vst [vmem:[#allocation104_spill] sm:$0xff] %v7633_v41  ;;  %v3061_v48 = vmul.f32 %v7495_v37, %v7617_v12  ;;  %v3062_v21 = vmul.f32 %v7495_v37, %v7619_v23  ;;  %v3063_v22 = vmul.f32 %v7495_v37, %v7621_v24 }
 0x1d3   : > { %9675 = vst [vmem:[#allocation105_spill] sm:$0xff] %v7635_v0  ;;  %9676 = vst [vmem:[#allocation106_spill] sm:$0xff] %v7637_v1  ;;  %v3064_v26 = vmul.f32 %v7495_v37, %v7623_v62  ;;  %v3065_v4 = vmul.f32 %v7495_v37, %v7625_v28  ;;  %v3066_v5 = vmul.f32 %v7495_v37, %v7627_v35 }
 0x1d4   : > { %9677 = vst [vmem:[#allocation107_spill] sm:$0xff] %v7639_v38  ;;  %9678 = vst [vmem:[#allocation108_spill] sm:$0xff] %v7641_v33  ;;  %v3067_v17 = vmul.f32 %v7495_v37, %v7629_v40  ;;  %v3074_v54 = vmul.f32 %v7500_v44, %v7587_v50  ;;  %v3077_v16 = vmul.f32 %v7500_v44, %v7593_v11 }
 0x1d5   : > { %9679 = vst [vmem:[#allocation109_spill] sm:$0xff] %v7643_v52  ;;  %9680 = vst [vmem:[#allocation110_spill] sm:$0xff] %v7645_v47  ;;  %v3078_v47 = vmul.f32 %v7500_v44, %v7595_v61  ;;  %v3079_v52 = vmul.f32 %v7500_v44, %v7597_v58  ;;  %v3080_v37 = vmul.f32 %v7500_v44, %v7599_v3 }
 0x1d6   : > { %9681 = vst [vmem:[#allocation111_spill] sm:$0xff] %v7647_v25  ;;  %9682 = vst [vmem:[#allocation112_spill] sm:$0xff] %v7649_v15  ;;  %v3075_v15 = vmul.f32 %v7500_v44, %v7589_v18  ;;  %v3076_v25 = vmul.f32 %v7500_v44, %v7591_v8  ;;  %v3081_v34 = vmul.f32 %v7500_v44, %v7601_v55 }
 0x1d7   : > { %v3082_v36 = vmul.f32 %v7500_v44, %v7603_v39  ;;  %v3083_v33 = vmul.f32 %v7500_v44, %v7605_v14  ;;  %v3084_v38 = vmul.f32 %v7500_v44, %v7607_v49  ;;  %v3085_v53 = vmul.f32 %v7500_v44, %v7609_v42 }
 0x1d8   : > { %v3086_v60 = vmul.f32 %v7500_v44, %v7611_v27  ;;  %v3087_v1 = vmul.f32 %v7500_v44, %v7613_v7  ;;  %v3088_v0 = vmul.f32 %v7500_v44, %v7615_v43  ;;  %v3089_v39 = vmul.f32 %v7500_v44, %v7617_v12 }
 0x1d9   : > { %v3090_v14 = vmul.f32 %v7500_v44, %v7619_v23  ;;  %v3091_v49 = vmul.f32 %v7500_v44, %v7621_v24  ;;  %v3092_v42 = vmul.f32 %v7500_v44, %v7623_v62  ;;  %v3093_v27 = vmul.f32 %v7500_v44, %v7625_v28 }
 0x1da   : > { %v3094_v7 = vmul.f32 %v7500_v44, %v7627_v35  ;;  %v3095_v43 = vmul.f32 %v7500_v44, %v7629_v40  ;;  %v3096_v12 = vmul.f32 %v7500_v44, %v7631_v57  ;;  %v3097_v23 = vmul.f32 %v7500_v44, %v7633_v41 }
 0x1db   : > { %v3099_v24 = vadd.f32 %v3074_v54, %v7524_v6  ;;  %v3100_v55 = vadd.f32 %v3075_v15, %v7524_v6  ;;  %v3101_v62 = vadd.f32 %v3076_v25, %v3046_v56  ;;  %v3102_v3 = vadd.f32 %v3077_v16, %v3047_v46 }
 0x1dc   : > { %v3103_v58 = vadd.f32 %v3078_v47, %v3048_v29  ;;  %v3104_v28 = vadd.f32 %v3079_v52, %v3049_v32  ;;  %v3105_v61 = vadd.f32 %v3080_v37, %v3050_v63  ;;  %v3106_v11 = vadd.f32 %v3081_v34, %v3051_v59  ;;  %v9683_v47 = vld [vmem:[#allocation81_spill] sm:$0xff]  ;;  %v9684_v52 = vld [vmem:[#allocation18_spill] sm:$0xff]  ;;  %v9694_v63 = vld [vmem:[#allocation91_spill] sm:$0xff] }
 0x1dd   : > { %v3107_v35 = vadd.f32 %v3082_v36, %v3052_v45  ;;  %v3108_v8 = vadd.f32 %v3083_v33, %v3053_v31  ;;  %v3109_v18 = vadd.f32 %v3084_v38, %v3054_v51  ;;  %v3110_v40 = vadd.f32 %v3085_v53, %v3055_v13  ;;  %v9685_v34 = vld [vmem:[#allocation82_spill] sm:$0xff]  ;;  %v9686_v38 = vld [vmem:[#allocation83_spill] sm:$0xff]  ;;  %v9695_v45 = vld [vmem:[#allocation92_spill] sm:$0xff] }
 0x1de   : > { %v3111_v2 = vadd.f32 %v3086_v60, %v3056_v20  ;;  %v3112_v50 = vadd.f32 %v3087_v1, %v3057_v10  ;;  %v3113_v57 = vadd.f32 %v3088_v0, %v3058_v9  ;;  %v3114_v41 = vadd.f32 %v3089_v39, %v3059_v19  ;;  %v9687_v60 = vld [vmem:[#allocation84_spill] sm:$0xff]  ;;  %v9692_v0 = vld [vmem:[#allocation89_spill] sm:$0xff]  ;;  %v9693_v33 = vld [vmem:[#allocation90_spill] sm:$0xff] }
 0x1df   : > { %v3115_v44 = vadd.f32 %v3090_v14, %v3060_v30  ;;  %v3116_v54 = vadd.f32 %v3091_v49, %v3061_v48  ;;  %v3117_v6 = vadd.f32 %v3092_v42, %v3062_v21  ;;  %v3118_v15 = vadd.f32 %v3093_v27, %v3063_v22  ;;  %v9688_v14 = vld [vmem:[#allocation85_spill] sm:$0xff]  ;;  %v9689_v42 = vld [vmem:[#allocation86_spill] sm:$0xff]  ;;  %v9698_v9 = vld [vmem:[#allocation95_spill] sm:$0xff] }
 0x1e0   : > { %v3119_v25 = vadd.f32 %v3094_v7, %v3064_v26  ;;  %v3120_v56 = vadd.f32 %v3095_v43, %v3065_v4  ;;  %v3121_v16 = vadd.f32 %v3096_v12, %v3066_v5  ;;  %v3122_v46 = vadd.f32 %v3097_v23, %v3067_v17  ;;  %v9690_v7 = vld [vmem:[#allocation87_spill] sm:$0xff]  ;;  %v9691_v12 = vld [vmem:[#allocation88_spill] sm:$0xff]  ;;  %v9696_v51 = vld [vmem:[#allocation93_spill] sm:$0xff] }
 0x1e1   : > { %v3129_v29 = vmul.f32 %v9684_v52, %v9683_v47  ;;  %v3130_v36 = vmul.f32 %v9684_v52, %v9685_v34  ;;  %v3131_v53 = vmul.f32 %v9684_v52, %v9686_v38  ;;  %v3132_v39 = vmul.f32 %v9684_v52, %v9687_v60  ;;  %v9697_v20 = vld [vmem:[#allocation94_spill] sm:$0xff]  ;;  %v9699_v30 = vld [vmem:[#allocation96_spill] sm:$0xff]  ;;  %v9700_v21 = vld [vmem:[#allocation97_spill] sm:$0xff] }
 0x1e2   : > { %v3133_v49 = vmul.f32 %v9684_v52, %v9688_v14  ;;  %v3134_v27 = vmul.f32 %v9684_v52, %v9689_v42  ;;  %v3135_v43 = vmul.f32 %v9684_v52, %v9690_v7  ;;  %v3136_v23 = vmul.f32 %v9684_v52, %v9691_v12  ;;  %v9701_v26 = vld [vmem:[#allocation98_spill] sm:$0xff]  ;;  %v9702_v5 = vld [vmem:[#allocation99_spill] sm:$0xff]  ;;  %v9703_v37 = vld [vmem:[#allocation100_spill] sm:$0xff] }
 0x1e3   : > { %v3137_v1 = vmul.f32 %v9684_v52, %v9692_v0  ;;  %v3138_v32 = vmul.f32 %v9684_v52, %v9693_v33  ;;  %v3139_v59 = vmul.f32 %v9684_v52, %v9694_v63  ;;  %v3140_v31 = vmul.f32 %v9684_v52, %v9695_v45  ;;  %v9704_v45 = vld [vmem:[#allocation101_spill] sm:$0xff]  ;;  %v9705_v63 = vld [vmem:[#allocation102_spill] sm:$0xff]  ;;  %v9706_v33 = vld [vmem:[#allocation103_spill] sm:$0xff] }
 0x1e4   : > { %v3141_v13 = vmul.f32 %v9684_v52, %v9696_v51  ;;  %v3142_v10 = vmul.f32 %v9684_v52, %v9697_v20  ;;  %v3143_v19 = vmul.f32 %v9684_v52, %v9698_v9  ;;  %v3144_v48 = vmul.f32 %v9684_v52, %v9699_v30  ;;  %v9707_v0 = vld [vmem:[#allocation104_spill] sm:$0xff]  ;;  %v9708_v12 = vld [vmem:[#allocation105_spill] sm:$0xff]  ;;  %v9709_v7 = vld [vmem:[#allocation106_spill] sm:$0xff] }
 0x1e5   : > { %v3145_v22 = vmul.f32 %v9684_v52, %v9700_v21  ;;  %v3146_v4 = vmul.f32 %v9684_v52, %v9701_v26  ;;  %v3147_v17 = vmul.f32 %v9684_v52, %v9702_v5  ;;  %v3148_v51 = vmul.f32 %v9684_v52, %v9703_v37  ;;  %v9710_v42 = vld [vmem:[#allocation50_spill] sm:$0xff] }
 0x1e6   : > { %v3149_v20 = vmul.f32 %v9684_v52, %v9704_v45  ;;  %v3150_v9 = vmul.f32 %v9684_v52, %v9705_v63  ;;  %v3151_v30 = vmul.f32 %v9684_v52, %v9706_v33  ;;  %v3152_v21 = vmul.f32 %v9684_v52, %v9707_v0 }
 0x1e7   : > { %v3153_v26 = vmul.f32 %v9684_v52, %v9708_v12  ;;  %v3154_v5 = vmul.f32 %v9684_v52, %v9709_v7  ;;  %v3156_v37 = vadd.f32 %v3129_v29, %v9710_v42  ;;  %v3157_v14 = vadd.f32 %v3130_v36, %v9710_v42 }
 0x1e8   : > { %v3158_v45 = vadd.f32 %v3131_v53, %v3099_v24  ;;  %v3159_v60 = vadd.f32 %v3132_v39, %v3100_v55  ;;  %v3160_v38 = vadd.f32 %v3133_v49, %v3101_v62  ;;  %v3161_v63 = vadd.f32 %v3134_v27, %v3102_v3 }
 0x1e9   : > { %v3162_v34 = vadd.f32 %v3135_v43, %v3103_v58  ;;  %v3163_v47 = vadd.f32 %v3136_v23, %v3104_v28  ;;  %v3164_v33 = vadd.f32 %v3137_v1, %v3105_v61  ;;  %v3165_v0 = vadd.f32 %v3138_v32, %v3106_v11  ;;  %v9711_v23 = vld [vmem:[#allocation81_spill] sm:$0xff]  ;;  %v9713_v11 = vld [vmem:[#allocation82_spill] sm:$0xff]  ;;  %v9722_v32 = vld [vmem:[#allocation91_spill] sm:$0xff] }
 0x1ea   : > { %v3166_v12 = vadd.f32 %v3139_v59, %v3107_v35  ;;  %v3167_v7 = vadd.f32 %v3140_v31, %v3108_v8  ;;  %v3168_v52 = vadd.f32 %v3141_v13, %v3109_v18  ;;  %v3169_v29 = vadd.f32 %v3142_v10, %v3110_v40  ;;  %v9712_v28 = vld [vmem:[#allocation49_spill] sm:$0xff]  ;;  %v9714_v18 = vld [vmem:[#allocation83_spill] sm:$0xff]  ;;  %v9723_v31 = vld [vmem:[#allocation92_spill] sm:$0xff] }
 0x1eb   : > { %v3170_v36 = vadd.f32 %v3143_v19, %v3111_v2  ;;  %v3171_v42 = vadd.f32 %v3144_v48, %v3112_v50  ;;  %v3172_v24 = vadd.f32 %v3145_v22, %v3113_v57  ;;  %v3173_v53 = vadd.f32 %v3146_v4, %v3114_v41  ;;  %v9715_v50 = vld [vmem:[#allocation84_spill] sm:$0xff]  ;;  %v9716_v40 = vld [vmem:[#allocation85_spill] sm:$0xff]  ;;  %v9717_v41 = vld [vmem:[#allocation86_spill] sm:$0xff] }
 0x1ec   : > { %v3174_v39 = vadd.f32 %v3147_v17, %v3115_v44  ;;  %v3175_v55 = vadd.f32 %v3148_v51, %v3116_v54  ;;  %v3176_v49 = vadd.f32 %v3149_v20, %v3117_v6  ;;  %v3177_v62 = vadd.f32 %v3150_v9, %v3118_v15  ;;  %v9718_v54 = vld [vmem:[#allocation87_spill] sm:$0xff]  ;;  %v9719_v15 = vld [vmem:[#allocation88_spill] sm:$0xff]  ;;  %v9724_v13 = vld [vmem:[#allocation93_spill] sm:$0xff] }
 0x1ed   : > { %v3178_v3 = vadd.f32 %v3151_v30, %v3119_v25  ;;  %v3179_v27 = vadd.f32 %v3152_v21, %v3120_v56  ;;  %v3180_v43 = vadd.f32 %v3153_v26, %v3121_v16  ;;  %v3181_v58 = vadd.f32 %v3154_v5, %v3122_v46  ;;  %v9720_v56 = vld [vmem:[#allocation89_spill] sm:$0xff]  ;;  %v9721_v46 = vld [vmem:[#allocation90_spill] sm:$0xff]  ;;  %v9726_v19 = vld [vmem:[#allocation95_spill] sm:$0xff] }
 0x1ee   : > { %v3188_v61 = vmul.f32 %v9712_v28, %v9711_v23  ;;  %v3189_v8 = vmul.f32 %v9712_v28, %v9713_v11  ;;  %v3190_v2 = vmul.f32 %v9712_v28, %v9714_v18  ;;  %v3191_v35 = vmul.f32 %v9712_v28, %v9715_v50  ;;  %v9725_v10 = vld [vmem:[#allocation94_spill] sm:$0xff]  ;;  %v9727_v48 = vld [vmem:[#allocation96_spill] sm:$0xff]  ;;  %v9728_v22 = vld [vmem:[#allocation97_spill] sm:$0xff] }
 0x1ef   : > { %v3192_v57 = vmul.f32 %v9712_v28, %v9716_v40  ;;  %v3193_v44 = vmul.f32 %v9712_v28, %v9717_v41  ;;  %v3194_v6 = vmul.f32 %v9712_v28, %v9718_v54  ;;  %v3195_v25 = vmul.f32 %v9712_v28, %v9719_v15  ;;  %v9729_v4 = vld [vmem:[#allocation98_spill] sm:$0xff]  ;;  %v9730_v17 = vld [vmem:[#allocation99_spill] sm:$0xff]  ;;  %v9735_v54 = vld [vmem:[#allocation104_spill] sm:$0xff] }
 0x1f0   : > { %v3196_v16 = vmul.f32 %v9712_v28, %v9720_v56  ;;  %v3197_v1 = vmul.f32 %v9712_v28, %v9721_v46  ;;  %v3198_v59 = vmul.f32 %v9712_v28, %v9722_v32  ;;  %v3199_v51 = vmul.f32 %v9712_v28, %v9723_v31  ;;  %v9731_v32 = vld [vmem:[#allocation100_spill] sm:$0xff]  ;;  %v9732_v46 = vld [vmem:[#allocation101_spill] sm:$0xff]  ;;  %v9733_v56 = vld [vmem:[#allocation102_spill] sm:$0xff] }
 0x1f1   : > { %v3200_v20 = vmul.f32 %v9712_v28, %v9724_v13  ;;  %v3201_v9 = vmul.f32 %v9712_v28, %v9725_v10  ;;  %v3202_v30 = vmul.f32 %v9712_v28, %v9726_v19  ;;  %v3203_v21 = vmul.f32 %v9712_v28, %v9727_v48  ;;  %v9734_v15 = vld [vmem:[#allocation103_spill] sm:$0xff]  ;;  %v9736_v41 = vld [vmem:[#allocation105_spill] sm:$0xff]  ;;  %v9737_v40 = vld [vmem:[#allocation106_spill] sm:$0xff] }
 0x1f2   : > { %v3204_v26 = vmul.f32 %v9712_v28, %v9728_v22  ;;  %v3205_v5 = vmul.f32 %v9712_v28, %v9729_v4  ;;  %v3206_v31 = vmul.f32 %v9712_v28, %v9730_v17  ;;  %v3207_v13 = vmul.f32 %v9712_v28, %v9731_v32  ;;  %v9738_v50 = vld [vmem:[#allocation107_spill] sm:$0xff]  ;;  %v9739_v18 = vld [vmem:[#allocation108_spill] sm:$0xff] }
 0x1f3   : > { %v3208_v10 = vmul.f32 %v9712_v28, %v9732_v46  ;;  %v3209_v19 = vmul.f32 %v9712_v28, %v9733_v56  ;;  %v3210_v48 = vmul.f32 %v9712_v28, %v9734_v15  ;;  %v3211_v22 = vmul.f32 %v9712_v28, %v9735_v54  ;;  %v9740_v11 = vld [vmem:[#allocation35_spill] sm:$0xff] }
 0x1f4   : > { %v3212_v4 = vmul.f32 %v9712_v28, %v9736_v41  ;;  %v3213_v17 = vmul.f32 %v9712_v28, %v9737_v40  ;;  %v3214_v32 = vmul.f32 %v9712_v28, %v9738_v50  ;;  %v3215_v46 = vmul.f32 %v9712_v28, %v9739_v18 }
 0x1f5   : > { %v3217_v56 = vadd.f32 %v3188_v61, %v9740_v11  ;;  %v3218_v23 = vadd.f32 %v3189_v8, %v9740_v11  ;;  %v3219_v15 = vadd.f32 %v3190_v2, %v3156_v37  ;;  %v3220_v54 = vadd.f32 %v3191_v35, %v3157_v14 }
 0x1f6   : > { %v3221_v41 = vadd.f32 %v3192_v57, %v3158_v45  ;;  %v3222_v40 = vadd.f32 %v3193_v44, %v3159_v60  ;;  %v3223_v50 = vadd.f32 %v3194_v6, %v3160_v38  ;;  %v3224_v18 = vadd.f32 %v3195_v25, %v3161_v63 }
 0x1f7   : > { %v3225_v28 = vadd.f32 %v3196_v16, %v3162_v34  ;;  %v3226_v61 = vadd.f32 %v3197_v1, %v3163_v47  ;;  %v3227_v8 = vadd.f32 %v3198_v59, %v3164_v33  ;;  %v3228_v11 = vadd.f32 %v3199_v51, %v3165_v0  ;;  %v9741_v33 = vld [vmem:[#allocation81_spill] sm:$0xff]  ;;  %v9742_v59 = vld [vmem:[#allocation34_spill] sm:$0xff] }
 0x1f8   : > { %v3229_v2 = vadd.f32 %v3200_v20, %v3166_v12  ;;  %v3230_v37 = vadd.f32 %v3201_v9, %v3167_v7  ;;  %v3231_v14 = vadd.f32 %v3202_v30, %v3168_v52  ;;  %v3232_v35 = vadd.f32 %v3203_v21, %v3169_v29  ;;  %v9743_v51 = vld [vmem:[#allocation82_spill] sm:$0xff]  ;;  %v9744_v12 = vld [vmem:[#allocation83_spill] sm:$0xff]  ;;  %v9745_v29 = vld [vmem:[#allocation84_spill] sm:$0xff] }
 0x1f9   : > { %v3233_v45 = vadd.f32 %v3204_v26, %v3170_v36  ;;  %v3234_v57 = vadd.f32 %v3205_v5, %v3171_v42  ;;  %v3235_v44 = vadd.f32 %v3206_v31, %v3172_v24  ;;  %v3236_v60 = vadd.f32 %v3207_v13, %v3173_v53  ;;  %v9746_v42 = vld [vmem:[#allocation85_spill] sm:$0xff]  ;;  %v9747_v53 = vld [vmem:[#allocation86_spill] sm:$0xff]  ;;  %v9753_v13 = vld [vmem:[#allocation92_spill] sm:$0xff] }
 0x1fa   : > { %v3237_v6 = vadd.f32 %v3208_v10, %v3174_v39  ;;  %v3238_v38 = vadd.f32 %v3209_v19, %v3175_v55  ;;  %v3239_v25 = vadd.f32 %v3210_v48, %v3176_v49  ;;  %v3240_v63 = vadd.f32 %v3211_v22, %v3177_v62  ;;  %v9748_v55 = vld [vmem:[#allocation87_spill] sm:$0xff]  ;;  %v9749_v62 = vld [vmem:[#allocation88_spill] sm:$0xff]  ;;  %v9754_v10 = vld [vmem:[#allocation93_spill] sm:$0xff] }
 0x1fb   : > { %v3241_v16 = vadd.f32 %v3212_v4, %v3178_v3  ;;  %v3242_v34 = vadd.f32 %v3213_v17, %v3179_v27  ;;  %v3243_v1 = vadd.f32 %v3214_v32, %v3180_v43  ;;  %v3244_v47 = vadd.f32 %v3215_v46, %v3181_v58  ;;  %v9750_v27 = vld [vmem:[#allocation89_spill] sm:$0xff]  ;;  %v9751_v58 = vld [vmem:[#allocation90_spill] sm:$0xff]  ;;  %v9752_v32 = vld [vmem:[#allocation91_spill] sm:$0xff] }
 0x1fc   : > { %v3251_v0 = vmul.f32 %v9742_v59, %v9741_v33  ;;  %v3252_v7 = vmul.f32 %v9742_v59, %v9743_v51  ;;  %v3253_v52 = vmul.f32 %v9742_v59, %v9744_v12  ;;  %v3254_v36 = vmul.f32 %v9742_v59, %v9745_v29  ;;  %v9755_v19 = vld [vmem:[#allocation94_spill] sm:$0xff]  ;;  %v9756_v48 = vld [vmem:[#allocation95_spill] sm:$0xff]  ;;  %v9757_v22 = vld [vmem:[#allocation96_spill] sm:$0xff] }
 0x1fd   : > { %v3255_v24 = vmul.f32 %v9742_v59, %v9746_v42  ;;  %v3256_v39 = vmul.f32 %v9742_v59, %v9747_v53  ;;  %v3257_v49 = vmul.f32 %v9742_v59, %v9748_v55  ;;  %v3258_v3 = vmul.f32 %v9742_v59, %v9749_v62  ;;  %v9758_v4 = vld [vmem:[#allocation97_spill] sm:$0xff]  ;;  %v9759_v17 = vld [vmem:[#allocation98_spill] sm:$0xff]  ;;  %v9764_v53 = vld [vmem:[#allocation103_spill] sm:$0xff] }
 0x1fe   : > { %v3259_v43 = vmul.f32 %v9742_v59, %v9750_v27  ;;  %v3260_v46 = vmul.f32 %v9742_v59, %v9751_v58  ;;  %v3261_v31 = vmul.f32 %v9742_v59, %v9752_v32  ;;  %v3262_v20 = vmul.f32 %v9742_v59, %v9753_v13  ;;  %v9760_v58 = vld [vmem:[#allocation99_spill] sm:$0xff]  ;;  %v9761_v27 = vld [vmem:[#allocation100_spill] sm:$0xff]  ;;  %v9762_v62 = vld [vmem:[#allocation101_spill] sm:$0xff] }
 0x1ff   : > { %v3263_v9 = vmul.f32 %v9742_v59, %v9754_v10  ;;  %v3264_v30 = vmul.f32 %v9742_v59, %v9755_v19  ;;  %v3265_v21 = vmul.f32 %v9742_v59, %v9756_v48  ;;  %v3266_v26 = vmul.f32 %v9742_v59, %v9757_v22  ;;  %v9763_v55 = vld [vmem:[#allocation102_spill] sm:$0xff]  ;;  %v9765_v42 = vld [vmem:[#allocation104_spill] sm:$0xff]  ;;  %v9766_v29 = vld [vmem:[#allocation105_spill] sm:$0xff] }
 0x200   : > { %v3267_v5 = vmul.f32 %v9742_v59, %v9758_v4  ;;  %v3268_v32 = vmul.f32 %v9742_v59, %v9759_v17  ;;  %v3269_v13 = vmul.f32 %v9742_v59, %v9760_v58  ;;  %v3270_v10 = vmul.f32 %v9742_v59, %v9761_v27  ;;  %v9767_v12 = vld [vmem:[#allocation106_spill] sm:$0xff]  ;;  %v9768_v51 = vld [vmem:[#allocation107_spill] sm:$0xff]  ;;  %v9769_v33 = vld [vmem:[#allocation108_spill] sm:$0xff] }
 0x201   : > { %v3271_v19 = vmul.f32 %v9742_v59, %v9762_v62  ;;  %v3272_v48 = vmul.f32 %v9742_v59, %v9763_v55  ;;  %v3273_v22 = vmul.f32 %v9742_v59, %v9764_v53  ;;  %v3274_v4 = vmul.f32 %v9742_v59, %v9765_v42  ;;  %v9770_v55 = vld [vmem:[#allocation109_spill] sm:$0xff]  ;;  %v9771_v42 = vld [vmem:[#allocation110_spill] sm:$0xff] }
 0x202   : > { %v3275_v17 = vmul.f32 %v9742_v59, %v9766_v29  ;;  %v3276_v58 = vmul.f32 %v9742_v59, %v9767_v12  ;;  %v3277_v27 = vmul.f32 %v9742_v59, %v9768_v51  ;;  %v3278_v62 = vmul.f32 %v9742_v59, %v9769_v33  ;;  %v9772_v12 = vld [vmem:[#allocation51_spill] sm:$0xff] }
 0x203   : > { %v3279_v53 = vmul.f32 %v9742_v59, %v9770_v55  ;;  %v3280_v29 = vmul.f32 %v9742_v59, %v9771_v42  ;;  %v9773_v51 = vld [vmem:[#allocation19_spill] sm:$0xff]  ;;  %v7922_v55 = vadd.f32 %v3251_v0, %v9772_v12  ;;  %v7925_v42 = vadd.f32 %v3252_v7, %v9772_v12 }
 0x204   : > { %v7919_v33 = vadd.f32 %v9773_v51, %v9772_v12  ;;  %v7927_v59 = vadd.f32 %v3253_v52, %v3217_v56  ;;  %v7929_v51 = vadd.f32 %v3254_v36, %v3218_v23  ;;  %v7933_v0 = vadd.f32 %v3256_v39, %v3220_v54 }
 0x205   : > { %9775 = vst [vmem:[#allocation50_spill] sm:$0xff] %v7922_v55  ;;  %9776 = vst [vmem:[#allocation49_spill] sm:$0xff] %v7925_v42  ;;  %v7935_v55 = vadd.f32 %v3257_v49, %v3221_v41  ;;  %v7937_v7 = vadd.f32 %v3258_v3, %v3222_v40  ;;  %v7939_v12 = vadd.f32 %v3259_v43, %v3223_v50 }
 0x206   : > { %9774 = vst [vmem:[#allocation18_spill] sm:$0xff] %v7919_v33  ;;  %9777 = vst [vmem:[#allocation35_spill] sm:$0xff] %v7927_v59  ;;  %v7931_v33 = vadd.f32 %v3255_v24, %v3219_v15  ;;  %v7941_v42 = vadd.f32 %v3260_v46, %v3224_v18  ;;  %v7943_v52 = vadd.f32 %v3261_v31, %v3225_v28  ;;  %v4217_v28 = vld [vmem:[%s8763_s6 + $0x5] ss:$0 sm:$0xff]  ;;  %v9798_v46 = vld [vmem:[#allocation91_spill] sm:$0xff] }
 0x207   : > { %v7945_v56 = vadd.f32 %v3262_v20, %v3226_v61  ;;  %v7947_v59 = vadd.f32 %v3263_v9, %v3227_v8  ;;  %v7949_v23 = vadd.f32 %v3264_v30, %v3228_v11  ;;  %v7951_v15 = vadd.f32 %v3265_v21, %v3229_v2  ;;  %v9799_v31 = vld [vmem:[#allocation92_spill] sm:$0xff]  ;;  %v9800_v20 = vld [vmem:[#allocation93_spill] sm:$0xff]  ;;  %v9801_v9 = vld [vmem:[#allocation94_spill] sm:$0xff] }
 0x208   : > { %v7953_v54 = vadd.f32 %v3266_v26, %v3230_v37  ;;  %v7955_v41 = vadd.f32 %v3267_v5, %v3231_v14  ;;  %v7957_v40 = vadd.f32 %v3268_v32, %v3232_v35  ;;  %v7959_v50 = vadd.f32 %v3269_v13, %v3233_v45  ;;  %v9802_v30 = vld [vmem:[#allocation95_spill] sm:$0xff]  ;;  %v9803_v21 = vld [vmem:[#allocation96_spill] sm:$0xff]  ;;  %v9804_v26 = vld [vmem:[#allocation97_spill] sm:$0xff] }
 0x209   : > { %v7961_v18 = vadd.f32 %v3270_v10, %v3234_v57  ;;  %v7966_v61 = vadd.f32 %v3271_v19, %v3235_v44  ;;  %v7968_v8 = vadd.f32 %v3272_v48, %v3236_v60  ;;  %v7970_v11 = vadd.f32 %v3273_v22, %v3237_v6  ;;  %v9788_v44 = vld [vmem:[#allocation81_spill] sm:$0xff]  ;;  %v9789_v60 = vld [vmem:[#allocation82_spill] sm:$0xff]  ;;  %v9790_v6 = vld [vmem:[#allocation83_spill] sm:$0xff] }
 0x20a   : > { %v7972_v2 = vadd.f32 %v3274_v4, %v3238_v38  ;;  %v7974_v37 = vadd.f32 %v3275_v17, %v3239_v25  ;;  %v7976_v14 = vadd.f32 %v3276_v58, %v3240_v63  ;;  %v7978_v35 = vadd.f32 %v3277_v27, %v3241_v16  ;;  %v9791_v38 = vld [vmem:[#allocation84_spill] sm:$0xff]  ;;  %v9792_v25 = vld [vmem:[#allocation85_spill] sm:$0xff]  ;;  %v9793_v63 = vld [vmem:[#allocation86_spill] sm:$0xff] }
 0x20b   : > { %9778 = vst [vmem:[#allocation34_spill] sm:$0xff] %v7966_v61  ;;  %9779 = vst [vmem:[#allocation51_spill] sm:$0xff] %v7968_v8  ;;  %v7980_v45 = vadd.f32 %v3278_v62, %v3242_v34  ;;  %v7982_v57 = vadd.f32 %v3279_v53, %v3243_v1  ;;  %v7984_v36 = vadd.f32 %v3280_v29, %v3244_v47  ;;  %v9794_v16 = vld [vmem:[#allocation87_spill] sm:$0xff]  ;;  %v9795_v34 = vld [vmem:[#allocation88_spill] sm:$0xff] }
 0x20c   : > { %9780 = vst [vmem:[#allocation19_spill] sm:$0xff] %v7970_v11  ;;  %9781 = vst [vmem:[#allocation113_spill] sm:$0xff] %v7972_v2  ;;  %v3317_v24 = vmul.f32 %v4217_v28, %v9788_v44  ;;  %v3318_v39 = vmul.f32 %v4217_v28, %v9789_v60  ;;  %v3319_v49 = vmul.f32 %v4217_v28, %v9790_v6  ;;  %v9796_v1 = vld [vmem:[#allocation89_spill] sm:$0xff]  ;;  %v9797_v47 = vld [vmem:[#allocation90_spill] sm:$0xff] }
 0x20d   : > { %9782 = vst [vmem:[#allocation114_spill] sm:$0xff] %v7974_v37  ;;  %9783 = vst [vmem:[#allocation115_spill] sm:$0xff] %v7976_v14  ;;  %v3320_v3 = vmul.f32 %v4217_v28, %v9791_v38  ;;  %v3321_v43 = vmul.f32 %v4217_v28, %v9792_v25  ;;  %v3322_v58 = vmul.f32 %v4217_v28, %v9793_v63  ;;  %v9805_v5 = vld [vmem:[#allocation98_spill] sm:$0xff]  ;;  %v9806_v44 = vld [vmem:[#allocation99_spill] sm:$0xff] }
 0x20e   : > { %9784 = vst [vmem:[#allocation116_spill] sm:$0xff] %v7978_v35  ;;  %9785 = vst [vmem:[#allocation117_spill] sm:$0xff] %v7980_v45  ;;  %v3323_v27 = vmul.f32 %v4217_v28, %v9794_v16  ;;  %v3324_v62 = vmul.f32 %v4217_v28, %v9795_v34  ;;  %v3325_v53 = vmul.f32 %v4217_v28, %v9796_v1  ;;  %v9807_v1 = vld [vmem:[#allocation100_spill] sm:$0xff]  ;;  %v9808_v34 = vld [vmem:[#allocation101_spill] sm:$0xff] }
 0x20f   : > { %9786 = vst [vmem:[#allocation118_spill] sm:$0xff] %v7982_v57  ;;  %9787 = vst [vmem:[#allocation119_spill] sm:$0xff] %v7984_v36  ;;  %v3326_v29 = vmul.f32 %v4217_v28, %v9797_v47  ;;  %v3327_v32 = vmul.f32 %v4217_v28, %v9798_v46  ;;  %v3328_v13 = vmul.f32 %v4217_v28, %v9799_v31  ;;  %v9809_v16 = vld [vmem:[#allocation102_spill] sm:$0xff]  ;;  %v9810_v63 = vld [vmem:[#allocation103_spill] sm:$0xff] }
 0x210   : > { %v3329_v10 = vmul.f32 %v4217_v28, %v9800_v20  ;;  %v3330_v19 = vmul.f32 %v4217_v28, %v9801_v9  ;;  %v3331_v48 = vmul.f32 %v4217_v28, %v9802_v30  ;;  %v3332_v22 = vmul.f32 %v4217_v28, %v9803_v21  ;;  %v9811_v25 = vld [vmem:[#allocation104_spill] sm:$0xff]  ;;  %v9812_v38 = vld [vmem:[#allocation105_spill] sm:$0xff]  ;;  %v9813_v6 = vld [vmem:[#allocation106_spill] sm:$0xff] }
 0x211   : > { %v3333_v4 = vmul.f32 %v4217_v28, %v9804_v26  ;;  %v3334_v17 = vmul.f32 %v4217_v28, %v9805_v5  ;;  %v3335_v60 = vmul.f32 %v4217_v28, %v9806_v44  ;;  %v3336_v47 = vmul.f32 %v4217_v28, %v9807_v1  ;;  %v9814_v36 = vld [vmem:[#allocation107_spill] sm:$0xff]  ;;  %v9815_v57 = vld [vmem:[#allocation108_spill] sm:$0xff]  ;;  %v9816_v45 = vld [vmem:[#allocation109_spill] sm:$0xff] }
 0x212   : > { %v3337_v46 = vmul.f32 %v4217_v28, %v9808_v34  ;;  %v3338_v31 = vmul.f32 %v4217_v28, %v9809_v16  ;;  %v3339_v20 = vmul.f32 %v4217_v28, %v9810_v63  ;;  %v3340_v9 = vmul.f32 %v4217_v28, %v9811_v25  ;;  %v9817_v35 = vld [vmem:[#allocation110_spill] sm:$0xff]  ;;  %v9818_v14 = vld [vmem:[#allocation111_spill] sm:$0xff]  ;;  %v9819_v37 = vld [vmem:[#allocation112_spill] sm:$0xff] }
 0x213   : > { %v3341_v30 = vmul.f32 %v4217_v28, %v9812_v38  ;;  %v3342_v21 = vmul.f32 %v4217_v28, %v9813_v6  ;;  %v3343_v26 = vmul.f32 %v4217_v28, %v9814_v36  ;;  %v3344_v5 = vmul.f32 %v4217_v28, %v9815_v57  ;;  %v9820_v2 = vld [vmem:[#allocation18_spill] sm:$0xff]  ;;  %v9822_v8 = vld [vmem:[#allocation49_spill] sm:$0xff]  ;;  %v9823_v61 = vld [vmem:[#allocation35_spill] sm:$0xff] }
 0x214   : > { %v3345_v44 = vmul.f32 %v4217_v28, %v9816_v45  ;;  %v3346_v1 = vmul.f32 %v4217_v28, %v9817_v35  ;;  %v3347_v34 = vmul.f32 %v4217_v28, %v9818_v14  ;;  %v3348_v16 = vmul.f32 %v4217_v28, %v9819_v37  ;;  %v9821_v11 = vld [vmem:[#allocation50_spill] sm:$0xff] }
 0x215   : > { %v3349_v63 = vadd.f32 %v3317_v24, %v9820_v2  ;;  %v3350_v25 = vadd.f32 %v3318_v39, %v9820_v2  ;;  %v3351_v38 = vadd.f32 %v3319_v49, %v9821_v11  ;;  %v3352_v6 = vadd.f32 %v3320_v3, %v9822_v8  ;;  %v9824_v39 = vld [vmem:[#allocation34_spill] sm:$0xff]  ;;  %v9825_v49 = vld [vmem:[#allocation51_spill] sm:$0xff] }
 0x216   : > { %v3353_v36 = vadd.f32 %v3321_v43, %v9823_v61  ;;  %v3354_v57 = vadd.f32 %v3322_v58, %v7929_v51  ;;  %v3355_v45 = vadd.f32 %v3323_v27, %v7931_v33  ;;  %v3356_v35 = vadd.f32 %v3324_v62, %v7933_v0  ;;  %v9826_v3 = vld [vmem:[#allocation19_spill] sm:$0xff]  ;;  %v9838_v62 = vld [vmem:[#allocation118_spill] sm:$0xff] }
 0x217   : > { %v3357_v14 = vadd.f32 %v3325_v53, %v7935_v55  ;;  %v3358_v28 = vadd.f32 %v3326_v29, %v7937_v7  ;;  %v3359_v24 = vadd.f32 %v3327_v32, %v7939_v12  ;;  %v3360_v2 = vadd.f32 %v3328_v13, %v7941_v42  ;;  %v9843_v32 = vld [vmem:[#allocation22_spill] sm:$0xff]  ;;  %v9844_v13 = vld [vmem:[#allocation84_spill] sm:$0xff] }
 0x218   : > { %v3361_v11 = vadd.f32 %v3329_v10, %v7943_v52  ;;  %v3362_v8 = vadd.f32 %v3330_v19, %v7945_v56  ;;  %v3363_v61 = vadd.f32 %v3331_v48, %v7947_v59  ;;  %v3364_v51 = vadd.f32 %v3332_v22, %v7949_v23  ;;  %v9828_v23 = vld [vmem:[#allocation113_spill] sm:$0xff]  ;;  %v9846_v19 = vld [vmem:[#allocation86_spill] sm:$0xff] }
 0x219   : > { %v3365_v33 = vadd.f32 %v3333_v4, %v7951_v15  ;;  %v3366_v0 = vadd.f32 %v3334_v17, %v7953_v54  ;;  %v3367_v55 = vadd.f32 %v3335_v60, %v7955_v41  ;;  %v3368_v7 = vadd.f32 %v3336_v47, %v7957_v40  ;;  %v9830_v15 = vld [vmem:[#allocation114_spill] sm:$0xff]  ;;  %v9832_v41 = vld [vmem:[#allocation115_spill] sm:$0xff]  ;;  %v9834_v40 = vld [vmem:[#allocation116_spill] sm:$0xff] }
 0x21a   : > { %v3369_v12 = vadd.f32 %v3337_v46, %v7959_v50  ;;  %v3370_v42 = vadd.f32 %v3338_v31, %v7961_v18  ;;  %v3371_v52 = vadd.f32 %v3339_v20, %v9824_v39  ;;  %v3372_v56 = vadd.f32 %v3340_v9, %v9825_v49  ;;  %v9836_v18 = vld [vmem:[#allocation117_spill] sm:$0xff]  ;;  %v9840_v47 = vld [vmem:[#allocation119_spill] sm:$0xff] }
 0x21b   : > { %v8043_v59 = vadd.f32 %v3341_v30, %v9826_v3  ;;  %v8046_v43 = vadd.f32 %v3342_v21, %v9828_v23  ;;  %v8049_v54 = vadd.f32 %v3343_v26, %v9830_v15  ;;  %v8052_v58 = vadd.f32 %v3344_v5, %v9832_v41  ;;  %v9842_v46 = vld [vmem:[#allocation83_spill] sm:$0xff]  ;;  %v9845_v10 = vld [vmem:[#allocation85_spill] sm:$0xff]  ;;  %v9850_v26 = vld [vmem:[#allocation90_spill] sm:$0xff] }
 0x21c   : > { %v8055_v50 = vadd.f32 %v3345_v44, %v9834_v40  ;;  %v8058_v27 = vadd.f32 %v3346_v1, %v9836_v18  ;;  %v8061_v53 = vadd.f32 %v3347_v34, %v9838_v62  ;;  %v8064_v29 = vadd.f32 %v3348_v16, %v9840_v47  ;;  %v9847_v1 = vld [vmem:[#allocation87_spill] sm:$0xff]  ;;  %v9848_v34 = vld [vmem:[#allocation88_spill] sm:$0xff]  ;;  %v9849_v16 = vld [vmem:[#allocation89_spill] sm:$0xff] }
 0x21d   : > { %9827 = vst [vmem:[#allocation81_spill] sm:$0xff] %v8043_v59  ;;  %9829 = vst [vmem:[#allocation82_spill] sm:$0xff] %v8046_v43  ;;  %v3386_v31 = vmul.f32 %v9843_v32, %v9842_v46  ;;  %v3387_v20 = vmul.f32 %v9843_v32, %v9844_v13  ;;  %v3388_v9 = vmul.f32 %v9843_v32, %v9845_v10  ;;  %v9851_v5 = vld [vmem:[#allocation91_spill] sm:$0xff]  ;;  %v9852_v44 = vld [vmem:[#allocation92_spill] sm:$0xff] }
 0x21e   : > { %9831 = vst [vmem:[#allocation18_spill] sm:$0xff] %v8049_v54  ;;  %9833 = vst [vmem:[#allocation50_spill] sm:$0xff] %v8052_v58  ;;  %v3389_v30 = vmul.f32 %v9843_v32, %v9846_v19  ;;  %v3390_v48 = vmul.f32 %v9843_v32, %v9847_v1  ;;  %v3391_v21 = vmul.f32 %v9843_v32, %v9848_v34  ;;  %v9853_v39 = vld [vmem:[#allocation93_spill] sm:$0xff]  ;;  %v9854_v3 = vld [vmem:[#allocation94_spill] sm:$0xff] }
 0x21f   : > { %9835 = vst [vmem:[#allocation49_spill] sm:$0xff] %v8055_v50  ;;  %9837 = vst [vmem:[#allocation35_spill] sm:$0xff] %v8058_v27  ;;  %v3392_v22 = vmul.f32 %v9843_v32, %v9849_v16  ;;  %v3393_v4 = vmul.f32 %v9843_v32, %v9850_v26  ;;  %v3394_v17 = vmul.f32 %v9843_v32, %v9851_v5  ;;  %v9855_v15 = vld [vmem:[#allocation95_spill] sm:$0xff]  ;;  %v9856_v40 = vld [vmem:[#allocation96_spill] sm:$0xff] }
 0x220   : > { %9839 = vst [vmem:[#allocation34_spill] sm:$0xff] %v8061_v53  ;;  %9841 = vst [vmem:[#allocation51_spill] sm:$0xff] %v8064_v29  ;;  %v3395_v60 = vmul.f32 %v9843_v32, %v9852_v44  ;;  %v3396_v49 = vmul.f32 %v9843_v32, %v9853_v39  ;;  %v3397_v23 = vmul.f32 %v9843_v32, %v9854_v3  ;;  %v9857_v62 = vld [vmem:[#allocation97_spill] sm:$0xff]  ;;  %v9858_v46 = vld [vmem:[#allocation98_spill] sm:$0xff] }
 0x221   : > { %v3398_v41 = vmul.f32 %v9843_v32, %v9855_v15  ;;  %v3399_v18 = vmul.f32 %v9843_v32, %v9856_v40  ;;  %v3400_v47 = vmul.f32 %v9843_v32, %v9857_v62  ;;  %v3401_v13 = vmul.f32 %v9843_v32, %v9858_v46  ;;  %v9859_v5 = vld [vmem:[#allocation99_spill] sm:$0xff]  ;;  %v9860_v26 = vld [vmem:[#allocation100_spill] sm:$0xff]  ;;  %v9861_v16 = vld [vmem:[#allocation101_spill] sm:$0xff] }
 0x222   : > { %v3402_v44 = vmul.f32 %v9843_v32, %v9859_v5  ;;  %v3403_v39 = vmul.f32 %v9843_v32, %v9860_v26  ;;  %v3404_v3 = vmul.f32 %v9843_v32, %v9861_v16  ;;  %v9862_v34 = vld [vmem:[#allocation102_spill] sm:$0xff]  ;;  %v9863_v1 = vld [vmem:[#allocation103_spill] sm:$0xff]  ;;  %v9864_v19 = vld [vmem:[#allocation104_spill] sm:$0xff]  ;;  %v3417_v43 = vadd.f32 %v3386_v31, %v3349_v63 }
 0x223   : > { %v3405_v15 = vmul.f32 %v9843_v32, %v9862_v34  ;;  %v3406_v40 = vmul.f32 %v9843_v32, %v9863_v1  ;;  %v3407_v62 = vmul.f32 %v9843_v32, %v9864_v19  ;;  %v9865_v10 = vld [vmem:[#allocation105_spill] sm:$0xff]  ;;  %v9866_v29 = vld [vmem:[#allocation106_spill] sm:$0xff]  ;;  %v9867_v53 = vld [vmem:[#allocation107_spill] sm:$0xff]  ;;  %v3419_v59 = vadd.f32 %v3388_v9, %v3351_v38 }
 0x224   : > { %v3408_v46 = vmul.f32 %v9843_v32, %v9865_v10  ;;  %v3409_v5 = vmul.f32 %v9843_v32, %v9866_v29  ;;  %v3410_v26 = vmul.f32 %v9843_v32, %v9867_v53  ;;  %v9868_v27 = vld [vmem:[#allocation108_spill] sm:$0xff]  ;;  %v9869_v50 = vld [vmem:[#allocation109_spill] sm:$0xff]  ;;  %v9870_v58 = vld [vmem:[#allocation110_spill] sm:$0xff]  ;;  %v3415_v10 = vmul.f32 %v9843_v32, %v9819_v37 }
 0x225   : > { %v3411_v16 = vmul.f32 %v9843_v32, %v9868_v27  ;;  %v3412_v34 = vmul.f32 %v9843_v32, %v9869_v50  ;;  %v3413_v1 = vmul.f32 %v9843_v32, %v9870_v58  ;;  %v9871_v54 = vld [vmem:[#allocation111_spill] sm:$0xff]  ;;  %v3418_v29 = vadd.f32 %v3387_v20, %v3350_v25 }
 0x226   : > { %v3414_v19 = vmul.f32 %v9843_v32, %v9871_v54  ;;  %v3420_v53 = vadd.f32 %v3389_v30, %v3352_v6  ;;  %v3421_v27 = vadd.f32 %v3390_v48, %v3353_v36  ;;  %v3422_v50 = vadd.f32 %v3391_v21, %v3354_v57 }
 0x227   : > { %v3423_v58 = vadd.f32 %v3392_v22, %v3355_v45  ;;  %v3424_v54 = vadd.f32 %v3393_v4, %v3356_v35  ;;  %v3425_v32 = vadd.f32 %v3394_v17, %v3357_v14  ;;  %v3426_v37 = vadd.f32 %v3395_v60, %v3358_v28  ;;  %v4219_v14 = vld [vmem:[%s8763_s6 + $0x7] ss:$0 sm:$0xff]  ;;  %v9873_v35 = vld [vmem:[#allocation81_spill] sm:$0xff]  ;;  %v9884_v60 = vld [vmem:[#allocation87_spill] sm:$0xff] }
 0x228   : > { %v3427_v31 = vadd.f32 %v3396_v49, %v3359_v24  ;;  %v3428_v63 = vadd.f32 %v3397_v23, %v3360_v2  ;;  %v3429_v20 = vadd.f32 %v3398_v41, %v3361_v11  ;;  %v3430_v25 = vadd.f32 %v3399_v18, %v3362_v8  ;;  %v9874_v24 = vld [vmem:[#allocation82_spill] sm:$0xff]  ;;  %v9886_v49 = vld [vmem:[#allocation89_spill] sm:$0xff]  ;;  %v9888_v23 = vld [vmem:[#allocation91_spill] sm:$0xff] }
 0x229   : > { %v3431_v9 = vadd.f32 %v3400_v47, %v3363_v61  ;;  %v3432_v38 = vadd.f32 %v3401_v13, %v3364_v51  ;;  %v3433_v6 = vadd.f32 %v3402_v44, %v3365_v33  ;;  %v3434_v30 = vadd.f32 %v3403_v39, %v3366_v0  ;;  %v9875_v11 = vld [vmem:[#allocation18_spill] sm:$0xff]  ;;  %v9877_v33 = vld [vmem:[#allocation49_spill] sm:$0xff]  ;;  %v9885_v39 = vld [vmem:[#allocation88_spill] sm:$0xff] }
 0x22a   : > { %v3435_v36 = vadd.f32 %v3404_v3, %v3367_v55  ;;  %v3436_v48 = vadd.f32 %v3405_v15, %v3368_v7  ;;  %v3437_v21 = vadd.f32 %v3406_v40, %v3369_v12  ;;  %v3438_v57 = vadd.f32 %v3407_v62, %v3370_v42  ;;  %v9876_v61 = vld [vmem:[#allocation50_spill] sm:$0xff]  ;;  %v9878_v55 = vld [vmem:[#allocation35_spill] sm:$0xff]  ;;  %v9880_v42 = vld [vmem:[#allocation80_spill] sm:$0xff] }
 0x22b   : > { %v3439_v22 = vadd.f32 %v3408_v46, %v3371_v52  ;;  %v8126_v45 = vadd.f32 %v3409_v5, %v3372_v56  ;;  %v3441_v28 = vadd.f32 %v3410_v26, %v9873_v35  ;;  %v3442_v2 = vadd.f32 %v3411_v16, %v9874_v24  ;;  %v9879_v12 = vld [vmem:[#allocation34_spill] sm:$0xff]  ;;  %v9881_v56 = vld [vmem:[#allocation51_spill] sm:$0xff]  ;;  %v9882_v5 = vld [vmem:[#allocation85_spill] sm:$0xff] }
 0x22c   : > { %v3443_v8 = vadd.f32 %v3412_v34, %v9875_v11  ;;  %v3444_v51 = vadd.f32 %v3413_v1, %v9876_v61  ;;  %v3445_v0 = vadd.f32 %v3414_v19, %v9877_v33  ;;  %v3446_v7 = vadd.f32 %v3415_v10, %v9878_v55  ;;  %v9883_v44 = vld [vmem:[#allocation86_spill] sm:$0xff]  ;;  %v9889_v15 = vld [vmem:[#allocation92_spill] sm:$0xff]  ;;  %v9890_v40 = vld [vmem:[#allocation93_spill] sm:$0xff] }
 0x22d   : > { %9872 = vst [vmem:[#allocation19_spill] sm:$0xff] %v8126_v45  ;;  %v3447_v52 = vadd.f32 %v9880_v42, %v9879_v12  ;;  %v3448_v4 = vadd.f32 %v9880_v42, %v9881_v56  ;;  %v3454_v17 = vmul.f32 %v4219_v14, %v9882_v5  ;;  %v3455_v26 = vmul.f32 %v4219_v14, %v9883_v44  ;;  %v9887_v3 = vld [vmem:[#allocation90_spill] sm:$0xff]  ;;  %v9892_v46 = vld [vmem:[#allocation95_spill] sm:$0xff]  ;;  %v9893_v35 = vld [vmem:[#allocation96_spill] sm:$0xff] }
 0x22e   : > { %v3456_v16 = vmul.f32 %v4219_v14, %v9884_v60  ;;  %v3457_v34 = vmul.f32 %v4219_v14, %v9885_v39  ;;  %v3458_v1 = vmul.f32 %v4219_v14, %v9886_v49  ;;  %v3459_v19 = vmul.f32 %v4219_v14, %v9887_v3  ;;  %v9891_v62 = vld [vmem:[#allocation94_spill] sm:$0xff]  ;;  %v9894_v11 = vld [vmem:[#allocation97_spill] sm:$0xff]  ;;  %v9896_v12 = vld [vmem:[#allocation99_spill] sm:$0xff] }
 0x22f   : > { %v3460_v10 = vmul.f32 %v4219_v14, %v9888_v23  ;;  %v3461_v41 = vmul.f32 %v4219_v14, %v9889_v15  ;;  %v3462_v18 = vmul.f32 %v4219_v14, %v9890_v40  ;;  %v3463_v47 = vmul.f32 %v4219_v14, %v9891_v62  ;;  %v9895_v33 = vld [vmem:[#allocation98_spill] sm:$0xff]  ;;  %v9897_v56 = vld [vmem:[#allocation100_spill] sm:$0xff]  ;;  %v9898_v44 = vld [vmem:[#allocation101_spill] sm:$0xff] }
 0x230   : > { %v3464_v13 = vmul.f32 %v4219_v14, %v9892_v46  ;;  %v3465_v24 = vmul.f32 %v4219_v14, %v9893_v35  ;;  %v3466_v61 = vmul.f32 %v4219_v14, %v9894_v11  ;;  %v3467_v55 = vmul.f32 %v4219_v14, %v9895_v33  ;;  %v9899_v3 = vld [vmem:[#allocation102_spill] sm:$0xff]  ;;  %v9900_v49 = vld [vmem:[#allocation103_spill] sm:$0xff]  ;;  %v9901_v39 = vld [vmem:[#allocation104_spill] sm:$0xff] }
 0x231   : > { %v3468_v42 = vmul.f32 %v4219_v14, %v9896_v12  ;;  %v3469_v5 = vmul.f32 %v4219_v14, %v9897_v56  ;;  %v3470_v23 = vmul.f32 %v4219_v14, %v9898_v44  ;;  %v3471_v15 = vmul.f32 %v4219_v14, %v9899_v3  ;;  %v9902_v60 = vld [vmem:[#allocation105_spill] sm:$0xff]  ;;  %v9903_v45 = vld [vmem:[#allocation106_spill] sm:$0xff]  ;;  %v9904_v11 = vld [vmem:[#allocation107_spill] sm:$0xff] }
 0x232   : > { %v3472_v40 = vmul.f32 %v4219_v14, %v9900_v49  ;;  %v3473_v62 = vmul.f32 %v4219_v14, %v9901_v39  ;;  %v3474_v46 = vmul.f32 %v4219_v14, %v9902_v60  ;;  %v3475_v35 = vmul.f32 %v4219_v14, %v9903_v45  ;;  %v9905_v12 = vld [vmem:[#allocation108_spill] sm:$0xff]  ;;  %v9906_v44 = vld [vmem:[#allocation109_spill] sm:$0xff]  ;;  %v9907_v49 = vld [vmem:[#allocation110_spill] sm:$0xff] }
 0x233   : > { %v3476_v33 = vmul.f32 %v4219_v14, %v9904_v11  ;;  %v3477_v56 = vmul.f32 %v4219_v14, %v9905_v12  ;;  %v3478_v3 = vmul.f32 %v4219_v14, %v9906_v44  ;;  %v3479_v39 = vmul.f32 %v4219_v14, %v9907_v49  ;;  %v9908_v60 = vld [vmem:[#allocation111_spill] sm:$0xff]  ;;  %v9909_v11 = vld [vmem:[#allocation112_spill] sm:$0xff] }
 0x234   : > { %v3480_v45 = vmul.f32 %v4219_v14, %v9908_v60  ;;  %v3481_v12 = vmul.f32 %v4219_v14, %v9909_v11  ;;  %v3482_v44 = vmul.f32 0.0, %v4219_v14  ;;  %v3483_v49 = vadd.f32 %v3454_v17, %v3417_v43 }
 0x235   : > { %v3484_v60 = vadd.f32 %v3455_v26, %v3418_v29  ;;  %v3485_v11 = vadd.f32 %v3456_v16, %v3419_v59  ;;  %v3486_v14 = vadd.f32 %v3457_v34, %v3420_v53  ;;  %v3487_v17 = vadd.f32 %v3458_v1, %v3421_v27 }
 0x236   : > { %v3488_v43 = vadd.f32 %v3459_v19, %v3422_v50  ;;  %v3489_v26 = vadd.f32 %v3460_v10, %v3423_v58  ;;  %v3490_v29 = vadd.f32 %v3461_v41, %v3424_v54  ;;  %v3491_v16 = vadd.f32 %v3462_v18, %v3425_v32 }
 0x237   : > { %v3492_v59 = vadd.f32 %v3463_v47, %v3426_v37  ;;  %v3493_v34 = vadd.f32 %v3464_v13, %v3427_v31  ;;  %v3494_v53 = vadd.f32 %v3465_v24, %v3428_v63  ;;  %v3495_v1 = vadd.f32 %v3466_v61, %v3429_v20  ;;  %v4220_v47 = vld [vmem:[%s8763_s6 + $0x8] ss:$0 sm:$0xff] }
 0x238   : > { %v3496_v27 = vadd.f32 %v3467_v55, %v3430_v25  ;;  %v3497_v19 = vadd.f32 %v3468_v42, %v3431_v9  ;;  %v3498_v50 = vadd.f32 %v3469_v5, %v3432_v38  ;;  %v3499_v10 = vadd.f32 %v3470_v23, %v3433_v6  ;;  %v9910_v13 = vld [vmem:[#allocation19_spill] sm:$0xff]  ;;  %v9914_v23 = vld [vmem:[#allocation90_spill] sm:$0xff]  ;;  %v9924_v42 = vld [vmem:[#allocation100_spill] sm:$0xff] }
 0x239   : > { %v3500_v58 = vadd.f32 %v3471_v15, %v3434_v30  ;;  %v3501_v41 = vadd.f32 %v3472_v40, %v3435_v36  ;;  %v3502_v54 = vadd.f32 %v3473_v62, %v3436_v48  ;;  %v3503_v18 = vadd.f32 %v3474_v46, %v3437_v21  ;;  %v9911_v30 = vld [vmem:[#allocation87_spill] sm:$0xff]  ;;  %v9912_v48 = vld [vmem:[#allocation88_spill] sm:$0xff]  ;;  %v9925_v5 = vld [vmem:[#allocation101_spill] sm:$0xff] }
 0x23a   : > { %v3504_v32 = vadd.f32 %v3475_v35, %v3438_v57  ;;  %v3505_v37 = vadd.f32 %v3476_v33, %v3439_v22  ;;  %v3506_v31 = vadd.f32 %v3477_v56, %v9910_v13  ;;  %v3507_v24 = vadd.f32 %v3478_v3, %v3441_v28  ;;  %v9913_v57 = vld [vmem:[#allocation89_spill] sm:$0xff]  ;;  %v9915_v40 = vld [vmem:[#allocation91_spill] sm:$0xff]  ;;  %v9916_v46 = vld [vmem:[#allocation92_spill] sm:$0xff] }
 0x23b   : > { %v3508_v63 = vadd.f32 %v3479_v39, %v3442_v2  ;;  %v3509_v20 = vadd.f32 %v3480_v45, %v3443_v8  ;;  %v3510_v61 = vadd.f32 %v3481_v12, %v3444_v51  ;;  %v3511_v25 = vadd.f32 %v3482_v44, %v3445_v0  ;;  %v9917_v28 = vld [vmem:[#allocation93_spill] sm:$0xff]  ;;  %v9918_v45 = vld [vmem:[#allocation94_spill] sm:$0xff]  ;;  %v9919_v51 = vld [vmem:[#allocation95_spill] sm:$0xff] }
 0x23c   : > { %v3512_v9 = vadd.f32 %v3482_v44, %v3446_v7  ;;  %v3513_v38 = vadd.f32 %v3482_v44, %v3447_v52  ;;  %v3514_v6 = vadd.f32 %v3482_v44, %v3448_v4  ;;  %v3520_v36 = vmul.f32 %v4220_v47, %v9911_v30  ;;  %v9920_v7 = vld [vmem:[#allocation96_spill] sm:$0xff]  ;;  %v9921_v4 = vld [vmem:[#allocation97_spill] sm:$0xff]  ;;  %v9922_v3 = vld [vmem:[#allocation98_spill] sm:$0xff] }
 0x23d   : > { %v3521_v21 = vmul.f32 %v4220_v47, %v9912_v48  ;;  %v3522_v22 = vmul.f32 %v4220_v47, %v9913_v57  ;;  %v3523_v15 = vmul.f32 %v4220_v47, %v9914_v23  ;;  %v3524_v62 = vmul.f32 %v4220_v47, %v9915_v40  ;;  %v9923_v55 = vld [vmem:[#allocation99_spill] sm:$0xff]  ;;  %v9926_v13 = vld [vmem:[#allocation102_spill] sm:$0xff]  ;;  %v9929_v40 = vld [vmem:[#allocation105_spill] sm:$0xff] }
 0x23e   : > { %v3525_v35 = vmul.f32 %v4220_v47, %v9916_v46  ;;  %v3526_v2 = vmul.f32 %v4220_v47, %v9917_v28  ;;  %v3527_v8 = vmul.f32 %v4220_v47, %v9918_v45  ;;  %v3528_v0 = vmul.f32 %v4220_v47, %v9919_v51  ;;  %v9927_v48 = vld [vmem:[#allocation103_spill] sm:$0xff]  ;;  %v9928_v46 = vld [vmem:[#allocation104_spill] sm:$0xff]  ;;  %v9930_v23 = vld [vmem:[#allocation106_spill] sm:$0xff] }
 0x23f   : > { %v3529_v52 = vmul.f32 %v4220_v47, %v9920_v7  ;;  %v3530_v39 = vmul.f32 %v4220_v47, %v9921_v4  ;;  %v3531_v33 = vmul.f32 %v4220_v47, %v9922_v3  ;;  %v3532_v12 = vmul.f32 %v4220_v47, %v9923_v55  ;;  %v9931_v57 = vld [vmem:[#allocation107_spill] sm:$0xff]  ;;  %v9932_v3 = vld [vmem:[#allocation108_spill] sm:$0xff] }
 0x240   : > { %v3533_v56 = vmul.f32 %v4220_v47, %v9924_v42  ;;  %v3534_v44 = vmul.f32 %v4220_v47, %v9925_v5  ;;  %v3535_v30 = vmul.f32 %v4220_v47, %v9926_v13  ;;  %v3536_v28 = vmul.f32 %v4220_v47, %v9927_v48  ;;  %v9933_v42 = vld [vmem:[#allocation109_spill] sm:$0xff]  ;;  %v9934_v13 = vld [vmem:[#allocation110_spill] sm:$0xff] }
 0x241   : > { %v3537_v45 = vmul.f32 %v4220_v47, %v9928_v46  ;;  %v3538_v51 = vmul.f32 %v4220_v47, %v9929_v40  ;;  %v3539_v7 = vmul.f32 %v4220_v47, %v9930_v23  ;;  %v3540_v4 = vmul.f32 %v4220_v47, %v9931_v57  ;;  %v9935_v46 = vld [vmem:[#allocation111_spill] sm:$0xff]  ;;  %v9936_v23 = vld [vmem:[#allocation112_spill] sm:$0xff] }
 0x242   : > { %v3541_v55 = vmul.f32 %v4220_v47, %v9932_v3  ;;  %v3542_v5 = vmul.f32 %v4220_v47, %v9933_v42  ;;  %v3543_v48 = vmul.f32 %v4220_v47, %v9934_v13  ;;  %v3544_v40 = vmul.f32 %v4220_v47, %v9935_v46 }
 0x243   : > { %v3545_v57 = vmul.f32 %v4220_v47, %v9936_v23  ;;  %v3546_v3 = vmul.f32 0.0, %v4220_v47  ;;  %v3547_v42 = vadd.f32 %v3520_v36, %v3483_v49  ;;  %v3548_v13 = vadd.f32 %v3521_v21, %v3484_v60 }
 0x244   : > { %v3549_v46 = vadd.f32 %v3522_v22, %v3485_v11  ;;  %v3550_v23 = vadd.f32 %v3523_v15, %v3486_v14  ;;  %v3551_v47 = vadd.f32 %v3524_v62, %v3487_v17  ;;  %v3552_v36 = vadd.f32 %v3525_v35, %v3488_v43 }
 0x245   : > { %v3553_v49 = vadd.f32 %v3526_v2, %v3489_v26  ;;  %v3554_v21 = vadd.f32 %v3527_v8, %v3490_v29  ;;  %v3555_v60 = vadd.f32 %v3528_v0, %v3491_v16  ;;  %v3556_v11 = vadd.f32 %v3529_v52, %v3492_v59  ;;  %v4221_v59 = vld [vmem:[%s8763_s6 + $0x9] ss:$0 sm:$0xff] }
 0x246   : > { %v3557_v22 = vadd.f32 %v3530_v39, %v3493_v34  ;;  %v3558_v14 = vadd.f32 %v3531_v33, %v3494_v53  ;;  %v3559_v15 = vadd.f32 %v3532_v12, %v3495_v1  ;;  %v3560_v17 = vadd.f32 %v3533_v56, %v3496_v27  ;;  %v9952_v56 = vld [vmem:[#allocation102_spill] sm:$0xff] }
 0x247   : > { %v3561_v62 = vadd.f32 %v3534_v44, %v3497_v19  ;;  %v3562_v35 = vadd.f32 %v3535_v30, %v3498_v50  ;;  %v3563_v43 = vadd.f32 %v3536_v28, %v3499_v10  ;;  %v3564_v2 = vadd.f32 %v3537_v45, %v3500_v58  ;;  %v9939_v10 = vld [vmem:[#allocation89_spill] sm:$0xff]  ;;  %v9953_v44 = vld [vmem:[#allocation103_spill] sm:$0xff] }
 0x248   : > { %v3565_v26 = vadd.f32 %v3538_v51, %v3501_v41  ;;  %v3566_v8 = vadd.f32 %v3539_v7, %v3502_v54  ;;  %v3567_v29 = vadd.f32 %v3540_v4, %v3503_v18  ;;  %v3568_v0 = vadd.f32 %v3541_v55, %v3504_v32  ;;  %v9940_v41 = vld [vmem:[#allocation90_spill] sm:$0xff]  ;;  %v9941_v18 = vld [vmem:[#allocation91_spill] sm:$0xff]  ;;  %v9943_v28 = vld [vmem:[#allocation93_spill] sm:$0xff] }
 0x249   : > { %v3569_v16 = vadd.f32 %v3542_v5, %v3505_v37  ;;  %v3570_v52 = vadd.f32 %v3543_v48, %v3506_v31  ;;  %v3571_v34 = vadd.f32 %v3544_v40, %v3507_v24  ;;  %v3572_v39 = vadd.f32 %v3545_v57, %v3508_v63  ;;  %v9942_v37 = vld [vmem:[#allocation92_spill] sm:$0xff]  ;;  %v9944_v24 = vld [vmem:[#allocation94_spill] sm:$0xff]  ;;  %v9949_v51 = vld [vmem:[#allocation99_spill] sm:$0xff] }
 0x24a   : > { %v3573_v33 = vadd.f32 %v3546_v3, %v3509_v20  ;;  %v3574_v53 = vadd.f32 %v3546_v3, %v3510_v61  ;;  %v3575_v1 = vadd.f32 %v3546_v3, %v3511_v25  ;;  %v3576_v27 = vadd.f32 %v3546_v3, %v3512_v9  ;;  %v9945_v20 = vld [vmem:[#allocation95_spill] sm:$0xff]  ;;  %v9946_v25 = vld [vmem:[#allocation96_spill] sm:$0xff]  ;;  %v9951_v55 = vld [vmem:[#allocation101_spill] sm:$0xff] }
 0x24b   : > { %v8202_v19 = vadd.f32 %v3546_v3, %v3513_v38  ;;  %v8204_v50 = vadd.f32 %v3546_v3, %v3514_v6  ;;  %v3584_v58 = vmul.f32 %v4221_v59, %v9939_v10  ;;  %v3585_v54 = vmul.f32 %v4221_v59, %v9940_v41  ;;  %v9947_v38 = vld [vmem:[#allocation97_spill] sm:$0xff]  ;;  %v9948_v6 = vld [vmem:[#allocation98_spill] sm:$0xff]  ;;  %v9950_v4 = vld [vmem:[#allocation100_spill] sm:$0xff] }
 0x24c   : > { %v3586_v32 = vmul.f32 %v4221_v59, %v9941_v18  ;;  %v3587_v31 = vmul.f32 %v4221_v59, %v9942_v37  ;;  %v3588_v45 = vmul.f32 %v4221_v59, %v9943_v28  ;;  %v3589_v63 = vmul.f32 %v4221_v59, %v9944_v24  ;;  %v9954_v48 = vld [vmem:[#allocation104_spill] sm:$0xff]  ;;  %v9955_v41 = vld [vmem:[#allocation105_spill] sm:$0xff]  ;;  %v9960_v37 = vld [vmem:[#allocation110_spill] sm:$0xff] }
 0x24d   : > { %9937 = vst [vmem:[#allocation113_spill] sm:$0xff] %v8202_v19  ;;  %9938 = vst [vmem:[#allocation114_spill] sm:$0xff] %v8204_v50  ;;  %v3590_v61 = vmul.f32 %v4221_v59, %v9945_v20  ;;  %v3591_v9 = vmul.f32 %v4221_v59, %v9946_v25  ;;  %v3592_v57 = vmul.f32 %v4221_v59, %v9947_v38  ;;  %v9956_v19 = vld [vmem:[#allocation106_spill] sm:$0xff]  ;;  %v9957_v20 = vld [vmem:[#allocation107_spill] sm:$0xff] }
 0x24e   : > { %v3593_v40 = vmul.f32 %v4221_v59, %v9948_v6  ;;  %v3594_v7 = vmul.f32 %v4221_v59, %v9949_v51  ;;  %v3595_v3 = vmul.f32 %v4221_v59, %v9950_v4  ;;  %v3596_v12 = vmul.f32 %v4221_v59, %v9951_v55  ;;  %v9958_v24 = vld [vmem:[#allocation108_spill] sm:$0xff]  ;;  %v9959_v28 = vld [vmem:[#allocation109_spill] sm:$0xff]  ;;  %v9961_v18 = vld [vmem:[#allocation111_spill] sm:$0xff] }
 0x24f   : > { %v3597_v5 = vmul.f32 %v4221_v59, %v9952_v56  ;;  %v3598_v30 = vmul.f32 %v4221_v59, %v9953_v44  ;;  %v3599_v10 = vmul.f32 %v4221_v59, %v9954_v48  ;;  %v3600_v50 = vmul.f32 %v4221_v59, %v9955_v41  ;;  %v9962_v56 = vld [vmem:[#allocation112_spill] sm:$0xff] }
 0x250   : > { %v3601_v25 = vmul.f32 %v4221_v59, %v9956_v19  ;;  %v3602_v38 = vmul.f32 %v4221_v59, %v9957_v20  ;;  %v3603_v6 = vmul.f32 %v4221_v59, %v9958_v24  ;;  %v3604_v51 = vmul.f32 %v4221_v59, %v9959_v28 }
 0x251   : > { %v3605_v4 = vmul.f32 %v4221_v59, %v9960_v37  ;;  %v3606_v55 = vmul.f32 %v4221_v59, %v9961_v18  ;;  %v3607_v44 = vmul.f32 %v4221_v59, %v9962_v56  ;;  %v3608_v48 = vmul.f32 0.0, %v4221_v59 }
 0x252   : > { %v3609_v41 = vadd.f32 %v3584_v58, %v3547_v42  ;;  %v3610_v19 = vadd.f32 %v3585_v54, %v3548_v13  ;;  %v3611_v20 = vadd.f32 %v3586_v32, %v3549_v46  ;;  %v3612_v24 = vadd.f32 %v3587_v31, %v3550_v23  ;;  %v4222_v23 = vld [vmem:[%s8763_s6 + $0xa] ss:$0 sm:$0xff] }
 0x253   : > { %v3613_v28 = vadd.f32 %v3588_v45, %v3551_v47  ;;  %v3614_v37 = vadd.f32 %v3589_v63, %v3552_v36  ;;  %v3615_v18 = vadd.f32 %v3590_v61, %v3553_v49  ;;  %v3616_v56 = vadd.f32 %v3591_v9, %v3554_v21  ;;  %v9967_v63 = vld [vmem:[#allocation95_spill] sm:$0xff] }
 0x254   : > { %v3617_v59 = vadd.f32 %v3592_v57, %v3555_v60  ;;  %v3618_v42 = vadd.f32 %v3593_v40, %v3556_v11  ;;  %v3619_v58 = vadd.f32 %v3594_v7, %v3557_v22  ;;  %v8230_v13 = vadd.f32 %v3595_v3, %v3558_v14  ;;  %v9972_v40 = vld [vmem:[#allocation98_spill] sm:$0xff]  ;;  %v9974_v3 = vld [vmem:[#allocation100_spill] sm:$0xff] }
 0x255   : > { %v8232_v54 = vadd.f32 %v3596_v12, %v3559_v15  ;;  %v8234_v32 = vadd.f32 %v3597_v5, %v3560_v17  ;;  %v8236_v46 = vadd.f32 %v3598_v30, %v3561_v62  ;;  %v8241_v31 = vadd.f32 %v3599_v10, %v3562_v35  ;;  %v9963_v15 = vld [vmem:[#allocation91_spill] sm:$0xff]  ;;  %v9964_v62 = vld [vmem:[#allocation92_spill] sm:$0xff]  ;;  %v9975_v12 = vld [vmem:[#allocation101_spill] sm:$0xff] }
 0x256   : > { %v8243_v47 = vadd.f32 %v3600_v50, %v3563_v43  ;;  %v8245_v36 = vadd.f32 %v3601_v25, %v3564_v2  ;;  %v8247_v49 = vadd.f32 %v3602_v38, %v3565_v26  ;;  %v8249_v21 = vadd.f32 %v3603_v6, %v3566_v8  ;;  %v9965_v43 = vld [vmem:[#allocation93_spill] sm:$0xff]  ;;  %v9969_v38 = vld [vmem:[#allocation114_spill] sm:$0xff] }
 0x257   : > { %v8251_v60 = vadd.f32 %v3604_v51, %v3567_v29  ;;  %v8253_v11 = vadd.f32 %v3605_v4, %v3568_v0  ;;  %v8255_v22 = vadd.f32 %v3606_v55, %v3569_v16  ;;  %v8257_v14 = vadd.f32 %v3607_v44, %v3570_v52  ;;  %v9966_v29 = vld [vmem:[#allocation94_spill] sm:$0xff]  ;;  %v9968_v25 = vld [vmem:[#allocation113_spill] sm:$0xff]  ;;  %v9973_v4 = vld [vmem:[#allocation99_spill] sm:$0xff] }
 0x258   : > { %v3646_v17 = vmul.f32 %v4222_v23, %v9963_v15  ;;  %v3647_v35 = vmul.f32 %v4222_v23, %v9964_v62  ;;  %v3648_v50 = vmul.f32 %v4222_v23, %v9965_v43  ;;  %v8262_v2 = vadd.f32 %v3608_v48, %v3571_v34  ;;  %v8291_v30 = vld [vmem:[%s8764_s7] ss:$0 sm:$0xff]  ;;  %v9977_v15 = vld [vmem:[#allocation103_spill] sm:$0xff]  ;;  %v9978_v43 = vld [vmem:[#allocation104_spill] sm:$0xff] }
 0x259   : > { %v8264_v26 = vadd.f32 %v3608_v48, %v3572_v39  ;;  %v8266_v8 = vadd.f32 %v3608_v48, %v3573_v33  ;;  %v3649_v45 = vmul.f32 %v4222_v23, %v9966_v29  ;;  %v8269_v0 = vadd.f32 %v3608_v48, %v3574_v53  ;;  %v9970_v39 = vld [vmem:[#allocation96_spill] sm:$0xff]  ;;  %v9971_v33 = vld [vmem:[#allocation97_spill] sm:$0xff]  ;;  %v9981_v29 = vld [vmem:[#allocation107_spill] sm:$0xff] }
 0x25a   : > { %v8271_v16 = vadd.f32 %v3608_v48, %v3575_v1  ;;  %v8273_v52 = vadd.f32 %v3608_v48, %v3576_v27  ;;  %v3650_v61 = vmul.f32 %v4222_v23, %v9967_v63  ;;  %v8277_v9 = vadd.f32 %v3608_v48, %v9968_v25 }
 0x25b   : > { %v8280_v34 = vadd.f32 %v3608_v48, %v9969_v38  ;;  %v3651_v57 = vmul.f32 %v4222_v23, %v9970_v39  ;;  %v3652_v6 = vmul.f32 %v4222_v23, %v9971_v33  ;;  %v3653_v51 = vmul.f32 %v4222_v23, %v9972_v40  ;;  %v9976_v48 = vld [vmem:[#allocation102_spill] sm:$0xff]  ;;  %v9982_v33 = vld [vmem:[#allocation108_spill] sm:$0xff] }
 0x25c   : > { %v3669_v53 = vadd.f32 %v3646_v17, %v3609_v41  ;;  %v3670_v7 = vadd.f32 %v3647_v35, %v3610_v19  ;;  %v3671_v1 = vadd.f32 %v3648_v50, %v3611_v20  ;;  %v3654_v27 = vmul.f32 %v4222_v23, %v9973_v4  ;;  %v9979_v20 = vld [vmem:[#allocation105_spill] sm:$0xff]  ;;  %v9980_v35 = vld [vmem:[#allocation106_spill] sm:$0xff] }
 0x25d   : > { %v3655_v55 = vmul.f32 %v4222_v23, %v9974_v3  ;;  %v3656_v5 = vmul.f32 %v4222_v23, %v9975_v12  ;;  %v3672_v44 = vadd.f32 %v3649_v45, %v3612_v24  ;;  %v3657_v10 = vmul.f32 %v4222_v23, %v9976_v48  ;;  %v9983_v4 = vld [vmem:[#allocation109_spill] sm:$0xff] }
 0x25e   : > { %v3658_v62 = vmul.f32 %v4222_v23, %v9977_v15  ;;  %v3659_v41 = vmul.f32 %v4222_v23, %v9978_v43  ;;  %v3673_v19 = vadd.f32 %v3650_v61, %v3613_v28  ;;  %v3660_v17 = vmul.f32 %v4222_v23, %v9979_v20  ;;  %v9984_v61 = vld [vmem:[#allocation110_spill] sm:$0xff]  ;;  %v9985_v15 = vld [vmem:[#allocation111_spill] sm:$0xff] }
 0x25f   : > { %v3661_v50 = vmul.f32 %v4222_v23, %v9980_v35  ;;  %v3662_v63 = vmul.f32 %v4222_v23, %v9981_v29  ;;  %v3674_v25 = vadd.f32 %v3651_v57, %v3614_v37  ;;  %v3675_v24 = vadd.f32 %v3652_v6, %v3615_v18  ;;  %v9986_v37 = vld [vmem:[#allocation112_spill] sm:$0xff] }
 0x260   : > { %v3708_v45 = vadd.f32 %v8291_v30, %v3669_v53  ;;  %v3709_v38 = vadd.f32 %v8291_v30, %v3670_v7  ;;  %v3710_v39 = vadd.f32 %v8291_v30, %v3671_v1  ;;  %v3663_v40 = vmul.f32 %v4222_v23, %v9982_v33 }
 0x261   : > { %v3664_v3 = vmul.f32 %v4222_v23, %v9983_v4  ;;  %v3676_v12 = vadd.f32 %v3653_v51, %v3616_v56  ;;  %v3711_v28 = vadd.f32 %v8291_v30, %v3672_v44  ;;  %v3665_v48 = vmul.f32 %v4222_v23, %v9984_v61 }
 0x262   : > { %v3666_v43 = vmul.f32 %v4222_v23, %v9985_v15  ;;  %v3677_v20 = vadd.f32 %v3654_v27, %v3617_v59  ;;  %v3712_v18 = vadd.f32 %v8291_v30, %v3673_v19  ;;  %v3667_v57 = vmul.f32 %v4222_v23, %v9986_v37 }
 0x263   : > { %v3678_v6 = vadd.f32 %v3655_v55, %v3618_v42  ;;  %v3679_v53 = vadd.f32 %v3656_v5, %v3619_v58  ;;  %v3713_v7 = vadd.f32 %v8291_v30, %v3674_v25  ;;  %v3714_v1 = vadd.f32 %v8291_v30, %v3675_v24 }
 0x264   : > { %v4224_v35 = vmul.f32 -1.442695, %v3708_v45  ;;  %v4225_v29 = vmul.f32 -1.442695, %v3709_v38  ;;  %v4226_v56 = vmul.f32 -1.442695, %v3710_v39  ;;  %v3680_v44 = vadd.f32 %v3657_v10, %v8230_v13 }
 0x265   : > { %v8311_v51 = vmul.f32 0.0, %v4222_v23  ;;  %v3715_v33 = vadd.f32 %v8291_v30, %v3676_v12  ;;  %v4227_v59 = vmul.f32 -1.442695, %v3711_v28  ;;  %v3681_v27 = vadd.f32 %v3658_v62, %v8232_v54 }
 0x266   : > { %v3716_v19 = vadd.f32 %v8291_v30, %v3677_v20  ;;  %4284 = vpow2.f32 %v4224_v35  ;;  %v4228_v42 = vmul.f32 -1.442695, %v3712_v18  ;;  %v3682_v58 = vadd.f32 %v3659_v41, %v8234_v32 }
 0x267   : > { %v3717_v55 = vadd.f32 %v8291_v30, %v3678_v6  ;;  %4286 = vpow2.f32 %v4225_v29  ;;  %v4229_v5 = vmul.f32 -1.442695, %v3713_v7  ;;  %v3683_v23 = vadd.f32 %v3660_v17, %v8236_v46 }
 0x268   : > { %v3718_v25 = vadd.f32 %v8291_v30, %v3679_v53  ;;  %4288 = vpow2.f32 %v4226_v56  ;;  %v4230_v13 = vmul.f32 -1.442695, %v3714_v1  ;;  %v3684_v10 = vadd.f32 %v3661_v50, %v8241_v31 }
 0x269   : > { %v3719_v54 = vadd.f32 %v8291_v30, %v3680_v44  ;;  %4290 = vpow2.f32 %v4227_v59  ;;  %v4231_v62 = vmul.f32 -1.442695, %v3715_v33  ;;  %v3685_v24 = vadd.f32 %v3662_v63, %v8243_v47 }
 0x26a   : > { %v3720_v32 = vadd.f32 %v8291_v30, %v3681_v27  ;;  %4292 = vpow2.f32 %v4228_v42  ;;  %v4232_v41 = vmul.f32 -1.442695, %v3716_v19  ;;  %v3686_v45 = vadd.f32 %v3663_v40, %v8245_v36 }
 0x26b   : > { %v3721_v46 = vadd.f32 %v8291_v30, %v3682_v58  ;;  %4294 = vpow2.f32 %v4229_v5  ;;  %v4233_v17 = vmul.f32 -1.442695, %v3717_v55  ;;  %v3687_v38 = vadd.f32 %v3664_v3, %v8247_v49 }
 0x26c   : > { %v3722_v31 = vadd.f32 %v8291_v30, %v3683_v23  ;;  %4296 = vpow2.f32 %v4230_v13  ;;  %v4234_v50 = vmul.f32 -1.442695, %v3718_v25  ;;  %v3688_v39 = vadd.f32 %v3665_v48, %v8249_v21  ;;  %v9987_v13 = vld [vmem:[#allocation5_spill] sm:$0xff] }
 0x26d   : > { %v3723_v47 = vadd.f32 %v8291_v30, %v3684_v10  ;;  %4298 = vpow2.f32 %v4231_v62  ;;  %v4235_v63 = vmul.f32 -1.442695, %v3719_v54  ;;  %v3689_v4 = vadd.f32 %v3666_v43, %v8251_v60  ;;  %v9989_v54 = vld [vmem:[#allocation20_spill] sm:$0xff] }
 0x26e   : > { %v3724_v36 = vadd.f32 %v8291_v30, %v3685_v24  ;;  %4300 = vpow2.f32 %v4232_v41  ;;  %v4236_v40 = vmul.f32 -1.442695, %v3720_v32  ;;  %v3690_v12 = vadd.f32 %v3667_v57, %v8253_v11 }
 0x26f   : > { %v3725_v49 = vadd.f32 %v8291_v30, %v3686_v45  ;;  %4302 = vpow2.f32 %v4233_v17  ;;  %v4237_v3 = vmul.f32 -1.442695, %v3721_v46  ;;  %v3691_v28 = vadd.f32 %v8311_v51, %v8255_v22 }
 0x270   : > { %v3726_v21 = vadd.f32 %v8291_v30, %v3687_v38  ;;  %4304 = vpow2.f32 %v4234_v50  ;;  %v4238_v61 = vmul.f32 -1.442695, %v3722_v31  ;;  %v3692_v60 = vadd.f32 %v8311_v51, %v8257_v14  ;;  %v9992_v38 = vld [vmem:[#allocation7_spill] sm:$0xff] }
 0x271   : > { %v3727_v48 = vadd.f32 %v8291_v30, %v3688_v39  ;;  %4306 = vpow2.f32 %v4235_v63  ;;  %v4239_v15 = vmul.f32 -1.442695, %v3723_v47  ;;  %v3693_v11 = vadd.f32 %v8311_v51, %v8262_v2  ;;  %v9993_v63 = vld [vmem:[#allocation39_spill] sm:$0xff] }
 0x272   : > { %v3728_v43 = vadd.f32 %v8291_v30, %v3689_v4  ;;  %4308 = vpow2.f32 %v4236_v40  ;;  %v4240_v20 = vmul.f32 -1.442695, %v3724_v36  ;;  %v3694_v22 = vadd.f32 %v8311_v51, %v8264_v26 }
 0x273   : > { %v8344_v18 = vpop.eup %4284  ;;  %v3729_v37 = vadd.f32 %v8291_v30, %v3690_v12  ;;  %4310 = vpow2.f32 %v4237_v3  ;;  %v4241_v14 = vmul.f32 -1.442695, %v3725_v49  ;;  %v3695_v6 = vadd.f32 %v8311_v51, %v8266_v8  ;;  %v9994_v49 = vld [vmem:[#allocation21_spill] sm:$0xff] }
 0x274   : > { %v8349_v57 = vpop.eup %4286  ;;  %v3730_v2 = vadd.f32 %v8291_v30, %v3691_v28  ;;  %4312 = vpow2.f32 %v4238_v61  ;;  %v4242_v53 = vmul.f32 -1.442695, %v3726_v21  ;;  %v3696_v1 = vadd.f32 %v8311_v51, %v8269_v0  ;;  %v9996_v28 = vld [vmem:[#allocation37_spill] sm:$0xff] }
 0x275   : > { %v8354_v7 = vpop.eup %4288  ;;  %v3731_v26 = vadd.f32 %v8291_v30, %v3692_v60  ;;  %4314 = vpow2.f32 %v4239_v15  ;;  %v4243_v35 = vmul.f32 -1.442695, %v3727_v48  ;;  %v3697_v56 = vadd.f32 %v8311_v51, %v8271_v16  ;;  %v9998_v60 = vld [vmem:[#allocation24_spill] sm:$0xff] }
 0x276   : > { %v8359_v29 = vpop.eup %4290  ;;  %v3732_v8 = vadd.f32 %v8291_v30, %v3693_v11  ;;  %4316 = vpow2.f32 %v4240_v20  ;;  %v4244_v44 = vmul.f32 -1.442695, %v3728_v43  ;;  %v3698_v59 = vadd.f32 %v8311_v51, %v8273_v52  ;;  %v9999_v43 = vld [vmem:[#allocation6_spill] sm:$0xff] }
 0x277   : > { %v8364_v33 = vpop.eup %4292  ;;  %v3733_v0 = vadd.f32 %v8291_v30, %v3694_v22  ;;  %4318 = vpow2.f32 %v4241_v14  ;;  %v4245_v27 = vmul.f32 -1.442695, %v3729_v37  ;;  %v3699_v42 = vadd.f32 %v8311_v51, %v8277_v9  ;;  %v10002_v37 = vld [vmem:[#allocation8_spill] sm:$0xff] }
 0x278   : > { %v8369_v19 = vpop.eup %4294  ;;  %v3734_v16 = vadd.f32 %v8291_v30, %v3695_v6  ;;  %4320 = vpow2.f32 %v4242_v53  ;;  %v4246_v58 = vmul.f32 -1.442695, %v3730_v2  ;;  %v3700_v5 = vadd.f32 %v8311_v51, %v8280_v34  ;;  %v9991_v34 = vld [vmem:[#allocation23_spill] sm:$0xff]  ;;  %v10003_v53 = vld [vmem:[#allocation40_spill] sm:$0xff] }
 0x279   : > { %v8374_v55 = vpop.eup %4296  ;;  %v3735_v52 = vadd.f32 %v8291_v30, %v3696_v1  ;;  %4322 = vpow2.f32 %v4243_v35  ;;  %v4247_v23 = vmul.f32 -1.442695, %v3731_v26  ;;  %v9988_v10 = vrot.slane %v9987_v13, 2  ;;  %v10004_v26 = vld [vmem:[#allocation25_spill] sm:$0xff] }
 0x27a   : > { %v8379_v25 = vpop.eup %4298  ;;  %v9990_v62 = vrot.slane %v9989_v54, 2  ;;  %v3736_v24 = vadd.f32 %v8291_v30, %v3697_v56  ;;  %4324 = vpow2.f32 %v4244_v44  ;;  %v4248_v32 = vmul.f32 -1.442695, %v3732_v8  ;;  %v10005_v44 = vld [vmem:[#allocation38_spill] sm:$0xff]  ;;  %v10008_v54 = vld [vmem:[#allocation41_spill] sm:$0xff] }
 0x27b   : > { %v8389_v41 = vpop.eup %4300  ;;  %v2164_v51 = vrot.slane %v9991_v34, 2  ;;  %v3737_v45 = vadd.f32 %v8291_v30, %v3698_v59  ;;  %4326 = vpow2.f32 %v4245_v27  ;;  %v4249_v46 = vmul.f32 -1.442695, %v3733_v0 }
 0x27c   : > { %v8386_v9 = vsel %vm1007_vm2, %v9990_v62, %v9988_v10  ;;  %v8393_v17 = vpop.eup %4302  ;;  %v2166_v31 = vrot.slane %v9992_v38, 2  ;;  %v3738_v50 = vadd.f32 %v8291_v30, %v3699_v42  ;;  %4328 = vpow2.f32 %v4246_v58  ;;  %v10010_v38 = vld [vmem:[#allocation10_spill] sm:$0xff] }
 0x27d   : > { %v4250_v39 = vmul.f32 -1.442695, %v3734_v16  ;;  %v8397_v47 = vpop.eup %4304  ;;  %v2168_v4 = vrot.slane %v9993_v63, 2  ;;  %v3739_v36 = vadd.f32 %v8291_v30, %v3700_v5  ;;  %4330 = vpow2.f32 %v4247_v23  ;;  %v10007_v5 = vld [vmem:[#allocation9_spill] sm:$0xff] }
 0x27e   : > { %v4251_v40 = vmul.f32 -1.442695, %v3735_v52  ;;  %v8401_v12 = vpop.eup %4306  ;;  %v9995_v3 = vrot.slane %v9994_v49, 2  ;;  %v9997_v21 = vrot.slane %v9996_v28, 2  ;;  %v2169_v48 = vrot.slane %v9998_v60, 2  ;;  %v10014_v28 = vld [vmem:[#allocation62_spill] sm:$0xff] }
 0x27f   : > { %4332 = vpow2.f32 %v4248_v32  ;;  %v4252_v15 = vmul.f32 -1.442695, %v3736_v24  ;;  %v8411_v11 = vpop.eup %4308  ;;  %v10000_v20 = vrot.slane %v9999_v43, 2  ;;  %v2171_v14 = vrot.slane %v10002_v37, 2  ;;  %v10019_v37 = vld [vmem:[#allocation28_spill] sm:$0xff] }
 0x280   : > { %v8408_v61 = vsel %vm1007_vm2, %v9997_v21, %v9995_v3  ;;  %v10001_v30 = vmov %v9995_v3  ;;  %4334 = vpow2.f32 %v4249_v46  ;;  %v4253_v6 = vmul.f32 -1.442695, %v3737_v45  ;;  %v8421_v2 = vpop.eup %4310  ;;  %v10015_v21 = vld [vmem:[#allocation11_spill] sm:$0xff] }
 0x281   : > { %v8418_v22 = vsel %vm1007_vm2, %v10001_v30, %v10000_v20  ;;  %v2173_v1 = vrot.slane %v10003_v53, 2  ;;  %v2174_v35 = vrot.slane %v10004_v26, 2  ;;  %4336 = vpow2.f32 %v4250_v39  ;;  %v8425_v8 = vpop.eup %4312  ;;  %v10021_v26 = vld [vmem:[#allocation12_spill] sm:$0xff] }
 0x282   : > { %v4254_v56 = vmul.f32 -1.442695, %v3738_v50  ;;  %v10006_v59 = vrot.slane %v10005_v44, 2  ;;  %v8433_v27 = vsel %vm1007_vm2, %v2164_v51, %v2166_v31  ;;  %4338 = vpow2.f32 %v4251_v40  ;;  %v8435_v16 = vpop.eup %4314  ;;  %v10011_v50 = vld [vmem:[#allocation42_spill] sm:$0xff]  ;;  %v10013_v40 = vld [vmem:[#allocation27_spill] sm:$0xff] }
 0x283   : > { %v4255_v42 = vmul.f32 -1.442695, %v3739_v36  ;;  %v8438_v58 = vsel %vm1007_vm2, %v2168_v4, %v2169_v48  ;;  %v2176_v52 = vrot.slane %v10007_v5, 2  ;;  %4340 = vpow2.f32 %v4252_v15  ;;  %v8442_v13 = vpop.eup %4316  ;;  %v10012_v36 = vld [vmem:[#allocation61_spill] sm:$0xff]  ;;  %v10017_v15 = vld [vmem:[#allocation43_spill] sm:$0xff]  ;;  %v10024_v5 = vld [vmem:[#allocation78_spill] sm:$0xff] }
 0x284   : > { %v8430_v0 = vsel %vm1007_vm2, %v10006_v59, %v2164_v51  ;;  %v3836_v23 = vadd.f32 1.0, %v8344_v18  ;;  %v8445_v10 = vsel %vm1007_vm2, %v2169_v48, %v2171_v14  ;;  %v2178_v62 = vrot.slane %v10008_v54, 2  ;;  %v8449_v32 = vpop.eup %4318  ;;  %v10009_v51 = vld [vmem:[#allocation26_spill] sm:$0xff]  ;;  %v10016_v48 = vld [vmem:[#allocation63_spill] sm:$0xff] }
 0x285   : > { %4342 = vpow2.f32 %v4253_v6  ;;  %v3837_v24 = vadd.f32 1.0, %v8349_v57  ;;  %v8452_v34 = vsel %vm1007_vm2, %v2173_v1, %v2174_v35  ;;  %v8959_v45 = vrot.slane %v10009_v51, 2  ;;  %v8456_v46 = vpop.eup %4320  ;;  %v10020_v1 = vld [vmem:[#allocation65_spill] sm:$0xff]  ;;  %v10026_v54 = vld [vmem:[#allocation79_spill] sm:$0xff] }
 0x286   : > { %4344 = vpow2.f32 %v4254_v56  ;;  %v3838_v18 = vadd.f32 1.0, %v8354_v7  ;;  %v2181_v31 = vrot.slane %v10010_v38, 2  ;;  %v3839_v63 = vadd.f32 1.0, %v8359_v29  ;;  %v8461_v57 = vpop.eup %4322  ;;  %v10023_v56 = vld [vmem:[#allocation44_spill] sm:$0xff]  ;;  %v10062_v38 = vld [vmem:[#allocation58_spill] sm:$0xff] }
 0x287   : > { %4346 = vpow2.f32 %v4255_v42  ;;  %v8464_v4 = vsel %vm1007_vm2, %v2174_v35, %v2176_v52  ;;  %v2216_v49 = vadd.f32 %v10013_v40, %v10012_v36  ;;  %v3840_v3 = vadd.f32 1.0, %v8364_v33  ;;  %v8469_v7 = vpop.eup %4324  ;;  %v10018_v33 = vld [vmem:[#allocation64_spill] sm:$0xff]  ;;  %v10025_v52 = vld [vmem:[#allocation29_spill] sm:$0xff]  ;;  %v10028_v36 = vld [vmem:[#allocation66_spill] sm:$0xff] }
 0x288   : > { %4348 = vrcp.f32 %v3836_v23  ;;  %v2217_v60 = vadd.f32 %v10015_v21, %v10014_v28  ;;  %v2218_v43 = vadd.f32 %v10017_v15, %v10016_v48  ;;  %v3841_v29 = vadd.f32 1.0, %v8369_v19  ;;  %v8476_v20 = vpop.eup %4326  ;;  %v10022_v19 = vld [vmem:[#allocation77_spill] sm:$0xff] }
 0x289   : > { %4350 = vrcp.f32 %v3837_v24  ;;  %v8481_v30 = vsel %vm1007_vm2, %v2178_v62, %v8959_v45  ;;  %v2219_v14 = vadd.f32 %v10019_v37, %v10018_v33  ;;  %v3842_v6 = vadd.f32 1.0, %v8374_v55  ;;  %v8486_v53 = vpop.eup %4328  ;;  %v10027_v62 = vld [vmem:[#allocation13_spill] sm:$0xff]  ;;  %v10032_v33 = vld [vmem:[#allocation68_spill] sm:$0xff]  ;;  %v10033_v37 = vld [vmem:[#allocation14_spill] sm:$0xff] }
 0x28a   : > { %4352 = vrcp.f32 %v3838_v18  ;;  %v2220_v35 = vadd.f32 %v10021_v26, %v10020_v1  ;;  %v2221_v44 = vadd.f32 %v10023_v56, %v10022_v19  ;;  %v3843_v59 = vadd.f32 1.0, %v8379_v25  ;;  %v8493_v42 = vpop.eup %4330  ;;  %v10029_v40 = vld [vmem:[#allocation45_spill] sm:$0xff]  ;;  %v10030_v25 = vld [vmem:[#allocation67_spill] sm:$0xff] }
 0x28b   : > { %4354 = vrcp.f32 %v3839_v63  ;;  %v2222_v23 = vadd.f32 %v10025_v52, %v10024_v5  ;;  %v8499_v55 = vadd.f32 %v10027_v62, %v10026_v54  ;;  %v3844_v24 = vadd.f32 1.0, %v8389_v41  ;;  %v10031_v63 = vld [vmem:[#allocation30_spill] sm:$0xff]  ;;  %v10034_v41 = vld [vmem:[#allocation69_spill] sm:$0xff]  ;;  %v10037_v52 = vld [vmem:[#allocation31_spill] sm:$0xff] }
 0x28c   : > { %4356 = vrcp.f32 %v3840_v3  ;;  %v8502_v18 = vpop.eup %4332  ;;  %v8506_v28 = vadd.f32 %v10029_v40, %v10028_v36  ;;  %v8510_v21 = vadd.f32 %v10031_v63, %v10030_v25  ;;  %v3845_v48 = vadd.f32 1.0, %v8393_v17  ;;  %v10035_v3 = vld [vmem:[#allocation46_spill] sm:$0xff]  ;;  %v10038_v17 = vld [vmem:[#allocation71_spill] sm:$0xff] }
 0x28d   : > { %4358 = vrcp.f32 %v3841_v29  ;;  %v8513_v15 = vpop.eup %4334  ;;  %v8517_v1 = vadd.f32 %v10033_v37, %v10032_v33  ;;  %v8521_v26 = vadd.f32 %v10035_v3, %v10034_v41  ;;  %v3846_v19 = vadd.f32 1.0, %v8397_v47  ;;  %v10036_v5 = vld [vmem:[#allocation70_spill] sm:$0xff]  ;;  %v10039_v29 = vld [vmem:[#allocation15_spill] sm:$0xff]  ;;  %v10042_v33 = vld [vmem:[#allocation73_spill] sm:$0xff] }
 0x28e   : > { %4360 = vrcp.f32 %v3842_v6  ;;  %v8524_v56 = vpop.eup %4336  ;;  %v8528_v54 = vadd.f32 %v10037_v52, %v10036_v5  ;;  %v8532_v62 = vadd.f32 %v10039_v29, %v10038_v17  ;;  %v8537_v36 = vld [vmem:[%s8759_s2] ss:$0 sm:$0xff]  ;;  %v3847_v40 = vadd.f32 1.0, %v8401_v12  ;;  %v10040_v6 = vld [vmem:[#allocation3_spill] sm:$0xff]  ;;  %v10043_v37 = vld [vmem:[#allocation32_spill] sm:$0xff] }
 0x28f   : > { %4362 = vrcp.f32 %v3843_v59  ;;  %v8540_v47 = vpop.eup %4338  ;;  %v10041_v25 = vld [vmem:[#allocation47_spill] sm:$0xff]  ;;  %v8548_v41 = vadd.f32 %v10043_v37, %v10042_v33  ;;  %v3848_v3 = vadd.f32 1.0, %v8411_v11  ;;  %v10044_v52 = vld [vmem:[#allocation74_spill] sm:$0xff]  ;;  %v10045_v17 = vld [vmem:[#allocation16_spill] sm:$0xff]  ;;  %v3850_v45 = vadd.f32 1.0, %v8425_v8 }
 0x290   : > { %v8544_v63 = vadd.f32 %v10041_v25, %v10040_v6  ;;  %4364 = vrcp.f32 %v3844_v24  ;;  %v8551_v5 = vpop.eup %4340  ;;  %v8555_v29 = vadd.f32 %v10045_v17, %v10044_v52  ;;  %v10046_v12 = vld [vmem:[#allocation75_spill] sm:$0xff]  ;;  %v10047_v59 = vld [vmem:[#allocation48_spill] sm:$0xff]  ;;  %v3849_v6 = vadd.f32 1.0, %v8421_v2  ;;  %v10049_v37 = vld [vmem:[#allocation33_spill] sm:$0xff] }
 0x291   : > { %v8559_v39 = vadd.f32 %v10047_v59, %v10046_v12  ;;  %4366 = vrcp.f32 %v3845_v48  ;;  %v10048_v33 = vld [vmem:[#allocation76_spill] sm:$0xff]  ;;  %v2255_v24 = vadd.f32 %v8537_v36, %v2216_v49  ;;  %v2256_v2 = vadd.f32 %v8537_v36, %v2217_v60 }
 0x292   : > { %v8562_v25 = vpop.eup %4342  ;;  %v8566_v11 = vadd.f32 %v10049_v37, %v10048_v33  ;;  %4368 = vrcp.f32 %v3846_v19  ;;  %v10050_v17 = vld [vmem:[#allocation72_spill] sm:$0xff]  ;;  %v3851_v48 = vadd.f32 1.0, %v8435_v16  ;;  %v10051_v33 = vld [vmem:[#allocation2_spill] sm:$0xff]  ;;  %v2257_v8 = vadd.f32 %v8537_v36, %v2218_v43 }
 0x293   : > { %v8570_v52 = vpop.eup %4344  ;;  %v8574_v12 = vadd.f32 %v8386_v9, %v10050_v17  ;;  %4370 = vrcp.f32 %v3847_v40  ;;  %v8582_v37 = vadd.f32 %v8408_v61, %v10051_v33  ;;  %v3852_v49 = vadd.f32 1.0, %v8442_v13  ;;  %v10052_v9 = vld [vmem:[#allocation52_spill] sm:$0xff] }
 0x294   : > { %v8578_v59 = vpop.eup %4346  ;;  %4372 = vrcp.f32 %v3848_v3  ;;  %v8595_v16 = vadd.f32 %v8418_v22, %v10052_v9  ;;  %v2258_v60 = vadd.f32 %v8537_v36, %v2219_v14  ;;  %v3853_v61 = vadd.f32 1.0, %v8449_v32 }
 0x295   : > { %v4349_v19 = vpop.eup %4348  ;;  %4374 = vrcp.f32 %v3849_v6  ;;  %v2259_v13 = vadd.f32 %v8537_v36, %v2220_v35  ;;  %v3854_v40 = vadd.f32 1.0, %v8456_v46  ;;  %v2260_v33 = vadd.f32 %v8537_v36, %v2221_v44 }
 0x296   : > { %v4351_v43 = vpop.eup %4350  ;;  %4376 = vrcp.f32 %v3850_v45  ;;  %v3932_v3 = vmul.f32 %v4349_v19, %v2255_v24  ;;  %v3855_v22 = vadd.f32 1.0, %v8461_v57  ;;  %v2261_v32 = vadd.f32 %v8537_v36, %v2222_v23 }
 0x297   : > { %v4353_v17 = vpop.eup %4352  ;;  %4378 = vrcp.f32 %v3851_v48  ;;  %v3933_v9 = vmul.f32 %v4351_v43, %v2256_v2  ;;  %v3856_v6 = vadd.f32 1.0, %v8469_v7  ;;  %v2262_v46 = vadd.f32 %v8537_v36, %v8499_v55 }
 0x298   : > { %v4355_v14 = vpop.eup %4354  ;;  %4380 = vrcp.f32 %v3852_v49  ;;  %v3934_v35 = vmul.f32 %v4353_v17, %v2257_v8  ;;  %3964 = vst.msk [vmem:[%s8591_s17] sm:$0xff] %vm2287_vm3, %v3932_v3  ;;  %v3857_v44 = vadd.f32 1.0, %v8476_v20  ;;  %v2263_v23 = vadd.f32 %v8537_v36, %v8506_v28 }
 0x299   : > { %v4357_v45 = vpop.eup %4356  ;;  %4382 = vrcp.f32 %v3853_v61  ;;  %v3935_v57 = vmul.f32 %v4355_v14, %v2258_v60  ;;  %3965 = vst.msk [vmem:[%s8591_s17 + $0x8] sm:$0xff] %vm2287_vm3, %v3933_v9  ;;  %v3858_v7 = vadd.f32 1.0, %v8486_v53  ;;  %v2264_v55 = vadd.f32 %v8537_v36, %v8510_v21 }
 0x29a   : > { %v4359_v24 = vpop.eup %4358  ;;  %4384 = vrcp.f32 %v3854_v40  ;;  %v3936_v2 = vmul.f32 %v4357_v45, %v2259_v13  ;;  %3966 = vst.msk [vmem:[%s8591_s17 + $0x10] sm:$0xff] %vm2287_vm3, %v3934_v35  ;;  %v3859_v20 = vadd.f32 1.0, %v8493_v42  ;;  %v2265_v28 = vadd.f32 %v8537_v36, %v8517_v1 }
 0x29b   : > { %v4361_v48 = vpop.eup %4360  ;;  %4386 = vrcp.f32 %v3855_v22  ;;  %v3937_v8 = vmul.f32 %v4359_v24, %v2260_v33  ;;  %3967 = vst.msk [vmem:[%s8591_s17 + $0x18] sm:$0xff] %vm2287_vm3, %v3935_v57  ;;  %v3860_v53 = vadd.f32 1.0, %v8502_v18  ;;  %v2266_v21 = vadd.f32 %v8537_v36, %v8521_v26  ;;  %v10054_v57 = vld [vmem:[#allocation54_spill] sm:$0xff] }
 0x29c   : > { %v4363_v49 = vpop.eup %4362  ;;  %4388 = vrcp.f32 %v3856_v6  ;;  %v3938_v19 = vmul.f32 %v4361_v48, %v2261_v32  ;;  %3968 = vst.msk [vmem:[%s8591_s17 + $0x20] sm:$0xff] %vm2287_vm3, %v3936_v2  ;;  %v3861_v42 = vadd.f32 1.0, %v8513_v15  ;;  %v2267_v1 = vadd.f32 %v8537_v36, %v8528_v54 }
 0x29d   : > { %v4365_v60 = vpop.eup %4364  ;;  %4390 = vrcp.f32 %v3857_v44  ;;  %v3939_v61 = vmul.f32 %v4363_v49, %v2262_v46  ;;  %3969 = vst.msk [vmem:[%s8591_s17 + $0x28] sm:$0xff] %vm2287_vm3, %v3937_v8  ;;  %v3862_v18 = vadd.f32 1.0, %v8524_v56  ;;  %v2268_v26 = vadd.f32 %v8537_v36, %v8532_v62 }
 0x29e   : > { %v4367_v43 = vpop.eup %4366  ;;  %4392 = vrcp.f32 %v3858_v7  ;;  %v3940_v13 = vmul.f32 %v4365_v60, %v2263_v23  ;;  %3970 = vst.msk [vmem:[%s8591_s17 + $0x30] sm:$0xff] %vm2287_vm3, %v3938_v19  ;;  %v3863_v15 = vadd.f32 1.0, %v8540_v47  ;;  %v2269_v54 = vadd.f32 %v8537_v36, %v8544_v63  ;;  %v10055_v7 = vld [vmem:[#allocation55_spill] sm:$0xff]  ;;  %v10059_v60 = vld [vmem:[#allocation36_spill] sm:$0xff] }
 0x29f   : > { %v4369_v40 = vpop.eup %4368  ;;  %4394 = vrcp.f32 %v3859_v20  ;;  %v3941_v3 = vmul.f32 %v4367_v43, %v2264_v55  ;;  %3971 = vst.msk [vmem:[%s8591_s17 + $0x38] sm:$0xff] %vm2287_vm3, %v3939_v61  ;;  %v3864_v56 = vadd.f32 1.0, %v8551_v5  ;;  %v2270_v62 = vadd.f32 %v8537_v36, %v8548_v41  ;;  %v10056_v55 = vld [vmem:[#allocation56_spill] sm:$0xff] }
 0x2a0   : > { %v4371_v17 = vpop.eup %4370  ;;  %4396 = vrcp.f32 %v3860_v53  ;;  %v3942_v33 = vmul.f32 %v4369_v40, %v2265_v28  ;;  %3972 = vst.msk [vmem:[%s8591_s17 + $0x40] sm:$0xff] %vm2287_vm3, %v3940_v13  ;;  %v3865_v47 = vadd.f32 1.0, %v8562_v25  ;;  %v2271_v63 = vadd.f32 %v8537_v36, %v8555_v29  ;;  %v10053_v29 = vld [vmem:[#allocation53_spill] sm:$0xff] }
 0x2a1   : > { %v4373_v22 = vpop.eup %4372  ;;  %4398 = vrcp.f32 %v3861_v42  ;;  %v3943_v9 = vmul.f32 %v4371_v17, %v2266_v21  ;;  %3973 = vst.msk [vmem:[%s8591_s17 + $0x48] sm:$0xff] %vm2287_vm3, %v3941_v3  ;;  %v3866_v5 = vadd.f32 1.0, %v8570_v52  ;;  %v2272_v41 = vadd.f32 %v8537_v36, %v8559_v39  ;;  %v10058_v28 = vld [vmem:[#allocation57_spill] sm:$0xff]  ;;  %v10060_v21 = vld [vmem:[#allocation60_spill] sm:$0xff] }
 0x2a2   : > { %v4375_v14 = vpop.eup %4374  ;;  %4400 = vrcp.f32 %v3862_v18  ;;  %v3944_v32 = vmul.f32 %v4373_v22, %v2267_v1  ;;  %3974 = vst.msk [vmem:[%s8591_s17 + $0x50] sm:$0xff] %vm2287_vm3, %v3942_v33  ;;  %v3867_v25 = vadd.f32 1.0, %v8578_v59  ;;  %v2238_v46 = vadd.f32 %v8430_v0, %v10053_v29  ;;  %v10063_v1 = vld [vmem:[#allocation59_spill] sm:$0xff] }
 0x2a3   : > { %v4377_v6 = vpop.eup %4376  ;;  %4402 = vrcp.f32 %v3863_v15  ;;  %v3945_v35 = vmul.f32 %v4375_v14, %v2268_v26  ;;  %3975 = vst.msk [vmem:[%s8591_s17 + $0x58] sm:$0xff] %vm2287_vm3, %v3943_v9  ;;  %v2273_v52 = vadd.f32 %v8537_v36, %v8566_v11  ;;  %v2239_v59 = vadd.f32 %v8433_v27, %v10054_v57  ;;  %v10064_v15 = vld [vmem:[#allocation17_spill] sm:$0xff] }
 0x2a4   : > { %v4379_v45 = vpop.eup %4378  ;;  %4404 = vrcp.f32 %v3864_v56  ;;  %v3946_v44 = vmul.f32 %v4377_v6, %v2269_v54  ;;  %3976 = vst.msk [vmem:[%s8591_s17 + $0x60] sm:$0xff] %vm2287_vm3, %v3944_v32  ;;  %v2274_v24 = vadd.f32 %v8537_v36, %v8574_v12  ;;  %v2240_v11 = vadd.f32 %v8438_v58, %v10055_v7  ;;  %v10065_v56 = vld [vmem:[#allocation4_spill] sm:$0xff] }
 0x2a5   : > { %v4381_v39 = vpop.eup %4380  ;;  %4406 = vrcp.f32 %v3865_v47  ;;  %v3947_v23 = vmul.f32 %v4379_v45, %v2270_v62  ;;  %3977 = vst.msk [vmem:[%s8591_s17 + $0x68] sm:$0xff] %vm2287_vm3, %v3945_v35  ;;  %v2275_v2 = vadd.f32 %v8537_v36, %v8582_v37  ;;  %v2241_v12 = vadd.f32 %v8445_v10, %v10056_v55 }
 0x2a6   : > { %v4383_v0 = vpop.eup %4382  ;;  %4408 = vrcp.f32 %v3866_v5  ;;  %v3948_v48 = vmul.f32 %v4381_v39, %v2271_v63  ;;  %3978 = vst.msk [vmem:[%s8591_s17 + $0x70] sm:$0xff] %vm2287_vm3, %v3946_v44  ;;  %v2276_v20 = vadd.f32 %v8537_v36, %v8595_v16  ;;  %v10057_v37 = vrot.slane %v10009_v51, 2 }
 0x2a7   : > { %v4385_v27 = vpop.eup %4384  ;;  %4410 = vrcp.f32 %v3867_v25  ;;  %v3949_v8 = vmul.f32 %v4383_v0, %v2272_v41  ;;  %3979 = vst.msk [vmem:[%s8591_s17 + $0x78] sm:$0xff] %vm2287_vm3, %v3947_v23  ;;  %v2242_v53 = vadd.f32 %v8452_v34, %v10058_v28  ;;  %v2277_v10 = vadd.f32 %v8537_v36, %v2238_v46 }
 0x2a8   : > { %v4387_v58 = vpop.eup %4386  ;;  %v2182_v49 = vsel %vm1007_vm2, %v10057_v37, %v2181_v31  ;;  %v3950_v19 = vmul.f32 %v4385_v27, %v2273_v52  ;;  %3980 = vst.msk [vmem:[%s8591_s17 + $0x80] sm:$0xff] %vm2287_vm3, %v3948_v48  ;;  %v10061_v42 = vrot.slane %v10060_v21, 1  ;;  %v2243_v51 = vadd.f32 %v8464_v4, %v10062_v38 }
 0x2a9   : > { %v4389_v16 = vpop.eup %4388  ;;  %v2278_v43 = vadd.f32 %v8537_v36, %v2239_v59  ;;  %v3951_v31 = vmul.f32 %v4387_v58, %v2274_v24  ;;  %3981 = vst.msk [vmem:[%s8591_s17 + $0x88] sm:$0xff] %vm2287_vm3, %v3949_v8  ;;  %v2244_v18 = vadd.f32 %v8481_v30, %v10063_v1  ;;  %v2279_v13 = vadd.f32 %v8537_v36, %v2240_v11 }
 0x2aa   : > { %v2010_v61 = vadd.f32 %v10061_v42, %v10059_v60  ;;  %v4391_v34 = vpop.eup %4390  ;;  %v3952_v40 = vmul.f32 %v4389_v16, %v2275_v2  ;;  %3982 = vst.msk [vmem:[%s8591_s17 + $0x90] sm:$0xff] %vm2287_vm3, %v3950_v19  ;;  %v2245_v3 = vadd.f32 %v2182_v49, %v10064_v15  ;;  %v2280_v4 = vadd.f32 %v8537_v36, %v2241_v12 }
 0x2ab   : > { %v4393_v26 = vpop.eup %4392  ;;  %v3953_v17 = vmul.f32 %v4391_v34, %v2276_v20  ;;  %3983 = vst.msk [vmem:[%s8591_s17 + $0x98] sm:$0xff] %vm2287_vm3, %v3951_v31  ;;  %v10066_v33 = vrot.slane %v10011_v50, 2  ;;  %v2281_v22 = vadd.f32 %v8537_v36, %v2242_v53  ;;  %v2282_v63 = vadd.f32 %v8537_v36, %v2243_v51 }
 0x2ac   : > { %v4395_v54 = vpop.eup %4394  ;;  %v3954_v62 = vmul.f32 %v4393_v26, %v2277_v10  ;;  %3984 = vst.msk [vmem:[%s8591_s17 + $0xa0] sm:$0xff] %vm2287_vm3, %v3952_v40  ;;  %v2283_v6 = vadd.f32 %v8537_v36, %v2244_v18  ;;  %v2284_v35 = vadd.f32 %v8537_v36, %v2245_v3 }
 0x2ad   : > { %v2246_v30 = vadd.f32 %v10066_v33, %v10065_v56  ;;  %v4397_v47 = vpop.eup %4396  ;;  %v10067_v9 = vmov %v10066_v33  ;;  %v3955_v5 = vmul.f32 %v4395_v54, %v2278_v43  ;;  %3985 = vst.msk [vmem:[%s8591_s17 + $0xa8] sm:$0xff] %vm2287_vm3, %v3953_v17 }
 0x2ae   : > { %v2247_v14 = vadd.f32 %v10067_v9, %v2010_v61  ;;  %v4399_v32 = vpop.eup %4398  ;;  %v3956_v41 = vmul.f32 %v4397_v47, %v2279_v13  ;;  %3986 = vst.msk [vmem:[%s8591_s17 + $0xb0] sm:$0xff] %vm2287_vm3, %v3954_v62 }
 0x2af   : > { %v4401_v25 = vpop.eup %4400  ;;  %v3957_v50 = vmul.f32 %v4399_v32, %v2280_v4  ;;  %3987 = vst.msk [vmem:[%s8591_s17 + $0xb8] sm:$0xff] %vm2287_vm3, %v3955_v5  ;;  %v2285_v29 = vadd.f32 %v8537_v36, %v2246_v30 }
 0x2b0   : > { %v4403_v45 = vpop.eup %4402  ;;  %v3958_v46 = vmul.f32 %v4401_v25, %v2281_v22  ;;  %3988 = vst.msk [vmem:[%s8591_s17 + $0xc0] sm:$0xff] %vm2287_vm3, %v3956_v41  ;;  %v2286_v44 = vadd.f32 %v8537_v36, %v2247_v14 }
 0x2b1   : > { %v4405_v52 = vpop.eup %4404  ;;  %v3959_v39 = vmul.f32 %v4403_v45, %v2282_v63  ;;  %3989 = vst.msk [vmem:[%s8591_s17 + $0xc8] sm:$0xff] %vm2287_vm3, %v3957_v50 }
 0x2b2   : > { %v4407_v57 = vpop.eup %4406  ;;  %v3960_v59 = vmul.f32 %v4405_v52, %v2283_v6  ;;  %3990 = vst.msk [vmem:[%s8591_s17 + $0xd0] sm:$0xff] %vm2287_vm3, %v3958_v46 }
 0x2b3   : > { %v4409_v24 = vpop.eup %4408  ;;  %v3961_v23 = vmul.f32 %v4407_v57, %v2284_v35  ;;  %3991 = vst.msk [vmem:[%s8591_s17 + $0xd8] sm:$0xff] %vm2287_vm3, %v3959_v39 }
 0x2b4   : > { %v4411_v0 = vpop.eup %4410  ;;  %v3962_v7 = vmul.f32 %v4409_v24, %v2285_v29  ;;  %3992 = vst.msk [vmem:[%s8591_s17 + $0xe0] sm:$0xff] %vm2287_vm3, %v3960_v59 }
 0x2b5   : > { %v3963_v11 = vmul.f32 %v4411_v0, %v2286_v44  ;;  %3993 = vst.msk [vmem:[%s8591_s17 + $0xe8] sm:$0xff] %vm2287_vm3, %v3961_v23 }
 0x2b6   : > { %3994 = vst.msk [vmem:[%s8591_s17 + $0xf0] sm:$0xff] %vm2287_vm3, %v3962_v7 }
 0x2b7   : > { %3995 = vst.msk [vmem:[%s8591_s17 + $0xf8] sm:$0xff] %vm2287_vm3, %v3963_v11 }
 0x2b8 PF: > { %s18_s29 = sadd.s32 1, %s4466_s29   ;;  %s10068_s27 = smov %s4462_s28 }
 0x2b9   : > { %p15_p5 = scmp.ge.s32.totalorder %s18_s29, 4   ;;  %s10069_s28 = smov %s10071_s30 }
 0x2bb   :  { %17 = sbr.rel (!%p15_p5) target bundleno = 2 (0x2), region = 103 }

</bundles_post_ra>
